<compile_context>
chip_gen: v7x
topology: tpu7x:2x2x1
jax: 0.10.0
libtpu: 0.0.40
codegen_flags: <defaults>
</compile_context>

<pallas_src>
import jax
import jax.numpy as jnp
from jax.experimental import pallas as pl
from jax.experimental.pallas import tpu as pltpu

ATTACK_PAD = -1e10  # logit for padded / out-of-range enemy slots


def _actor_kernel(x_full_ref, idx_ref, mask_ref,
                  w1_ref, b1_ref, w1ae_ref, w2f_ref, b2f_ref,
                  w2abd_ref, b2a_ref, out_ref):
    N, _ = x_full_ref.shape
    TN, E = idx_ref.shape
    H = w1ae_ref.shape[1]
    H3 = w2f_ref.shape[0]            # 3 * H
    F = w2f_ref.shape[1]             # move_dim + 1 + 3
    MV1 = F - 3                      # move_dim + 1 columns before the 3 logits

    cd = w1_ref.dtype                # MXU operand dtype (f32 or bf16)

    # This tile's node rows, sliced out of the VMEM-resident full x.
    start = pl.multiple_of(pl.program_id(0) * TN, TN)
    x_tile = x_full_ref[pl.ds(start, TN), :]                      # [TN, D]

    # ---- fused first layer for every head that reads x ---------------------
    # columns: [ move-hidden | hold-hidden | diffpool-hidden | attack-ally ]
    z = jnp.dot(x_tile, w1_ref[...],
                preferred_element_type=jnp.float32) + b1_ref[...]
    z_mhp = jnp.maximum(z[:, :H3], 0.0)    # ReLU for move / hold / diffpool
    z_att_ally = z[:, H3:]                 # attack ally half (+bias), ReLU later

    # ---- fused (block-diagonal) second layer: move | hold | diffpool -------
    fused = jnp.dot(z_mhp.astype(cd), w2f_ref[...],
                    preferred_element_type=jnp.float32) + b2f_ref[...]
    logits = fused[:, MV1:]                                       # 3 logits
    m = jnp.max(logits, axis=-1, keepdims=True)
    exp_l = jnp.exp(logits - m)
    prob = exp_l / jnp.sum(exp_l, axis=-1, keepdims=True)         # exact softmax

    # ---- attack head: per enemy slot, gather-by-one-hot matmul -------------
    # enemy_e[n, :] = x[attack_idx[n, e], :] realized as one_hot_e @ x (MXU;
    # exact row selection, operands stay in VMEM, no HBM gather round trip).
    # TODO(synk): for very large graphs (one-hot gather is O(N^2 * E) MACs),
    # switch to a DMA row-gather from x kept in pl.ANY/HBM.
    x_full = x_full_ref[...]
    node_iota = jax.lax.broadcasted_iota(jnp.int32, (TN, N), 1)
    h_slots = []
    for slot in range(E):                                         # static unroll
        idx_col = idx_ref[:, slot:slot + 1]                       # [TN, 1] i32
        one_hot = (node_iota == idx_col).astype(cd)               # [TN, N]
        enemy = jnp.dot(one_hot, x_full,
                        preferred_element_type=jnp.float32)       # [TN, D]
        h = jnp.dot(enemy.astype(cd), w1ae_ref[...],
                    preferred_element_type=jnp.float32) + z_att_ally
        h_slots.append(jnp.maximum(h, 0.0))                       # [TN, H]
    h_all = jnp.concatenate(h_slots, axis=-1)                     # [TN, E*H]
    # block-diagonal second layer -> lane-dense [TN, E] attack slab
    attack = jnp.dot(h_all.astype(cd), w2abd_ref[...],
                     preferred_element_type=jnp.float32) + b2a_ref[...]
    attack = jnp.where(mask_ref[...] > 0.5, attack, ATTACK_PAD)   # mask in-kernel

    # ---- single packed output slab: [ move | hold | prob | attack ] --------
    out_ref[...] = jnp.concatenate([fused[:, :MV1], prob, attack], axis=-1)


def pack_actor_params(params, move_dim=4, maximum_num_enemy=8,
                      compute_dtype=jnp.float32):
    """One-time host-side weight packing (hoisted out of the per-call forward)."""
    D = params['w1m'].shape[0]
    H = params['w1m'].shape[1]
    E = maximum_num_enemy
    F = move_dim + 1 + 3
    cd = compute_dtype
    f32 = jnp.float32

    w1a = params['w1a']                                  # [2D, H]: enemy | ally
    w1_all = jnp.concatenate(
        [params['w1m'], params['w1h'], params['w1p'], w1a[D:]], axis=1).astype(cd)
    b1_all = jnp.concatenate(
        [params['b1m'], params['b1h'], params['b1p'], params['b1a']],
        axis=1).astype(f32)
    w1ae = w1a[:D].astype(cd)                            # enemy half of layer 1
    # NOTE(bf16 path): the attack first layer is two bf16 matmuls (enemy half +
    # ally half) summed in f32, vs. one concatenated [., 2D] bf16 matmul in the
    # reference module -> tiny rounding difference (covered by 5e-2 tolerance).

    w2f = jnp.zeros((3 * H, F), f32)                     # block-diag second layer
    w2f = w2f.at[0:H, 0:move_dim].set(params['w2m'])
    w2f = w2f.at[H:2 * H, move_dim:move_dim + 1].set(params['w2h'])
    w2f = w2f.at[2 * H:3 * H, move_dim + 1:].set(params['w2p'])
    w2f = w2f.astype(cd)
    b2f = jnp.concatenate(
        [params['b2m'], params['b2h'], params['b2p']], axis=1).astype(f32)

    w2abd = jnp.zeros((E * H, E), f32)                   # block-diag attack layer 2
    for e in range(E):
        w2abd = w2abd.at[e * H:(e + 1) * H, e:e + 1].set(params['w2a'])
    w2abd = w2abd.astype(cd)
    b2a = jnp.asarray(jnp.broadcast_to(params['b2a'].astype(f32), (1, E)))

    return dict(w1_all=w1_all, b1_all=b1_all, w1ae=w1ae, w2f=w2f, b2f=b2f,
                w2abd=w2abd, b2a=b2a, move_dim=move_dim, E=E,
                compute_dtype=cd)


def hierarchical_actor_forward(node_feature, attack_idx, attack_mask, packed,
                               tile_n=None, core_parallel=False):
    """Returns (move_argument, hold_argument, attack_argument, high_level_prob)."""
    N, D = node_feature.shape
    E = attack_idx.shape[1]
    assert E == packed['E']
    move_dim = packed['move_dim']
    F = move_dim + 1 + 3
    cd = packed['compute_dtype']

    # Few, large grid steps: the kernel is overhead-bound at these shapes, so
    # default to a single step (also optimal for single-TensorCore v5e/v6e).
    if tile_n is None:
        tile_n = min(N, 1024)
    tile_n = min(tile_n, N)
    assert N % tile_n == 0, "N must be a multiple of tile_n (pad the graph)"
    num_tiles = N // tile_n

    x = node_feature.astype(cd)
    idx = attack_idx.astype(jnp.int32)
    mask = attack_mask.astype(jnp.float32)

    weights = [packed['w1_all'], packed['b1_all'], packed['w1ae'],
               packed['w2f'], packed['b2f'], packed['w2abd'], packed['b2a']]

    def full_spec(a):
        return pl.BlockSpec(a.shape, lambda i: (0,) * a.ndim)

    in_specs = ([full_spec(x),                                   # resident x (gather source)
                 pl.BlockSpec((tile_n, E), lambda i: (i, 0)),    # attack_idx tile
                 pl.BlockSpec((tile_n, E), lambda i: (i, 0))]    # attack_mask tile
                + [full_spec(w) for w in weights])

    if core_parallel:
        # v7x: shard the node-tile axis across both TensorCores.  Use only with
        # num_tiles an even multiple of the core count.
        dim_sem = (pltpu.CORE_PARALLEL,)
    else:
        dim_sem = ("parallel",)

    out = pl.pallas_call(
        _actor_kernel,
        out_shape=jax.ShapeDtypeStruct((N, F + E), jnp.float32),
        grid_spec=pltpu.PrefetchScalarGridSpec(
            num_scalar_prefetch=0,
            grid=(num_tiles,),
            in_specs=in_specs,
            out_specs=pl.BlockSpec((tile_n, F + E), lambda i: (i, 0)),
        ),
        compiler_params=pltpu.CompilerParams(dimension_semantics=dim_sem),
    )(x, idx, mask, *weights)

    move = out[:, :move_dim]
    hold = out[:, move_dim:move_dim + 1]
    prob = out[:, move_dim + 1:F]
    attack = out[:, F:]
    return move, hold, attack, prob


def init_params(key, node_input_dim, num_neurons, move_dim):
    """Deterministic synthetic parameters matching the module's MLP shapes."""
    H = num_neurons

    def dense(k, fan_in, fan_out):
        k1, k2 = jax.random.split(k)
        w = jax.random.normal(k1, (fan_in, fan_out), jnp.float32) / jnp.sqrt(
            jnp.float32(fan_in))
        b = 0.01 * jax.random.normal(k2, (1, fan_out), jnp.float32)
        return w, b

    ks = jax.random.split(key, 8)
    p = {}
    p['w1m'], p['b1m'] = dense(ks[0], node_input_dim, H)
    p['w2m'], p['b2m'] = dense(ks[1], H, move_dim)
    p['w1h'], p['b1h'] = dense(ks[2], node_input_dim, H)
    p['w2h'], p['b2h'] = dense(ks[3], H, 1)
    p['w1a'], p['b1a'] = dense(ks[4], 2 * node_input_dim, H)  # concat(enemy, ally)
    p['w2a'], p['b2a'] = dense(ks[5], H, 1)
    p['w1p'], p['b1p'] = dense(ks[6], node_input_dim, H)
    p['w2p'], p['b2p'] = dense(ks[7], H, 3)
    return p


def reference_forward(node_feature, attack_idx, attack_mask, params, move_dim,
                      compute_dtype=jnp.float32):
    """Pure-JAX reference (optionally with matched bf16 operand casting)."""
    N, D = node_feature.shape
    E = attack_idx.shape[1]
    cd = compute_dtype

    def mlp2(x, w1, b1, w2, b2):
        h = jnp.maximum(
            jnp.dot(x.astype(cd), w1.astype(cd),
                    preferred_element_type=jnp.float32) + b1, 0.0)
        return jnp.dot(h.astype(cd), w2.astype(cd),
                       preferred_element_type=jnp.float32) + b2

    move = mlp2(node_feature, params['w1m'], params['b1m'],
                params['w2m'], params['b2m'])
    hold = mlp2(node_feature, params['w1h'], params['b1h'],
                params['w2h'], params['b2h'])
    enemy_feat = node_feature[attack_idx.reshape(-1)]
    ally_rep = jnp.repeat(node_feature, E, axis=0)
    pair = jnp.concatenate([enemy_feat, ally_rep], axis=-1)
    att = mlp2(pair, params['w1a'], params['b1a'],
               params['w2a'], params['b2a']).reshape(N, E)
    att = jnp.where(attack_mask > 0.5, att, ATTACK_PAD)
    logits = mlp2(node_feature, params['w1p'], params['b1p'],
                  params['w2p'], params['b2p'])
    prob = jax.nn.softmax(logits, axis=-1)
    return move, hold, att, prob


if __name__ == "__main__":
    # Small, module-consistent shapes.
    N = 256                # total graph nodes (allies + enemies)
    node_input_dim = 32    # hyper_param['node_input_dim']
    num_neurons = 64       # hyper_param['num_neurons']
    move_dim = 4
    maximum_num_enemy = 8  # E

    key = jax.random.PRNGKey(0)
    k_feat, k_idx, k_mask, k_param = jax.random.split(key, 4)

    node_feature = jax.random.normal(k_feat, (N, node_input_dim), jnp.float32)
    attack_idx = jax.random.randint(k_idx, (N, maximum_num_enemy), 0, N)
    attack_mask = (jax.random.uniform(k_mask, (N, maximum_num_enemy)) < 0.6
                   ).astype(jnp.float32)

    params = init_params(k_param, node_input_dim, num_neurons, move_dim)

    # ---- f32 path, single grid step (default) ----
    packed32 = pack_actor_params(params, move_dim, maximum_num_enemy,
                                 compute_dtype=jnp.float32)
    move, hold, attack, prob = hierarchical_actor_forward(
        node_feature, attack_idx, attack_mask, packed32)
    jax.block_until_ready((move, hold, attack, prob))

    r_move, r_hold, r_attack, r_prob = reference_forward(
        node_feature, attack_idx, attack_mask, params, move_dim)
    assert move.shape == (N, move_dim)
    assert hold.shape == (N, 1)
    assert attack.shape == (N, maximum_num_enemy)
    assert prob.shape == (N, 3)
    assert jnp.allclose(move, r_move, atol=1e-4, rtol=1e-4)
    assert jnp.allclose(hold, r_hold, atol=1e-4, rtol=1e-4)
    # gather-by-one-hot matmul + block-diag layer 2 -> slightly different f32
    # rounding/accumulation order than the reference's exact take()+matmul
    assert jnp.allclose(attack, r_attack, atol=1e-3, rtol=1e-3)
    assert jnp.allclose(prob, r_prob, atol=1e-4, rtol=1e-4)   # exact softmax now
    assert jnp.allclose(jnp.sum(prob, axis=-1), 1.0, atol=1e-5)

    # ---- tiled path (2 grid steps) must agree with the single-step path ----
    move2, hold2, attack2, prob2 = hierarchical_actor_forward(
        node_feature, attack_idx, attack_mask, packed32, tile_n=128)
    jax.block_until_ready((move2, hold2, attack2, prob2))
    assert jnp.allclose(move2, move, atol=1e-5, rtol=1e-5)
    assert jnp.allclose(hold2, hold, atol=1e-5, rtol=1e-5)
    assert jnp.allclose(attack2, attack, atol=1e-5, rtol=1e-5)
    assert jnp.allclose(prob2, prob, atol=1e-5, rtol=1e-5)

    # ---- bf16 MXU operands (native on v5e/v6e/v7x), vs matched-cast reference ----
    packed_bf16 = pack_actor_params(params, move_dim, maximum_num_enemy,
                                    compute_dtype=jnp.bfloat16)
    bmove, bhold, battack, bprob = hierarchical_actor_forward(
        node_feature, attack_idx, attack_mask, packed_bf16)
    jax.block_until_ready((bmove, bhold, battack, bprob))
    b_move, b_hold, b_attack, b_prob = reference_forward(
        node_feature, attack_idx, attack_mask, params, move_dim,
        compute_dtype=jnp.bfloat16)
    assert jnp.allclose(bmove, b_move, atol=5e-2, rtol=5e-2)
    assert jnp.allclose(bhold, b_hold, atol=5e-2, rtol=5e-2)
    assert jnp.allclose(battack, b_attack, atol=5e-2, rtol=5e-2)
    assert jnp.allclose(bprob, b_prob, atol=2e-2, rtol=2e-2)

    print("KERNEL_OK")
</pallas_src>

<mosaic_0001>
module attributes {stable_mosaic.version = 11 : i64} {
  func.func @_actor_kernel(%arg0: i32, %arg1: memref<256x32xf32, #tpu.memory_space<vmem>>, %arg2: memref<256x8xi32, #tpu.memory_space<vmem>>, %arg3: memref<256x8xf32, #tpu.memory_space<vmem>>, %arg4: memref<32x256xf32, #tpu.memory_space<vmem>>, %arg5: memref<1x256xf32, #tpu.memory_space<vmem>>, %arg6: memref<32x64xf32, #tpu.memory_space<vmem>>, %arg7: memref<192x8xf32, #tpu.memory_space<vmem>>, %arg8: memref<1x8xf32, #tpu.memory_space<vmem>>, %arg9: memref<512x8xf32, #tpu.memory_space<vmem>>, %arg10: memref<1x8xf32, #tpu.memory_space<vmem>>, %arg11: memref<256x16xf32, #tpu.memory_space<vmem>>) attributes {dimension_semantics = [#tpu.dimension_semantics<parallel>], iteration_bounds = array<i64: 1>, scalar_prefetch = 0 : i64, scratch_operands = 0 : i64, tpu.core_type = #tpu.core_type<tc>, window_params = [{pipeline_mode = #tpu.pipeline_mode<synchronous>, transform_indices = @transform_0, window_bounds = array<i64: 256, 32>}, {transform_indices = @transform_1, window_bounds = array<i64: 256, 8>}, {transform_indices = @transform_2, window_bounds = array<i64: 256, 8>}, {pipeline_mode = #tpu.pipeline_mode<synchronous>, transform_indices = @transform_3, window_bounds = array<i64: 32, 256>}, {pipeline_mode = #tpu.pipeline_mode<synchronous>, transform_indices = @transform_4, window_bounds = array<i64: 1, 256>}, {pipeline_mode = #tpu.pipeline_mode<synchronous>, transform_indices = @transform_5, window_bounds = array<i64: 32, 64>}, {pipeline_mode = #tpu.pipeline_mode<synchronous>, transform_indices = @transform_6, window_bounds = array<i64: 192, 8>}, {pipeline_mode = #tpu.pipeline_mode<synchronous>, transform_indices = @transform_7, window_bounds = array<i64: 1, 8>}, {pipeline_mode = #tpu.pipeline_mode<synchronous>, transform_indices = @transform_8, window_bounds = array<i64: 512, 8>}, {pipeline_mode = #tpu.pipeline_mode<synchronous>, transform_indices = @transform_9, window_bounds = array<i64: 1, 8>}, {transform_indices = @transform_10, window_bounds = array<i64: 256, 16>}]} {
    %c256_i32 = arith.constant 256 : i32
    %0 = arith.muli %arg0, %c256_i32 : i32
    %1 = tpu.assume_multiple %0, 256 : i32
    %2 = arith.index_cast %1 : i32 to index
    %c0 = arith.constant 0 : index
    %3 = vector.load %arg1[%2, %c0] : memref<256x32xf32, #tpu.memory_space<vmem>>, vector<256x32xf32>
    %c0_0 = arith.constant 0 : index
    %c0_1 = arith.constant 0 : index
    %4 = vector.load %arg4[%c0_0, %c0_1] : memref<32x256xf32, #tpu.memory_space<vmem>>, vector<32x256xf32>
    %cst = arith.constant dense<0.000000e+00> : vector<256x256xf32>
    %5 = tpu.matmul %3, %4, %cst {dimension_numbers = #tpu.dot_dimension_numbers<[1], [0], [0], [1], [0, 0, 1, 1], [], []>} : vector<256x32xf32>, vector<32x256xf32>, vector<256x256xf32> -> vector<256x256xf32>
    %c0_2 = arith.constant 0 : index
    %c0_3 = arith.constant 0 : index
    %6 = vector.load %arg5[%c0_2, %c0_3] : memref<1x256xf32, #tpu.memory_space<vmem>>, vector<1x256xf32>
    %7 = vector.broadcast %6 : vector<1x256xf32> to vector<256x256xf32>
    %8 = arith.addf %5, %7 : vector<256x256xf32>
    %9 = vector.extract_strided_slice %8 {offsets = [0, 0], sizes = [256, 192], strides = [1, 1]} : vector<256x256xf32> to vector<256x192xf32>
    %cst_4 = arith.constant 0.000000e+00 : f32
    %10 = vector.broadcast %cst_4 : f32 to vector<256x192xf32>
    %11 = arith.maximumf %9, %10 : vector<256x192xf32>
    %12 = vector.extract_strided_slice %8 {offsets = [0, 192], sizes = [256, 64], strides = [1, 1]} : vector<256x256xf32> to vector<256x64xf32>
    %c0_5 = arith.constant 0 : index
    %c0_6 = arith.constant 0 : index
    %13 = vector.load %arg7[%c0_5, %c0_6] : memref<192x8xf32, #tpu.memory_space<vmem>>, vector<192x8xf32>
    %cst_7 = arith.constant dense<0.000000e+00> : vector<256x8xf32>
    %14 = tpu.matmul %11, %13, %cst_7 {dimension_numbers = #tpu.dot_dimension_numbers<[1], [0], [0], [1], [0, 0, 1, 1], [], []>} : vector<256x192xf32>, vector<192x8xf32>, vector<256x8xf32> -> vector<256x8xf32>
    %c0_8 = arith.constant 0 : index
    %c0_9 = arith.constant 0 : index
    %15 = vector.load %arg8[%c0_8, %c0_9] : memref<1x8xf32, #tpu.memory_space<vmem>>, vector<1x8xf32>
    %16 = vector.broadcast %15 : vector<1x8xf32> to vector<256x8xf32>
    %17 = arith.addf %14, %16 : vector<256x8xf32>
    %18 = vector.extract_strided_slice %17 {offsets = [0, 5], sizes = [256, 3], strides = [1, 1]} : vector<256x8xf32> to vector<256x3xf32>
    %cst_10 = arith.constant dense<0xFF800000> : vector<256xf32>
    %19 = vector.multi_reduction <maximumf>, %18, %cst_10 [1] : vector<256x3xf32> to vector<256xf32>
    %20 = vector.shape_cast %19 : vector<256xf32> to vector<256x1xf32>
    %21 = vector.broadcast %20 : vector<256x1xf32> to vector<256x3xf32>
    %22 = arith.subf %18, %21 : vector<256x3xf32>
    %23 = math.exp %22 : vector<256x3xf32>
    %cst_11 = arith.constant dense<0.000000e+00> : vector<256xf32>
    %24 = vector.multi_reduction <add>, %23, %cst_11 [1] : vector<256x3xf32> to vector<256xf32>
    %25 = vector.shape_cast %24 : vector<256xf32> to vector<256x1xf32>
    %26 = vector.broadcast %25 : vector<256x1xf32> to vector<256x3xf32>
    %27 = arith.divf %23, %26 : vector<256x3xf32>
    %c0_12 = arith.constant 0 : index
    %c0_13 = arith.constant 0 : index
    %28 = vector.load %arg1[%c0_12, %c0_13] : memref<256x32xf32, #tpu.memory_space<vmem>>, vector<256x32xf32>
    %29 = tpu.iota {dimensions = array<i32: 1>} : vector<256x256xi32>
    %c0_14 = arith.constant 0 : index
    %c0_15 = arith.constant 0 : index
    %30 = vector.load %arg2[%c0_14, %c0_15] : memref<256x8xi32, #tpu.memory_space<vmem>>, vector<256x1xi32>
    %31 = vector.broadcast %30 : vector<256x1xi32> to vector<256x256xi32>
    %32 = arith.cmpi eq, %29, %31 : vector<256x256xi32>
    %33 = arith.extui %32 : vector<256x256xi1> to vector<256x256xi32>
    %34 = arith.sitofp %33 : vector<256x256xi32> to vector<256x256xf32>
    %cst_16 = arith.constant dense<0.000000e+00> : vector<256x32xf32>
    %35 = tpu.matmul %34, %28, %cst_16 {dimension_numbers = #tpu.dot_dimension_numbers<[1], [0], [0], [1], [0, 0, 1, 1], [], []>} : vector<256x256xf32>, vector<256x32xf32>, vector<256x32xf32> -> vector<256x32xf32>
    %c0_17 = arith.constant 0 : index
    %c0_18 = arith.constant 0 : index
    %36 = vector.load %arg6[%c0_17, %c0_18] : memref<32x64xf32, #tpu.memory_space<vmem>>, vector<32x64xf32>
    %cst_19 = arith.constant dense<0.000000e+00> : vector<256x64xf32>
    %37 = tpu.matmul %35, %36, %cst_19 {dimension_numbers = #tpu.dot_dimension_numbers<[1], [0], [0], [1], [0, 0, 1, 1], [], []>} : vector<256x32xf32>, vector<32x64xf32>, vector<256x64xf32> -> vector<256x64xf32>
    %38 = arith.addf %37, %12 : vector<256x64xf32>
    %cst_20 = arith.constant 0.000000e+00 : f32
    %39 = vector.broadcast %cst_20 : f32 to vector<256x64xf32>
    %40 = arith.maximumf %38, %39 : vector<256x64xf32>
    %c0_21 = arith.constant 0 : index
    %c1 = arith.constant 1 : index
    %41 = vector.load %arg2[%c0_21, %c1] : memref<256x8xi32, #tpu.memory_space<vmem>>, vector<256x1xi32>
    %42 = vector.broadcast %41 : vector<256x1xi32> to vector<256x256xi32>
    %43 = arith.cmpi eq, %29, %42 : vector<256x256xi32>
    %44 = arith.extui %43 : vector<256x256xi1> to vector<256x256xi32>
    %45 = arith.sitofp %44 : vector<256x256xi32> to vector<256x256xf32>
    %cst_22 = arith.constant dense<0.000000e+00> : vector<256x32xf32>
    %46 = tpu.matmul %45, %28, %cst_22 {dimension_numbers = #tpu.dot_dimension_numbers<[1], [0], [0], [1], [0, 0, 1, 1], [], []>} : vector<256x256xf32>, vector<256x32xf32>, vector<256x32xf32> -> vector<256x32xf32>
    %c0_23 = arith.constant 0 : index
    %c0_24 = arith.constant 0 : index
    %47 = vector.load %arg6[%c0_23, %c0_24] : memref<32x64xf32, #tpu.memory_space<vmem>>, vector<32x64xf32>
    %cst_25 = arith.constant dense<0.000000e+00> : vector<256x64xf32>
    %48 = tpu.matmul %46, %47, %cst_25 {dimension_numbers = #tpu.dot_dimension_numbers<[1], [0], [0], [1], [0, 0, 1, 1], [], []>} : vector<256x32xf32>, vector<32x64xf32>, vector<256x64xf32> -> vector<256x64xf32>
    %49 = arith.addf %48, %12 : vector<256x64xf32>
    %cst_26 = arith.constant 0.000000e+00 : f32
    %50 = vector.broadcast %cst_26 : f32 to vector<256x64xf32>
    %51 = arith.maximumf %49, %50 : vector<256x64xf32>
    %c0_27 = arith.constant 0 : index
    %c2 = arith.constant 2 : index
    %52 = vector.load %arg2[%c0_27, %c2] : memref<256x8xi32, #tpu.memory_space<vmem>>, vector<256x1xi32>
    %53 = vector.broadcast %52 : vector<256x1xi32> to vector<256x256xi32>
    %54 = arith.cmpi eq, %29, %53 : vector<256x256xi32>
    %55 = arith.extui %54 : vector<256x256xi1> to vector<256x256xi32>
    %56 = arith.sitofp %55 : vector<256x256xi32> to vector<256x256xf32>
    %cst_28 = arith.constant dense<0.000000e+00> : vector<256x32xf32>
    %57 = tpu.matmul %56, %28, %cst_28 {dimension_numbers = #tpu.dot_dimension_numbers<[1], [0], [0], [1], [0, 0, 1, 1], [], []>} : vector<256x256xf32>, vector<256x32xf32>, vector<256x32xf32> -> vector<256x32xf32>
    %c0_29 = arith.constant 0 : index
    %c0_30 = arith.constant 0 : index
    %58 = vector.load %arg6[%c0_29, %c0_30] : memref<32x64xf32, #tpu.memory_space<vmem>>, vector<32x64xf32>
    %cst_31 = arith.constant dense<0.000000e+00> : vector<256x64xf32>
    %59 = tpu.matmul %57, %58, %cst_31 {dimension_numbers = #tpu.dot_dimension_numbers<[1], [0], [0], [1], [0, 0, 1, 1], [], []>} : vector<256x32xf32>, vector<32x64xf32>, vector<256x64xf32> -> vector<256x64xf32>
    %60 = arith.addf %59, %12 : vector<256x64xf32>
    %cst_32 = arith.constant 0.000000e+00 : f32
    %61 = vector.broadcast %cst_32 : f32 to vector<256x64xf32>
    %62 = arith.maximumf %60, %61 : vector<256x64xf32>
    %c0_33 = arith.constant 0 : index
    %c3 = arith.constant 3 : index
    %63 = vector.load %arg2[%c0_33, %c3] : memref<256x8xi32, #tpu.memory_space<vmem>>, vector<256x1xi32>
    %64 = vector.broadcast %63 : vector<256x1xi32> to vector<256x256xi32>
    %65 = arith.cmpi eq, %29, %64 : vector<256x256xi32>
    %66 = arith.extui %65 : vector<256x256xi1> to vector<256x256xi32>
    %67 = arith.sitofp %66 : vector<256x256xi32> to vector<256x256xf32>
    %cst_34 = arith.constant dense<0.000000e+00> : vector<256x32xf32>
    %68 = tpu.matmul %67, %28, %cst_34 {dimension_numbers = #tpu.dot_dimension_numbers<[1], [0], [0], [1], [0, 0, 1, 1], [], []>} : vector<256x256xf32>, vector<256x32xf32>, vector<256x32xf32> -> vector<256x32xf32>
    %c0_35 = arith.constant 0 : index
    %c0_36 = arith.constant 0 : index
    %69 = vector.load %arg6[%c0_35, %c0_36] : memref<32x64xf32, #tpu.memory_space<vmem>>, vector<32x64xf32>
    %cst_37 = arith.constant dense<0.000000e+00> : vector<256x64xf32>
    %70 = tpu.matmul %68, %69, %cst_37 {dimension_numbers = #tpu.dot_dimension_numbers<[1], [0], [0], [1], [0, 0, 1, 1], [], []>} : vector<256x32xf32>, vector<32x64xf32>, vector<256x64xf32> -> vector<256x64xf32>
    %71 = arith.addf %70, %12 : vector<256x64xf32>
    %cst_38 = arith.constant 0.000000e+00 : f32
    %72 = vector.broadcast %cst_38 : f32 to vector<256x64xf32>
    %73 = arith.maximumf %71, %72 : vector<256x64xf32>
    %c0_39 = arith.constant 0 : index
    %c4 = arith.constant 4 : index
    %74 = vector.load %arg2[%c0_39, %c4] : memref<256x8xi32, #tpu.memory_space<vmem>>, vector<256x1xi32>
    %75 = vector.broadcast %74 : vector<256x1xi32> to vector<256x256xi32>
    %76 = arith.cmpi eq, %29, %75 : vector<256x256xi32>
    %77 = arith.extui %76 : vector<256x256xi1> to vector<256x256xi32>
    %78 = arith.sitofp %77 : vector<256x256xi32> to vector<256x256xf32>
    %cst_40 = arith.constant dense<0.000000e+00> : vector<256x32xf32>
    %79 = tpu.matmul %78, %28, %cst_40 {dimension_numbers = #tpu.dot_dimension_numbers<[1], [0], [0], [1], [0, 0, 1, 1], [], []>} : vector<256x256xf32>, vector<256x32xf32>, vector<256x32xf32> -> vector<256x32xf32>
    %c0_41 = arith.constant 0 : index
    %c0_42 = arith.constant 0 : index
    %80 = vector.load %arg6[%c0_41, %c0_42] : memref<32x64xf32, #tpu.memory_space<vmem>>, vector<32x64xf32>
    %cst_43 = arith.constant dense<0.000000e+00> : vector<256x64xf32>
    %81 = tpu.matmul %79, %80, %cst_43 {dimension_numbers = #tpu.dot_dimension_numbers<[1], [0], [0], [1], [0, 0, 1, 1], [], []>} : vector<256x32xf32>, vector<32x64xf32>, vector<256x64xf32> -> vector<256x64xf32>
    %82 = arith.addf %81, %12 : vector<256x64xf32>
    %cst_44 = arith.constant 0.000000e+00 : f32
    %83 = vector.broadcast %cst_44 : f32 to vector<256x64xf32>
    %84 = arith.maximumf %82, %83 : vector<256x64xf32>
    %c0_45 = arith.constant 0 : index
    %c5 = arith.constant 5 : index
    %85 = vector.load %arg2[%c0_45, %c5] : memref<256x8xi32, #tpu.memory_space<vmem>>, vector<256x1xi32>
    %86 = vector.broadcast %85 : vector<256x1xi32> to vector<256x256xi32>
    %87 = arith.cmpi eq, %29, %86 : vector<256x256xi32>
    %88 = arith.extui %87 : vector<256x256xi1> to vector<256x256xi32>
    %89 = arith.sitofp %88 : vector<256x256xi32> to vector<256x256xf32>
    %cst_46 = arith.constant dense<0.000000e+00> : vector<256x32xf32>
    %90 = tpu.matmul %89, %28, %cst_46 {dimension_numbers = #tpu.dot_dimension_numbers<[1], [0], [0], [1], [0, 0, 1, 1], [], []>} : vector<256x256xf32>, vector<256x32xf32>, vector<256x32xf32> -> vector<256x32xf32>
    %c0_47 = arith.constant 0 : index
    %c0_48 = arith.constant 0 : index
    %91 = vector.load %arg6[%c0_47, %c0_48] : memref<32x64xf32, #tpu.memory_space<vmem>>, vector<32x64xf32>
    %cst_49 = arith.constant dense<0.000000e+00> : vector<256x64xf32>
    %92 = tpu.matmul %90, %91, %cst_49 {dimension_numbers = #tpu.dot_dimension_numbers<[1], [0], [0], [1], [0, 0, 1, 1], [], []>} : vector<256x32xf32>, vector<32x64xf32>, vector<256x64xf32> -> vector<256x64xf32>
    %93 = arith.addf %92, %12 : vector<256x64xf32>
    %cst_50 = arith.constant 0.000000e+00 : f32
    %94 = vector.broadcast %cst_50 : f32 to vector<256x64xf32>
    %95 = arith.maximumf %93, %94 : vector<256x64xf32>
    %c0_51 = arith.constant 0 : index
    %c6 = arith.constant 6 : index
    %96 = vector.load %arg2[%c0_51, %c6] : memref<256x8xi32, #tpu.memory_space<vmem>>, vector<256x1xi32>
    %97 = vector.broadcast %96 : vector<256x1xi32> to vector<256x256xi32>
    %98 = arith.cmpi eq, %29, %97 : vector<256x256xi32>
    %99 = arith.extui %98 : vector<256x256xi1> to vector<256x256xi32>
    %100 = arith.sitofp %99 : vector<256x256xi32> to vector<256x256xf32>
    %cst_52 = arith.constant dense<0.000000e+00> : vector<256x32xf32>
    %101 = tpu.matmul %100, %28, %cst_52 {dimension_numbers = #tpu.dot_dimension_numbers<[1], [0], [0], [1], [0, 0, 1, 1], [], []>} : vector<256x256xf32>, vector<256x32xf32>, vector<256x32xf32> -> vector<256x32xf32>
    %c0_53 = arith.constant 0 : index
    %c0_54 = arith.constant 0 : index
    %102 = vector.load %arg6[%c0_53, %c0_54] : memref<32x64xf32, #tpu.memory_space<vmem>>, vector<32x64xf32>
    %cst_55 = arith.constant dense<0.000000e+00> : vector<256x64xf32>
    %103 = tpu.matmul %101, %102, %cst_55 {dimension_numbers = #tpu.dot_dimension_numbers<[1], [0], [0], [1], [0, 0, 1, 1], [], []>} : vector<256x32xf32>, vector<32x64xf32>, vector<256x64xf32> -> vector<256x64xf32>
    %104 = arith.addf %103, %12 : vector<256x64xf32>
    %cst_56 = arith.constant 0.000000e+00 : f32
    %105 = vector.broadcast %cst_56 : f32 to vector<256x64xf32>
    %106 = arith.maximumf %104, %105 : vector<256x64xf32>
    %c0_57 = arith.constant 0 : index
    %c7 = arith.constant 7 : index
    %107 = vector.load %arg2[%c0_57, %c7] : memref<256x8xi32, #tpu.memory_space<vmem>>, vector<256x1xi32>
    %108 = vector.broadcast %107 : vector<256x1xi32> to vector<256x256xi32>
    %109 = arith.cmpi eq, %29, %108 : vector<256x256xi32>
    %110 = arith.extui %109 : vector<256x256xi1> to vector<256x256xi32>
    %111 = arith.sitofp %110 : vector<256x256xi32> to vector<256x256xf32>
    %cst_58 = arith.constant dense<0.000000e+00> : vector<256x32xf32>
    %112 = tpu.matmul %111, %28, %cst_58 {dimension_numbers = #tpu.dot_dimension_numbers<[1], [0], [0], [1], [0, 0, 1, 1], [], []>} : vector<256x256xf32>, vector<256x32xf32>, vector<256x32xf32> -> vector<256x32xf32>
    %c0_59 = arith.constant 0 : index
    %c0_60 = arith.constant 0 : index
    %113 = vector.load %arg6[%c0_59, %c0_60] : memref<32x64xf32, #tpu.memory_space<vmem>>, vector<32x64xf32>
    %cst_61 = arith.constant dense<0.000000e+00> : vector<256x64xf32>
    %114 = tpu.matmul %112, %113, %cst_61 {dimension_numbers = #tpu.dot_dimension_numbers<[1], [0], [0], [1], [0, 0, 1, 1], [], []>} : vector<256x32xf32>, vector<32x64xf32>, vector<256x64xf32> -> vector<256x64xf32>
    %115 = arith.addf %114, %12 : vector<256x64xf32>
    %cst_62 = arith.constant 0.000000e+00 : f32
    %116 = vector.broadcast %cst_62 : f32 to vector<256x64xf32>
    %117 = arith.maximumf %115, %116 : vector<256x64xf32>
    %118 = tpu.concatenate %40, %51, %62, %73, %84, %95, %106, %117 in 1 : vector<256x64xf32>, vector<256x64xf32>, vector<256x64xf32>, vector<256x64xf32>, vector<256x64xf32>, vector<256x64xf32>, vector<256x64xf32>, vector<256x64xf32> -> vector<256x512xf32>
    %c0_63 = arith.constant 0 : index
    %c0_64 = arith.constant 0 : index
    %119 = vector.load %arg9[%c0_63, %c0_64] : memref<512x8xf32, #tpu.memory_space<vmem>>, vector<512x8xf32>
    %cst_65 = arith.constant dense<0.000000e+00> : vector<256x8xf32>
    %120 = tpu.matmul %118, %119, %cst_65 {dimension_numbers = #tpu.dot_dimension_numbers<[1], [0], [0], [1], [0, 0, 1, 1], [], []>} : vector<256x512xf32>, vector<512x8xf32>, vector<256x8xf32> -> vector<256x8xf32>
    %c0_66 = arith.constant 0 : index
    %c0_67 = arith.constant 0 : index
    %121 = vector.load %arg10[%c0_66, %c0_67] : memref<1x8xf32, #tpu.memory_space<vmem>>, vector<1x8xf32>
    %122 = vector.broadcast %121 : vector<1x8xf32> to vector<256x8xf32>
    %123 = arith.addf %120, %122 : vector<256x8xf32>
    %c0_68 = arith.constant 0 : index
    %c0_69 = arith.constant 0 : index
    %124 = vector.load %arg3[%c0_68, %c0_69] : memref<256x8xf32, #tpu.memory_space<vmem>>, vector<256x8xf32>
    %cst_70 = arith.constant 5.000000e-01 : f32
    %125 = vector.broadcast %cst_70 : f32 to vector<256x8xf32>
    %126 = arith.cmpf ogt, %124, %125 : vector<256x8xf32>
    %cst_71 = arith.constant -1.000000e+10 : f32
    %127 = vector.broadcast %cst_71 : f32 to vector<256x8xf32>
    %128 = arith.select %126, %123, %127 : vector<256x8xi1>, vector<256x8xf32>
    %129 = vector.extract_strided_slice %17 {offsets = [0, 0], sizes = [256, 5], strides = [1, 1]} : vector<256x8xf32> to vector<256x5xf32>
    %130 = tpu.concatenate %129, %27, %128 in 1 : vector<256x5xf32>, vector<256x3xf32>, vector<256x8xf32> -> vector<256x16xf32>
    %c0_72 = arith.constant 0 : index
    %c0_73 = arith.constant 0 : index
    %131 = vector.load %arg11[%c0_72, %c0_73] : memref<256x16xf32, #tpu.memory_space<vmem>>, vector<256x16xf32>
    tpu.vector_store %arg11[%c0_72, %c0_73], %130 {strides = array<i32>} : memref<256x16xf32, #tpu.memory_space<vmem>>, vector<256x16xf32>,
    return
  }
  func.func @transform_0(%arg0: i32) -> (i32, i32) {
    %c0_i32 = arith.constant 0 : i32
    %c0_i32_0 = arith.constant 0 : i32
    %c0_i32_1 = arith.constant 0 : i32
    return %c0_i32, %c0_i32_0 : i32, i32
  }
  func.func @transform_1(%arg0: i32) -> (i32, i32) {
    %c0_i32 = arith.constant 0 : i32
    %c0_i32_0 = arith.constant 0 : i32
    return %arg0, %c0_i32 : i32, i32
  }
  func.func @transform_2(%arg0: i32) -> (i32, i32) {
    %c0_i32 = arith.constant 0 : i32
    %c0_i32_0 = arith.constant 0 : i32
    return %arg0, %c0_i32 : i32, i32
  }
  func.func @transform_3(%arg0: i32) -> (i32, i32) {
    %c0_i32 = arith.constant 0 : i32
    %c0_i32_0 = arith.constant 0 : i32
    %c0_i32_1 = arith.constant 0 : i32
    return %c0_i32, %c0_i32_0 : i32, i32
  }
  func.func @transform_4(%arg0: i32) -> (i32, i32) {
    %c0_i32 = arith.constant 0 : i32
    %c0_i32_0 = arith.constant 0 : i32
    %c0_i32_1 = arith.constant 0 : i32
    return %c0_i32, %c0_i32_0 : i32, i32
  }
  func.func @transform_5(%arg0: i32) -> (i32, i32) {
    %c0_i32 = arith.constant 0 : i32
    %c0_i32_0 = arith.constant 0 : i32
    %c0_i32_1 = arith.constant 0 : i32
    return %c0_i32, %c0_i32_0 : i32, i32
  }
  func.func @transform_6(%arg0: i32) -> (i32, i32) {
    %c0_i32 = arith.constant 0 : i32
    %c0_i32_0 = arith.constant 0 : i32
    %c0_i32_1 = arith.constant 0 : i32
    return %c0_i32, %c0_i32_0 : i32, i32
  }
  func.func @transform_7(%arg0: i32) -> (i32, i32) {
    %c0_i32 = arith.constant 0 : i32
    %c0_i32_0 = arith.constant 0 : i32
    %c0_i32_1 = arith.constant 0 : i32
    return %c0_i32, %c0_i32_0 : i32, i32
  }
  func.func @transform_8(%arg0: i32) -> (i32, i32) {
    %c0_i32 = arith.constant 0 : i32
    %c0_i32_0 = arith.constant 0 : i32
    %c0_i32_1 = arith.constant 0 : i32
    return %c0_i32, %c0_i32_0 : i32, i32
  }
  func.func @transform_9(%arg0: i32) -> (i32, i32) {
    %c0_i32 = arith.constant 0 : i32
    %c0_i32_0 = arith.constant 0 : i32
    %c0_i32_1 = arith.constant 0 : i32
    return %c0_i32, %c0_i32_0 : i32, i32
  }
  func.func @transform_10(%arg0: i32) -> (i32, i32) {
    %c0_i32 = arith.constant 0 : i32
    %c0_i32_0 = arith.constant 0 : i32
    return %arg0, %c0_i32 : i32, i32
  }
}

</mosaic_0001>

<bundles_post_ra>
// kernel: tpu_custom_call.1
= control target key start
LH: loop header
LB: loop body
LE: loop exit
PB: predicated region body
PF: predicated region fallthrough
CT: control target
= control target key end

     0   :  { %v13277_v0 = vmov 0   ;;  %v13278_v12 = vmov 0.0   ;;  %vm89_vm0 = vcmask 261120   ;;  %v19751_v58 = vmov 0.0|0.0   ;;  %s13288_s13 = smov 64   ;;  %s19740_s1 = inlined_call_operand.vmem [shape: s32[256,8], index: 1, kind: input, shape index: {}]   ;;  %s19741_s3 = inlined_call_operand.vmem [shape: f32[32,256], index: 3, kind: input, shape index: {}]   ;;  %s19742_s0 = inlined_call_operand.vmem [shape: f32[256,32], index: 0, kind: input, shape index: {}]   ;;  %s19743_s6 = inlined_call_operand.vmem [shape: f32[192,8], index: 6, kind: input, shape index: {}]   ;;  %s19744_s4 = inlined_call_operand.vmem [shape: f32[1,256], index: 4, kind: input, shape index: {}]   ;;  %s19745_s5 = inlined_call_operand.vmem [shape: f32[32,64], index: 5, kind: input, shape index: {}]   ;;  %s19746_s7 = inlined_call_operand.vmem [shape: f32[1,8], index: 7, kind: input, shape index: {}]   ;;  %s19747_s8 = inlined_call_operand.vmem [shape: f32[512,8], index: 8, kind: input, shape index: {}]   ;;  %s19748_s9 = inlined_call_operand.vmem [shape: f32[1,8], index: 9, kind: input, shape index: {}]   ;;  %s19749_s2 = inlined_call_operand.vmem [shape: f32[256,8], index: 2, kind: input, shape index: {}]   ;;  %s19750_s10 = inlined_call_operand.vmem [shape: f32[256,16], index: 10, kind: output, shape index: {}]  }
   0x1   :  { %12770 = vset.pattern.permute.xlu1 %v13277_v0  ;;  %12769 = vset.pattern.permute.xlu0 %v13277_v0  ;;  %v13349_v1 = vld [vmem:[%s19740_s1 + $0x38] sm:$0xff]  ;;  %v13354_v2 = vld [vmem:[%s19740_s1 + $0x28] sm:$0xff]  ;;  %v69_v5 = vld [vmem:[%s19741_s3] sm:$0xff]  ;;  %vm538_vm9 = vcmask 523264  }
   0x2   :  { %v70_v3 = vld [vmem:[%s19741_s3 + $0x8] sm:$0xff]  ;;  %1431 = vperm.xlu1 %12770, %v13349_v1   ;;  %1425 = vperm.xlu0 %12769, %v13354_v2   ;;  %v72_v4 = vld [vmem:[%s19741_s3 + $0x18] sm:$0xff]  ;;  %v71_v6 = vld [vmem:[%s19741_s3 + $0x10] sm:$0xff] }
   0x3   :  { %v12039_v7 = vpack.c.bf16 %v72_v4, %v70_v3  ;;  %v12041_v8 = vpack.c.bf16 %v71_v6, %v69_v5  ;;  %v13373_v9 = vld [vmem:[%s19740_s1 + $0x40] sm:$0xff]  ;;  %v13378_v10 = vld [vmem:[%s19740_s1 + $0x30] sm:$0xff]  ;;  %v74_v11 = vld [vmem:[%s19741_s3 + $0x28] sm:$0xff]  ;;  %250 = vmatprep.mubr.f32.mxu0 %v13278_v12  ;;  %12047 = vmatprep.subr.bf16.mxu1 %v19751_v58 }
   0x4   :  { %v76_v13 = vld [vmem:[%s19741_s3 + $0x38] sm:$0xff]  ;;  %v73_v14 = vld [vmem:[%s19741_s3 + $0x20] sm:$0xff]  ;;  %v75_v15 = vld [vmem:[%s19741_s3 + $0x30] sm:$0xff] }
   0x5   :  { %12040 = vmatprep.subr.bf16.mxu0 %v12039_v7  ;;  %v12043_v16 = vpack.c.bf16 %v76_v13, %v74_v11  ;;  %v12045_v17 = vpack.c.bf16 %v75_v15, %v73_v14  ;;  %v13398_v18 = vld [vmem:[%s19740_s1 + $0x50] sm:$0xff]  ;;  %v13403_v19 = vld [vmem:[%s19740_s1 + $0x48] sm:$0xff]  ;;  %v13409_v20 = vld [vmem:[%s19742_s0] sm:$0xff] }
   0x6   :  { %12042 = vmatpush1.bf16.msra.mxu0 %v12041_v8  ;;  %1434 = vperm.xlu1 %12770, %v13373_v9   ;;  %v13415_v21 = vld [vmem:[%s19740_s1 + $0x60] sm:$0xff]  ;;  %v13420_v22 = vld [vmem:[%s19740_s1 + $0x58] sm:$0xff]  ;;  %v13429_v23 = vld [vmem:[%s19742_s0 + $0x8] sm:$0xff] }
   0x7   :  { %1428 = vperm.xlu0 %12769, %v13378_v10   ;;  %12044 = vmatprep.subr.bf16.mxu0 %v12043_v16  ;;  %v13435_v24 = vld [vmem:[%s19740_s1] sm:$0xff]  ;;  %v13440_v25 = vld [vmem:[%s19740_s1 + $0x68] sm:$0xff]  ;;  %v13449_v26 = vld [vmem:[%s19742_s0 + $0x10] sm:$0xff]  ;;  %v13646_v59 = vpack.c.bf16 %v13429_v23, %v13409_v20  ;;  %v13280_v16 = vmov 1  }
   0x8   :  { %v13455_v27 = vld [vmem:[%s19740_s1 + $0x8] sm:$0xff]  ;;  %v13460_v28 = vld [vmem:[%s19740_s1 + $0x70] sm:$0xff]  ;;  %v13469_v29 = vld [vmem:[%s19742_s0 + $0x18] sm:$0xff] }
   0x9   :  { %v13475_v30 = vld [vmem:[%s19740_s1 + $0x10] sm:$0xff]  ;;  %v13480_v31 = vld [vmem:[%s19740_s1 + $0x78] sm:$0xff]  ;;  %v13489_v32 = vld [vmem:[%s19742_s0 + $0x20] sm:$0xff]  ;;  %v13679_v4 = vpack.c.bf16 %v13469_v29, %v13449_v26 }
   0xa   :  { %12046 = vmatpush1.bf16.msra.mxu0 %v12045_v17  ;;  %1440 = vperm.xlu1 %12770, %v13398_v18   ;;  %v13495_v33 = vld [vmem:[%s19740_s1 + $0x18] sm:$0xff]  ;;  %v13500_v34 = vld [vmem:[%s19740_s1 + $0x80] sm:$0xff]  ;;  %v13509_v35 = vld [vmem:[%s19742_s0 + $0x28] sm:$0xff] }
   0xb   :  { %1437 = vperm.xlu0 %12769, %v13403_v19   ;;  %v13515_v36 = vld [vmem:[%s19740_s1 + $0x20] sm:$0xff]  ;;  %v13520_v37 = vld [vmem:[%s19740_s1 + $0x88] sm:$0xff]  ;;  %v13529_v38 = vld [vmem:[%s19742_s0 + $0x30] sm:$0xff]  ;;  %12083 = vmatprep.subr.bf16.mxu0 %v19751_v58  ;;  %v13706_v13 = vpack.c.bf16 %v13509_v35, %v13489_v32 }
   0xc   :  { %v13535_v39 = vld [vmem:[%s19740_s1 + $0x98] sm:$0xff]  ;;  %v13540_v40 = vld [vmem:[%s19740_s1 + $0x90] sm:$0xff]  ;;  %v13555_v42 = vld [vmem:[%s19740_s1 + $0xa8] sm:$0xff] }
   0xd   :  { %9957 = vmatmul.mubr.msk.f32.vlgmr.msra.gmra.mrb[0].mxu0 %vm89_vm0, %v13409_v20  ;;  %v13549_v41 = vld [vmem:[%s19742_s0 + $0x38] sm:$0xff]  ;;  %v13560_v43 = vld [vmem:[%s19740_s1 + $0xa0] sm:$0xff]  ;;  %v13580_v46 = vld [vmem:[%s19740_s1 + $0xb0] sm:$0xff] }
   0xe   :  { %1446 = vperm.xlu1 %12770, %v13415_v21   ;;  %256 = vmatprep.mubr.f32.mxu0 %v13278_v12  ;;  %v13569_v44 = vld [vmem:[%s19742_s0 + $0x40] sm:$0xff]  ;;  %v13575_v45 = vld [vmem:[%s19740_s1 + $0xb8] sm:$0xff]  ;;  %v13589_v47 = vld [vmem:[%s19742_s0 + $0x48] sm:$0xff] }
   0xf   :  { %1443 = vperm.xlu0 %12769, %v13420_v22   ;;  %v13595_v48 = vld [vmem:[%s19740_s1 + $0xc8] sm:$0xff]  ;;  %v13600_v49 = vld [vmem:[%s19740_s1 + $0xc0] sm:$0xff]  ;;  %v13609_v50 = vld [vmem:[%s19742_s0 + $0x50] sm:$0xff]  ;;  %12085 = vmatpush1.bf16.msra.mxu0 %v13646_v59 }
  0x10   :  { %v13615_v51 = vld [vmem:[%s19740_s1 + $0xd8] sm:$0xff]  ;;  %v13620_v52 = vld [vmem:[%s19740_s1 + $0xd0] sm:$0xff]  ;;  %v507_v53 = vld [vmem:[%s19743_s6] sm:$0xff]  ;;  %12086 = vmatprep.subr.bf16.mxu0 %v19751_v58 }
  0x11   :  { %9958 = vmatmul.mubr.msk.f32.gmra.mrb[2].mxu0 %vm89_vm0, %v13429_v23  ;;  %v508_v54 = vld [vmem:[%s19743_s6 + $0x8] sm:$0xff]  ;;  %v13635_v55 = vld [vmem:[%s19742_s0 + $0x58] sm:$0xff]  ;;  %v13651_v60 = vld [vmem:[%s19740_s1 + $0xe0] sm:$0xff]  ;;  %v13725_v23 = vpack.c.bf16 %v13549_v41, %v13529_v38 }
  0x12   :  { %1410 = vperm.xlu1 %12770, %v13435_v24   ;;  %262 = vmatprep.mubr.f32.mxu0 %v13278_v12  ;;  %v12048_v56 = vpack.c.bf16 %v508_v54, %v507_v53  ;;  %v13641_v57 = vld [vmem:[%s19740_s1 + $0xe8] sm:$0xff]  ;;  %v509_v61 = vld [vmem:[%s19743_s6 + $0x10] sm:$0xff]  ;;  %v510_v62 = vld [vmem:[%s19743_s6 + $0x18] sm:$0xff] }
  0x13   :  { %1449 = vperm.xlu0 %12769, %v13440_v25   ;;  %v13668_v63 = vld [vmem:[%s19742_s0 + $0x60] sm:$0xff]  ;;  %v12051_v0 = vpack.c.bf16 %v510_v62, %v509_v61  ;;  %v13674_v3 = vld [vmem:[%s19740_s1 + $0xf8] sm:$0xff]  ;;  %v13684_v5 = vld [vmem:[%s19740_s1 + $0xf0] sm:$0xff]  ;;  %12088 = vmatpush1.bf16.msra.mxu0 %v13679_v4 }
  0x14   :  { %12049 = vmatpush1.bf16.msra.mxu1 %v12048_v56  ;;  %v511_v6 = vld [vmem:[%s19743_s6 + $0x20] sm:$0xff]  ;;  %v512_v7 = vld [vmem:[%s19743_s6 + $0x28] sm:$0xff]  ;;  %12089 = vmatprep.subr.bf16.mxu0 %v19751_v58  ;;  %v513_v14 = vld [vmem:[%s19743_s6 + $0x30] sm:$0xff] }
  0x15   :  { %9959 = vmatmul.mubr.msk.f32.gmra.mrb[4].mxu0 %vm89_vm0, %v13449_v26  ;;  %12050 = vmatprep.subr.bf16.mxu1 %v19751_v58  ;;  %v50_v8 = vld [vmem:[%s19742_s0 + $0x68] sm:$0xff]  ;;  %v12054_v11 = vpack.c.bf16 %v512_v7, %v511_v6  ;;  %v514_v15 = vld [vmem:[%s19743_s6 + $0x38] sm:$0xff]  ;;  %v51_v17 = vld [vmem:[%s19742_s0 + $0x70] sm:$0xff] }
  0x16   :  { %1413 = vperm.xlu1 %12770, %v13455_v27   ;;  %268 = vmatprep.mubr.f32.mxu0 %v13278_v12  ;;  %v12057_v20 = vpack.c.bf16 %v514_v15, %v513_v14  ;;  %v515_v26 = vld [vmem:[%s19743_s6 + $0x40] sm:$0xff]  ;;  %v518_v53 = vld [vmem:[%s19743_s6 + $0x58] sm:$0xff]  ;;  %v520_v61 = vld [vmem:[%s19743_s6 + $0x68] sm:$0xff] }
  0x17   :  { %1452 = vperm.xlu0 %12769, %v13460_v28   ;;  %12091 = vmatpush1.bf16.msra.mxu0 %v13706_v13  ;;  %v53_v54 = vld [vmem:[%s19742_s0 + $0x80] sm:$0xff]  ;;  %v54_v62 = vld [vmem:[%s19742_s0 + $0x88] sm:$0xff]  ;;  %v522_v6 = vld [vmem:[%s19743_s6 + $0x78] sm:$0xff] }
  0x18   :  { %12052 = vmatpush1.bf16.msra.mxu1 %v12051_v0  ;;  %12092 = vmatprep.subr.bf16.mxu0 %v19751_v58  ;;  %v519_v56 = vld [vmem:[%s19743_s6 + $0x60] sm:$0xff]  ;;  %v521_v0 = vld [vmem:[%s19743_s6 + $0x70] sm:$0xff]  ;;  %v524_v14 = vld [vmem:[%s19743_s6 + $0x88] sm:$0xff] }
  0x19   :  { %9960 = vmatmul.mubr.msk.f32.gmra.mrb[6].mxu0 %vm89_vm0, %v13469_v29  ;;  %12053 = vmatprep.subr.bf16.mxu1 %v19751_v58  ;;  %v516_v29 = vld [vmem:[%s19743_s6 + $0x48] sm:$0xff]  ;;  %v55_v7 = vld [vmem:[%s19742_s0 + $0x90] sm:$0xff]  ;;  %v56_v15 = vld [vmem:[%s19742_s0 + $0x98] sm:$0xff] }
  0x1a   :  { %1416 = vperm.xlu1 %12770, %v13475_v30   ;;  %274 = vmatprep.mubr.f32.mxu0 %v13278_v12 }
  0x1b   :  { %1455 = vperm.xlu0 %12769, %v13480_v31   ;;  %12094 = vmatpush1.bf16.msra.mxu0 %v13725_v23 }
  0x1c   :  { %12055 = vmatpush1.bf16.msra.mxu1 %v12054_v11  ;;  %12095 = vmatprep.subr.bf16.mxu0 %v19751_v58  ;;  %v523_v11 = vld [vmem:[%s19743_s6 + $0x80] sm:$0xff] }
  0x1d   :  { %9961 = vmatmul.mubr.msk.f32.gmra.mrb[8].mxu0 %vm89_vm0, %v13489_v32  ;;  %12056 = vmatprep.subr.bf16.mxu1 %v19751_v58  ;;  %v52_v32 = vld [vmem:[%s19742_s0 + $0x78] sm:$0xff] }
  0x1e   :  { %1419 = vperm.xlu1 %12770, %v13495_v33   ;;  %280 = vmatprep.mubr.f32.mxu0 %v13278_v12 }
  0x1f   :  { %1458 = vperm.xlu0 %12769, %v13500_v34  }
  0x20   :  { %12058 = vmatpush1.bf16.msra.mxu1 %v12057_v20  ;;  %v525_v20 = vld [vmem:[%s19743_s6 + $0x90] sm:$0xff] }
  0x21   :  { %9962 = vmatmul.mubr.msk.f32.gmra.mrb[10].mxu0 %vm89_vm0, %v13509_v35  ;;  %v12060_v35 = vpack.c.bf16 %v516_v29, %v515_v26  ;;  %12059 = vmatprep.subr.bf16.mxu1 %v19751_v58  ;;  %v526_v26 = vld [vmem:[%s19743_s6 + $0x98] sm:$0xff]  ;;  %v57_v29 = vld [vmem:[%s19742_s0 + $0xa0] sm:$0xff] }
  0x22   :  { %1422 = vperm.xlu1 %12770, %v13515_v36   ;;  %286 = vmatprep.mubr.f32.mxu0 %v13278_v12 }
  0x23   :  { %1461 = vperm.xlu0 %12769, %v13520_v37  }
  0x24   :  { %12061 = vmatpush1.bf16.msra.mxu1 %v12060_v35  ;;  %v13838_v35 = vpack.c.bf16 %v56_v15, %v55_v7 }
  0x25   :  { %9963 = vmatmul.mubr.msk.f32.gmra.mrb[12].mxu0 %vm89_vm0, %v13529_v38  ;;  %v13745_v38 = vpack.c.bf16 %v13589_v47, %v13569_v44  ;;  %12062 = vmatprep.subr.bf16.mxu1 %v19751_v58 }
  0x26   :  { %1467 = vperm.xlu1 %12770, %v13535_v39   ;;  %292 = vmatprep.mubr.f32.mxu0 %v13278_v12  ;;  %20159 = vst [vmem:[#allocation6_spill] sm:$0xff] %v13838_v35 }
  0x27   :  { %1464 = vperm.xlu0 %12769, %v13540_v40   ;;  %12097 = vmatpush1.bf16.msra.mxu0 %v13745_v38 }
  0x28   :  { %12098 = vmatprep.subr.bf16.mxu0 %v19751_v58 }
  0x29   :  { %9964 = vmatmul.mubr.msk.f32.gmra.mrb[14].mxu0 %vm89_vm0, %v13549_v41  ;;  %v517_v41 = vld [vmem:[%s19743_s6 + $0x50] sm:$0xff] }
  0x2a   :  { %1473 = vperm.xlu1 %12770, %v13555_v42   ;;  %298 = vmatprep.mubr.f32.mxu0 %v13278_v12 }
  0x2b   :  { %1470 = vperm.xlu0 %12769, %v13560_v43  }
  0x2d   :  { %9965 = vmatmul.mubr.msk.f32.gmra.mrb[16].mxu0 %vm89_vm0, %v13569_v44  ;;  %v12063_v44 = vpack.c.bf16 %v518_v53, %v517_v41  ;;  %v527_v41 = vld [vmem:[%s19743_s6 + $0xa0] sm:$0xff]  ;;  %v528_v53 = vld [vmem:[%s19743_s6 + $0xa8] sm:$0xff] }
  0x2e   :  { %1479 = vperm.xlu1 %12770, %v13575_v45   ;;  %304 = vmatprep.mubr.f32.mxu0 %v13278_v12 }
  0x2f   :  { %1476 = vperm.xlu0 %12769, %v13580_v46   ;;  %12064 = vmatpush1.bf16.msra.mxu1 %v12063_v44  ;;  %v12078_v44 = vpack.c.bf16 %v528_v53, %v527_v41  ;;  %v67_v41 = vld [vmem:[%s19742_s0 + $0xf0] sm:$0xff]  ;;  %v68_v53 = vld [vmem:[%s19742_s0 + $0xf8] sm:$0xff] }
  0x30   :  { %12065 = vmatprep.subr.bf16.mxu1 %v19751_v58 }
  0x31   :  { %9966 = vmatmul.mubr.msk.f32.gmra.mrb[18].mxu0 %vm89_vm0, %v13589_v47  ;;  %v13765_v47 = vpack.c.bf16 %v13635_v55, %v13609_v50 }
  0x32   :  { %1485 = vperm.xlu1 %12770, %v13595_v48   ;;  %310 = vmatprep.mubr.f32.mxu0 %v13278_v12 }
  0x33   :  { %1482 = vperm.xlu0 %12769, %v13600_v49   ;;  %20155 = vst [vmem:[#allocation2_spill] sm:$0xff] %v13765_v47  ;;  %12100 = vmatpush1.bf16.msra.mxu0 %v13765_v47 }
  0x34   :  { %12101 = vmatprep.subr.bf16.mxu0 %v19751_v58 }
  0x35   :  { %9967 = vmatmul.mubr.msk.f32.gmra.mrb[20].mxu0 %vm89_vm0, %v13609_v50  ;;  %v12066_v50 = vpack.c.bf16 %v520_v61, %v519_v56  ;;  %v529_v61 = vld [vmem:[%s19743_s6 + $0xb0] sm:$0xff] }
  0x36   :  { %1491 = vperm.xlu1 %12770, %v13615_v51   ;;  %316 = vmatprep.mubr.f32.mxu0 %v13278_v12 }
  0x37   :  { %1488 = vperm.xlu0 %12769, %v13620_v52   ;;  %12067 = vmatpush1.bf16.msra.mxu1 %v12066_v50  ;;  %v59_v50 = vld [vmem:[%s19742_s0 + $0xb0] sm:$0xff] }
  0x38   :  { %12068 = vmatprep.subr.bf16.mxu1 %v19751_v58 }
  0x39   :  { %9968 = vmatmul.mubr.msk.f32.gmra.mrb[22].mxu0 %vm89_vm0, %v13635_v55  ;;  %v13784_v55 = vpack.c.bf16 %v50_v8, %v13668_v63 }
  0x3a   :  { %1497 = vperm.xlu1 %12770, %v13641_v57   ;;  %322 = vmatprep.mubr.f32.mxu0 %v13278_v12 }
  0x3b   :  { %1494 = vperm.xlu0 %12769, %v13651_v60   ;;  %20156 = vst [vmem:[#allocation3_spill] sm:$0xff] %v13784_v55  ;;  %12103 = vmatpush1.bf16.msra.mxu0 %v13784_v55 }
  0x3c   :  { %12104 = vmatprep.subr.bf16.mxu0 %v19751_v58 }
  0x3d   :  { %9969 = vmatmul.mubr.msk.f32.gmra.mrb[24].mxu0 %vm89_vm0, %v13668_v63  ;;  %v12069_v63 = vpack.c.bf16 %v522_v6, %v521_v0  ;;  %v60_v6 = vld [vmem:[%s19742_s0 + $0xb8] sm:$0xff] }
  0x3e   :  { %1503 = vperm.xlu1 %12770, %v13674_v3   ;;  %328 = vmatprep.mubr.f32.mxu0 %v13278_v12 }
  0x3f   :  { %1500 = vperm.xlu0 %12769, %v13684_v5   ;;  %12070 = vmatpush1.bf16.msra.mxu1 %v12069_v63  ;;  %v61_v63 = vld [vmem:[%s19742_s0 + $0xc0] sm:$0xff] }
  0x40   :  { %12071 = vmatprep.subr.bf16.mxu1 %v19751_v58 }
  0x41   :  { %9970 = vmatmul.mubr.msk.f32.gmra.mrb[26].mxu0 %vm89_vm0, %v50_v8  ;;  %v13802_v8 = vpack.c.bf16 %v52_v32, %v51_v17 }
  0x42   :  { %12772 = vset.pattern.permute.xlu1 %v13280_v16  ;;  %334 = vmatprep.mubr.f32.mxu0 %v13278_v12 }
  0x43   :  { %12771 = vset.pattern.permute.xlu0 %v13280_v16  ;;  %2411 = vperm.xlu1 %12772, %v13455_v27   ;;  %20157 = vst [vmem:[#allocation4_spill] sm:$0xff] %v13802_v8  ;;  %v12072_v16 = vpack.c.bf16 %v524_v14, %v523_v11  ;;  %v62_v11 = vld [vmem:[%s19742_s0 + $0xc8] sm:$0xff] }
  0x44   :  { %2408 = vperm.xlu0 %12771, %v13435_v24   ;;  %12106 = vmatpush1.bf16.msra.mxu0 %v13802_v8  ;;  %v13892_v14 = vpack.c.bf16 %v62_v11, %v61_v63 }
  0x45   :  { %9971 = vmatmul.mubr.msk.f32.gmra.mrb[28].mxu0 %vm89_vm0, %v51_v17  ;;  %v13820_v17 = vpack.c.bf16 %v54_v62, %v53_v54  ;;  %12073 = vmatpush1.bf16.msra.mxu1 %v12072_v16  ;;  %v64_v16 = vld [vmem:[%s19742_s0 + $0xd8] sm:$0xff] }
  0x46   :  { %340 = vmatprep.mubr.f32.mxu0 %v13278_v12  ;;  %12107 = vmatprep.subr.bf16.mxu0 %v19751_v58  ;;  %20162 = vst [vmem:[#allocation9_spill] sm:$0xff] %v13892_v14 }
  0x47   :  { %2414 = vperm.xlu1 %12772, %v13475_v30   ;;  %20158 = vst [vmem:[#allocation5_spill] sm:$0xff] %v13820_v17  ;;  %12074 = vmatprep.subr.bf16.mxu1 %v19751_v58 }
  0x48   :  { %2417 = vperm.xlu0 %12771, %v13495_v33   ;;  %12109 = vmatpush1.bf16.msra.mxu0 %v13820_v17 }
  0x49   :  { %9972 = vmatmul.mubr.msk.f32.gmra.mrb[30].mxu0 %vm89_vm0, %v52_v32  ;;  %v12075_v32 = vpack.c.bf16 %v526_v26, %v525_v20  ;;  %12110 = vmatprep.subr.bf16.mxu0 %v19751_v58  ;;  %v65_v26 = vld [vmem:[%s19742_s0 + $0xe0] sm:$0xff] }
  0x4a   :  { %346 = vmatprep.mubr.f32.mxu0 %v13278_v12 }
  0x4b   :  { %2420 = vperm.xlu1 %12772, %v13515_v36   ;;  %12076 = vmatpush1.bf16.msra.mxu1 %v12075_v32 }
  0x4c   :  { %2423 = vperm.xlu0 %12771, %v13354_v2   ;;  %12077 = vmatprep.subr.bf16.mxu1 %v19751_v58 }
  0x4d   :  { %9973 = vmatmul.mubr.msk.f32.gmra.mrb[32].mxu0 %vm89_vm0, %v53_v54  ;;  %v58_v54 = vld [vmem:[%s19742_s0 + $0xa8] sm:$0xff] }
  0x4e   :  { %352 = vmatprep.mubr.f32.mxu0 %v13278_v12  ;;  %12112 = vmatpush1.bf16.msra.mxu0 %v13838_v35  ;;  %v13856_v56 = vpack.c.bf16 %v58_v54, %v57_v29 }
  0x4f   :  { %2426 = vperm.xlu1 %12772, %v13378_v10   ;;  %12079 = vmatpush1.bf16.msra.mxu1 %v12078_v44 }
  0x50   :  { %2429 = vperm.xlu0 %12771, %v13349_v1   ;;  %20160 = vst [vmem:[#allocation7_spill] sm:$0xff] %v13856_v56  ;;  %12113 = vmatprep.subr.bf16.mxu0 %v19751_v58 }
  0x51   :  { %9974 = vmatmul.mubr.msk.f32.gmra.mrb[34].mxu0 %vm89_vm0, %v54_v62  ;;  %v530_v62 = vld [vmem:[%s19743_s6 + $0xb8] sm:$0xff]  ;;  %12080 = vmatprep.subr.bf16.mxu1 %v19751_v58 }
  0x52   :  { %358 = vmatprep.mubr.f32.mxu0 %v13278_v12  ;;  %v12081_v0 = vpack.c.bf16 %v530_v62, %v529_v61  ;;  %12115 = vmatpush1.bf16.msra.mxu0 %v13856_v56  ;;  %v13281_v62 = vmov 2  }
  0x53   :  { %2432 = vperm.xlu1 %12772, %v13373_v9   ;;  %12116 = vmatprep.subr.bf16.mxu0 %v19751_v58 }
  0x54   :  { %2435 = vperm.xlu0 %12771, %v13403_v19   ;;  %12082 = vmatpush1.bf16.msra.mxu1 %v12081_v0 }
  0x55   :  { %9975 = vmatmul.mubr.msk.f32.gmra.mrb[36].mxu0 %vm89_vm0, %v55_v7  ;;  %v13877_v7 = vpack.c.bf16 %v60_v6, %v59_v50  ;;  %12627 = vmatprep.subr.bf16.mxu1 %v19751_v58 }
  0x56   :  { %364 = vmatprep.mubr.f32.mxu0 %v13278_v12 }
  0x57   :  { %2438 = vperm.xlu1 %12772, %v13398_v18   ;;  %20161 = vst [vmem:[#allocation8_spill] sm:$0xff] %v13877_v7  ;;  %12118 = vmatpush1.bf16.msra.mxu0 %v13877_v7 }
  0x58   :  { %2441 = vperm.xlu0 %12771, %v13420_v22   ;;  %12119 = vmatprep.subr.bf16.mxu0 %v19751_v58 }
  0x59   :  { %9976 = vmatmul.mubr.msk.f32.gmra.mrb[38].mxu0 %vm89_vm0, %v56_v15  ;;  %v63_v15 = vld [vmem:[%s19742_s0 + $0xd0] sm:$0xff] }
  0x5a   :  { %370 = vmatprep.mubr.f32.mxu0 %v13278_v12  ;;  %v13906_v20 = vpack.c.bf16 %v64_v16, %v63_v15 }
  0x5b   :  { %2444 = vperm.xlu1 %12772, %v13415_v21   ;;  %12121 = vmatpush1.bf16.msra.mxu0 %v13892_v14 }
  0x5c   :  { %2447 = vperm.xlu0 %12771, %v13440_v25   ;;  %20163 = vst [vmem:[#allocation10_spill] sm:$0xff] %v13906_v20  ;;  %12122 = vmatprep.subr.bf16.mxu0 %v19751_v58 }
  0x5d   :  { %9977 = vmatmul.mubr.msk.f32.gmra.mrb[40].mxu0 %vm89_vm0, %v57_v29  ;;  %v66_v29 = vld [vmem:[%s19742_s0 + $0xe8] sm:$0xff] }
  0x5e   :  { %376 = vmatprep.mubr.f32.mxu0 %v13278_v12  ;;  %v13920_v32 = vpack.c.bf16 %v66_v29, %v65_v26 }
  0x5f   :  { %2450 = vperm.xlu1 %12772, %v13460_v28   ;;  %12124 = vmatpush1.bf16.msra.mxu0 %v13906_v20 }
  0x60   :  { %2453 = vperm.xlu0 %12771, %v13480_v31   ;;  %20164 = vst [vmem:[#allocation11_spill] sm:$0xff] %v13920_v32  ;;  %12125 = vmatprep.subr.bf16.mxu0 %v19751_v58 }
  0x61   :  { %9978 = vmatmul.mubr.msk.f32.gmra.mrb[42].mxu0 %vm89_vm0, %v58_v54  ;;  %v13934_v54 = vpack.c.bf16 %v68_v53, %v67_v41 }
  0x62   :  { %382 = vmatprep.mubr.f32.mxu0 %v13278_v12 }
  0x63   :  { %2456 = vperm.xlu1 %12772, %v13500_v34   ;;  %12127 = vmatpush1.bf16.msra.mxu0 %v13920_v32  ;;  %20165 = vst [vmem:[#allocation12_spill] sm:$0xff] %v13934_v54 }
  0x64   :  { %2459 = vperm.xlu0 %12771, %v13520_v37   ;;  %12128 = vmatprep.subr.bf16.mxu0 %v19751_v58 }
  0x65   :  { %9979 = vmatmul.mubr.msk.f32.gmra.mrb[44].mxu0 %vm89_vm0, %v59_v50 }
  0x66   :  { %388 = vmatprep.mubr.f32.mxu0 %v13278_v12 }
  0x67   :  { %2462 = vperm.xlu1 %12772, %v13540_v40   ;;  %12130 = vmatpush1.bf16.msra.mxu0 %v13934_v54 }
  0x68   :  { %2465 = vperm.xlu0 %12771, %v13535_v39  }
  0x69   :  { %9980 = vmatmul.mubr.msk.f32.gmra.mrb[46].mxu0 %vm89_vm0, %v60_v6  ;;  %v19753_v6 = vlaneseq }
  0x6a   :  { %394 = vmatprep.mubr.f32.mxu0 %v13278_v12 }
  0x6b   :  { %2468 = vperm.xlu1 %12772, %v13560_v43  }
  0x6c   :  { %2471 = vperm.xlu0 %12771, %v13555_v42  }
  0x6d   :  { %9981 = vmatmul.mubr.msk.f32.gmra.mrb[48].mxu0 %vm89_vm0, %v61_v63 }
  0x6e   :  { %400 = vmatprep.mubr.f32.mxu0 %v13278_v12 }
  0x6f   :  { %2474 = vperm.xlu1 %12772, %v13580_v46  }
  0x70   :  { %2477 = vperm.xlu0 %12771, %v13575_v45  }
  0x71   :  { %9982 = vmatmul.mubr.msk.f32.gmra.mrb[50].mxu0 %vm89_vm0, %v62_v11  ;;  %v13970_v11 = vand.u32 127, %v19753_v6 }
  0x72   :  { %406 = vmatprep.mubr.f32.mxu0 %v13278_v12 }
  0x73   :  { %2480 = vperm.xlu1 %12772, %v13600_v49  }
  0x74   :  { %2483 = vperm.xlu0 %12771, %v13595_v48  }
  0x75   :  { %9983 = vmatmul.mubr.msk.f32.gmra.mrb[52].mxu0 %vm89_vm0, %v63_v15 }
  0x76   :  { %412 = vmatprep.mubr.f32.mxu0 %v13278_v12 }
  0x77   :  { %2486 = vperm.xlu1 %12772, %v13620_v52  }
  0x78   :  { %2489 = vperm.xlu0 %12771, %v13615_v51  }
  0x79   :  { %9984 = vmatmul.mubr.msk.f32.gmra.mrb[54].mxu0 %vm89_vm0, %v64_v16 }
  0x7a   :  { %418 = vmatprep.mubr.f32.mxu0 %v13278_v12 }
  0x7b   :  { %2492 = vperm.xlu1 %12772, %v13651_v60  }
  0x7c   :  { %2495 = vperm.xlu0 %12771, %v13641_v57  }
  0x7d   :  { %9985 = vmatmul.mubr.msk.f32.gmra.mrb[56].mxu0 %vm89_vm0, %v65_v26  ;;  %v13981_v26 = vadd.s32 128, %v13970_v11 }
  0x7e   :  { %424 = vmatprep.mubr.f32.mxu0 %v13278_v12 }
  0x7f   :  { %2498 = vperm.xlu1 %12772, %v13684_v5  }
  0x80   :  { %2501 = vperm.xlu0 %12771, %v13674_v3  }
  0x81   :  { %9986 = vmatmul.mubr.msk.f32.gmra.mrb[58].mxu0 %vm89_vm0, %v66_v29  ;;  %v13951_v44 = vpop.permute.xlu1 %1431  ;;  %v13953_v61 = vpop.permute.xlu0 %1425 }
  0x82   :  { %430 = vmatprep.mubr.f32.mxu0 %v13278_v12  ;;  %vm1516_vm12 = vcmp.eq.s32.totalorder %v13981_v26, %v13953_v61  ;;  %vm1515_vm13 = vcmp.eq.s32.totalorder %v13970_v11, %v13953_v61  ;;  %vm1520_vm15 = vcmp.eq.s32.totalorder %v13981_v26, %v13951_v44 }
  0x83   :  { %12773 = vset.pattern.permute.xlu1 %v13281_v62 }
  0x84   :  { %12774 = vset.pattern.permute.xlu0 %v13281_v62  ;;  %3274 = vperm.xlu1 %12773, %v13435_v24  }
  0x85   :  { %3277 = vperm.xlu0 %12774, %v13455_v27   ;;  %9987 = vmatmul.mubr.msk.f32.gmra.mrb[60].mxu0 %vm89_vm0, %v67_v41  ;;  %v13959_v50 = vpop.permute.xlu1 %1434 }
  0x86   :  { %436 = vmatprep.mubr.f32.mxu0 %v13278_v12  ;;  %v13962_v0 = vpop.permute.xlu0 %1428 }
  0x87   :  { %vm1518_vm14 = vcmp.eq.s32.totalorder %v13981_v26, %v13962_v0 }
  0x88   :  { %3280 = vperm.xlu1 %12773, %v13475_v30  }
  0x89   :  { %3286 = vperm.xlu0 %12774, %v13515_v36   ;;  %9988 = vmatmul.mubr.msk.f32.gmra.mrb[62].mxu0 %vm89_vm0, %v68_v53  ;;  %v13967_v63 = vpop.permute.xlu1 %1440  ;;  %v19758_v53 = vmov 1.0  }
  0x8a   :  { %v13972_v15 = vpop.permute.xlu0 %1437 }
  0x8c   :  { %3283 = vperm.xlu1 %12773, %v13495_v33  }
  0x8d   :  { %3292 = vperm.xlu0 %12774, %v13378_v10   ;;  %v13976_v12 = vpop.permute.xlu1 %1446 }
  0x8e   :  { %20166 = vst [vmem:[#allocation13_spill] sm:$0xff] %v13976_v12  ;;  %v13978_v16 = vpop.permute.xlu0 %1443 }
  0x8f   :  { %20167 = vst [vmem:[#allocation14_spill] sm:$0xff] %v13978_v16 }
  0x90   :  { %3289 = vperm.xlu1 %12773, %v13354_v2  }
  0x91   :  { %3298 = vperm.xlu0 %12774, %v13373_v9   ;;  %v1411_v29 = vpop.permute.xlu1 %1410 }
  0x92   :  { %v13985_v41 = vpop.permute.xlu0 %1449  ;;  %vm1505_vm1 = vcmp.eq.s32.totalorder %v13970_v11, %v1411_v29  ;;  %vm1506_vm2 = vcmp.eq.s32.totalorder %v13981_v26, %v1411_v29 }
  0x93   :  { %20168 = vst [vmem:[#allocation15_spill] sm:$0xff] %v13985_v41  ;;  %10086 = vmatprep.mubr.msk.f32.mxu0 %vm1506_vm2, %v19758_v53  ;;  %vm1519_vm2 = vcmp.eq.s32.totalorder %v13970_v11, %v13951_v44 }
  0x94   :  { %3295 = vperm.xlu1 %12773, %v13349_v1   ;;  %10087 = vmatmul.mubr.msk.f32.vlgmr.msra.gmra.mrb[64].mxu0 %vm1505_vm1, %v19758_v53  ;;  %vm1517_vm1 = vcmp.eq.s32.totalorder %v13970_v11, %v13962_v0 }
  0x95   :  { %3304 = vperm.xlu0 %12774, %v13398_v18   ;;  %v1414_v62 = vpop.permute.xlu1 %1413 }
  0x96   :  { %v13993_v58 = vpop.permute.xlu0 %1452  ;;  %vm1508_vm3 = vcmp.eq.s32.totalorder %v13981_v26, %v1414_v62  ;;  %vm1507_vm4 = vcmp.eq.s32.totalorder %v13970_v11, %v1414_v62 }
  0x97   :  { %20169 = vst [vmem:[#allocation16_spill] sm:$0xff] %v13993_v58  ;;  %10088 = vmatprep.mubr.msk.f32.mxu0 %vm1508_vm3, %v19758_v53  ;;  %vm1522_vm3 = vcmp.eq.s32.totalorder %v13981_v26, %v13959_v50 }
  0x98   :  { %3301 = vperm.xlu1 %12773, %v13403_v19   ;;  %10089 = vmatmul.mubr.msk.f32.gmra.mrb[66].mxu0 %vm1507_vm4, %v19758_v53  ;;  %vm1521_vm4 = vcmp.eq.s32.totalorder %v13970_v11, %v13959_v50 }
  0x99   :  { %3310 = vperm.xlu0 %12774, %v13415_v21   ;;  %v1417_v29 = vpop.permute.xlu1 %1416 }
  0x9a   :  { %v14001_v6 = vpop.permute.xlu0 %1455  ;;  %vm1510_vm5 = vcmp.eq.s32.totalorder %v13981_v26, %v1417_v29  ;;  %vm1509_vm6 = vcmp.eq.s32.totalorder %v13970_v11, %v1417_v29 }
  0x9b   :  { %20170 = vst [vmem:[#allocation17_spill] sm:$0xff] %v14001_v6  ;;  %10090 = vmatprep.mubr.msk.f32.mxu0 %vm1510_vm5, %v19758_v53  ;;  %vm1524_vm5 = vcmp.eq.s32.totalorder %v13981_v26, %v13972_v15 }
  0x9c   :  { %3307 = vperm.xlu1 %12773, %v13420_v22   ;;  %10091 = vmatmul.mubr.msk.f32.gmra.mrb[68].mxu0 %vm1509_vm6, %v19758_v53  ;;  %vm1523_vm6 = vcmp.eq.s32.totalorder %v13970_v11, %v13972_v15  ;;  %v20301_v15 = vld [vmem:[#allocation14_spill] sm:$0xff] }
  0x9d   :  { %3316 = vperm.xlu0 %12774, %v13460_v28   ;;  %v1420_v62 = vpop.permute.xlu1 %1419 }
  0x9e   :  { %v14009_v58 = vpop.permute.xlu0 %1458  ;;  %vm1512_vm7 = vcmp.eq.s32.totalorder %v13981_v26, %v1420_v62  ;;  %vm1511_vm8 = vcmp.eq.s32.totalorder %v13970_v11, %v1420_v62 }
  0x9f   :  { %20171 = vst [vmem:[#allocation18_spill] sm:$0xff] %v14009_v58  ;;  %10092 = vmatprep.mubr.msk.f32.mxu0 %vm1512_vm7, %v19758_v53  ;;  %vm1526_vm7 = vcmp.eq.s32.totalorder %v13981_v26, %v13967_v63 }
  0xa0   :  { %3313 = vperm.xlu1 %12773, %v13440_v25   ;;  %10093 = vmatmul.mubr.msk.f32.gmra.mrb[70].mxu0 %vm1511_vm8, %v19758_v53  ;;  %vm1525_vm8 = vcmp.eq.s32.totalorder %v13970_v11, %v13967_v63  ;;  %v20303_v63 = vld [vmem:[#allocation13_spill] sm:$0xff] }
  0xa1   :  { %3322 = vperm.xlu0 %12774, %v13500_v34   ;;  %v14017_v29 = vpop.permute.xlu1 %1422 }
  0xa2   :  { %v14019_v6 = vpop.permute.xlu0 %1461  ;;  %vm1514_vm10 = vcmp.eq.s32.totalorder %v13981_v26, %v14017_v29  ;;  %vm1513_vm11 = vcmp.eq.s32.totalorder %v13970_v11, %v14017_v29 }
  0xa3   :  { %20172 = vst [vmem:[#allocation19_spill] sm:$0xff] %v14019_v6 }
  0xa4   :  { %3319 = vperm.xlu1 %12773, %v13480_v31  }
  0xa5   :  { %3328 = vperm.xlu0 %12774, %v13540_v40   ;;  %v14023_v58 = vpop.permute.xlu1 %1467 }
  0xa6   :  { %20173 = vst [vmem:[#allocation20_spill] sm:$0xff] %v14023_v58  ;;  %v14025_v41 = vpop.permute.xlu0 %1464 }
  0xa7   :  { %20174 = vst [vmem:[#allocation21_spill] sm:$0xff] %v14025_v41 }
  0xa8   :  { %3325 = vperm.xlu1 %12773, %v13520_v37  }
  0xa9   :  { %3334 = vperm.xlu0 %12774, %v13560_v43   ;;  %v14029_v62 = vpop.permute.xlu1 %1473 }
  0xaa   :  { %20175 = vst [vmem:[#allocation22_spill] sm:$0xff] %v14029_v62  ;;  %v14031_v53 = vpop.permute.xlu0 %1470 }
  0xab   :  { %20176 = vst [vmem:[#allocation23_spill] sm:$0xff] %v14031_v53 }
  0xac   :  { %3331 = vperm.xlu1 %12773, %v13535_v39  }
  0xad   :  { %3340 = vperm.xlu0 %12774, %v13580_v46   ;;  %v14035_v6 = vpop.permute.xlu1 %1479 }
  0xae   :  { %20177 = vst [vmem:[#allocation24_spill] sm:$0xff] %v14035_v6  ;;  %v14037_v12 = vpop.permute.xlu0 %1476 }
  0xaf   :  { %20178 = vst [vmem:[#allocation25_spill] sm:$0xff] %v14037_v12 }
  0xb0   :  { %3337 = vperm.xlu1 %12773, %v13555_v42  }
  0xb1   :  { %3346 = vperm.xlu0 %12774, %v13600_v49   ;;  %v14041_v58 = vpop.permute.xlu1 %1485 }
  0xb2   :  { %20179 = vst [vmem:[#allocation26_spill] sm:$0xff] %v14041_v58  ;;  %v14043_v41 = vpop.permute.xlu0 %1482 }
  0xb3   :  { %20180 = vst [vmem:[#allocation27_spill] sm:$0xff] %v14043_v41 }
  0xb4   :  { %3343 = vperm.xlu1 %12773, %v13575_v45  }
  0xb5   :  { %3352 = vperm.xlu0 %12774, %v13620_v52   ;;  %v14047_v62 = vpop.permute.xlu1 %1491 }
  0xb6   :  { %20181 = vst [vmem:[#allocation28_spill] sm:$0xff] %v14047_v62  ;;  %v14049_v53 = vpop.permute.xlu0 %1488  ;;  %v13283_v62 = vmov 3  }
  0xb7   :  { %20182 = vst [vmem:[#allocation29_spill] sm:$0xff] %v14049_v53 }
  0xb8   :  { %3349 = vperm.xlu1 %12773, %v13595_v48  }
  0xb9   :  { %3358 = vperm.xlu0 %12774, %v13651_v60   ;;  %v14053_v6 = vpop.permute.xlu1 %1497 }
  0xba   :  { %20183 = vst [vmem:[#allocation30_spill] sm:$0xff] %v14053_v6  ;;  %v14055_v12 = vpop.permute.xlu0 %1494 }
  0xbb   :  { %20184 = vst [vmem:[#allocation31_spill] sm:$0xff] %v14055_v12 }
  0xbc   :  { %3355 = vperm.xlu1 %12773, %v13615_v51  }
  0xbd   :  { %3364 = vperm.xlu0 %12774, %v13684_v5   ;;  %v14059_v58 = vpop.permute.xlu1 %1503 }
  0xbe   :  { %20185 = vst [vmem:[#allocation32_spill] sm:$0xff] %v14059_v58  ;;  %v14061_v41 = vpop.permute.xlu0 %1500 }
  0xc0   :  { %3361 = vperm.xlu1 %12773, %v13641_v57  }
  0xc1   :  { %12775 = vset.pattern.permute.xlu0 %v13283_v62 }
  0xc2   :  { %4140 = vperm.xlu0 %12775, %v13435_v24   ;;  %v14065_v53 = vpop.permute.xlu1 %2411 }
  0xc3   :  { %20186 = vst [vmem:[#allocation33_spill] sm:$0xff] %v14065_v53  ;;  %v14067_v16 = vpop.permute.xlu0 %2408 }
  0xc4   :  { %20187 = vst [vmem:[#allocation34_spill] sm:$0xff] %v14067_v16  ;;  %3367 = vperm.xlu1 %12773, %v13674_v3  }
  0xc6   :  { %4149 = vperm.xlu0 %12775, %v13495_v33   ;;  %v14071_v6 = vpop.permute.xlu1 %2414 }
  0xc7   :  { %20188 = vst [vmem:[#allocation35_spill] sm:$0xff] %v14071_v6  ;;  %v14073_v12 = vpop.permute.xlu0 %2417 }
  0xc8   :  { %20189 = vst [vmem:[#allocation36_spill] sm:$0xff] %v14073_v12  ;;  %12776 = vset.pattern.permute.xlu1 %v13283_v62 }
  0xc9   :  { %4143 = vperm.xlu1 %12776, %v13455_v27  }
  0xca   :  { %4155 = vperm.xlu0 %12775, %v13354_v2   ;;  %v14077_v58 = vpop.permute.xlu1 %2420  ;;  %v20196_v2 = vlaneseq }
  0xcb   :  { %20190 = vst [vmem:[#allocation37_spill] sm:$0xff] %v14077_v58  ;;  %v14079_v24 = vpop.permute.xlu0 %2423 }
  0xcc   :  { %20191 = vst [vmem:[#allocation38_spill] sm:$0xff] %v14079_v24  ;;  %v80_v24 = vshrl.u32 %v20196_v2, 7 }
  0xcd   :  { %4146 = vperm.xlu1 %12776, %v13475_v30  }
  0xce   :  { %4161 = vperm.xlu0 %12775, %v13349_v1   ;;  %v14083_v53 = vpop.permute.xlu1 %2426 }
  0xcf   :  { %20192 = vst [vmem:[#allocation39_spill] sm:$0xff] %v14083_v53  ;;  %v14085_v33 = vpop.permute.xlu0 %2429 }
  0xd0   :  { %20193 = vst [vmem:[#allocation40_spill] sm:$0xff] %v14085_v33  ;;  %v81_v33 = vsub.s32 0, %v80_v24 }
  0xd1   :  { %4152 = vperm.xlu1 %12776, %v13515_v36  }
  0xd2   :  { %4167 = vperm.xlu0 %12775, %v13403_v19   ;;  %v14089_v62 = vpop.permute.xlu1 %2432  ;;  %v77_v19 = vld [vmem:[%s19744_s4] sm:$0x3] }
  0xd3   :  { %20194 = vst [vmem:[#allocation41_spill] sm:$0xff] %v14089_v62  ;;  %v14091_v27 = vpop.permute.xlu0 %2435 }
  0xd4   :  { %20195 = vst [vmem:[#allocation42_spill] sm:$0xff] %v14091_v27 }
  0xd5   :  { %4158 = vperm.xlu1 %12776, %v13378_v10   ;;  %v85_v10 = vsub.s32 1, %v80_v24 }
  0xd6   :  { %4173 = vperm.xlu0 %12775, %v13420_v22   ;;  %v14096_v30 = vpop.permute.xlu1 %2438  ;;  %v14110_v22 = vrot.slane %v77_v19, %v81_v33 }
  0xd7   :  { %20197 = vst [vmem:[#allocation43_spill] sm:$0xff] %v14096_v30  ;;  %v14098_v1 = vpop.permute.xlu0 %2441 }
  0xd8   :  { %20198 = vst [vmem:[#allocation44_spill] sm:$0xff] %v14098_v1 }
  0xd9   :  { %4164 = vperm.xlu1 %12776, %v13373_v9   ;;  %v14115_v9 = vrot.slane %v77_v19, %v85_v10 }
  0xda   :  { %4179 = vperm.xlu0 %12775, %v13440_v25   ;;  %v14105_v36 = vpop.permute.xlu1 %2444 }
  0xdb   :  { %20199 = vst [vmem:[#allocation45_spill] sm:$0xff] %v14105_v36  ;;  %v14107_v27 = vpop.permute.xlu0 %2447 }
  0xdc   :  { %20200 = vst [vmem:[#allocation46_spill] sm:$0xff] %v14107_v27 }
  0xdd   :  { %4170 = vperm.xlu1 %12776, %v13398_v18  }
  0xde   :  { %4185 = vperm.xlu0 %12775, %v13480_v31   ;;  %v14113_v2 = vpop.permute.xlu1 %2450 }
  0xdf   :  { %20201 = vst [vmem:[#allocation47_spill] sm:$0xff] %v14113_v2  ;;  %v14117_v25 = vpop.permute.xlu0 %2453 }
  0xe0   :  { %20202 = vst [vmem:[#allocation48_spill] sm:$0xff] %v14117_v25  ;;  %v252_v1 = vpop.f32.mrb[0].mxu0 }
  0xe1   :  { %v253_v30 = vadd.f32 %v252_v1, %v14110_v22  ;;  %v254_v62 = vpop.f32.mrb[1].mxu0  ;;  %4176 = vperm.xlu1 %12776, %v13415_v21   ;;  %v20206_v1 = vmov 1.0  }
  0xe2   :  { %4191 = vperm.xlu0 %12775, %v13520_v37   ;;  %v14123_v18 = vadd.f32 %v254_v62, %v14115_v9  ;;  %v14125_v24 = vpop.permute.xlu1 %2456  ;;  %10094 = vmatprep.mubr.msk.f32.mxu0 %vm1514_vm10, %v20206_v1  ;;  %vm1528_vm10 = vcmp.eq.s32.totalorder %v13981_v26, %v20301_v15 }
  0xe3   :  { %20204 = vst [vmem:[#allocation50_spill] sm:$0xff] %v14125_v24  ;;  %v14127_v31 = vpop.permute.xlu0 %2459  ;;  %v443_v62 = vmax.f32 %v253_v30, 0.0  ;;  %10095 = vmatmul.mubr.msk.f32.gmra.mrb[72].mxu0 %vm1513_vm11, %v20206_v1  ;;  %vm1527_vm11 = vcmp.eq.s32.totalorder %v13970_v11, %v20301_v15  ;;  %v20306_v15 = vld [vmem:[#allocation15_spill] sm:$0xff] }
  0xe4   :  { %20203 = vst [vmem:[#allocation49_spill] sm:$0xff] %v14123_v18  ;;  %20205 = vst [vmem:[#allocation51_spill] sm:$0xff] %v14127_v31  ;;  %v258_v33 = vpop.f32.mrb[2].mxu0  ;;  %v444_v19 = vmax.f32 %v14123_v18, 0.0 }
  0xe5   :  { %v259_v21 = vadd.f32 %v258_v33, %v14110_v22  ;;  %v260_v37 = vpop.f32.mrb[3].mxu0  ;;  %4182 = vperm.xlu1 %12776, %v13460_v28  }
  0xe6   :  { %v14138_v10 = vadd.f32 %v260_v37, %v14115_v9  ;;  %4197 = vperm.xlu0 %12775, %v13535_v39   ;;  %9990 = vmatprep.mubr.msk.f32.mxu1 %vm538_vm9, %v444_v19  ;;  %v14142_v31 = vpop.permute.xlu1 %2462  ;;  %v20210_v37 = vmov 0.0|0.0  }
  0xe7   :  { %20208 = vst [vmem:[#allocation53_spill] sm:$0xff] %v14142_v31  ;;  %700 = vmatmul.mubr.f32.vlgmr.msra.gmra.mrb[0].mxu1 %v443_v62  ;;  %v14144_v24 = vpop.permute.xlu0 %2465  ;;  %v445_v39 = vmax.f32 %v259_v21, 0.0 }
  0xe8   :  { %20207 = vst [vmem:[#allocation52_spill] sm:$0xff] %v14138_v10  ;;  %20209 = vst [vmem:[#allocation54_spill] sm:$0xff] %v14144_v24  ;;  %v446_v29 = vmax.f32 %v14138_v10, 0.0  ;;  %12643 = vmatpush1.bf16.msra.mxu1 %v13646_v59  ;;  %v264_v28 = vpop.f32.mrb[4].mxu0 }
  0xe9   :  { %v265_v30 = vadd.f32 %v264_v28, %v14110_v22  ;;  %v266_v33 = vpop.f32.mrb[5].mxu0  ;;  %4188 = vperm.xlu1 %12776, %v13500_v34   ;;  %12628 = vmatprep.subr.bf16.mxu1 %v20210_v37 }
  0xea   :  { %v14153_v19 = vadd.f32 %v266_v33, %v14115_v9  ;;  %4203 = vperm.xlu0 %12775, %v13555_v42   ;;  %9991 = vmatprep.mubr.msk.f32.mxu1 %vm538_vm9, %v446_v29  ;;  %v14157_v62 = vpop.permute.xlu1 %2468 }
  0xeb   :  { %20212 = vst [vmem:[#allocation56_spill] sm:$0xff] %v14157_v62  ;;  %705 = vmatmul.mubr.f32.gmra.mrb[2].mxu1 %v445_v39  ;;  %v14159_v24 = vpop.permute.xlu0 %2471  ;;  %v447_v33 = vmax.f32 %v265_v30, 0.0 }
  0xec   :  { %20211 = vst [vmem:[#allocation55_spill] sm:$0xff] %v14153_v19  ;;  %20213 = vst [vmem:[#allocation57_spill] sm:$0xff] %v14159_v24  ;;  %v448_v28 = vmax.f32 %v14153_v19, 0.0  ;;  %v270_v31 = vpop.f32.mrb[6].mxu0  ;;  %12644 = vmatpush1.bf16.msra.mxu1 %v13679_v4 }
  0xed   :  { %v271_v34 = vadd.f32 %v270_v31, %v14110_v22  ;;  %v272_v21 = vpop.f32.mrb[7].mxu0  ;;  %4194 = vperm.xlu1 %12776, %v13540_v40   ;;  %12629 = vmatprep.subr.bf16.mxu1 %v20210_v37 }
  0xee   :  { %v14167_v42 = vadd.f32 %v272_v21, %v14115_v9  ;;  %4209 = vperm.xlu0 %12775, %v13575_v45   ;;  %9992 = vmatprep.mubr.msk.f32.mxu1 %vm538_vm9, %v448_v28  ;;  %v14171_v29 = vpop.permute.xlu1 %2474 }
  0xef   :  { %20215 = vst [vmem:[#allocation59_spill] sm:$0xff] %v14171_v29  ;;  %710 = vmatmul.mubr.f32.gmra.mrb[4].mxu1 %v447_v33  ;;  %v14173_v39 = vpop.permute.xlu0 %2477  ;;  %v449_v21 = vmax.f32 %v271_v34, 0.0 }
  0xf0   :  { %20214 = vst [vmem:[#allocation58_spill] sm:$0xff] %v14167_v42  ;;  %20216 = vst [vmem:[#allocation60_spill] sm:$0xff] %v14173_v39  ;;  %v450_v31 = vmax.f32 %v14167_v42, 0.0  ;;  %v276_v24 = vpop.f32.mrb[8].mxu0  ;;  %12645 = vmatpush1.bf16.msra.mxu1 %v13706_v13 }
  0xf1   :  { %v277_v40 = vadd.f32 %v276_v24, %v14110_v22  ;;  %v278_v30 = vpop.f32.mrb[9].mxu0  ;;  %4200 = vperm.xlu1 %12776, %v13560_v43   ;;  %12630 = vmatprep.subr.bf16.mxu1 %v20210_v37 }
  0xf2   :  { %v14181_v45 = vadd.f32 %v278_v30, %v14115_v9  ;;  %4215 = vperm.xlu0 %12775, %v13595_v48   ;;  %9993 = vmatprep.mubr.msk.f32.mxu1 %vm538_vm9, %v450_v31  ;;  %v14185_v28 = vpop.permute.xlu1 %2480 }
  0xf3   :  { %20218 = vst [vmem:[#allocation62_spill] sm:$0xff] %v14185_v28  ;;  %715 = vmatmul.mubr.f32.gmra.mrb[6].mxu1 %v449_v21  ;;  %v14187_v33 = vpop.permute.xlu0 %2483  ;;  %v451_v30 = vmax.f32 %v277_v40, 0.0 }
  0xf4   :  { %20217 = vst [vmem:[#allocation61_spill] sm:$0xff] %v14181_v45  ;;  %20219 = vst [vmem:[#allocation63_spill] sm:$0xff] %v14187_v33  ;;  %v452_v24 = vmax.f32 %v14181_v45, 0.0  ;;  %v282_v39 = vpop.f32.mrb[10].mxu0  ;;  %12646 = vmatpush1.bf16.msra.mxu1 %v13725_v23 }
  0xf5   :  { %v283_v43 = vadd.f32 %v282_v39, %v14110_v22  ;;  %v284_v34 = vpop.f32.mrb[11].mxu0  ;;  %4206 = vperm.xlu1 %12776, %v13580_v46   ;;  %12631 = vmatprep.subr.bf16.mxu1 %v20210_v37 }
  0xf6   :  { %v14195_v48 = vadd.f32 %v284_v34, %v14115_v9  ;;  %4221 = vperm.xlu0 %12775, %v13615_v51   ;;  %9994 = vmatprep.mubr.msk.f32.mxu1 %vm538_vm9, %v452_v24  ;;  %v14199_v31 = vpop.permute.xlu1 %2486 }
  0xf7   :  { %20221 = vst [vmem:[#allocation65_spill] sm:$0xff] %v14199_v31  ;;  %720 = vmatmul.mubr.f32.gmra.mrb[8].mxu1 %v451_v30  ;;  %v14201_v21 = vpop.permute.xlu0 %2489  ;;  %v453_v34 = vmax.f32 %v283_v43, 0.0 }
  0xf8   :  { %20220 = vst [vmem:[#allocation64_spill] sm:$0xff] %v14195_v48  ;;  %20222 = vst [vmem:[#allocation66_spill] sm:$0xff] %v14201_v21  ;;  %v454_v39 = vmax.f32 %v14195_v48, 0.0  ;;  %v288_v33 = vpop.f32.mrb[12].mxu0  ;;  %12647 = vmatpush1.bf16.msra.mxu1 %v13745_v38 }
  0xf9   :  { %v289_v46 = vadd.f32 %v288_v33, %v14110_v22  ;;  %v290_v40 = vpop.f32.mrb[13].mxu0  ;;  %4212 = vperm.xlu1 %12776, %v13600_v49   ;;  %12632 = vmatprep.subr.bf16.mxu1 %v20210_v37 }
  0xfa   :  { %v14209_v51 = vadd.f32 %v290_v40, %v14115_v9  ;;  %4227 = vperm.xlu0 %12775, %v13641_v57   ;;  %9995 = vmatprep.mubr.msk.f32.mxu1 %vm538_vm9, %v454_v39  ;;  %v14213_v24 = vpop.permute.xlu1 %2492 }
  0xfb   :  { %20224 = vst [vmem:[#allocation68_spill] sm:$0xff] %v14213_v24  ;;  %725 = vmatmul.mubr.f32.gmra.mrb[10].mxu1 %v453_v34  ;;  %v14215_v30 = vpop.permute.xlu0 %2495  ;;  %v455_v40 = vmax.f32 %v289_v46, 0.0 }
  0xfc   :  { %20223 = vst [vmem:[#allocation67_spill] sm:$0xff] %v14209_v51  ;;  %20225 = vst [vmem:[#allocation69_spill] sm:$0xff] %v14215_v30  ;;  %v456_v33 = vmax.f32 %v14209_v51, 0.0  ;;  %v294_v21 = vpop.f32.mrb[14].mxu0  ;;  %12648 = vmatpush1.bf16.msra.mxu1 %v13765_v47 }
  0xfd   :  { %v295_v49 = vadd.f32 %v294_v21, %v14110_v22  ;;  %v296_v43 = vpop.f32.mrb[15].mxu0  ;;  %4218 = vperm.xlu1 %12776, %v13620_v52   ;;  %12633 = vmatprep.subr.bf16.mxu1 %v20210_v37 }
  0xfe   :  { %v14223_v57 = vadd.f32 %v296_v43, %v14115_v9  ;;  %4233 = vperm.xlu0 %12775, %v13674_v3   ;;  %9996 = vmatprep.mubr.msk.f32.mxu1 %vm538_vm9, %v456_v33  ;;  %v14227_v39 = vpop.permute.xlu1 %2498  ;;  %v13284_v33 = vmov 4  }
  0xff   :  { %20227 = vst [vmem:[#allocation71_spill] sm:$0xff] %v14227_v39  ;;  %730 = vmatmul.mubr.f32.gmra.mrb[12].mxu1 %v455_v40  ;;  %v14229_v34 = vpop.permute.xlu0 %2501  ;;  %v457_v43 = vmax.f32 %v295_v49, 0.0  ;;  %v14243_v40 = vld [vmem:[%s19740_s1 + $0x8] sm:$0xff] }
 0x100   :  { %20226 = vst [vmem:[#allocation70_spill] sm:$0xff] %v14223_v57  ;;  %20228 = vst [vmem:[#allocation72_spill] sm:$0xff] %v14229_v34  ;;  %v458_v21 = vmax.f32 %v14223_v57, 0.0  ;;  %v300_v30 = vpop.f32.mrb[16].mxu0  ;;  %12649 = vmatpush1.bf16.msra.mxu1 %v13784_v55 }
 0x101   :  { %v301_v52 = vadd.f32 %v300_v30, %v14110_v22  ;;  %v302_v46 = vpop.f32.mrb[17].mxu0  ;;  %4224 = vperm.xlu1 %12776, %v13651_v60   ;;  %12634 = vmatprep.subr.bf16.mxu1 %v20210_v37 }
 0x102   :  { %v14237_v3 = vadd.f32 %v302_v46, %v14115_v9  ;;  %12778 = vset.pattern.permute.xlu0 %v13284_v33  ;;  %9997 = vmatprep.mubr.msk.f32.mxu1 %vm538_vm9, %v458_v21 }
 0x103   :  { %5009 = vperm.xlu0 %12778, %v14243_v40   ;;  %735 = vmatmul.mubr.f32.gmra.mrb[14].mxu1 %v457_v43  ;;  %v14246_v30 = vpop.permute.xlu1 %3274  ;;  %v459_v39 = vmax.f32 %v301_v52, 0.0  ;;  %v14262_v43 = vld [vmem:[%s19740_s1 + $0x20] sm:$0xff] }
 0x104   :  { %20229 = vst [vmem:[#allocation73_spill] sm:$0xff] %v14237_v3  ;;  %20230 = vst [vmem:[#allocation74_spill] sm:$0xff] %v14246_v30  ;;  %v460_v60 = vmax.f32 %v14237_v3, 0.0  ;;  %v306_v49 = vpop.f32.mrb[18].mxu0  ;;  %v14249_v34 = vpop.permute.xlu0 %3277  ;;  %12650 = vmatpush1.bf16.msra.mxu1 %v13802_v8 }
 0x105   :  { %20231 = vst [vmem:[#allocation75_spill] sm:$0xff] %v14249_v34  ;;  %v307_v46 = vadd.f32 %v306_v49, %v14110_v22  ;;  %v308_v21 = vpop.f32.mrb[19].mxu0  ;;  %4230 = vperm.xlu1 %12776, %v13684_v5   ;;  %12635 = vmatprep.subr.bf16.mxu1 %v20210_v37 }
 0x106   :  { %v14256_v24 = vadd.f32 %v308_v21, %v14115_v9  ;;  %9998 = vmatprep.mubr.msk.f32.mxu1 %vm538_vm9, %v460_v60 }
 0x107   :  { %5018 = vperm.xlu0 %12778, %v14262_v43   ;;  %740 = vmatmul.mubr.f32.gmra.mrb[16].mxu1 %v459_v39  ;;  %v14265_v49 = vpop.permute.xlu1 %3280  ;;  %v461_v30 = vmax.f32 %v307_v46, 0.0  ;;  %v14280_v39 = vld [vmem:[%s19740_s1] sm:$0xff] }
 0x108   :  { %20232 = vst [vmem:[#allocation76_spill] sm:$0xff] %v14256_v24  ;;  %20233 = vst [vmem:[#allocation77_spill] sm:$0xff] %v14265_v49  ;;  %v462_v5 = vmax.f32 %v14256_v24, 0.0  ;;  %v312_v52 = vpop.f32.mrb[20].mxu0  ;;  %v14268_v34 = vpop.permute.xlu0 %3286  ;;  %12651 = vmatpush1.bf16.msra.mxu1 %v13820_v17 }
 0x109   :  { %20234 = vst [vmem:[#allocation78_spill] sm:$0xff] %v14268_v34  ;;  %v313_v21 = vadd.f32 %v312_v52, %v14110_v22  ;;  %v314_v60 = vpop.f32.mrb[21].mxu0  ;;  %12777 = vset.pattern.permute.xlu1 %v13284_v33  ;;  %12636 = vmatprep.subr.bf16.mxu1 %v20210_v37  ;;  %v14286_v52 = vld [vmem:[%s19740_s1 + $0x30] sm:$0xff] }
 0x10a   :  { %v14274_v31 = vadd.f32 %v314_v60, %v14115_v9  ;;  %9999 = vmatprep.mubr.msk.f32.mxu1 %vm538_vm9, %v462_v5  ;;  %5006 = vperm.xlu1 %12777, %v14280_v39  }
 0x10b   :  { %5024 = vperm.xlu0 %12778, %v14286_v52   ;;  %745 = vmatmul.mubr.f32.gmra.mrb[18].mxu1 %v461_v30  ;;  %v14289_v33 = vpop.permute.xlu1 %3283  ;;  %v463_v28 = vmax.f32 %v313_v21, 0.0  ;;  %v14304_v30 = vld [vmem:[%s19740_s1 + $0x10] sm:$0xff] }
 0x10c   :  { %20235 = vst [vmem:[#allocation79_spill] sm:$0xff] %v14274_v31  ;;  %20236 = vst [vmem:[#allocation80_spill] sm:$0xff] %v14289_v33  ;;  %v464_v46 = vmax.f32 %v14274_v31, 0.0  ;;  %v318_v5 = vpop.f32.mrb[22].mxu0  ;;  %v14292_v60 = vpop.permute.xlu0 %3292  ;;  %12652 = vmatpush1.bf16.msra.mxu1 %v13838_v35 }
 0x10d   :  { %20237 = vst [vmem:[#allocation81_spill] sm:$0xff] %v14292_v60  ;;  %v319_v34 = vadd.f32 %v318_v5, %v14110_v22  ;;  %v320_v49 = vpop.f32.mrb[23].mxu0  ;;  %12637 = vmatprep.subr.bf16.mxu1 %v20210_v37  ;;  %v14310_v5 = vld [vmem:[%s19740_s1 + $0x40] sm:$0xff] }
 0x10e   :  { %v14298_v29 = vadd.f32 %v320_v49, %v14115_v9  ;;  %10000 = vmatprep.mubr.msk.f32.mxu1 %vm538_vm9, %v464_v46  ;;  %5012 = vperm.xlu1 %12777, %v14304_v30  }
 0x10f   :  { %5030 = vperm.xlu0 %12778, %v14310_v5   ;;  %750 = vmatmul.mubr.f32.gmra.mrb[20].mxu1 %v463_v28  ;;  %v14313_v21 = vpop.permute.xlu1 %3289  ;;  %v465_v25 = vmax.f32 %v319_v34, 0.0  ;;  %v14328_v28 = vld [vmem:[%s19740_s1 + $0x18] sm:$0xff] }
 0x110   :  { %20238 = vst [vmem:[#allocation82_spill] sm:$0xff] %v14298_v29  ;;  %20239 = vst [vmem:[#allocation83_spill] sm:$0xff] %v14313_v21  ;;  %v466_v49 = vmax.f32 %v14298_v29, 0.0  ;;  %v324_v46 = vpop.f32.mrb[24].mxu0  ;;  %v14316_v60 = vpop.permute.xlu0 %3298  ;;  %12653 = vmatpush1.bf16.msra.mxu1 %v13856_v56 }
 0x111   :  { %20240 = vst [vmem:[#allocation84_spill] sm:$0xff] %v14316_v60  ;;  %v325_v33 = vadd.f32 %v324_v46, %v14110_v22  ;;  %v326_v62 = vpop.f32.mrb[25].mxu0  ;;  %12638 = vmatprep.subr.bf16.mxu1 %v20210_v37  ;;  %v14334_v46 = vld [vmem:[%s19740_s1 + $0x50] sm:$0xff] }
 0x112   :  { %v14322_v2 = vadd.f32 %v326_v62, %v14115_v9  ;;  %10001 = vmatprep.mubr.msk.f32.mxu1 %vm538_vm9, %v466_v49  ;;  %5015 = vperm.xlu1 %12777, %v14328_v28  }
 0x113   :  { %5036 = vperm.xlu0 %12778, %v14334_v46   ;;  %755 = vmatmul.mubr.f32.gmra.mrb[22].mxu1 %v465_v25  ;;  %v14337_v34 = vpop.permute.xlu1 %3295  ;;  %v467_v36 = vmax.f32 %v325_v33, 0.0  ;;  %v14352_v25 = vld [vmem:[%s19740_s1 + $0x28] sm:$0xff] }
 0x114   :  { %20241 = vst [vmem:[#allocation85_spill] sm:$0xff] %v14322_v2  ;;  %20242 = vst [vmem:[#allocation86_spill] sm:$0xff] %v14337_v34  ;;  %v468_v62 = vmax.f32 %v14322_v2, 0.0  ;;  %v330_v49 = vpop.f32.mrb[26].mxu0  ;;  %v14340_v60 = vpop.permute.xlu0 %3304  ;;  %12654 = vmatpush1.bf16.msra.mxu1 %v13877_v7 }
 0x115   :  { %20243 = vst [vmem:[#allocation87_spill] sm:$0xff] %v14340_v60  ;;  %v331_v21 = vadd.f32 %v330_v49, %v14110_v22  ;;  %v332_v27 = vpop.f32.mrb[27].mxu0  ;;  %12639 = vmatprep.subr.bf16.mxu1 %v20210_v37  ;;  %v14358_v49 = vld [vmem:[%s19740_s1 + $0x60] sm:$0xff] }
 0x116   :  { %v14346_v53 = vadd.f32 %v332_v27, %v14115_v9  ;;  %10002 = vmatprep.mubr.msk.f32.mxu1 %vm538_vm9, %v468_v62  ;;  %5021 = vperm.xlu1 %12777, %v14352_v25  }
 0x117   :  { %5042 = vperm.xlu0 %12778, %v14358_v49   ;;  %760 = vmatmul.mubr.f32.gmra.mrb[24].mxu1 %v467_v36  ;;  %v14361_v33 = vpop.permute.xlu1 %3301  ;;  %v469_v12 = vmax.f32 %v331_v21, 0.0  ;;  %v14376_v36 = vld [vmem:[%s19740_s1 + $0x38] sm:$0xff] }
 0x118   :  { %20244 = vst [vmem:[#allocation88_spill] sm:$0xff] %v14346_v53  ;;  %20245 = vst [vmem:[#allocation89_spill] sm:$0xff] %v14361_v33  ;;  %v470_v27 = vmax.f32 %v14346_v53, 0.0  ;;  %v336_v62 = vpop.f32.mrb[28].mxu0  ;;  %v14364_v60 = vpop.permute.xlu0 %3310  ;;  %12655 = vmatpush1.bf16.msra.mxu1 %v13892_v14 }
 0x119   :  { %20246 = vst [vmem:[#allocation90_spill] sm:$0xff] %v14364_v60  ;;  %v337_v34 = vadd.f32 %v336_v62, %v14110_v22  ;;  %v338_v58 = vpop.f32.mrb[29].mxu0  ;;  %12640 = vmatprep.subr.bf16.mxu1 %v20210_v37  ;;  %v14382_v62 = vld [vmem:[%s19740_s1 + $0x70] sm:$0xff] }
 0x11a   :  { %v14370_v6 = vadd.f32 %v338_v58, %v14115_v9  ;;  %10003 = vmatprep.mubr.msk.f32.mxu1 %vm538_vm9, %v470_v27  ;;  %5027 = vperm.xlu1 %12777, %v14376_v36  }
 0x11b   :  { %5048 = vperm.xlu0 %12778, %v14382_v62   ;;  %765 = vmatmul.mubr.f32.gmra.mrb[26].mxu1 %v469_v12  ;;  %v14385_v21 = vpop.permute.xlu1 %3307  ;;  %v471_v2 = vmax.f32 %v337_v34, 0.0  ;;  %v14400_v12 = vld [vmem:[%s19740_s1 + $0x48] sm:$0xff] }
 0x11c   :  { %20247 = vst [vmem:[#allocation91_spill] sm:$0xff] %v14370_v6  ;;  %20248 = vst [vmem:[#allocation92_spill] sm:$0xff] %v14385_v21  ;;  %v472_v58 = vmax.f32 %v14370_v6, 0.0  ;;  %v342_v27 = vpop.f32.mrb[30].mxu0  ;;  %v14388_v60 = vpop.permute.xlu0 %3316  ;;  %12656 = vmatpush1.bf16.msra.mxu1 %v13906_v20 }
 0x11d   :  { %20249 = vst [vmem:[#allocation93_spill] sm:$0xff] %v14388_v60  ;;  %v343_v33 = vadd.f32 %v342_v27, %v14110_v22  ;;  %v344_v16 = vpop.f32.mrb[31].mxu0  ;;  %12641 = vmatprep.subr.bf16.mxu1 %v20210_v37  ;;  %v14406_v27 = vld [vmem:[%s19740_s1 + $0x80] sm:$0xff] }
 0x11e   :  { %v14394_v31 = vadd.f32 %v344_v16, %v14115_v9  ;;  %10004 = vmatprep.mubr.msk.f32.mxu1 %vm538_vm9, %v472_v58  ;;  %5033 = vperm.xlu1 %12777, %v14400_v12  }
 0x11f   :  { %5054 = vperm.xlu0 %12778, %v14406_v27   ;;  %770 = vmatmul.mubr.f32.gmra.mrb[28].mxu1 %v471_v2  ;;  %v14409_v34 = vpop.permute.xlu1 %3313  ;;  %v473_v3 = vmax.f32 %v343_v33, 0.0  ;;  %v14424_v2 = vld [vmem:[%s19740_s1 + $0x58] sm:$0xff] }
 0x120   :  { %20250 = vst [vmem:[#allocation94_spill] sm:$0xff] %v14394_v31  ;;  %20251 = vst [vmem:[#allocation95_spill] sm:$0xff] %v14409_v34  ;;  %v474_v16 = vmax.f32 %v14394_v31, 0.0  ;;  %v348_v58 = vpop.f32.mrb[32].mxu0  ;;  %v14412_v60 = vpop.permute.xlu0 %3322  ;;  %12657 = vmatpush1.bf16.msra.mxu1 %v13920_v32 }
 0x121   :  { %20252 = vst [vmem:[#allocation96_spill] sm:$0xff] %v14412_v60  ;;  %v349_v21 = vadd.f32 %v348_v58, %v14110_v22  ;;  %v350_v6 = vpop.f32.mrb[33].mxu0  ;;  %12642 = vmatprep.subr.bf16.mxu1 %v20210_v37  ;;  %v14430_v58 = vld [vmem:[%s19740_s1 + $0x90] sm:$0xff] }
 0x122   :  { %v14418_v51 = vadd.f32 %v350_v6, %v14115_v9  ;;  %10005 = vmatprep.mubr.msk.f32.mxu1 %vm538_vm9, %v474_v16  ;;  %5039 = vperm.xlu1 %12777, %v14424_v2  }
 0x123   :  { %5060 = vperm.xlu0 %12778, %v14430_v58   ;;  %775 = vmatmul.mubr.f32.gmra.mrb[30].mxu1 %v473_v3  ;;  %v14433_v33 = vpop.permute.xlu1 %3319  ;;  %v475_v45 = vmax.f32 %v349_v21, 0.0  ;;  %v14447_v3 = vld [vmem:[%s19740_s1 + $0x68] sm:$0xff] }
 0x124   :  { %20253 = vst [vmem:[#allocation97_spill] sm:$0xff] %v14418_v51  ;;  %20254 = vst [vmem:[#allocation98_spill] sm:$0xff] %v14433_v33  ;;  %v476_v6 = vmax.f32 %v14418_v51, 0.0  ;;  %v354_v16 = vpop.f32.mrb[34].mxu0  ;;  %v14436_v60 = vpop.permute.xlu0 %3328  ;;  %12658 = vmatpush1.bf16.msra.mxu1 %v13934_v54 }
 0x125   :  { %20255 = vst [vmem:[#allocation99_spill] sm:$0xff] %v14436_v60  ;;  %v355_v34 = vadd.f32 %v354_v16, %v14110_v22  ;;  %v356_v31 = vpop.f32.mrb[35].mxu0  ;;  %v14453_v60 = vld [vmem:[%s19740_s1 + $0xa0] sm:$0xff] }
 0x126   :  { %v14441_v19 = vadd.f32 %v356_v31, %v14115_v9  ;;  %10006 = vmatprep.mubr.msk.f32.mxu1 %vm538_vm9, %v476_v6  ;;  %5045 = vperm.xlu1 %12777, %v14447_v3  }
 0x127   :  { %5066 = vperm.xlu0 %12778, %v14453_v60   ;;  %780 = vmatmul.mubr.f32.gmra.mrb[32].mxu1 %v475_v45  ;;  %v14456_v21 = vpop.permute.xlu1 %3325  ;;  %v477_v53 = vmax.f32 %v355_v34, 0.0  ;;  %v14469_v45 = vld [vmem:[%s19740_s1 + $0x78] sm:$0xff] }
 0x128   :  { %20256 = vst [vmem:[#allocation100_spill] sm:$0xff] %v14441_v19  ;;  %20257 = vst [vmem:[#allocation101_spill] sm:$0xff] %v14456_v21  ;;  %v478_v31 = vmax.f32 %v14441_v19, 0.0  ;;  %v360_v6 = vpop.f32.mrb[36].mxu0  ;;  %v14459_v16 = vpop.permute.xlu0 %3334 }
 0x129   :  { %20258 = vst [vmem:[#allocation102_spill] sm:$0xff] %v14459_v16  ;;  %v361_v33 = vadd.f32 %v360_v6, %v14110_v22  ;;  %v362_v51 = vpop.f32.mrb[37].mxu0  ;;  %v14475_v16 = vld [vmem:[%s19740_s1 + $0xb0] sm:$0xff] }
 0x12a   :  { %v14463_v18 = vadd.f32 %v362_v51, %v14115_v9  ;;  %10007 = vmatprep.mubr.msk.f32.mxu1 %vm538_vm9, %v478_v31  ;;  %5051 = vperm.xlu1 %12777, %v14469_v45  }
 0x12b   :  { %5072 = vperm.xlu0 %12778, %v14475_v16   ;;  %785 = vmatmul.mubr.f32.gmra.mrb[34].mxu1 %v477_v53  ;;  %v14478_v34 = vpop.permute.xlu1 %3331  ;;  %v479_v29 = vmax.f32 %v361_v33, 0.0  ;;  %v14491_v53 = vld [vmem:[%s19740_s1 + $0x88] sm:$0xff] }
 0x12c   :  { %20259 = vst [vmem:[#allocation103_spill] sm:$0xff] %v14463_v18  ;;  %20260 = vst [vmem:[#allocation104_spill] sm:$0xff] %v14478_v34  ;;  %v480_v51 = vmax.f32 %v14463_v18, 0.0  ;;  %v366_v31 = vpop.f32.mrb[38].mxu0  ;;  %v14481_v6 = vpop.permute.xlu0 %3340 }
 0x12d   :  { %20261 = vst [vmem:[#allocation105_spill] sm:$0xff] %v14481_v6  ;;  %v367_v21 = vadd.f32 %v366_v31, %v14110_v22  ;;  %v368_v19 = vpop.f32.mrb[39].mxu0  ;;  %v14497_v6 = vld [vmem:[%s19740_s1 + $0xc0] sm:$0xff] }
 0x12e   :  { %v14485_v54 = vadd.f32 %v368_v19, %v14115_v9  ;;  %10008 = vmatprep.mubr.msk.f32.mxu1 %vm538_vm9, %v480_v51  ;;  %5057 = vperm.xlu1 %12777, %v14491_v53  }
 0x12f   :  { %5078 = vperm.xlu0 %12778, %v14497_v6   ;;  %790 = vmatmul.mubr.f32.gmra.mrb[36].mxu1 %v479_v29  ;;  %v14500_v33 = vpop.permute.xlu1 %3337  ;;  %v481_v24 = vmax.f32 %v367_v21, 0.0  ;;  %v14513_v29 = vld [vmem:[%s19740_s1 + $0x98] sm:$0xff] }
 0x130   :  { %20262 = vst [vmem:[#allocation106_spill] sm:$0xff] %v14485_v54  ;;  %20263 = vst [vmem:[#allocation107_spill] sm:$0xff] %v14500_v33  ;;  %v482_v19 = vmax.f32 %v14485_v54, 0.0  ;;  %v372_v51 = vpop.f32.mrb[40].mxu0  ;;  %v14503_v31 = vpop.permute.xlu0 %3346 }
 0x131   :  { %20264 = vst [vmem:[#allocation108_spill] sm:$0xff] %v14503_v31  ;;  %v373_v34 = vadd.f32 %v372_v51, %v14110_v22  ;;  %v374_v18 = vpop.f32.mrb[41].mxu0  ;;  %v14519_v31 = vld [vmem:[%s19740_s1 + $0xd0] sm:$0xff] }
 0x132   :  { %v14507_v32 = vadd.f32 %v374_v18, %v14115_v9  ;;  %10009 = vmatprep.mubr.msk.f32.mxu1 %vm538_vm9, %v482_v19  ;;  %5063 = vperm.xlu1 %12777, %v14513_v29  }
 0x133   :  { %5084 = vperm.xlu0 %12778, %v14519_v31   ;;  %795 = vmatmul.mubr.f32.gmra.mrb[38].mxu1 %v481_v24  ;;  %v14522_v21 = vpop.permute.xlu1 %3343  ;;  %v483_v57 = vmax.f32 %v373_v34, 0.0  ;;  %v14535_v24 = vld [vmem:[%s19740_s1 + $0xa8] sm:$0xff] }
 0x134   :  { %20265 = vst [vmem:[#allocation109_spill] sm:$0xff] %v14507_v32  ;;  %20266 = vst [vmem:[#allocation110_spill] sm:$0xff] %v14522_v21  ;;  %v484_v18 = vmax.f32 %v14507_v32, 0.0  ;;  %v378_v19 = vpop.f32.mrb[42].mxu0  ;;  %v14525_v51 = vpop.permute.xlu0 %3352 }
 0x135   :  { %20267 = vst [vmem:[#allocation111_spill] sm:$0xff] %v14525_v51  ;;  %v379_v33 = vadd.f32 %v378_v19, %v14110_v22  ;;  %v380_v54 = vpop.f32.mrb[43].mxu0  ;;  %v14541_v51 = vld [vmem:[%s19740_s1 + $0xe0] sm:$0xff] }
 0x136   :  { %v14529_v20 = vadd.f32 %v380_v54, %v14115_v9  ;;  %10010 = vmatprep.mubr.msk.f32.mxu1 %vm538_vm9, %v484_v18  ;;  %5069 = vperm.xlu1 %12777, %v14535_v24  }
 0x137   :  { %5090 = vperm.xlu0 %12778, %v14541_v51   ;;  %800 = vmatmul.mubr.f32.gmra.mrb[40].mxu1 %v483_v57  ;;  %v14544_v34 = vpop.permute.xlu1 %3349  ;;  %v485_v48 = vmax.f32 %v379_v33, 0.0  ;;  %v14557_v57 = vld [vmem:[%s19740_s1 + $0xb8] sm:$0xff] }
 0x138   :  { %20268 = vst [vmem:[#allocation112_spill] sm:$0xff] %v14529_v20  ;;  %20269 = vst [vmem:[#allocation113_spill] sm:$0xff] %v14544_v34  ;;  %v486_v54 = vmax.f32 %v14529_v20, 0.0  ;;  %v384_v18 = vpop.f32.mrb[44].mxu0  ;;  %v14547_v19 = vpop.permute.xlu0 %3358 }
 0x139   :  { %20270 = vst [vmem:[#allocation114_spill] sm:$0xff] %v14547_v19  ;;  %v385_v21 = vadd.f32 %v384_v18, %v14110_v22  ;;  %v386_v32 = vpop.f32.mrb[45].mxu0  ;;  %v14563_v19 = vld [vmem:[%s19740_s1 + $0xf0] sm:$0xff] }
 0x13a   :  { %v14551_v14 = vadd.f32 %v386_v32, %v14115_v9  ;;  %10011 = vmatprep.mubr.msk.f32.mxu1 %vm538_vm9, %v486_v54  ;;  %5075 = vperm.xlu1 %12777, %v14557_v57  }
 0x13b   :  { %5096 = vperm.xlu0 %12778, %v14563_v19   ;;  %805 = vmatmul.mubr.f32.gmra.mrb[42].mxu1 %v485_v48  ;;  %v14566_v33 = vpop.permute.xlu1 %3355  ;;  %v487_v20 = vmax.f32 %v385_v21, 0.0  ;;  %v14579_v48 = vld [vmem:[%s19740_s1 + $0xc8] sm:$0xff] }
 0x13c   :  { %20271 = vst [vmem:[#allocation115_spill] sm:$0xff] %v14551_v14  ;;  %20272 = vst [vmem:[#allocation116_spill] sm:$0xff] %v14566_v33  ;;  %v488_v32 = vmax.f32 %v14551_v14, 0.0  ;;  %v390_v54 = vpop.f32.mrb[46].mxu0  ;;  %v14570_v42 = vpop.permute.xlu0 %3364  ;;  %v13285_v33 = vmov 5  }
 0x13d   :  { %v391_v18 = vadd.f32 %v390_v54, %v14110_v22  ;;  %v392_v34 = vpop.f32.mrb[47].mxu0  ;;  %20273 = vst [vmem:[#allocation117_spill] sm:$0xff] %v14570_v42 }
 0x13e   :  { %v14573_v7 = vadd.f32 %v392_v34, %v14115_v9  ;;  %10012 = vmatprep.mubr.msk.f32.mxu1 %vm538_vm9, %v488_v32  ;;  %5081 = vperm.xlu1 %12777, %v14579_v48  }
 0x13f   :  { %12779 = vset.pattern.permute.xlu0 %v13285_v33  ;;  %810 = vmatmul.mubr.f32.gmra.mrb[44].mxu1 %v487_v20  ;;  %v14582_v54 = vpop.permute.xlu1 %3361  ;;  %v489_v14 = vmax.f32 %v391_v18, 0.0  ;;  %v14594_v20 = vld [vmem:[%s19740_s1 + $0xd8] sm:$0xff] }
 0x140   :  { %20274 = vst [vmem:[#allocation118_spill] sm:$0xff] %v14573_v7  ;;  %20275 = vst [vmem:[#allocation119_spill] sm:$0xff] %v14582_v54  ;;  %v490_v21 = vmax.f32 %v14573_v7, 0.0  ;;  %5872 = vperm.xlu0 %12779, %v14280_v39   ;;  %v396_v34 = vpop.f32.mrb[48].mxu0 }
 0x141   :  { %v397_v42 = vadd.f32 %v396_v34, %v14110_v22  ;;  %v398_v32 = vpop.f32.mrb[49].mxu0  ;;  %v14597_v54 = vpop.permute.xlu0 %4140 }
 0x142   :  { %v14588_v10 = vadd.f32 %v398_v32, %v14115_v9  ;;  %10013 = vmatprep.mubr.msk.f32.mxu1 %vm538_vm9, %v490_v21  ;;  %5087 = vperm.xlu1 %12777, %v14594_v20   ;;  %20277 = vst [vmem:[#allocation121_spill] sm:$0xff] %v14597_v54 }
 0x143   :  { %815 = vmatmul.mubr.f32.gmra.mrb[46].mxu1 %v489_v14  ;;  %v14599_v7 = vpop.permute.xlu1 %3367  ;;  %v491_v56 = vmax.f32 %v397_v42, 0.0  ;;  %v14611_v14 = vld [vmem:[%s19740_s1 + $0xe8] sm:$0xff]  ;;  %v1922_v42 = vld [vmem:[%s19745_s5] sm:$0xff] }
 0x144   :  { %20276 = vst [vmem:[#allocation120_spill] sm:$0xff] %v14588_v10  ;;  %20278 = vst [vmem:[#allocation122_spill] sm:$0xff] %v14599_v7  ;;  %v492_v34 = vmax.f32 %v14588_v10, 0.0  ;;  %5881 = vperm.xlu0 %12779, %v14328_v28   ;;  %v402_v18 = vpop.f32.mrb[50].mxu0 }
 0x145   :  { %v403_v32 = vadd.f32 %v402_v18, %v14110_v22  ;;  %v404_v21 = vpop.f32.mrb[51].mxu0  ;;  %v14625_v10 = vpop.permute.xlu0 %4149 }
 0x146   :  { %v14605_v35 = vadd.f32 %v404_v21, %v14115_v9  ;;  %10014 = vmatprep.mubr.msk.f32.mxu1 %vm538_vm9, %v492_v34  ;;  %5093 = vperm.xlu1 %12777, %v14611_v14   ;;  %v1923_v34 = vld [vmem:[%s19745_s5 + $0x8] sm:$0xff]  ;;  %20281 = vst [vmem:[#allocation125_spill] sm:$0xff] %v14625_v10 }
 0x147   :  { %820 = vmatmul.mubr.f32.gmra.mrb[48].mxu1 %v491_v56  ;;  %v493_v17 = vmax.f32 %v403_v32, 0.0 }
 0x148   :  { %20279 = vst [vmem:[#allocation123_spill] sm:$0xff] %v14605_v35  ;;  %v494_v54 = vmax.f32 %v14605_v35, 0.0  ;;  %5887 = vperm.xlu0 %12779, %v14352_v25   ;;  %v408_v18 = vpop.f32.mrb[52].mxu0  ;;  %v14616_v7 = vpop.permute.xlu1 %4143  ;;  %v14627_v35 = vpack.c.bf16 %v1923_v34, %v1922_v42  ;;  %v1925_v34 = vld [vmem:[%s19745_s5 + $0x18] sm:$0xff] }
 0x149   :  { %20280 = vst [vmem:[#allocation124_spill] sm:$0xff] %v14616_v7  ;;  %v409_v21 = vadd.f32 %v408_v18, %v14110_v22  ;;  %v410_v56 = vpop.f32.mrb[53].mxu0  ;;  %v14636_v7 = vld [vmem:[%s19740_s1 + $0xf8] sm:$0xff]  ;;  %v14659_v55 = vpop.permute.xlu0 %4155 }
 0x14a   :  { %v14630_v8 = vadd.f32 %v410_v56, %v14115_v9  ;;  %10015 = vmatprep.mubr.msk.f32.mxu1 %vm538_vm9, %v494_v54  ;;  %5099 = vperm.xlu1 %12777, %v14636_v7   ;;  %v1924_v54 = vld [vmem:[%s19745_s5 + $0x10] sm:$0xff]  ;;  %20285 = vst [vmem:[#allocation129_spill] sm:$0xff] %v14659_v55 }
 0x14b   :  { %825 = vmatmul.mubr.f32.gmra.mrb[50].mxu1 %v493_v17  ;;  %12132 = vmatprep.subr.bf16.mxu1 %v14627_v35  ;;  %v495_v10 = vmax.f32 %v409_v21, 0.0 }
 0x14c   :  { %20282 = vst [vmem:[#allocation126_spill] sm:$0xff] %v14630_v8  ;;  %v496_v18 = vmax.f32 %v14630_v8, 0.0  ;;  %5893 = vperm.xlu0 %12779, %v14376_v36   ;;  %v414_v32 = vpop.f32.mrb[54].mxu0  ;;  %v14642_v42 = vpop.permute.xlu1 %4146  ;;  %12188 = vmatprep.subr.bf16.mxu0 %v14627_v35 }
 0x14d   :  { %20283 = vst [vmem:[#allocation127_spill] sm:$0xff] %v14642_v42  ;;  %v415_v17 = vadd.f32 %v414_v32, %v14110_v22  ;;  %v416_v56 = vpop.f32.mrb[55].mxu0  ;;  %12190 = vmatpush3.bf16.msra.mxu0 %v14627_v35  ;;  %v14657_v42 = vpack.c.bf16 %v1925_v34, %v1924_v54 }
 0x14e   :  { %v14654_v8 = vadd.f32 %v416_v56, %v14115_v9  ;;  %10016 = vmatprep.mubr.msk.f32.mxu1 %vm538_vm9, %v496_v18  ;;  %12780 = vset.pattern.permute.xlu1 %v13285_v33 }
 0x14f   :  { %830 = vmatmul.mubr.f32.gmra.mrb[52].mxu1 %v495_v10  ;;  %5875 = vperm.xlu1 %12780, %v14243_v40   ;;  %v497_v33 = vmax.f32 %v415_v17, 0.0  ;;  %v14679_v17 = vpop.permute.xlu0 %4161 }
 0x150   :  { %20284 = vst [vmem:[#allocation128_spill] sm:$0xff] %v14654_v8  ;;  %v498_v47 = vmax.f32 %v14654_v8, 0.0  ;;  %5899 = vperm.xlu0 %12779, %v14400_v12   ;;  %v420_v21 = vpop.f32.mrb[56].mxu0  ;;  %v14664_v32 = vpop.permute.xlu1 %4152  ;;  %12192 = vmatprep.subr.bf16.mxu0 %v14657_v42  ;;  %20289 = vst [vmem:[#allocation133_spill] sm:$0xff] %v14679_v17 }
 0x151   :  { %20286 = vst [vmem:[#allocation130_spill] sm:$0xff] %v14664_v32  ;;  %v421_v56 = vadd.f32 %v420_v21, %v14110_v22  ;;  %v422_v18 = vpop.f32.mrb[57].mxu0  ;;  %12194 = vmatpush3.bf16.msra.mxu0 %v14657_v42 }
 0x152   :  { %v14670_v54 = vadd.f32 %v422_v18, %v14115_v9  ;;  %10017 = vmatprep.mubr.msk.f32.mxu1 %vm538_vm9, %v498_v47  ;;  %12195 = vmatprep.subr.bf16.mxu0 %v20210_v37 }
 0x153   :  { %835 = vmatmul.mubr.f32.gmra.mrb[54].mxu1 %v497_v33  ;;  %5878 = vperm.xlu1 %12780, %v14304_v30   ;;  %v499_v32 = vmax.f32 %v421_v56, 0.0 }
 0x154   :  { %20287 = vst [vmem:[#allocation131_spill] sm:$0xff] %v14670_v54  ;;  %v500_v10 = vmax.f32 %v14670_v54, 0.0  ;;  %5905 = vperm.xlu0 %12779, %v14424_v2   ;;  %v426_v34 = vpop.f32.mrb[58].mxu0  ;;  %v14677_v21 = vpop.permute.xlu1 %4158 }
 0x155   :  { %20288 = vst [vmem:[#allocation132_spill] sm:$0xff] %v14677_v21  ;;  %v427_v55 = vadd.f32 %v426_v34, %v14110_v22  ;;  %v428_v18 = vpop.f32.mrb[59].mxu0 }
 0x156   :  { %v14683_v47 = vadd.f32 %v428_v18, %v14115_v9  ;;  %10018 = vmatprep.mubr.msk.f32.mxu1 %vm538_vm9, %v500_v10  ;;  %v14696_v10 = vpop.permute.xlu0 %4167 }
 0x157   :  { %840 = vmatmul.mubr.f32.gmra.mrb[56].mxu1 %v499_v32  ;;  %5884 = vperm.xlu1 %12780, %v14262_v43   ;;  %v501_v8 = vmax.f32 %v427_v55, 0.0  ;;  %20292 = vst [vmem:[#allocation136_spill] sm:$0xff] %v14696_v10 }
 0x158   :  { %20290 = vst [vmem:[#allocation134_spill] sm:$0xff] %v14683_v47  ;;  %v502_v33 = vmax.f32 %v14683_v47, 0.0  ;;  %5911 = vperm.xlu0 %12779, %v14447_v3   ;;  %v432_v54 = vpop.f32.mrb[60].mxu0  ;;  %v14689_v21 = vpop.permute.xlu1 %4164 }
 0x159   :  { %20291 = vst [vmem:[#allocation135_spill] sm:$0xff] %v14689_v21  ;;  %v433_v17 = vadd.f32 %v432_v54, %v14110_v22  ;;  %v434_v34 = vpop.f32.mrb[61].mxu0 }
 0x15a   :  { %v14693_v56 = vadd.f32 %v434_v34, %v14115_v9  ;;  %10019 = vmatprep.mubr.msk.f32.mxu1 %vm538_vm9, %v502_v33  ;;  %v14713_v10 = vpop.permute.xlu0 %4173 }
 0x15b   :  { %845 = vmatmul.mubr.f32.gmra.mrb[58].mxu1 %v501_v8  ;;  %5890 = vperm.xlu1 %12780, %v14286_v52   ;;  %v503_v47 = vmax.f32 %v433_v17, 0.0 }
 0x15c   :  { %v504_v32 = vmax.f32 %v14693_v56, 0.0  ;;  %5917 = vperm.xlu0 %12779, %v14469_v45   ;;  %v438_v18 = vpop.f32.mrb[62].mxu0  ;;  %v14701_v21 = vpop.permute.xlu1 %4170 }
 0x15d   :  { %20293 = vst [vmem:[#allocation137_spill] sm:$0xff] %v14701_v21  ;;  %v439_v54 = vadd.f32 %v438_v18, %v14110_v22  ;;  %v440_v55 = vpop.f32.mrb[63].mxu0 }
 0x15e   :  { %v14705_v34 = vadd.f32 %v440_v55, %v14115_v9  ;;  %10020 = vmatprep.mubr.msk.f32.mxu1 %vm538_vm9, %v504_v32  ;;  %v14725_v9 = vpop.permute.xlu0 %4179 }
 0x15f   :  { %850 = vmatmul.mubr.f32.gmra.mrb[60].mxu1 %v503_v47  ;;  %5896 = vperm.xlu1 %12780, %v14310_v5   ;;  %v505_v21 = vmax.f32 %v439_v54, 0.0 }
 0x160   :  { %v506_v8 = vmax.f32 %v14705_v34, 0.0  ;;  %5923 = vperm.xlu0 %12779, %v14491_v53   ;;  %v14711_v33 = vpop.permute.xlu1 %4176 }
 0x162   :  { %10021 = vmatprep.mubr.msk.f32.mxu1 %vm538_vm9, %v506_v8  ;;  %v14753_v54 = vpop.permute.xlu0 %4185 }
 0x163   :  { %855 = vmatmul.mubr.f32.gmra.mrb[62].mxu1 %v505_v21  ;;  %5902 = vperm.xlu1 %12780, %v14334_v46  }
 0x164   :  { %5929 = vperm.xlu0 %12779, %v14513_v29   ;;  %10096 = vmatprep.mubr.msk.f32.mxu1 %vm1516_vm12, %v20206_v1  ;;  %v14723_v22 = vpop.permute.xlu1 %4182  ;;  %vm1530_vm12 = vcmp.eq.s32.totalorder %v13981_v26, %v20303_v63 }
 0x166   :  { %v14769_v8 = vpop.permute.xlu0 %4191 }
 0x167   :  { %10097 = vmatmul.mubr.msk.f32.vlgmr.msra.gmra.mrb[64].mxu1 %vm1515_vm13, %v20206_v1  ;;  %5908 = vperm.xlu1 %12780, %v14358_v49   ;;  %v14731_v21 = vpop.f32.mrb[64].mxu0  ;;  %20297 = vst [vmem:[#allocation141_spill] sm:$0xff] %v14769_v8  ;;  %vm1529_vm13 = vcmp.eq.s32.totalorder %v13970_v11, %v20303_v63 }
 0x168   :  { %5935 = vperm.xlu0 %12779, %v14535_v24   ;;  %10098 = vmatprep.mubr.msk.f32.mxu1 %vm1518_vm14, %v20206_v1  ;;  %v14735_v61 = vpop.permute.xlu1 %4188  ;;  %v1765_v17 = vpop.f32.mrb[65].mxu0  ;;  %vm1532_vm14 = vcmp.eq.s32.totalorder %v13981_v26, %v20306_v15 }
 0x169   :  { %20294 = vst [vmem:[#allocation138_spill] sm:$0xff] %v14735_v61  ;;  %12134 = vmatpush3.bf16.msra.mxu1 %v14627_v35 }
 0x16a   :  { %12136 = vmatprep.subr.bf16.mxu1 %v14657_v42 }
 0x16b   :  { %10099 = vmatmul.mubr.msk.f32.gmra.mrb[66].mxu1 %vm1517_vm1, %v20206_v1  ;;  %5914 = vperm.xlu1 %12780, %v14382_v62   ;;  %v14745_v47 = vpop.f32.mrb[66].mxu0 }
 0x16c   :  { %5941 = vperm.xlu0 %12779, %v14557_v57   ;;  %10100 = vmatprep.mubr.msk.f32.mxu1 %vm1520_vm15, %v20206_v1  ;;  %v14751_v32 = vpop.permute.xlu1 %4194  ;;  %v1770_v18 = vpop.f32.mrb[67].mxu0  ;;  %vm1531_vm15 = vcmp.eq.s32.totalorder %v13970_v11, %v20306_v15 }
 0x16d   :  { %20295 = vst [vmem:[#allocation139_spill] sm:$0xff] %v14751_v32  ;;  %12138 = vmatpush3.bf16.msra.mxu1 %v14657_v42 }
 0x16e   :  { %12139 = vmatprep.subr.bf16.mxu1 %v20210_v37 }
 0x16f   :  { %10101 = vmatmul.mubr.msk.f32.gmra.mrb[68].mxu1 %vm1519_vm2, %v20206_v1  ;;  %5920 = vperm.xlu1 %12780, %v14406_v27   ;;  %v14761_v0 = vpop.f32.mrb[68].mxu0 }
 0x170   :  { %5947 = vperm.xlu0 %12779, %v14579_v48   ;;  %10102 = vmatprep.mubr.msk.f32.mxu1 %vm1522_vm3, %v20206_v1  ;;  %v14765_v44 = vpop.permute.xlu1 %4200  ;;  %v1775_v55 = vpop.f32.mrb[69].mxu0 }
 0x171   :  { %20296 = vst [vmem:[#allocation140_spill] sm:$0xff] %v14765_v44  ;;  %v14791_v44 = vpop.permute.xlu0 %4197 }
 0x172   :  { %20300 = vst [vmem:[#allocation144_spill] sm:$0xff] %v14791_v44 }
 0x173   :  { %10103 = vmatmul.mubr.msk.f32.gmra.mrb[70].mxu1 %vm1521_vm4, %v20206_v1  ;;  %5926 = vperm.xlu1 %12780, %v14430_v58   ;;  %v14775_v17 = vpop.f32.mrb[70].mxu0 }
 0x174   :  { %5953 = vperm.xlu0 %12779, %v14594_v20   ;;  %10104 = vmatprep.mubr.msk.f32.mxu1 %vm1524_vm5, %v20206_v1  ;;  %v14779_v18 = vpop.permute.xlu1 %4206  ;;  %v1780_v55 = vpop.f32.mrb[71].mxu0 }
 0x175   :  { %20298 = vst [vmem:[#allocation142_spill] sm:$0xff] %v14779_v18  ;;  %v13286_v18 = vmov 6  }
 0x177   :  { %10105 = vmatmul.mubr.msk.f32.gmra.mrb[72].mxu1 %vm1523_vm6, %v20206_v1  ;;  %5932 = vperm.xlu1 %12780, %v14453_v60  }
 0x178   :  { %5959 = vperm.xlu0 %12779, %v14611_v14   ;;  %10106 = vmatprep.mubr.msk.f32.mxu1 %vm1526_vm7, %v20206_v1  ;;  %v14789_v50 = vpop.permute.xlu1 %4212 }
 0x179   :  { %20299 = vst [vmem:[#allocation143_spill] sm:$0xff] %v14789_v50  ;;  %v14809_v50 = vpop.permute.xlu0 %4203 }
 0x17a   :  { %20304 = vst [vmem:[#allocation13_spill] sm:$0xff] %v14809_v50 }
 0x17b   :  { %10107 = vmatmul.mubr.msk.f32.gmra.mrb[74].mxu1 %vm1525_vm8, %v20206_v1  ;;  %5938 = vperm.xlu1 %12780, %v14475_v16  }
 0x17c   :  { %5965 = vperm.xlu0 %12779, %v14636_v7   ;;  %10108 = vmatprep.mubr.msk.f32.mxu1 %vm1528_vm10, %v20206_v1  ;;  %v14801_v55 = vpop.permute.xlu1 %4218 }
 0x17d   :  { %20302 = vst [vmem:[#allocation14_spill] sm:$0xff] %v14801_v55  ;;  %v14825_v50 = vpop.permute.xlu0 %4209 }
 0x17e   :  { %20308 = vst [vmem:[#allocation146_spill] sm:$0xff] %v14825_v50 }
 0x17f   :  { %10109 = vmatmul.mubr.msk.f32.gmra.mrb[76].mxu1 %vm1527_vm11, %v20206_v1  ;;  %5944 = vperm.xlu1 %12780, %v14497_v6  }
 0x180   :  { %12782 = vset.pattern.permute.xlu0 %v13286_v18  ;;  %10110 = vmatprep.mubr.msk.f32.mxu1 %vm1530_vm12, %v20206_v1  ;;  %v14812_v44 = vpop.permute.xlu1 %4224 }
 0x181   :  { %20305 = vst [vmem:[#allocation145_spill] sm:$0xff] %v14812_v44  ;;  %6741 = vperm.xlu0 %12782, %v14243_v40   ;;  %v20309_v40 = vld [vmem:[#allocation16_spill] sm:$0xff]  ;;  %v14843_v15 = vpop.permute.xlu0 %4215 }
 0x182   :  { %vm1534_vm1 = vcmp.eq.s32.totalorder %v13981_v26, %v20309_v40  ;;  %vm1533_vm2 = vcmp.eq.s32.totalorder %v13970_v11, %v20309_v40 }
 0x183   :  { %10111 = vmatmul.mubr.msk.f32.gmra.mrb[78].mxu1 %vm1529_vm13, %v20206_v1  ;;  %5950 = vperm.xlu1 %12780, %v14519_v31  }
 0x184   :  { %10112 = vmatprep.mubr.msk.f32.mxu1 %vm1532_vm14, %v20206_v1  ;;  %v14822_v55 = vpop.permute.xlu1 %4230 }
 0x185   :  { %20307 = vst [vmem:[#allocation15_spill] sm:$0xff] %v14822_v55  ;;  %6750 = vperm.xlu0 %12782, %v14262_v43   ;;  %v20311_v43 = vld [vmem:[#allocation17_spill] sm:$0xff] }
 0x186   :  { %vm1536_vm3 = vcmp.eq.s32.totalorder %v13981_v26, %v20311_v43  ;;  %20312 = vst [vmem:[#allocation17_spill] sm:$0xff] %v14843_v15  ;;  %vm1535_vm4 = vcmp.eq.s32.totalorder %v13970_v11, %v20311_v43  ;;  %v20317_v43 = vld [vmem:[#allocation19_spill] sm:$0xff] }
 0x187   :  { %10113 = vmatmul.mubr.msk.f32.gmra.mrb[80].mxu1 %vm1531_vm15, %v20206_v1  ;;  %5956 = vperm.xlu1 %12780, %v14541_v51   ;;  %vm1540_vm7 = vcmp.eq.s32.totalorder %v13981_v26, %v20317_v43  ;;  %vm1539_vm8 = vcmp.eq.s32.totalorder %v13970_v11, %v20317_v43 }
 0x188   :  { %10114 = vmatprep.mubr.msk.f32.mxu1 %vm1534_vm1, %v20206_v1 }
 0x189   :  { %6756 = vperm.xlu0 %12782, %v14286_v52   ;;  %v14835_v63 = vpop.permute.xlu1 %5006  ;;  %v20314_v52 = vld [vmem:[#allocation18_spill] sm:$0xff] }
 0x18a   :  { %20310 = vst [vmem:[#allocation16_spill] sm:$0xff] %v14835_v63  ;;  %vm1538_vm5 = vcmp.eq.s32.totalorder %v13981_v26, %v20314_v52  ;;  %vm1537_vm6 = vcmp.eq.s32.totalorder %v13970_v11, %v20314_v52 }
 0x18b   :  { %10115 = vmatmul.mubr.msk.f32.gmra.mrb[82].mxu1 %vm1533_vm2, %v20206_v1  ;;  %5962 = vperm.xlu1 %12780, %v14563_v19  }
 0x18c   :  { %10116 = vmatprep.mubr.msk.f32.mxu1 %vm1536_vm3, %v20206_v1 }
 0x18d   :  { %6762 = vperm.xlu0 %12782, %v14310_v5   ;;  %v14847_v55 = vpop.permute.xlu1 %5012  ;;  %v14859_v5 = vpop.permute.xlu0 %4221 }
 0x18e   :  { %20313 = vst [vmem:[#allocation147_spill] sm:$0xff] %v14847_v55  ;;  %20316 = vst [vmem:[#allocation148_spill] sm:$0xff] %v14859_v5  ;;  %v20391_v5 = vld [vmem:[#allocation49_spill] sm:$0xff] }
 0x18f   :  { %10117 = vmatmul.mubr.msk.f32.gmra.mrb[84].mxu1 %vm1535_vm4, %v20206_v1  ;;  %12781 = vset.pattern.permute.xlu1 %v13286_v18 }
 0x190   :  { %10118 = vmatprep.mubr.msk.f32.mxu1 %vm1538_vm5, %v20206_v1  ;;  %6738 = vperm.xlu1 %12781, %v14280_v39  }
 0x191   :  { %6768 = vperm.xlu0 %12782, %v14334_v46   ;;  %v14857_v40 = vpop.permute.xlu1 %5015  ;;  %v20319_v46 = vld [vmem:[#allocation21_spill] sm:$0xff]  ;;  %v14876_v52 = vpop.permute.xlu0 %4227 }
 0x192   :  { %20315 = vst [vmem:[#allocation18_spill] sm:$0xff] %v14857_v40  ;;  %vm1542_vm10 = vcmp.eq.s32.totalorder %v13981_v26, %v20319_v46  ;;  %20320 = vst [vmem:[#allocation21_spill] sm:$0xff] %v14876_v52  ;;  %vm1541_vm11 = vcmp.eq.s32.totalorder %v13970_v11, %v20319_v46  ;;  %v20385_v52 = vld [vmem:[#allocation11_spill] sm:$0xff] }
 0x193   :  { %10119 = vmatmul.mubr.msk.f32.gmra.mrb[86].mxu1 %vm1537_vm6, %v20206_v1 }
 0x194   :  { %10120 = vmatprep.mubr.msk.f32.mxu1 %vm1540_vm7, %v20206_v1  ;;  %6744 = vperm.xlu1 %12781, %v14304_v30  }
 0x195   :  { %6774 = vperm.xlu0 %12782, %v14358_v49   ;;  %v14869_v18 = vpop.permute.xlu1 %5021  ;;  %v20322_v49 = vld [vmem:[#allocation20_spill] sm:$0xff]  ;;  %v14891_v43 = vpop.permute.xlu0 %4233 }
 0x196   :  { %20318 = vst [vmem:[#allocation19_spill] sm:$0xff] %v14869_v18  ;;  %vm1544_vm12 = vcmp.eq.s32.totalorder %v13981_v26, %v20322_v49  ;;  %20323 = vst [vmem:[#allocation20_spill] sm:$0xff] %v14891_v43  ;;  %vm1543_vm13 = vcmp.eq.s32.totalorder %v13970_v11, %v20322_v49  ;;  %v20381_v43 = vld [vmem:[#allocation10_spill] sm:$0xff] }
 0x197   :  { %10121 = vmatmul.mubr.msk.f32.gmra.mrb[88].mxu1 %vm1539_vm8, %v20206_v1 }
 0x198   :  { %10122 = vmatprep.mubr.msk.f32.mxu1 %vm1542_vm10, %v20206_v1  ;;  %6747 = vperm.xlu1 %12781, %v14328_v28  }
 0x199   :  { %6780 = vperm.xlu0 %12782, %v14382_v62   ;;  %v14881_v30 = vpop.permute.xlu1 %5027  ;;  %v20324_v62 = vld [vmem:[#allocation23_spill] sm:$0xff]  ;;  %v14908_v49 = vpop.permute.xlu0 %5009 }
 0x19a   :  { %20321 = vst [vmem:[#allocation149_spill] sm:$0xff] %v14881_v30  ;;  %vm1546_vm14 = vcmp.eq.s32.totalorder %v13981_v26, %v20324_v62  ;;  %vm1545_vm15 = vcmp.eq.s32.totalorder %v13970_v11, %v20324_v62  ;;  %v20333_v30 = vld [vmem:[#allocation27_spill] sm:$0xff] }
 0x19b   :  { %10123 = vmatmul.mubr.msk.f32.gmra.mrb[90].mxu1 %vm1541_vm11, %v20206_v1  ;;  %vm1554_vm7 = vcmp.eq.s32.totalorder %v13981_v26, %v20333_v30  ;;  %vm1553_vm8 = vcmp.eq.s32.totalorder %v13970_v11, %v20333_v30  ;;  %v20339_v30 = vld [vmem:[#allocation29_spill] sm:$0xff] }
 0x19c   :  { %10124 = vmatprep.mubr.msk.f32.mxu1 %vm1544_vm12, %v20206_v1  ;;  %6753 = vperm.xlu1 %12781, %v14352_v25   ;;  %vm1558_vm12 = vcmp.eq.s32.totalorder %v13981_v26, %v20339_v30 }
 0x19d   :  { %6786 = vperm.xlu0 %12782, %v14406_v27   ;;  %v14898_v46 = vpop.permute.xlu1 %5033  ;;  %v20326_v27 = vld [vmem:[#allocation22_spill] sm:$0xff]  ;;  %v14923_v62 = vpop.permute.xlu0 %5018 }
 0x19e   :  { %20325 = vst [vmem:[#allocation23_spill] sm:$0xff] %v14898_v46  ;;  %vm1548_vm1 = vcmp.eq.s32.totalorder %v13981_v26, %v20326_v27  ;;  %20327 = vst [vmem:[#allocation22_spill] sm:$0xff] %v14908_v49  ;;  %vm1547_vm2 = vcmp.eq.s32.totalorder %v13970_v11, %v20326_v27  ;;  %v20332_v27 = vld [vmem:[#allocation24_spill] sm:$0xff]  ;;  %v13287_v49 = vmov 7  }
 0x19f   :  { %10125 = vmatmul.mubr.msk.f32.gmra.mrb[92].mxu1 %vm1543_vm13, %v20206_v1  ;;  %vm1552_vm5 = vcmp.eq.s32.totalorder %v13981_v26, %v20332_v27  ;;  %vm1551_vm6 = vcmp.eq.s32.totalorder %v13970_v11, %v20332_v27  ;;  %v20336_v27 = vld [vmem:[#allocation26_spill] sm:$0xff]  ;;  %vm1557_vm13 = vcmp.eq.s32.totalorder %v13970_v11, %v20339_v30 }
 0x1a0   :  { %10126 = vmatprep.mubr.msk.f32.mxu1 %vm1546_vm14, %v20206_v1  ;;  %6759 = vperm.xlu1 %12781, %v14376_v36   ;;  %vm1556_vm10 = vcmp.eq.s32.totalorder %v13981_v26, %v20336_v27  ;;  %vm1555_vm11 = vcmp.eq.s32.totalorder %v13970_v11, %v20336_v27  ;;  %v20340_v27 = vld [vmem:[#allocation28_spill] sm:$0xff] }
 0x1a1   :  { %6792 = vperm.xlu0 %12782, %v14430_v58   ;;  %v14913_v46 = vpop.permute.xlu1 %5039  ;;  %v20329_v58 = vld [vmem:[#allocation25_spill] sm:$0xff]  ;;  %vm1560_vm14 = vcmp.eq.s32.totalorder %v13981_v26, %v20340_v27 }
 0x1a2   :  { %20328 = vst [vmem:[#allocation150_spill] sm:$0xff] %v14913_v46  ;;  %vm1550_vm3 = vcmp.eq.s32.totalorder %v13981_v26, %v20329_v58  ;;  %20330 = vst [vmem:[#allocation25_spill] sm:$0xff] %v14923_v62  ;;  %vm1549_vm4 = vcmp.eq.s32.totalorder %v13970_v11, %v20329_v58  ;;  %v14940_v58 = vpop.permute.xlu0 %5024 }
 0x1a3   :  { %10127 = vmatmul.mubr.msk.f32.gmra.mrb[94].mxu1 %vm1545_vm15, %v20206_v1  ;;  %20334 = vst [vmem:[#allocation24_spill] sm:$0xff] %v14940_v58  ;;  %vm1559_vm15 = vcmp.eq.s32.totalorder %v13970_v11, %v20340_v27 }
 0x1a4   :  { %10128 = vmatprep.mubr.msk.f32.mxu1 %vm1548_vm1, %v20206_v1  ;;  %6765 = vperm.xlu1 %12781, %v14400_v12  }
 0x1a5   :  { %6798 = vperm.xlu0 %12782, %v14453_v60   ;;  %v14927_v46 = vpop.permute.xlu1 %5045 }
 0x1a6   :  { %20331 = vst [vmem:[#allocation151_spill] sm:$0xff] %v14927_v46  ;;  %v14955_v58 = vpop.permute.xlu0 %5030 }
 0x1a7   :  { %10129 = vmatmul.mubr.msk.f32.gmra.mrb[96].mxu1 %vm1547_vm2, %v20206_v1  ;;  %20337 = vst [vmem:[#allocation26_spill] sm:$0xff] %v14955_v58 }
 0x1a8   :  { %10130 = vmatprep.mubr.msk.f32.mxu1 %vm1550_vm3, %v20206_v1  ;;  %6771 = vperm.xlu1 %12781, %v14424_v2  }
 0x1a9   :  { %6804 = vperm.xlu0 %12782, %v14475_v16   ;;  %v14944_v46 = vpop.permute.xlu1 %5051 }
 0x1aa   :  { %20335 = vst [vmem:[#allocation27_spill] sm:$0xff] %v14944_v46  ;;  %v14976_v62 = vpop.permute.xlu0 %5036 }
 0x1ab   :  { %10131 = vmatmul.mubr.msk.f32.gmra.mrb[98].mxu1 %vm1549_vm4, %v20206_v1  ;;  %20341 = vst [vmem:[#allocation29_spill] sm:$0xff] %v14976_v62  ;;  %v20343_v62 = vld [vmem:[#allocation31_spill] sm:$0xff] }
 0x1ac   :  { %10132 = vmatprep.mubr.msk.f32.mxu1 %vm1552_vm5, %v20206_v1  ;;  %6777 = vperm.xlu1 %12781, %v14447_v3   ;;  %vm1562_vm1 = vcmp.eq.s32.totalorder %v13981_v26, %v20343_v62  ;;  %vm1561_vm2 = vcmp.eq.s32.totalorder %v13970_v11, %v20343_v62  ;;  %vm1566_vm5 = vcmp.eq.s32.totalorder %v13981_v26, %v14061_v41 }
 0x1ad   :  { %6810 = vperm.xlu0 %12782, %v14497_v6   ;;  %v14959_v46 = vpop.permute.xlu1 %5057 }
 0x1ae   :  { %20338 = vst [vmem:[#allocation152_spill] sm:$0xff] %v14959_v46 }
 0x1af   :  { %10133 = vmatmul.mubr.msk.f32.gmra.mrb[100].mxu1 %vm1551_vm6, %v20206_v1  ;;  %vm1565_vm6 = vcmp.eq.s32.totalorder %v13970_v11, %v14061_v41 }
 0x1b0   :  { %10134 = vmatprep.mubr.msk.f32.mxu1 %vm1554_vm7, %v20206_v1  ;;  %6783 = vperm.xlu1 %12781, %v14469_v45  }
 0x1b1   :  { %6816 = vperm.xlu0 %12782, %v14519_v31   ;;  %v14980_v55 = vpop.permute.xlu1 %5063 }
 0x1b2   :  { %20342 = vst [vmem:[#allocation28_spill] sm:$0xff] %v14980_v55  ;;  %v20346_v55 = vld [vmem:[#allocation30_spill] sm:$0xff] }
 0x1b3   :  { %10135 = vmatmul.mubr.msk.f32.gmra.mrb[102].mxu1 %vm1553_vm8, %v20206_v1  ;;  %vm1564_vm3 = vcmp.eq.s32.totalorder %v13981_v26, %v20346_v55  ;;  %vm1563_vm4 = vcmp.eq.s32.totalorder %v13970_v11, %v20346_v55 }
 0x1b4   :  { %10136 = vmatprep.mubr.msk.f32.mxu1 %vm1556_vm10, %v20206_v1  ;;  %6789 = vperm.xlu1 %12781, %v14491_v53   ;;  %vm860_vm10 = vcmask 64552  }
 0x1b5   :  { %6822 = vperm.xlu0 %12782, %v14541_v51   ;;  %v14999_v27 = vpop.permute.xlu1 %5069 }
 0x1b6   :  { %v14974_v46 = vpop.f32.mrb[72].mxu0  ;;  %20345 = vst [vmem:[#allocation153_spill] sm:$0xff] %v14999_v27 }
 0x1b7   :  { %10137 = vmatmul.mubr.msk.f32.gmra.mrb[104].mxu1 %vm1555_vm11, %v20206_v1  ;;  %v1785_v40 = vpop.f32.mrb[73].mxu0 }
 0x1b8   :  { %10138 = vmatprep.mubr.msk.f32.mxu1 %vm1558_vm12, %v20206_v1  ;;  %6795 = vperm.xlu1 %12781, %v14513_v29   ;;  %v14992_v40 = vpop.permute.xlu0 %5042 }
 0x1b9   :  { %6828 = vperm.xlu0 %12782, %v14563_v19   ;;  %20344 = vst [vmem:[#allocation31_spill] sm:$0xff] %v14992_v40  ;;  %v15018_v27 = vpop.permute.xlu1 %5075 }
 0x1ba   :  { %v14967_v18 = vpop.f32.mrb[0].mxu1  ;;  %20348 = vst [vmem:[#allocation154_spill] sm:$0xff] %v15018_v27 }
 0x1bb   :  { %v703_v58 = vpop.f32.mrb[1].mxu1  ;;  %10139 = vmatmul.mubr.msk.f32.gmra.mrb[106].mxu1 %vm1557_vm13, %v20206_v1 }
 0x1bc   :  { %10140 = vmatprep.mubr.msk.f32.mxu1 %vm1560_vm14, %v20206_v1  ;;  %6801 = vperm.xlu1 %12781, %v14535_v24  }
 0x1bd   :  { %12783 = vset.pattern.permute.xlu0 %v13287_v49  ;;  %v15037_v41 = vpop.permute.xlu1 %5081 }
 0x1be   :  { %7604 = vperm.xlu0 %12783, %v14280_v39   ;;  %v14983_v58 = vpop.f32.mrb[2].mxu1  ;;  %20351 = vst [vmem:[#allocation155_spill] sm:$0xff] %v15037_v41 }
 0x1bf   :  { %v708_v30 = vpop.f32.mrb[3].mxu1  ;;  %10141 = vmatmul.mubr.msk.f32.gmra.mrb[108].mxu1 %vm1559_vm15, %v20206_v1 }
 0x1c0   :  { %10142 = vmatprep.mubr.msk.f32.mxu1 %vm1562_vm1, %v20206_v1  ;;  %6807 = vperm.xlu1 %12781, %v14557_v57  }
 0x1c2   :  { %7613 = vperm.xlu0 %12783, %v14328_v28   ;;  %v14995_v39 = vpop.f32.mrb[4].mxu1 }
 0x1c3   :  { %v713_v30 = vpop.f32.mrb[5].mxu1  ;;  %10143 = vmatmul.mubr.msk.f32.gmra.mrb[110].mxu1 %vm1561_vm2, %v20206_v1 }
 0x1c4   :  { %10144 = vmatprep.mubr.msk.f32.mxu1 %vm1564_vm3, %v20206_v1  ;;  %6813 = vperm.xlu1 %12781, %v14579_v48   ;;  %v15014_v30 = vpop.permute.xlu0 %5048 }
 0x1c5   :  { %20347 = vst [vmem:[#allocation30_spill] sm:$0xff] %v15014_v30 }
 0x1c6   :  { %7619 = vperm.xlu0 %12783, %v14352_v25   ;;  %v15007_v28 = vpop.f32.mrb[6].mxu1 }
 0x1c7   :  { %v718_v62 = vpop.f32.mrb[7].mxu1  ;;  %10145 = vmatmul.mubr.msk.f32.gmra.mrb[112].mxu1 %vm1563_vm4, %v20206_v1 }
 0x1c8   :  { %10146 = vmatprep.mubr.msk.f32.mxu1 %vm1566_vm5, %v20206_v1  ;;  %6819 = vperm.xlu1 %12781, %v14594_v20   ;;  %v20349_v62 = vld [vmem:[#allocation32_spill] sm:$0xff]  ;;  %v15030_v30 = vpop.permute.xlu0 %5054 }
 0x1c9   :  { %vm1568_vm7 = vcmp.eq.s32.totalorder %v13981_v26, %v20349_v62  ;;  %20350 = vst [vmem:[#allocation32_spill] sm:$0xff] %v15030_v30  ;;  %vm1567_vm8 = vcmp.eq.s32.totalorder %v13970_v11, %v20349_v62  ;;  %v15052_v62 = vpop.permute.xlu1 %5087 }
 0x1ca   :  { %7625 = vperm.xlu0 %12783, %v14376_v36   ;;  %v15021_v25 = vpop.f32.mrb[8].mxu1  ;;  %20353 = vst [vmem:[#allocation157_spill] sm:$0xff] %v15052_v62 }
 0x1cb   :  { %v723_v55 = vpop.f32.mrb[9].mxu1  ;;  %10147 = vmatmul.mubr.msk.f32.gmra.mrb[114].mxu1 %vm1565_vm6, %v20206_v1 }
 0x1cc   :  { %10148 = vmatprep.mubr.msk.f32.mxu1 %vm1568_vm7, %v20206_v1  ;;  %6825 = vperm.xlu1 %12781, %v14611_v14   ;;  %v15048_v30 = vpop.permute.xlu0 %5060 }
 0x1cd   :  { %20352 = vst [vmem:[#allocation156_spill] sm:$0xff] %v15048_v30 }
 0x1ce   :  { %7631 = vperm.xlu0 %12783, %v14400_v12   ;;  %v15033_v36 = vpop.f32.mrb[10].mxu1 }
 0x1cf   :  { %v728_v55 = vpop.f32.mrb[11].mxu1  ;;  %10149 = vmatmul.mubr.msk.f32.gmra.mrb[116].mxu1 %vm1567_vm8, %v20206_v1 }
 0x1d0   :  { %6831 = vperm.xlu1 %12781, %v14636_v7   ;;  %11599 = vmatprep.mubr.msk.f32.mxu1 %vm89_vm0, %v14731_v21  ;;  %v13265_v21 = vld [vmem:[%s19740_s1 + $0x8] sm:$0xff]  ;;  %v15076_v55 = vpop.permute.xlu1 %5093 }
 0x1d1   :  { %20355 = vst [vmem:[#allocation159_spill] sm:$0xff] %v15076_v55  ;;  %v20360_v55 = vld [vmem:[#allocation2_spill] sm:$0xff] }
 0x1d2   :  { %7637 = vperm.xlu0 %12783, %v14424_v2   ;;  %v15044_v27 = vpop.f32.mrb[12].mxu1 }
 0x1d3   :  { %v733_v12 = vpop.f32.mrb[13].mxu1  ;;  %11600 = vmatmul.mubr.msk.f32.vlgmr.msra.gmra.mrb[118].mxu1 %vm89_vm0, %v14745_v47 }
 0x1d4   :  { %12784 = vset.pattern.permute.xlu1 %v13287_v49  ;;  %11602 = vmatprep.mubr.msk.f32.mxu1 %vm89_vm0, %v14761_v0  ;;  %v13266_v0 = vld [vmem:[%s19740_s1 + $0x10] sm:$0xff]  ;;  %v15070_v49 = vpop.permute.xlu0 %5066 }
 0x1d5   :  { %7607 = vperm.xlu1 %12784, %v13265_v21   ;;  %12141 = vmatpush1.bf16.msra.mxu1 %v13646_v59  ;;  %20354 = vst [vmem:[#allocation158_spill] sm:$0xff] %v15070_v49 }
 0x1d6   :  { %7643 = vperm.xlu0 %12783, %v14447_v3   ;;  %v15059_v2 = vpop.f32.mrb[14].mxu1  ;;  %12142 = vmatprep.subr.bf16.mxu1 %v20210_v37 }
 0x1d7   :  { %v738_v47 = vpop.f32.mrb[15].mxu1  ;;  %11603 = vmatmul.mubr.msk.f32.gmra.mrb[120].mxu1 %vm89_vm0, %v14775_v17 }
 0x1d8   :  { %11605 = vmatprep.mubr.msk.f32.mxu1 %vm89_vm0, %v14974_v46  ;;  %v13267_v46 = vld [vmem:[%s19740_s1 + $0x20] sm:$0xff]  ;;  %v15086_v21 = vpop.permute.xlu0 %5072  ;;  %v15088_v47 = vpop.permute.xlu1 %5099 }
 0x1d9   :  { %7610 = vperm.xlu1 %12784, %v13266_v0   ;;  %12144 = vmatpush1.bf16.msra.mxu1 %v13679_v4  ;;  %20356 = vst [vmem:[#allocation160_spill] sm:$0xff] %v15086_v21  ;;  %20357 = vst [vmem:[#allocation161_spill] sm:$0xff] %v15088_v47  ;;  %v13268_v0 = vld [vmem:[%s19740_s1 + $0x30] sm:$0xff]  ;;  %v20367_v21 = vld [vmem:[#allocation5_spill] sm:$0xff] }
 0x1da   :  { %7649 = vperm.xlu0 %12783, %v14469_v45   ;;  %v15073_v3 = vpop.f32.mrb[16].mxu1  ;;  %12145 = vmatprep.subr.bf16.mxu1 %v20210_v37 }
 0x1db   :  { %v743_v17 = vpop.f32.mrb[17].mxu1 }
 0x1dd   :  { %7616 = vperm.xlu1 %12784, %v13267_v46   ;;  %12147 = vmatpush1.bf16.msra.mxu1 %v13706_v13  ;;  %v13269_v46 = vld [vmem:[%s19740_s1 + $0x40] sm:$0xff] }
 0x1de   :  { %7655 = vperm.xlu0 %12783, %v14491_v53   ;;  %v15083_v12 = vpop.f32.mrb[18].mxu1  ;;  %12148 = vmatprep.subr.bf16.mxu1 %v20210_v37 }
 0x1df   :  { %v748_v45 = vpop.f32.mrb[19].mxu1 }
 0x1e0   :  { %v15102_v45 = vpop.permute.xlu0 %5078 }
 0x1e1   :  { %7622 = vperm.xlu1 %12784, %v13268_v0   ;;  %12150 = vmatpush1.bf16.msra.mxu1 %v13725_v23  ;;  %20358 = vst [vmem:[#allocation162_spill] sm:$0xff] %v15102_v45 }
 0x1e2   :  { %7661 = vperm.xlu0 %12783, %v14513_v29   ;;  %v15095_v17 = vpop.f32.mrb[20].mxu1  ;;  %12151 = vmatprep.subr.bf16.mxu1 %v20210_v37  ;;  %v15108_v29 = vpop.permute.xlu1 %5875 }
 0x1e3   :  { %v753_v53 = vpop.f32.mrb[21].mxu1  ;;  %20359 = vst [vmem:[#allocation163_spill] sm:$0xff] %v15108_v29  ;;  %v20363_v29 = vld [vmem:[#allocation3_spill] sm:$0xff] }
 0x1e4   :  { %v13270_v53 = vld [vmem:[%s19740_s1 + $0x50] sm:$0xff]  ;;  %v15118_v62 = vpop.permute.xlu0 %5084 }
 0x1e5   :  { %7628 = vperm.xlu1 %12784, %v13269_v46   ;;  %12153 = vmatpush1.bf16.msra.mxu1 %v13745_v38  ;;  %20361 = vst [vmem:[#allocation2_spill] sm:$0xff] %v15118_v62 }
 0x1e6   :  { %7667 = vperm.xlu0 %12783, %v14535_v24   ;;  %v15105_v0 = vpop.f32.mrb[22].mxu1  ;;  %12154 = vmatprep.subr.bf16.mxu1 %v20210_v37  ;;  %v15120_v41 = vpop.permute.xlu1 %5878 }
 0x1e7   :  { %v758_v47 = vpop.f32.mrb[23].mxu1  ;;  %20362 = vst [vmem:[#allocation164_spill] sm:$0xff] %v15120_v41  ;;  %v20364_v41 = vld [vmem:[#allocation4_spill] sm:$0xff] }
 0x1e8   :  { %v13271_v47 = vld [vmem:[%s19740_s1 + $0x60] sm:$0xff]  ;;  %v15134_v62 = vpop.permute.xlu0 %5090 }
 0x1e9   :  { %7634 = vperm.xlu1 %12784, %v13270_v53   ;;  %12156 = vmatpush1.bf16.msra.mxu1 %v20360_v55  ;;  %20365 = vst [vmem:[#allocation3_spill] sm:$0xff] %v15134_v62 }
 0x1ea   :  { %7673 = vperm.xlu0 %12783, %v14557_v57   ;;  %v15115_v46 = vpop.f32.mrb[24].mxu1  ;;  %12157 = vmatprep.subr.bf16.mxu1 %v20210_v37 }
 0x1eb   :  { %v763_v24 = vpop.f32.mrb[25].mxu1 }
 0x1ec   :  { %v13272_v24 = vld [vmem:[%s19740_s1 + $0x70] sm:$0xff]  ;;  %v15150_v62 = vpop.permute.xlu0 %5096 }
 0x1ed   :  { %7640 = vperm.xlu1 %12784, %v13271_v47   ;;  %12159 = vmatpush1.bf16.msra.mxu1 %v20363_v29  ;;  %20368 = vst [vmem:[#allocation5_spill] sm:$0xff] %v15150_v62 }
 0x1ee   :  { %7679 = vperm.xlu0 %12783, %v14579_v48   ;;  %v15127_v53 = vpop.f32.mrb[26].mxu1  ;;  %12160 = vmatprep.subr.bf16.mxu1 %v20210_v37  ;;  %v15140_v48 = vpop.permute.xlu1 %5884 }
 0x1ef   :  { %v768_v57 = vpop.f32.mrb[27].mxu1  ;;  %20366 = vst [vmem:[#allocation4_spill] sm:$0xff] %v15140_v48  ;;  %v20370_v48 = vld [vmem:[#allocation6_spill] sm:$0xff] }
 0x1f0   :  { %v13273_v57 = vld [vmem:[%s19740_s1 + $0x80] sm:$0xff]  ;;  %v15164_v62 = vpop.permute.xlu0 %5872 }
 0x1f1   :  { %7646 = vperm.xlu1 %12784, %v13272_v24   ;;  %12162 = vmatpush1.bf16.msra.mxu1 %v20364_v41  ;;  %20372 = vst [vmem:[#allocation6_spill] sm:$0xff] %v15164_v62 }
 0x1f2   :  { %7685 = vperm.xlu0 %12783, %v14594_v20   ;;  %v15137_v47 = vpop.f32.mrb[28].mxu1  ;;  %12163 = vmatprep.subr.bf16.mxu1 %v20210_v37  ;;  %v15152_v49 = vpop.permute.xlu1 %5890 }
 0x1f3   :  { %v773_v45 = vpop.f32.mrb[29].mxu1  ;;  %20369 = vst [vmem:[#allocation165_spill] sm:$0xff] %v15152_v49  ;;  %v20373_v49 = vld [vmem:[#allocation52_spill] sm:$0xff] }
 0x1f4   :  { %v13274_v45 = vld [vmem:[%s19740_s1 + $0x90] sm:$0xff] }
 0x1f5   :  { %7652 = vperm.xlu1 %12784, %v13273_v57   ;;  %12165 = vmatpush1.bf16.msra.mxu1 %v20367_v21 }
 0x1f6   :  { %7691 = vperm.xlu0 %12783, %v14611_v14   ;;  %v15147_v24 = vpop.f32.mrb[30].mxu1  ;;  %12166 = vmatprep.subr.bf16.mxu1 %v20210_v37 }
 0x1f7   :  { %v778_v20 = vpop.f32.mrb[31].mxu1 }
 0x1f8   :  { %v20371_v20 = vld [vmem:[#allocation7_spill] sm:$0xff] }
 0x1f9   :  { %7658 = vperm.xlu1 %12784, %v13274_v45   ;;  %12168 = vmatpush1.bf16.msra.mxu1 %v20370_v48 }
 0x1fa   :  { %7697 = vperm.xlu0 %12783, %v14636_v7   ;;  %v15159_v57 = vpop.f32.mrb[32].mxu1  ;;  %12169 = vmatprep.subr.bf16.mxu1 %v20210_v37  ;;  %v15171_v7 = vpop.permute.xlu1 %5896 }
 0x1fb   :  { %v783_v14 = vpop.f32.mrb[33].mxu1  ;;  %20374 = vst [vmem:[#allocation7_spill] sm:$0xff] %v15171_v7  ;;  %v20379_v7 = vld [vmem:[#allocation9_spill] sm:$0xff] }
 0x1fc   :  { %v20375_v14 = vld [vmem:[#allocation8_spill] sm:$0xff] }
 0x1fd   :  { %7664 = vperm.xlu1 %12784, %v14453_v60   ;;  %12171 = vmatpush1.bf16.msra.mxu1 %v20371_v20  ;;  %v20376_v60 = vld [vmem:[#allocation58_spill] sm:$0xff] }
 0x1fe   :  { %1960 = vrot.lane.b32.xlu0 %v20373_v49, %s13288_s13  ;;  %v15168_v45 = vpop.f32.mrb[34].mxu1  ;;  %12172 = vmatprep.subr.bf16.mxu1 %v20210_v37  ;;  %v15180_v49 = vpop.permute.xlu0 %5881 }
 0x1ff   :  { %v788_v30 = vpop.f32.mrb[35].mxu1  ;;  %20377 = vst [vmem:[#allocation52_spill] sm:$0xff] %v15180_v49  ;;  %v15182_v63 = vpop.permute.xlu1 %5902 }
 0x200   :  { %20378 = vst [vmem:[#allocation8_spill] sm:$0xff] %v15182_v63  ;;  %v20383_v63 = vld [vmem:[#allocation70_spill] sm:$0xff] }
 0x201   :  { %7670 = vperm.xlu1 %12784, %v14475_v16   ;;  %12174 = vmatpush1.bf16.msra.mxu1 %v20375_v14  ;;  %v20380_v16 = vld [vmem:[#allocation64_spill] sm:$0xff] }
 0x202   :  { %1964 = vrot.lane.b32.xlu0 %v20376_v60, %s13288_s13  ;;  %v15177_v40 = vpop.f32.mrb[36].mxu1  ;;  %12175 = vmatprep.subr.bf16.mxu1 %v20210_v37 }
 0x203   :  { %v793_v62 = vpop.f32.mrb[37].mxu1  ;;  %v15200_v49 = vpop.permute.xlu1 %5908 }
 0x204   :  { %v15193_v62 = vpop.permute.xlu0 %5887  ;;  %20384 = vst [vmem:[#allocation9_spill] sm:$0xff] %v15200_v49  ;;  %v20389_v49 = vld [vmem:[#allocation12_spill] sm:$0xff] }
 0x205   :  { %7676 = vperm.xlu1 %12784, %v14497_v6   ;;  %12177 = vmatpush1.bf16.msra.mxu1 %v20379_v7  ;;  %20382 = vst [vmem:[#allocation58_spill] sm:$0xff] %v15193_v62 }
 0x206   :  { %1968 = vrot.lane.b32.xlu0 %v20380_v16, %s13288_s13  ;;  %v15188_v30 = vpop.f32.mrb[38].mxu1  ;;  %12178 = vmatprep.subr.bf16.mxu1 %v20210_v37 }
 0x207   :  { %v798_v60 = vpop.f32.mrb[39].mxu1  ;;  %v15211_v44 = vpop.permute.xlu1 %5914 }
 0x208   :  { %20388 = vst [vmem:[#allocation10_spill] sm:$0xff] %v15211_v44 }
 0x209   :  { %7682 = vperm.xlu1 %12784, %v14519_v31   ;;  %12180 = vmatpush1.bf16.msra.mxu1 %v20381_v43  ;;  %v20386_v31 = vld [vmem:[#allocation76_spill] sm:$0xff] }
 0x20a   :  { %1972 = vrot.lane.b32.xlu0 %v20383_v63, %s13288_s13  ;;  %v15197_v6 = vpop.f32.mrb[40].mxu1  ;;  %12181 = vmatprep.subr.bf16.mxu1 %v20210_v37  ;;  %v15209_v63 = vpop.permute.xlu0 %5893 }
 0x20b   :  { %v803_v16 = vpop.f32.mrb[41].mxu1  ;;  %20387 = vst [vmem:[#allocation64_spill] sm:$0xff] %v15209_v63  ;;  %v20393_v63 = vld [vmem:[#allocation88_spill] sm:$0xff] }
 0x20d   :  { %7688 = vperm.xlu1 %12784, %v14541_v51   ;;  %12183 = vmatpush1.bf16.msra.mxu1 %v20385_v52  ;;  %v20390_v51 = vld [vmem:[#allocation82_spill] sm:$0xff] }
 0x20e   :  { %1976 = vrot.lane.b32.xlu0 %v20386_v31, %s13288_s13  ;;  %v15206_v60 = vpop.f32.mrb[42].mxu1  ;;  %12184 = vmatprep.subr.bf16.mxu1 %v20210_v37 }
 0x20f   :  { %v808_v62 = vpop.f32.mrb[43].mxu1 }
 0x210   :  { %v15222_v62 = vpop.permute.xlu0 %5899 }
 0x211   :  { %7694 = vperm.xlu1 %12784, %v14563_v19   ;;  %12186 = vmatpush1.bf16.msra.mxu1 %v20389_v49  ;;  %20392 = vst [vmem:[#allocation70_spill] sm:$0xff] %v15222_v62  ;;  %v15228_v19 = vpop.permute.xlu1 %5920 }
 0x212   :  { %1980 = vrot.lane.b32.xlu0 %v20390_v51, %s13288_s13  ;;  %v15217_v16 = vpop.f32.mrb[44].mxu1  ;;  %12244 = vmatprep.subr.bf16.mxu1 %v14627_v35  ;;  %20394 = vst [vmem:[#allocation11_spill] sm:$0xff] %v15228_v19  ;;  %v20395_v51 = vld [vmem:[#allocation55_spill] sm:$0xff] }
 0x213   :  { %v813_v31 = vpop.f32.mrb[45].mxu1 }
 0x215   :  { %1958 = vrot.lane.b32.xlu1 %v20391_v5, %s13288_s13  ;;  %v15234_v31 = vpop.permute.xlu1 %5926  ;;  %v20398_v5 = vld [vmem:[#allocation61_spill] sm:$0xff] }
 0x216   :  { %1984 = vrot.lane.b32.xlu0 %v20393_v63, %s13288_s13  ;;  %v15226_v44 = vpop.f32.mrb[46].mxu1  ;;  %20397 = vst [vmem:[#allocation12_spill] sm:$0xff] %v15234_v31  ;;  %v20400_v63 = vld [vmem:[#allocation67_spill] sm:$0xff] }
 0x217   :  { %v818_v15 = vpop.f32.mrb[47].mxu1 }
 0x219   :  { %1962 = vrot.lane.b32.xlu1 %v20395_v51, %s13288_s13  ;;  %v15244_v15 = vpop.permute.xlu1 %5932  ;;  %v20403_v51 = vld [vmem:[#allocation73_spill] sm:$0xff] }
 0x21a   :  { %v15232_v50 = vpop.f32.mrb[48].mxu1  ;;  %20402 = vst [vmem:[#allocation88_spill] sm:$0xff] %v15244_v15 }
 0x21b   :  { %20396 = vst [vmem:[#allocation76_spill] sm:$0xff] %v15232_v50  ;;  %v823_v32 = vpop.f32.mrb[49].mxu1 }
 0x21d   :  { %1966 = vrot.lane.b32.xlu1 %v20398_v5, %s13288_s13  ;;  %v15250_v50 = vpop.permute.xlu1 %5938  ;;  %v20406_v5 = vld [vmem:[#allocation79_spill] sm:$0xff] }
 0x21e   :  { %v15238_v62 = vpop.f32.mrb[50].mxu1  ;;  %20405 = vst [vmem:[#allocation61_spill] sm:$0xff] %v15250_v50 }
 0x21f   :  { %20399 = vst [vmem:[#allocation82_spill] sm:$0xff] %v15238_v62  ;;  %v828_v8 = vpop.f32.mrb[51].mxu1 }
 0x221   :  { %1970 = vrot.lane.b32.xlu1 %v20400_v63, %s13288_s13  ;;  %v15259_v63 = vld [vmem:[%s19746_s7] ss:$0 sm:$0xff] }
 0x222   :  { %v15242_v61 = vpop.f32.mrb[52].mxu1  ;;  %v15269_v50 = vadd.f32 %v15259_v63, %v14967_v18 }
 0x223   :  { %20401 = vst [vmem:[#allocation49_spill] sm:$0xff] %v15242_v61  ;;  %v833_v19 = vpop.f32.mrb[53].mxu1 }
 0x224   :  { %v20408_v19 = vld [vmem:[#allocation85_spill] sm:$0xff]  ;;  %v861_v15 = vsel %vm860_vm10, %v15269_v50, -inf }
 0x225   :  { %1974 = vrot.lane.b32.xlu1 %v20403_v51, %s13288_s13  ;;  %20411 = vst [vmem:[#allocation85_spill] sm:$0xff] %v15269_v50  ;;  %v20420_v50 = vld [vmem:[#allocation100_spill] sm:$0xff] }
 0x226   :  { %v15248_v32 = vpop.f32.mrb[54].mxu1 }
 0x227   :  { %20404 = vst [vmem:[#allocation55_spill] sm:$0xff] %v15248_v32  ;;  %v838_v31 = vpop.f32.mrb[55].mxu1  ;;  %v15265_v32 = vpop.permute.xlu1 %5944 }
 0x228   :  { %20410 = vst [vmem:[#allocation79_spill] sm:$0xff] %v15265_v32 }
 0x229   :  { %1978 = vrot.lane.b32.xlu1 %v20406_v5, %s13288_s13  ;;  %v20412_v5 = vld [vmem:[#allocation91_spill] sm:$0xff] }
 0x22a   :  { %v15254_v8 = vpop.f32.mrb[56].mxu1 }
 0x22b   :  { %20407 = vst [vmem:[#allocation67_spill] sm:$0xff] %v15254_v8  ;;  %v843_v62 = vpop.f32.mrb[57].mxu1 }
 0x22d   :  { %1982 = vrot.lane.b32.xlu1 %v20408_v19, %s13288_s13  ;;  %v15277_v19 = vpop.permute.xlu0 %5905 }
 0x22e   :  { %v15263_v51 = vpop.f32.mrb[58].mxu1  ;;  %20414 = vst [vmem:[#allocation166_spill] sm:$0xff] %v15277_v19 }
 0x22f   :  { %20409 = vst [vmem:[#allocation73_spill] sm:$0xff] %v15263_v51  ;;  %v848_v31 = vpop.f32.mrb[59].mxu1  ;;  %v15279_v51 = vpop.permute.xlu1 %5950 }
 0x230   :  { %20415 = vst [vmem:[#allocation167_spill] sm:$0xff] %v15279_v51  ;;  %v20416_v31 = vld [vmem:[#allocation94_spill] sm:$0xff] }
 0x231   :  { %1986 = vrot.lane.b32.xlu1 %v20412_v5, %s13288_s13  ;;  %v20418_v5 = vld [vmem:[#allocation97_spill] sm:$0xff] }
 0x232   :  { %v15273_v62 = vpop.f32.mrb[60].mxu1 }
 0x233   :  { %20413 = vst [vmem:[#allocation91_spill] sm:$0xff] %v15273_v62  ;;  %v853_v8 = vpop.f32.mrb[61].mxu1  ;;  %v15287_v62 = vpop.permute.xlu1 %5956 }
 0x234   :  { %20419 = vst [vmem:[#allocation97_spill] sm:$0xff] %v15287_v62 }
 0x235   :  { %862 = vmax.xlane.f32.xlu0 %v861_v15  ;;  %1988 = vrot.lane.b32.xlu1 %v20416_v31, %s13288_s13 }
 0x236   :  { %v15283_v18 = vpop.f32.mrb[62].mxu1 }
 0x237   :  { %20417 = vst [vmem:[#allocation94_spill] sm:$0xff] %v15283_v18  ;;  %v858_v32 = vpop.f32.mrb[63].mxu1  ;;  %v15293_v31 = vpop.permute.xlu1 %5962 }
 0x238   :  { %20421 = vst [vmem:[#allocation100_spill] sm:$0xff] %v15293_v31  ;;  %v20422_v32 = vld [vmem:[#allocation103_spill] sm:$0xff]  ;;  %v15305_v31 = vpop.permute.xlu0 %5911 }
 0x239   :  { %1990 = vrot.lane.b32.xlu1 %v20418_v5, %s13288_s13 }
 0x23a   :  { %v1788_v61 = vpop.f32.mrb[64].mxu1 }
 0x23b   :  { %v1790_v8 = vpop.f32.mrb[65].mxu1  ;;  %11606 = vmatmul.mubr.msk.f32.gmra.mrb[122].mxu1 %vm89_vm0, %v1788_v61  ;;  %v15300_v62 = vpop.permute.xlu1 %6738 }
 0x23c   :  { %v20423_v8 = vld [vmem:[#allocation109_spill] sm:$0xff]  ;;  %20424 = vst [vmem:[#allocation103_spill] sm:$0xff] %v15300_v62 }
 0x23d   :  { %1992 = vrot.lane.b32.xlu1 %v20420_v50, %s13288_s13  ;;  %20426 = vst [vmem:[#allocation109_spill] sm:$0xff] %v15305_v31 }
 0x23e   :  { %v1793_v51 = vpop.f32.mrb[66].mxu1 }
 0x23f   :  { %v1795_v15 = vpop.f32.mrb[67].mxu1  ;;  %11608 = vmatprep.mubr.msk.f32.mxu1 %vm89_vm0, %v1793_v51  ;;  %v20425_v51 = vld [vmem:[#allocation112_spill] sm:$0xff] }
 0x241   :  { %1994 = vrot.lane.b32.xlu1 %v20422_v32, %s13288_s13 }
 0x242   :  { %v1798_v18 = vpop.f32.mrb[68].mxu1 }
 0x243   :  { %v1800_v5 = vpop.f32.mrb[69].mxu1  ;;  %11609 = vmatmul.mubr.msk.f32.gmra.mrb[124].mxu1 %vm89_vm0, %v1798_v18  ;;  %v20427_v18 = vld [vmem:[#allocation106_spill] sm:$0xff] }
 0x244   :  { %v15310_v5 = vpop.permute.xlu1 %6744 }
 0x245   :  { %1998 = vrot.lane.b32.xlu1 %v20423_v8, %s13288_s13  ;;  %20428 = vst [vmem:[#allocation112_spill] sm:$0xff] %v15310_v5  ;;  %v20429_v8 = vld [vmem:[#allocation115_spill] sm:$0xff] }
 0x246   :  { %v1803_v61 = vpop.f32.mrb[70].mxu1 }
 0x247   :  { %v1805_v50 = vpop.f32.mrb[71].mxu1  ;;  %11611 = vmatprep.mubr.msk.f32.mxu1 %vm89_vm0, %v1803_v61  ;;  %v20430_v61 = vld [vmem:[#allocation118_spill] sm:$0xff] }
 0x248   :  { %v15319_v31 = vpop.permute.xlu1 %6747 }
 0x249   :  { %2000 = vrot.lane.b32.xlu1 %v20425_v51, %s13288_s13  ;;  %v15317_v51 = vpop.permute.xlu0 %5917  ;;  %20432 = vst [vmem:[#allocation115_spill] sm:$0xff] %v15319_v31 }
 0x24a   :  { %v1808_v15 = vpop.f32.mrb[72].mxu1  ;;  %20431 = vst [vmem:[#allocation106_spill] sm:$0xff] %v15317_v51 }
 0x24b   :  { %v1810_v32 = vpop.f32.mrb[73].mxu1  ;;  %11612 = vmatmul.mubr.msk.f32.gmra.mrb[126].mxu1 %vm89_vm0, %v1808_v15  ;;  %1996 = vrot.lane.b32.xlu0 %v20427_v18, %s13288_s13  ;;  %v20433_v18 = vld [vmem:[#allocation120_spill] sm:$0xff] }
 0x24d   :  { %2002 = vrot.lane.b32.xlu1 %v20429_v8, %s13288_s13 }
 0x24e   :  { %v1813_v50 = vpop.f32.mrb[74].mxu1 }
 0x24f   :  { %v1815_v62 = vpop.f32.mrb[75].mxu1  ;;  %11614 = vmatprep.mubr.msk.f32.mxu1 %vm89_vm0, %v1813_v50  ;;  %v15327_v50 = vpop.permute.xlu1 %6753 }
 0x250   :  { %v15325_v62 = vpop.permute.xlu0 %5923  ;;  %20435 = vst [vmem:[#allocation120_spill] sm:$0xff] %v15327_v50  ;;  %v20440_v50 = vld [vmem:[#allocation128_spill] sm:$0xff] }
 0x251   :  { %2004 = vrot.lane.b32.xlu1 %v20430_v61, %s13288_s13  ;;  %20434 = vst [vmem:[#allocation118_spill] sm:$0xff] %v15325_v62  ;;  %v20436_v61 = vld [vmem:[#allocation123_spill] sm:$0xff] }
 0x252   :  { %v1818_v32 = vpop.f32.mrb[76].mxu1 }
 0x253   :  { %v1820_v15 = vpop.f32.mrb[77].mxu1  ;;  %11615 = vmatmul.mubr.msk.f32.gmra.mrb[128].mxu1 %vm89_vm0, %v1818_v32  ;;  %v20437_v32 = vld [vmem:[#allocation126_spill] sm:$0xff] }
 0x254   :  { %v15334_v15 = vpop.permute.xlu0 %5929 }
 0x255   :  { %2006 = vrot.lane.b32.xlu1 %v20433_v18, %s13288_s13  ;;  %20438 = vst [vmem:[#allocation123_spill] sm:$0xff] %v15334_v15 }
 0x256   :  { %v1823_v5 = vpop.f32.mrb[78].mxu1 }
 0x257   :  { %v1825_v8 = vpop.f32.mrb[79].mxu1  ;;  %11617 = vmatprep.mubr.msk.f32.mxu1 %vm89_vm0, %v1823_v5 }
 0x258   :  { %v15336_v8 = vpop.permute.xlu1 %6759 }
 0x259   :  { %2008 = vrot.lane.b32.xlu1 %v20436_v61, %s13288_s13  ;;  %20439 = vst [vmem:[#allocation126_spill] sm:$0xff] %v15336_v8  ;;  %v20444_v8 = vld [vmem:[#allocation131_spill] sm:$0xff] }
 0x25a   :  { %v1828_v51 = vpop.f32.mrb[80].mxu1 }
 0x25b   :  { %v1830_v19 = vpop.f32.mrb[81].mxu1  ;;  %11618 = vmatmul.mubr.msk.f32.gmra.mrb[130].mxu1 %vm89_vm0, %v1828_v51  ;;  %v15346_v51 = vadd.f32 %v15259_v63, %v14983_v58 }
 0x25c   :  { %v15342_v19 = vpop.permute.xlu0 %5935 }
 0x25d   :  { %2010 = vrot.lane.b32.xlu1 %v20437_v32, %s13288_s13  ;;  %20441 = vst [vmem:[#allocation128_spill] sm:$0xff] %v15342_v19  ;;  %20442 = vst [vmem:[#allocation168_spill] sm:$0xff] %v15346_v51  ;;  %v15348_v32 = vpop.permute.xlu1 %6765  ;;  %v864_v58 = vsel %vm860_vm10, %v15346_v51, -inf }
 0x25e   :  { %v1833_v18 = vpop.f32.mrb[82].mxu1  ;;  %20443 = vst [vmem:[#allocation169_spill] sm:$0xff] %v15348_v32 }
 0x25f   :  { %v1835_v5 = vpop.f32.mrb[83].mxu1  ;;  %11620 = vmatprep.mubr.msk.f32.mxu1 %vm89_vm0, %v1833_v18 }
 0x261   :  { %2012 = vrot.lane.b32.xlu1 %v20440_v50, %s13288_s13  ;;  %v15355_v50 = vadd.f32 %v15259_v63, %v15007_v28  ;;  %v15363_v19 = vpop.permute.xlu1 %6771 }
 0x262   :  { %v1838_v31 = vpop.f32.mrb[84].mxu1  ;;  %20448 = vst [vmem:[#allocation170_spill] sm:$0xff] %v15363_v19 }
 0x263   :  { %v1840_v61 = vpop.f32.mrb[85].mxu1  ;;  %11621 = vmatmul.mubr.msk.f32.gmra.mrb[132].mxu1 %vm89_vm0, %v1838_v31  ;;  %20445 = vst [vmem:[#allocation131_spill] sm:$0xff] %v15355_v50  ;;  %v20446_v31 = vld [vmem:[#allocation134_spill] sm:$0xff]  ;;  %v870_v28 = vsel %vm860_vm10, %v15355_v50, -inf }
 0x264   :  { %v15361_v61 = vpop.permute.xlu0 %5941 }
 0x265   :  { %2014 = vrot.lane.b32.xlu1 %v20444_v8, %s13288_s13  ;;  %20447 = vst [vmem:[#allocation134_spill] sm:$0xff] %v15361_v61 }
 0x266   :  { %v1843_v5 = vpop.f32.mrb[86].mxu1 }
 0x267   :  { %v1845_v18 = vpop.f32.mrb[87].mxu1  ;;  %11623 = vmatprep.mubr.msk.f32.mxu1 %vm89_vm0, %v1843_v5  ;;  %v15368_v5 = vadd.f32 %v15259_v63, %v15021_v25 }
 0x269   :  { %2016 = vrot.lane.b32.xlu1 %v20446_v31, %s13288_s13  ;;  %20449 = vst [vmem:[#allocation171_spill] sm:$0xff] %v15368_v5 }
 0x26a   :  { %v1848_v32 = vpop.f32.mrb[88].mxu1  ;;  %865 = vmax.xlane.f32.xlu0 %v864_v58  ;;  %v15375_v58 = vpop.permute.xlu0 %5947 }
 0x26b   :  { %v1850_v8 = vpop.f32.mrb[89].mxu1  ;;  %11624 = vmatmul.mubr.msk.f32.gmra.mrb[134].mxu1 %vm89_vm0, %v1848_v32  ;;  %20450 = vst [vmem:[#allocation172_spill] sm:$0xff] %v15375_v58  ;;  %v15379_v32 = vadd.f32 %v15259_v63, %v15033_v36 }
 0x26c   :  { %v15381_v8 = vpop.permute.xlu1 %6777 }
 0x26d   :  { %2018 = vrot.lane.b32.xlu1 %v14693_v56, %s13288_s13  ;;  %20451 = vst [vmem:[#allocation173_spill] sm:$0xff] %v15379_v32  ;;  %20452 = vst [vmem:[#allocation174_spill] sm:$0xff] %v15381_v8  ;;  %v873_v56 = vsel %vm860_vm10, %v15368_v5, -inf  ;;  %v876_v36 = vsel %vm860_vm10, %v15379_v32, -inf }
 0x26e   :  { %v1853_v18 = vpop.f32.mrb[90].mxu1  ;;  %871 = vmax.xlane.f32.xlu0 %v870_v28 }
 0x26f   :  { %v1855_v31 = vpop.f32.mrb[91].mxu1  ;;  %11626 = vmatprep.mubr.msk.f32.mxu1 %vm89_vm0, %v1853_v18  ;;  %v15390_v18 = vadd.f32 %v15259_v63, %v15059_v2 }
 0x270   :  { %v15394_v31 = vpop.permute.xlu0 %5953 }
 0x271   :  { %2020 = vrot.lane.b32.xlu1 %v14705_v34, %s13288_s13  ;;  %20453 = vst [vmem:[#allocation175_spill] sm:$0xff] %v15390_v18  ;;  %20454 = vst [vmem:[#allocation176_spill] sm:$0xff] %v15394_v31 }
 0x272   :  { %v1858_v25 = vpop.f32.mrb[92].mxu1  ;;  %874 = vmax.xlane.f32.xlu0 %v873_v56  ;;  %v15399_v56 = vadd.f32 %v15259_v63, %v15083_v12 }
 0x273   :  { %v1860_v28 = vpop.f32.mrb[93].mxu1  ;;  %11627 = vmatmul.mubr.msk.f32.gmra.mrb[136].mxu1 %vm89_vm0, %v1858_v25  ;;  %v882_v25 = vsel %vm860_vm10, %v15390_v18, -inf }
 0x274   :  { %20455 = vst [vmem:[#allocation177_spill] sm:$0xff] %v15399_v56  ;;  %v15404_v32 = vpop.permute.xlu0 %5959 }
 0x275   :  { %20456 = vst [vmem:[#allocation178_spill] sm:$0xff] %v15404_v32 }
 0x276   :  { %v1863_v51 = vpop.f32.mrb[94].mxu1  ;;  %877 = vmax.xlane.f32.xlu0 %v876_v36  ;;  %v15408_v36 = vadd.f32 %v15259_v63, %v15105_v0  ;;  %v15421_v0 = vpop.permute.xlu1 %6783 }
 0x277   :  { %v1865_v34 = vpop.f32.mrb[95].mxu1  ;;  %11629 = vmatprep.mubr.msk.f32.mxu1 %vm89_vm0, %v1863_v51  ;;  %v888_v51 = vsel %vm860_vm10, %v15399_v56, -inf  ;;  %20460 = vst [vmem:[#allocation182_spill] sm:$0xff] %v15421_v0 }
 0x278   :  { %20457 = vst [vmem:[#allocation179_spill] sm:$0xff] %v15408_v36 }
 0x27a   :  { %v1868_v28 = vpop.f32.mrb[96].mxu1  ;;  %883 = vmax.xlane.f32.xlu0 %v882_v25  ;;  %v15415_v25 = vadd.f32 %v15259_v63, %v15127_v53 }
 0x27b   :  { %v1870_v2 = vpop.f32.mrb[97].mxu1  ;;  %11630 = vmatmul.mubr.msk.f32.gmra.mrb[138].mxu1 %vm89_vm0, %v1868_v28  ;;  %v894_v28 = vsel %vm860_vm10, %v15408_v36, -inf }
 0x27c   :  { %20458 = vst [vmem:[#allocation180_spill] sm:$0xff] %v15415_v25  ;;  %v15419_v2 = vpop.permute.xlu0 %5965  ;;  %v900_v53 = vsel %vm860_vm10, %v15415_v25, -inf }
 0x27d   :  { %20459 = vst [vmem:[#allocation181_spill] sm:$0xff] %v15419_v2 }
 0x27e   :  { %v1873_v34 = vpop.f32.mrb[98].mxu1  ;;  %889 = vmax.xlane.f32.xlu0 %v888_v51  ;;  %v15426_v51 = vadd.f32 %v15259_v63, %v15147_v24 }
 0x27f   :  { %v1875_v12 = vpop.f32.mrb[99].mxu1  ;;  %11632 = vmatprep.mubr.msk.f32.mxu1 %vm89_vm0, %v1873_v34 }
 0x280   :  { %20461 = vst [vmem:[#allocation183_spill] sm:$0xff] %v15426_v51  ;;  %v15431_v36 = vpop.permute.xlu0 %6741  ;;  %v906_v24 = vsel %vm860_vm10, %v15426_v51, -inf }
 0x281   :  { %20462 = vst [vmem:[#allocation184_spill] sm:$0xff] %v15431_v36 }
 0x282   :  { %v1878_v18 = vpop.f32.mrb[100].mxu1  ;;  %895 = vmax.xlane.f32.xlu0 %v894_v28  ;;  %v15435_v28 = vadd.f32 %v15259_v63, %v15168_v45 }
 0x283   :  { %v1880_v5 = vpop.f32.mrb[101].mxu1  ;;  %11633 = vmatmul.mubr.msk.f32.gmra.mrb[140].mxu1 %vm89_vm0, %v1878_v18 }
 0x284   :  { %20463 = vst [vmem:[#allocation185_spill] sm:$0xff] %v15435_v28  ;;  %v15437_v5 = vpop.permute.xlu1 %6789 }
 0x285   :  { %20464 = vst [vmem:[#allocation186_spill] sm:$0xff] %v15437_v5 }
 0x286   :  { %v1883_v34 = vpop.f32.mrb[102].mxu1  ;;  %901 = vmax.xlane.f32.xlu0 %v900_v53  ;;  %v15444_v53 = vadd.f32 %v15259_v63, %v15188_v30  ;;  %v15459_v30 = vadd.f32 %v15259_v63, %v15206_v60  ;;  %v15474_v60 = vadd.f32 %v15259_v63, %v15226_v44 }
 0x287   :  { %v1885_v12 = vpop.f32.mrb[103].mxu1  ;;  %11635 = vmatprep.mubr.msk.f32.mxu1 %vm89_vm0, %v1883_v34  ;;  %v912_v34 = vsel %vm860_vm10, %v15435_v28, -inf }
 0x288   :  { %20465 = vst [vmem:[#allocation187_spill] sm:$0xff] %v15444_v53  ;;  %v15448_v12 = vpop.permute.xlu0 %6750  ;;  %v15450_v25 = vpop.permute.xlu1 %6795  ;;  %20469 = vst [vmem:[#allocation191_spill] sm:$0xff] %v15459_v30  ;;  %v930_v44 = vsel %vm860_vm10, %v15474_v60, -inf }
 0x289   :  { %20466 = vst [vmem:[#allocation188_spill] sm:$0xff] %v15448_v12  ;;  %20467 = vst [vmem:[#allocation189_spill] sm:$0xff] %v15450_v25 }
 0x28a   :  { %v1888_v18 = vpop.f32.mrb[104].mxu1  ;;  %907 = vmax.xlane.f32.xlu0 %v906_v24  ;;  %v918_v24 = vsel %vm860_vm10, %v15444_v53, -inf  ;;  %20472 = vst [vmem:[#allocation194_spill] sm:$0xff] %v15474_v60 }
 0x28b   :  { %v1890_v56 = vpop.f32.mrb[105].mxu1  ;;  %11636 = vmatmul.mubr.msk.f32.gmra.mrb[142].mxu1 %vm89_vm0, %v1888_v18 }
 0x28c   :  { %v15455_v56 = vadd.f32 %v15259_v63, %v14995_v39 }
 0x28e   :  { %v1893_v45 = vpop.f32.mrb[106].mxu1  ;;  %913 = vmax.xlane.f32.xlu0 %v912_v34  ;;  %20468 = vst [vmem:[#allocation190_spill] sm:$0xff] %v15455_v56  ;;  %v15468_v34 = vpop.permute.xlu0 %6756  ;;  %v867_v39 = vsel %vm860_vm10, %v15455_v56, -inf }
 0x28f   :  { %v1895_v50 = vpop.f32.mrb[107].mxu1  ;;  %11638 = vmatprep.mubr.msk.f32.mxu1 %vm89_vm0, %v1893_v45  ;;  %20471 = vst [vmem:[#allocation193_spill] sm:$0xff] %v15468_v34  ;;  %v15476_v45 = vpop.permute.xlu1 %6801 }
 0x290   :  { %v15466_v50 = vadd.f32 %v15259_v63, %v15044_v27  ;;  %20473 = vst [vmem:[#allocation195_spill] sm:$0xff] %v15476_v45  ;;  %v15483_v27 = vadd.f32 %v15259_v63, %v15073_v3  ;;  %v15496_v3 = vadd.f32 %v15259_v63, %v15095_v17  ;;  %v20480_v17 = vld [vmem:[#allocation34_spill] sm:$0xff] }
 0x291   :  { %vm2504_vm11 = vcmp.eq.s32.totalorder %v13981_v26, %v20480_v17  ;;  %vm2503_vm12 = vcmp.eq.s32.totalorder %v13970_v11, %v20480_v17 }
 0x292   :  { %v1898_v18 = vpop.f32.mrb[108].mxu1  ;;  %919 = vmax.xlane.f32.xlu0 %v918_v24  ;;  %20470 = vst [vmem:[#allocation192_spill] sm:$0xff] %v15466_v50  ;;  %20474 = vst [vmem:[#allocation196_spill] sm:$0xff] %v15483_v27  ;;  %v879_v53 = vsel %vm860_vm10, %v15466_v50, -inf  ;;  %v20530_v50 = vld [vmem:[#allocation72_spill] sm:$0xff] }
 0x293   :  { %v1900_v28 = vpop.f32.mrb[109].mxu1  ;;  %11639 = vmatmul.mubr.msk.f32.gmra.mrb[144].mxu1 %vm89_vm0, %v1898_v18  ;;  %20477 = vst [vmem:[#allocation199_spill] sm:$0xff] %v15496_v3 }
 0x294   :  { %v924_v28 = vsel %vm860_vm10, %v15459_v30, -inf  ;;  %v15491_v30 = vpop.permute.xlu1 %6807 }
 0x295   :  { %868 = vmax.xlane.f32.xlu1 %v867_v39  ;;  %v15489_v39 = vpop.permute.xlu0 %6762  ;;  %20476 = vst [vmem:[#allocation198_spill] sm:$0xff] %v15491_v30 }
 0x296   :  { %v1903_v24 = vpop.f32.mrb[110].mxu1  ;;  %925 = vmax.xlane.f32.xlu0 %v924_v28  ;;  %20475 = vst [vmem:[#allocation197_spill] sm:$0xff] %v15489_v39 }
 0x297   :  { %v1905_v18 = vpop.f32.mrb[111].mxu1  ;;  %11641 = vmatprep.mubr.msk.f32.mxu1 %vm89_vm0, %v1903_v24  ;;  %v885_v24 = vsel %vm860_vm10, %v15483_v27, -inf }
 0x299   :  { %880 = vmax.xlane.f32.xlu1 %v879_v53 }
 0x29a   :  { %v1908_v51 = vpop.f32.mrb[112].mxu1  ;;  %931 = vmax.xlane.f32.xlu0 %v930_v44  ;;  %v15503_v44 = vadd.f32 %v15259_v63, %v15115_v46  ;;  %v15516_v46 = vadd.f32 %v15259_v63, %v15137_v47  ;;  %v15532_v47 = vadd.f32 %v15259_v63, %v15159_v57  ;;  %v20489_v57 = vld [vmem:[#allocation35_spill] sm:$0xff] }
 0x29b   :  { %v1910_v28 = vpop.f32.mrb[113].mxu1  ;;  %11642 = vmatmul.mubr.msk.f32.gmra.mrb[146].mxu1 %vm89_vm0, %v1908_v51  ;;  %v15507_v51 = vpop.permute.xlu1 %6813  ;;  %vm2508_vm15 = vcmp.eq.s32.totalorder %v13981_v26, %v20489_v57  ;;  %vm2507_vm1 = vcmp.eq.s32.totalorder %v13970_v11, %v20489_v57  ;;  %v20495_v57 = vld [vmem:[#allocation37_spill] sm:$0xff] }
 0x29c   :  { %20478 = vst [vmem:[#allocation200_spill] sm:$0xff] %v15503_v44  ;;  %v891_v28 = vsel %vm860_vm10, %v15496_v3, -inf  ;;  %20479 = vst [vmem:[#allocation201_spill] sm:$0xff] %v15507_v51  ;;  %vm2512_vm4 = vcmp.eq.s32.totalorder %v13981_v26, %v20495_v57  ;;  %vm2511_vm5 = vcmp.eq.s32.totalorder %v13970_v11, %v20495_v57  ;;  %v20501_v57 = vld [vmem:[#allocation41_spill] sm:$0xff] }
 0x29d   :  { %886 = vmax.xlane.f32.xlu1 %v885_v24  ;;  %20481 = vst [vmem:[#allocation34_spill] sm:$0xff] %v15516_v46  ;;  %v897_v24 = vsel %vm860_vm10, %v15503_v44, -inf  ;;  %20486 = vst [vmem:[#allocation204_spill] sm:$0xff] %v15532_v47  ;;  %v20492_v44 = vld [vmem:[#allocation36_spill] sm:$0xff] }
 0x29e   :  { %v1913_v53 = vpop.f32.mrb[114].mxu1  ;;  %vm2510_vm2 = vcmp.eq.s32.totalorder %v13981_v26, %v20492_v44  ;;  %vm2509_vm3 = vcmp.eq.s32.totalorder %v13970_v11, %v20492_v44  ;;  %v20497_v44 = vld [vmem:[#allocation38_spill] sm:$0xff] }
 0x29f   :  { %v1915_v18 = vpop.f32.mrb[115].mxu1  ;;  %11644 = vmatprep.mubr.msk.f32.mxu1 %vm89_vm0, %v1913_v53  ;;  %v20482_v53 = vld [vmem:[#allocation33_spill] sm:$0xff]  ;;  %vm2514_vm6 = vcmp.eq.s32.totalorder %v13981_v26, %v20497_v44  ;;  %vm2513_vm7 = vcmp.eq.s32.totalorder %v13970_v11, %v20497_v44  ;;  %v20502_v44 = vld [vmem:[#allocation42_spill] sm:$0xff] }
 0x2a0   :  { %vm2506_vm13 = vcmp.eq.s32.totalorder %v13981_v26, %v20482_v53  ;;  %vm2505_vm14 = vcmp.eq.s32.totalorder %v13970_v11, %v20482_v53  ;;  %v909_v53 = vsel %vm860_vm10, %v15532_v47, -inf }
 0x2a1   :  { %892 = vmax.xlane.f32.xlu1 %v891_v28  ;;  %v903_v28 = vsel %vm860_vm10, %v15516_v46, -inf  ;;  %v15550_v46 = vadd.f32 %v15259_v63, %v15177_v40  ;;  %v15566_v40 = vadd.f32 %v15259_v63, %v15197_v6  ;;  %v15580_v6 = vadd.f32 %v15259_v63, %v15217_v16 }
 0x2a2   :  { %v1918_v60 = vpop.f32.mrb[116].mxu1 }
 0x2a3   :  { %v1920_v27 = vpop.f32.mrb[117].mxu1  ;;  %11645 = vmatmul.mubr.msk.f32.gmra.mrb[148].mxu1 %vm89_vm0, %v1918_v60  ;;  %20490 = vst [vmem:[#allocation35_spill] sm:$0xff] %v15550_v46  ;;  %20493 = vst [vmem:[#allocation36_spill] sm:$0xff] %v15566_v40  ;;  %v915_v47 = vsel %vm860_vm10, %v15550_v46, -inf  ;;  %v921_v46 = vsel %vm860_vm10, %v15566_v40, -inf  ;;  %v927_v16 = vsel %vm860_vm10, %v15580_v6, -inf }
 0x2a4   :  { %10246 = vmatprep.mubr.msk.f32.mxu1 %vm2504_vm11, %v20206_v1  ;;  %v15525_v27 = vpop.permute.xlu1 %6819  ;;  %20496 = vst [vmem:[#allocation37_spill] sm:$0xff] %v15580_v6  ;;  %v20526_v40 = vld [vmem:[#allocation69_spill] sm:$0xff] }
 0x2a5   :  { %898 = vmax.xlane.f32.xlu1 %v897_v24  ;;  %20484 = vst [vmem:[#allocation202_spill] sm:$0xff] %v15525_v27 }
 0x2a6   :  { %v15523_v18 = vpop.f32.mrb[118].mxu1 }
 0x2a7   :  { %20483 = vst [vmem:[#allocation33_spill] sm:$0xff] %v15523_v18  ;;  %v15527_v60 = vpop.f32.mrb[119].mxu1  ;;  %10247 = vmatmul.mubr.msk.f32.vlgmr.msra.gmra.mrb[150].mxu1 %vm2503_vm12, %v20206_v1  ;;  %v20584_v18 = vld [vmem:[#allocation122_spill] sm:$0xff] }
 0x2a8   :  { %20485 = vst [vmem:[#allocation203_spill] sm:$0xff] %v15527_v60  ;;  %10248 = vmatprep.mubr.msk.f32.mxu1 %vm2506_vm13, %v20206_v1  ;;  %12246 = vmatpush3.bf16.msra.mxu1 %v14627_v35 }
 0x2a9   :  { %904 = vmax.xlane.f32.xlu1 %v903_v28  ;;  %12248 = vmatprep.subr.bf16.mxu1 %v14657_v42  ;;  %v15556_v28 = vpop.permute.xlu1 %6825 }
 0x2aa   :  { %v15541_v17 = vpop.f32.mrb[120].mxu1  ;;  %20491 = vst [vmem:[#allocation207_spill] sm:$0xff] %v15556_v28 }
 0x2ab   :  { %20487 = vst [vmem:[#allocation205_spill] sm:$0xff] %v15541_v17  ;;  %v15543_v24 = vpop.f32.mrb[121].mxu1  ;;  %10249 = vmatmul.mubr.msk.f32.gmra.mrb[152].mxu1 %vm2505_vm14, %v20206_v1  ;;  %vm2520_vm14 = vcmp.eq.s32.totalorder %v13981_v26, %v20501_v57 }
 0x2ac   :  { %20488 = vst [vmem:[#allocation206_spill] sm:$0xff] %v15543_v24  ;;  %10250 = vmatprep.mubr.msk.f32.mxu1 %vm2508_vm15, %v20206_v1  ;;  %12250 = vmatpush3.bf16.msra.mxu1 %v14657_v42  ;;  %vm2519_vm15 = vcmp.eq.s32.totalorder %v13970_v11, %v20501_v57  ;;  %v20506_v57 = vld [vmem:[#allocation46_spill] sm:$0xff] }
 0x2ad   :  { %910 = vmax.xlane.f32.xlu1 %v909_v53  ;;  %12251 = vmatprep.subr.bf16.mxu1 %v20210_v37  ;;  %v15573_v53 = vpop.permute.xlu1 %6831 }
 0x2ae   :  { %20494 = vst [vmem:[#allocation208_spill] sm:$0xff] %v15573_v53 }
 0x2af   :  { %10251 = vmatmul.mubr.msk.f32.gmra.mrb[154].mxu1 %vm2507_vm1, %v20206_v1  ;;  %vm2522_vm1 = vcmp.eq.s32.totalorder %v13981_v26, %v20502_v44 }
 0x2b0   :  { %10252 = vmatprep.mubr.msk.f32.mxu1 %vm2510_vm2, %v20206_v1  ;;  %vm2521_vm2 = vcmp.eq.s32.totalorder %v13970_v11, %v20502_v44  ;;  %v20507_v44 = vld [vmem:[#allocation47_spill] sm:$0xff] }
 0x2b1   :  { %916 = vmax.xlane.f32.xlu1 %v915_v47  ;;  %v15593_v63 = vpop.permute.xlu1 %7607  ;;  %v20500_v47 = vld [vmem:[#allocation40_spill] sm:$0xff] }
 0x2b2   :  { %20498 = vst [vmem:[#allocation38_spill] sm:$0xff] %v15593_v63  ;;  %vm2518_vm12 = vcmp.eq.s32.totalorder %v13981_v26, %v20500_v47  ;;  %vm2517_vm13 = vcmp.eq.s32.totalorder %v13970_v11, %v20500_v47  ;;  %v20505_v47 = vld [vmem:[#allocation45_spill] sm:$0xff] }
 0x2b3   :  { %10253 = vmatmul.mubr.msk.f32.gmra.mrb[156].mxu1 %vm2509_vm3, %v20206_v1 }
 0x2b4   :  { %10254 = vmatprep.mubr.msk.f32.mxu1 %vm2512_vm4, %v20206_v1 }
 0x2b5   :  { %922 = vmax.xlane.f32.xlu1 %v921_v46  ;;  %v20499_v46 = vld [vmem:[#allocation39_spill] sm:$0xff] }
 0x2b6   :  { %vm2516_vm8 = vcmp.eq.s32.totalorder %v13981_v26, %v20499_v46  ;;  %vm2515_vm11 = vcmp.eq.s32.totalorder %v13970_v11, %v20499_v46  ;;  %v20504_v46 = vld [vmem:[#allocation44_spill] sm:$0xff] }
 0x2b7   :  { %10255 = vmatmul.mubr.msk.f32.gmra.mrb[158].mxu1 %vm2511_vm5, %v20206_v1  ;;  %vm2526_vm5 = vcmp.eq.s32.totalorder %v13981_v26, %v20504_v46 }
 0x2b8   :  { %10256 = vmatprep.mubr.msk.f32.mxu1 %vm2514_vm6, %v20206_v1  ;;  %vm2525_vm6 = vcmp.eq.s32.totalorder %v13970_v11, %v20504_v46  ;;  %v20509_v46 = vld [vmem:[#allocation50_spill] sm:$0xff] }
 0x2b9   :  { %928 = vmax.xlane.f32.xlu1 %v927_v16  ;;  %v20503_v16 = vld [vmem:[#allocation43_spill] sm:$0xff] }
 0x2ba   :  { %vm2524_vm3 = vcmp.eq.s32.totalorder %v13981_v26, %v20503_v16  ;;  %vm2523_vm4 = vcmp.eq.s32.totalorder %v13970_v11, %v20503_v16  ;;  %v20508_v16 = vld [vmem:[#allocation48_spill] sm:$0xff] }
 0x2bb   :  { %10257 = vmatmul.mubr.msk.f32.gmra.mrb[160].mxu1 %vm2513_vm7, %v20206_v1  ;;  %vm2528_vm7 = vcmp.eq.s32.totalorder %v13981_v26, %v20505_v47 }
 0x2bc   :  { %10258 = vmatprep.mubr.msk.f32.mxu1 %vm2516_vm8, %v20206_v1  ;;  %vm2527_vm8 = vcmp.eq.s32.totalorder %v13970_v11, %v20505_v47  ;;  %v20510_v47 = vld [vmem:[#allocation51_spill] sm:$0xff] }
 0x2bf   :  { %10259 = vmatmul.mubr.msk.f32.gmra.mrb[162].mxu1 %vm2515_vm11, %v20206_v1  ;;  %vm2530_vm11 = vcmp.eq.s32.totalorder %v13981_v26, %v20506_v57 }
 0x2c0   :  { %10260 = vmatprep.mubr.msk.f32.mxu1 %vm2518_vm12, %v20206_v1  ;;  %vm2529_vm12 = vcmp.eq.s32.totalorder %v13970_v11, %v20506_v57  ;;  %v20511_v57 = vld [vmem:[#allocation53_spill] sm:$0xff] }
 0x2c3   :  { %10261 = vmatmul.mubr.msk.f32.gmra.mrb[164].mxu1 %vm2517_vm13, %v20206_v1  ;;  %vm2532_vm13 = vcmp.eq.s32.totalorder %v13981_v26, %v20507_v44 }
 0x2c4   :  { %10262 = vmatprep.mubr.msk.f32.mxu1 %vm2520_vm14, %v20206_v1  ;;  %vm2531_vm14 = vcmp.eq.s32.totalorder %v13970_v11, %v20507_v44  ;;  %v20512_v44 = vld [vmem:[#allocation54_spill] sm:$0xff] }
 0x2c7   :  { %10263 = vmatmul.mubr.msk.f32.gmra.mrb[166].mxu1 %vm2519_vm15, %v20206_v1  ;;  %vm2534_vm15 = vcmp.eq.s32.totalorder %v13981_v26, %v20508_v16 }
 0x2c8   :  { %10264 = vmatprep.mubr.msk.f32.mxu1 %vm2522_vm1, %v20206_v1  ;;  %vm2533_vm1 = vcmp.eq.s32.totalorder %v13970_v11, %v20508_v16  ;;  %v20513_v16 = vld [vmem:[#allocation56_spill] sm:$0xff] }
 0x2cb   :  { %10265 = vmatmul.mubr.msk.f32.gmra.mrb[168].mxu1 %vm2521_vm2, %v20206_v1  ;;  %vm2536_vm2 = vcmp.eq.s32.totalorder %v13981_v26, %v20509_v46 }
 0x2cc   :  { %10266 = vmatprep.mubr.msk.f32.mxu1 %vm2524_vm3, %v20206_v1  ;;  %vm2535_vm3 = vcmp.eq.s32.totalorder %v13970_v11, %v20509_v46  ;;  %v20514_v46 = vld [vmem:[#allocation57_spill] sm:$0xff] }
 0x2cf   :  { %10267 = vmatmul.mubr.msk.f32.gmra.mrb[170].mxu1 %vm2523_vm4, %v20206_v1  ;;  %vm2538_vm4 = vcmp.eq.s32.totalorder %v13981_v26, %v20510_v47 }
 0x2d0   :  { %10268 = vmatprep.mubr.msk.f32.mxu1 %vm2526_vm5, %v20206_v1  ;;  %vm2537_vm5 = vcmp.eq.s32.totalorder %v13970_v11, %v20510_v47  ;;  %v20515_v47 = vld [vmem:[#allocation59_spill] sm:$0xff] }
 0x2d3   :  { %10269 = vmatmul.mubr.msk.f32.gmra.mrb[172].mxu1 %vm2525_vm6, %v20206_v1  ;;  %vm2540_vm6 = vcmp.eq.s32.totalorder %v13981_v26, %v20511_v57 }
 0x2d4   :  { %10270 = vmatprep.mubr.msk.f32.mxu1 %vm2528_vm7, %v20206_v1  ;;  %vm2539_vm7 = vcmp.eq.s32.totalorder %v13970_v11, %v20511_v57  ;;  %v20516_v57 = vld [vmem:[#allocation60_spill] sm:$0xff] }
 0x2d7   :  { %10271 = vmatmul.mubr.msk.f32.gmra.mrb[174].mxu1 %vm2527_vm8, %v20206_v1  ;;  %vm2542_vm8 = vcmp.eq.s32.totalorder %v13981_v26, %v20512_v44 }
 0x2d8   :  { %10272 = vmatprep.mubr.msk.f32.mxu1 %vm2530_vm11, %v20206_v1  ;;  %vm2541_vm11 = vcmp.eq.s32.totalorder %v13970_v11, %v20512_v44  ;;  %v20517_v44 = vld [vmem:[#allocation62_spill] sm:$0xff] }
 0x2db   :  { %10273 = vmatmul.mubr.msk.f32.gmra.mrb[176].mxu1 %vm2529_vm12, %v20206_v1  ;;  %vm2544_vm12 = vcmp.eq.s32.totalorder %v13981_v26, %v20513_v16 }
 0x2dc   :  { %10274 = vmatprep.mubr.msk.f32.mxu1 %vm2532_vm13, %v20206_v1  ;;  %vm2543_vm13 = vcmp.eq.s32.totalorder %v13970_v11, %v20513_v16  ;;  %v20518_v16 = vld [vmem:[#allocation63_spill] sm:$0xff] }
 0x2df   :  { %10275 = vmatmul.mubr.msk.f32.gmra.mrb[178].mxu1 %vm2531_vm14, %v20206_v1  ;;  %vm2546_vm14 = vcmp.eq.s32.totalorder %v13981_v26, %v20514_v46 }
 0x2e0   :  { %10276 = vmatprep.mubr.msk.f32.mxu1 %vm2534_vm15, %v20206_v1  ;;  %vm2545_vm15 = vcmp.eq.s32.totalorder %v13970_v11, %v20514_v46  ;;  %v20519_v46 = vld [vmem:[#allocation65_spill] sm:$0xff] }
 0x2e3   :  { %10277 = vmatmul.mubr.msk.f32.gmra.mrb[180].mxu1 %vm2533_vm1, %v20206_v1  ;;  %vm2548_vm1 = vcmp.eq.s32.totalorder %v13981_v26, %v20515_v47 }
 0x2e4   :  { %10278 = vmatprep.mubr.msk.f32.mxu1 %vm2536_vm2, %v20206_v1  ;;  %vm2547_vm2 = vcmp.eq.s32.totalorder %v13970_v11, %v20515_v47 }
 0x2e7   :  { %10279 = vmatmul.mubr.msk.f32.gmra.mrb[182].mxu1 %vm2535_vm3, %v20206_v1  ;;  %vm2550_vm3 = vcmp.eq.s32.totalorder %v13981_v26, %v20516_v57 }
 0x2e8   :  { %10280 = vmatprep.mubr.msk.f32.mxu1 %vm2538_vm4, %v20206_v1  ;;  %vm2549_vm4 = vcmp.eq.s32.totalorder %v13970_v11, %v20516_v57 }
 0x2eb   :  { %10281 = vmatmul.mubr.msk.f32.gmra.mrb[184].mxu1 %vm2537_vm5, %v20206_v1  ;;  %vm2552_vm5 = vcmp.eq.s32.totalorder %v13981_v26, %v20517_v44 }
 0x2ec   :  { %10282 = vmatprep.mubr.msk.f32.mxu1 %vm2540_vm6, %v20206_v1  ;;  %vm2551_vm6 = vcmp.eq.s32.totalorder %v13970_v11, %v20517_v44  ;;  %v20522_v44 = vld [vmem:[#allocation66_spill] sm:$0xff] }
 0x2ef   :  { %10283 = vmatmul.mubr.msk.f32.gmra.mrb[186].mxu1 %vm2539_vm7, %v20206_v1  ;;  %vm2554_vm7 = vcmp.eq.s32.totalorder %v13981_v26, %v20518_v16 }
 0x2f0   :  { %10284 = vmatprep.mubr.msk.f32.mxu1 %vm2542_vm8, %v20206_v1  ;;  %vm2553_vm8 = vcmp.eq.s32.totalorder %v13970_v11, %v20518_v16  ;;  %v20523_v16 = vld [vmem:[#allocation68_spill] sm:$0xff] }
 0x2f3   :  { %10285 = vmatmul.mubr.msk.f32.gmra.mrb[188].mxu1 %vm2541_vm11, %v20206_v1  ;;  %vm2556_vm11 = vcmp.eq.s32.totalorder %v13981_v26, %v20519_v46 }
 0x2f4   :  { %10286 = vmatprep.mubr.msk.f32.mxu1 %vm2544_vm12, %v20206_v1  ;;  %vm2555_vm12 = vcmp.eq.s32.totalorder %v13970_v11, %v20519_v46 }
 0x2f7   :  { %10287 = vmatmul.mubr.msk.f32.gmra.mrb[190].mxu1 %vm2543_vm13, %v20206_v1  ;;  %vm2558_vm13 = vcmp.eq.s32.totalorder %v13981_v26, %v20522_v44 }
 0x2f8   :  { %10288 = vmatprep.mubr.msk.f32.mxu1 %vm2546_vm14, %v20206_v1  ;;  %vm2557_vm14 = vcmp.eq.s32.totalorder %v13970_v11, %v20522_v44  ;;  %v20527_v44 = vld [vmem:[#allocation71_spill] sm:$0xff] }
 0x2fb   :  { %10289 = vmatmul.mubr.msk.f32.gmra.mrb[192].mxu1 %vm2545_vm15, %v20206_v1  ;;  %vm2560_vm15 = vcmp.eq.s32.totalorder %v13981_v26, %v20523_v16 }
 0x2fc   :  { %10290 = vmatprep.mubr.msk.f32.mxu1 %vm2548_vm1, %v20206_v1  ;;  %vm2559_vm1 = vcmp.eq.s32.totalorder %v13970_v11, %v20523_v16 }
 0x2ff   :  { %10291 = vmatmul.mubr.msk.f32.gmra.mrb[194].mxu1 %vm2547_vm2, %v20206_v1  ;;  %vm2562_vm2 = vcmp.eq.s32.totalorder %v13981_v26, %v20526_v40 }
 0x300   :  { %10292 = vmatprep.mubr.msk.f32.mxu1 %vm2550_vm3, %v20206_v1  ;;  %vm2561_vm3 = vcmp.eq.s32.totalorder %v13970_v11, %v20526_v40 }
 0x303   :  { %10293 = vmatmul.mubr.msk.f32.gmra.mrb[196].mxu1 %vm2549_vm4, %v20206_v1  ;;  %vm2564_vm4 = vcmp.eq.s32.totalorder %v13981_v26, %v20527_v44 }
 0x304   :  { %10294 = vmatprep.mubr.msk.f32.mxu1 %vm2552_vm5, %v20206_v1  ;;  %vm2563_vm5 = vcmp.eq.s32.totalorder %v13970_v11, %v20527_v44 }
 0x307   :  { %10295 = vmatmul.mubr.msk.f32.gmra.mrb[198].mxu1 %vm2551_vm6, %v20206_v1  ;;  %vm2566_vm6 = vcmp.eq.s32.totalorder %v13981_v26, %v20530_v50 }
 0x308   :  { %10296 = vmatprep.mubr.msk.f32.mxu1 %vm2554_vm7, %v20206_v1  ;;  %vm2565_vm7 = vcmp.eq.s32.totalorder %v13970_v11, %v20530_v50 }
 0x30b   :  { %10297 = vmatmul.mubr.msk.f32.gmra.mrb[200].mxu1 %vm2553_vm8, %v20206_v1 }
 0x30c   :  { %10298 = vmatprep.mubr.msk.f32.mxu1 %vm2556_vm11, %v20206_v1 }
 0x30e   :  { %v15721_v47 = vpop.f32.mrb[122].mxu1 }
 0x30f   :  { %20520 = vst [vmem:[#allocation39_spill] sm:$0xff] %v15721_v47  ;;  %v15725_v57 = vpop.f32.mrb[123].mxu1  ;;  %10299 = vmatmul.mubr.msk.f32.gmra.mrb[202].mxu1 %vm2555_vm12, %v20206_v1 }
 0x310   :  { %20521 = vst [vmem:[#allocation40_spill] sm:$0xff] %v15725_v57  ;;  %10300 = vmatprep.mubr.msk.f32.mxu1 %vm2558_vm13, %v20206_v1 }
 0x313   :  { %10301 = vmatmul.mubr.msk.f32.gmra.mrb[204].mxu1 %vm2557_vm14, %v20206_v1 }
 0x314   :  { %10302 = vmatprep.mubr.msk.f32.mxu1 %vm2560_vm15, %v20206_v1 }
 0x316   :  { %v15737_v46 = vpop.f32.mrb[124].mxu1 }
 0x317   :  { %20524 = vst [vmem:[#allocation41_spill] sm:$0xff] %v15737_v46  ;;  %v15741_v6 = vpop.f32.mrb[125].mxu1  ;;  %10303 = vmatmul.mubr.msk.f32.gmra.mrb[206].mxu1 %vm2559_vm1, %v20206_v1 }
 0x318   :  { %20525 = vst [vmem:[#allocation42_spill] sm:$0xff] %v15741_v6  ;;  %10304 = vmatprep.mubr.msk.f32.mxu1 %vm2562_vm2, %v20206_v1 }
 0x31b   :  { %10305 = vmatmul.mubr.msk.f32.gmra.mrb[208].mxu1 %vm2561_vm3, %v20206_v1 }
 0x31c   :  { %10306 = vmatprep.mubr.msk.f32.mxu1 %vm2564_vm4, %v20206_v1 }
 0x31e   :  { %v15753_v16 = vpop.f32.mrb[126].mxu1 }
 0x31f   :  { %20528 = vst [vmem:[#allocation43_spill] sm:$0xff] %v15753_v16  ;;  %v15757_v3 = vpop.f32.mrb[127].mxu1  ;;  %10307 = vmatmul.mubr.msk.f32.gmra.mrb[210].mxu1 %vm2563_vm5, %v20206_v1 }
 0x320   :  { %20529 = vst [vmem:[#allocation44_spill] sm:$0xff] %v15757_v3  ;;  %10308 = vmatprep.mubr.msk.f32.mxu1 %vm2566_vm6, %v20206_v1 }
 0x323   :  { %10309 = vmatmul.mubr.msk.f32.gmra.mrb[212].mxu1 %vm2565_vm7, %v20206_v1 }
 0x326   :  { %v15766_v40 = vpop.f32.mrb[128].mxu1 }
 0x327   :  { %20531 = vst [vmem:[#allocation45_spill] sm:$0xff] %v15766_v40  ;;  %v15768_v56 = vpop.f32.mrb[129].mxu1 }
 0x328   :  { %20532 = vst [vmem:[#allocation46_spill] sm:$0xff] %v15768_v56 }
 0x32e   :  { %v15770_v16 = vpop.f32.mrb[130].mxu1 }
 0x32f   :  { %20533 = vst [vmem:[#allocation47_spill] sm:$0xff] %v15770_v16  ;;  %v15772_v44 = vpop.f32.mrb[131].mxu1 }
 0x330   :  { %20534 = vst [vmem:[#allocation48_spill] sm:$0xff] %v15772_v44 }
 0x336   :  { %v15774_v3 = vpop.f32.mrb[132].mxu1 }
 0x337   :  { %20535 = vst [vmem:[#allocation50_spill] sm:$0xff] %v15774_v3  ;;  %v15776_v46 = vpop.f32.mrb[133].mxu1 }
 0x338   :  { %20536 = vst [vmem:[#allocation51_spill] sm:$0xff] %v15776_v46 }
 0x33e   :  { %v15778_v6 = vpop.f32.mrb[134].mxu1 }
 0x33f   :  { %20537 = vst [vmem:[#allocation53_spill] sm:$0xff] %v15778_v6  ;;  %v15780_v47 = vpop.f32.mrb[135].mxu1 }
 0x340   :  { %20538 = vst [vmem:[#allocation54_spill] sm:$0xff] %v15780_v47 }
 0x346   :  { %v15782_v57 = vpop.f32.mrb[136].mxu1 }
 0x347   :  { %20539 = vst [vmem:[#allocation56_spill] sm:$0xff] %v15782_v57  ;;  %v15784_v50 = vpop.f32.mrb[137].mxu1 }
 0x348   :  { %20540 = vst [vmem:[#allocation57_spill] sm:$0xff] %v15784_v50 }
 0x34e   :  { %v15786_v17 = vpop.f32.mrb[138].mxu1 }
 0x34f   :  { %20541 = vst [vmem:[#allocation59_spill] sm:$0xff] %v15786_v17  ;;  %v15788_v40 = vpop.f32.mrb[139].mxu1 }
 0x350   :  { %20542 = vst [vmem:[#allocation60_spill] sm:$0xff] %v15788_v40 }
 0x356   :  { %v15790_v56 = vpop.f32.mrb[140].mxu1 }
 0x357   :  { %20543 = vst [vmem:[#allocation62_spill] sm:$0xff] %v15790_v56  ;;  %v15792_v16 = vpop.f32.mrb[141].mxu1 }
 0x358   :  { %20544 = vst [vmem:[#allocation63_spill] sm:$0xff] %v15792_v16 }
 0x35e   :  { %v15794_v44 = vpop.f32.mrb[142].mxu1 }
 0x35f   :  { %20545 = vst [vmem:[#allocation65_spill] sm:$0xff] %v15794_v44  ;;  %v15796_v3 = vpop.f32.mrb[143].mxu1 }
 0x360   :  { %20546 = vst [vmem:[#allocation66_spill] sm:$0xff] %v15796_v3 }
 0x366   :  { %v15798_v46 = vpop.f32.mrb[144].mxu1 }
 0x367   :  { %20547 = vst [vmem:[#allocation68_spill] sm:$0xff] %v15798_v46  ;;  %v15800_v6 = vpop.f32.mrb[145].mxu1 }
 0x368   :  { %20548 = vst [vmem:[#allocation69_spill] sm:$0xff] %v15800_v6 }
 0x36e   :  { %v15802_v47 = vpop.f32.mrb[146].mxu1 }
 0x36f   :  { %20549 = vst [vmem:[#allocation71_spill] sm:$0xff] %v15802_v47  ;;  %v15804_v57 = vpop.f32.mrb[147].mxu1 }
 0x370   :  { %20550 = vst [vmem:[#allocation72_spill] sm:$0xff] %v15804_v57 }
 0x376   :  { %v15806_v50 = vpop.f32.mrb[148].mxu1 }
 0x377   :  { %20551 = vst [vmem:[#allocation209_spill] sm:$0xff] %v15806_v50  ;;  %v15808_v17 = vpop.f32.mrb[149].mxu1 }
 0x378   :  { %20552 = vst [vmem:[#allocation210_spill] sm:$0xff] %v15808_v17 }
 0x37a   :  { %v2761_v40 = vpop.f32.mrb[150].mxu1 }
 0x37b   :  { %v2763_v56 = vpop.f32.mrb[151].mxu1  ;;  %11655 = vmatprep.mubr.msk.f32.mxu0 %vm89_vm0, %v2761_v40 }
 0x37e   :  { %v2766_v16 = vpop.f32.mrb[152].mxu1 }
 0x37f   :  { %v2768_v44 = vpop.f32.mrb[153].mxu1  ;;  %11656 = vmatmul.mubr.msk.f32.vlgmr.msra.gmra.mrb[74].mxu0 %vm89_vm0, %v2766_v16 }
 0x380   :  { %12197 = vmatpush1.bf16.msra.mxu0 %v13646_v59 }
 0x381   :  { %12198 = vmatprep.subr.bf16.mxu0 %v20210_v37 }
 0x382   :  { %v2771_v46 = vpop.f32.mrb[154].mxu1 }
 0x383   :  { %v2773_v47 = vpop.f32.mrb[155].mxu1  ;;  %11658 = vmatprep.mubr.msk.f32.mxu0 %vm89_vm0, %v2771_v46 }
 0x384   :  { %12200 = vmatpush1.bf16.msra.mxu0 %v13679_v4 }
 0x385   :  { %12201 = vmatprep.subr.bf16.mxu0 %v20210_v37 }
 0x386   :  { %v2776_v50 = vpop.f32.mrb[156].mxu1 }
 0x387   :  { %v2778_v56 = vpop.f32.mrb[157].mxu1  ;;  %11659 = vmatmul.mubr.msk.f32.gmra.mrb[76].mxu0 %vm89_vm0, %v2776_v50 }
 0x388   :  { %12203 = vmatpush1.bf16.msra.mxu0 %v13706_v13 }
 0x389   :  { %12204 = vmatprep.subr.bf16.mxu0 %v20210_v37 }
 0x38a   :  { %v2781_v16 = vpop.f32.mrb[158].mxu1 }
 0x38b   :  { %v2783_v40 = vpop.f32.mrb[159].mxu1  ;;  %11661 = vmatprep.mubr.msk.f32.mxu0 %vm89_vm0, %v2781_v16 }
 0x38c   :  { %12206 = vmatpush1.bf16.msra.mxu0 %v13725_v23 }
 0x38d   :  { %12207 = vmatprep.subr.bf16.mxu0 %v20210_v37 }
 0x38e   :  { %v2786_v47 = vpop.f32.mrb[160].mxu1 }
 0x38f   :  { %v2788_v46 = vpop.f32.mrb[161].mxu1  ;;  %11662 = vmatmul.mubr.msk.f32.gmra.mrb[78].mxu0 %vm89_vm0, %v2786_v47 }
 0x390   :  { %12209 = vmatpush1.bf16.msra.mxu0 %v13745_v38 }
 0x391   :  { %12210 = vmatprep.subr.bf16.mxu0 %v20210_v37 }
 0x392   :  { %v2791_v44 = vpop.f32.mrb[162].mxu1 }
 0x393   :  { %v2793_v50 = vpop.f32.mrb[163].mxu1  ;;  %11664 = vmatprep.mubr.msk.f32.mxu0 %vm89_vm0, %v2791_v44 }
 0x394   :  { %12212 = vmatpush1.bf16.msra.mxu0 %v20360_v55 }
 0x395   :  { %12213 = vmatprep.subr.bf16.mxu0 %v20210_v37 }
 0x396   :  { %v2796_v56 = vpop.f32.mrb[164].mxu1 }
 0x397   :  { %v2798_v16 = vpop.f32.mrb[165].mxu1  ;;  %11665 = vmatmul.mubr.msk.f32.gmra.mrb[80].mxu0 %vm89_vm0, %v2796_v56 }
 0x398   :  { %12215 = vmatpush1.bf16.msra.mxu0 %v20363_v29 }
 0x399   :  { %12216 = vmatprep.subr.bf16.mxu0 %v20210_v37 }
 0x39a   :  { %v2801_v40 = vpop.f32.mrb[166].mxu1 }
 0x39b   :  { %v2803_v47 = vpop.f32.mrb[167].mxu1  ;;  %11667 = vmatprep.mubr.msk.f32.mxu0 %vm89_vm0, %v2801_v40 }
 0x39c   :  { %12218 = vmatpush1.bf16.msra.mxu0 %v20364_v41 }
 0x39d   :  { %12219 = vmatprep.subr.bf16.mxu0 %v20210_v37 }
 0x39e   :  { %v2806_v46 = vpop.f32.mrb[168].mxu1 }
 0x39f   :  { %v2808_v44 = vpop.f32.mrb[169].mxu1  ;;  %11668 = vmatmul.mubr.msk.f32.gmra.mrb[82].mxu0 %vm89_vm0, %v2806_v46 }
 0x3a0   :  { %12221 = vmatpush1.bf16.msra.mxu0 %v20367_v21 }
 0x3a1   :  { %12222 = vmatprep.subr.bf16.mxu0 %v20210_v37 }
 0x3a2   :  { %v2811_v50 = vpop.f32.mrb[170].mxu1 }
 0x3a3   :  { %v2813_v56 = vpop.f32.mrb[171].mxu1  ;;  %11670 = vmatprep.mubr.msk.f32.mxu0 %vm89_vm0, %v2811_v50 }
 0x3a4   :  { %12224 = vmatpush1.bf16.msra.mxu0 %v20370_v48 }
 0x3a5   :  { %12225 = vmatprep.subr.bf16.mxu0 %v20210_v37 }
 0x3a6   :  { %v2816_v16 = vpop.f32.mrb[172].mxu1 }
 0x3a7   :  { %v2818_v40 = vpop.f32.mrb[173].mxu1  ;;  %11671 = vmatmul.mubr.msk.f32.gmra.mrb[84].mxu0 %vm89_vm0, %v2816_v16 }
 0x3a8   :  { %12227 = vmatpush1.bf16.msra.mxu0 %v20371_v20 }
 0x3a9   :  { %12228 = vmatprep.subr.bf16.mxu0 %v20210_v37 }
 0x3aa   :  { %v2821_v47 = vpop.f32.mrb[174].mxu1 }
 0x3ab   :  { %v2823_v46 = vpop.f32.mrb[175].mxu1  ;;  %11673 = vmatprep.mubr.msk.f32.mxu0 %vm89_vm0, %v2821_v47 }
 0x3ac   :  { %12230 = vmatpush1.bf16.msra.mxu0 %v20375_v14 }
 0x3ad   :  { %12231 = vmatprep.subr.bf16.mxu0 %v20210_v37 }
 0x3ae   :  { %v2826_v44 = vpop.f32.mrb[176].mxu1 }
 0x3af   :  { %v2828_v50 = vpop.f32.mrb[177].mxu1  ;;  %11674 = vmatmul.mubr.msk.f32.gmra.mrb[86].mxu0 %vm89_vm0, %v2826_v44 }
 0x3b0   :  { %12233 = vmatpush1.bf16.msra.mxu0 %v20379_v7 }
 0x3b1   :  { %12234 = vmatprep.subr.bf16.mxu0 %v20210_v37 }
 0x3b2   :  { %v2831_v56 = vpop.f32.mrb[178].mxu1 }
 0x3b3   :  { %v2833_v16 = vpop.f32.mrb[179].mxu1  ;;  %11676 = vmatprep.mubr.msk.f32.mxu0 %vm89_vm0, %v2831_v56 }
 0x3b4   :  { %12236 = vmatpush1.bf16.msra.mxu0 %v20381_v43 }
 0x3b5   :  { %12237 = vmatprep.subr.bf16.mxu0 %v20210_v37 }
 0x3b6   :  { %v2836_v40 = vpop.f32.mrb[180].mxu1 }
 0x3b7   :  { %v2838_v47 = vpop.f32.mrb[181].mxu1  ;;  %11677 = vmatmul.mubr.msk.f32.gmra.mrb[88].mxu0 %vm89_vm0, %v2836_v40 }
 0x3b8   :  { %12239 = vmatpush1.bf16.msra.mxu0 %v20385_v52 }
 0x3b9   :  { %12240 = vmatprep.subr.bf16.mxu0 %v20210_v37 }
 0x3ba   :  { %v2841_v46 = vpop.f32.mrb[182].mxu1 }
 0x3bb   :  { %v2843_v44 = vpop.f32.mrb[183].mxu1  ;;  %11679 = vmatprep.mubr.msk.f32.mxu0 %vm89_vm0, %v2841_v46 }
 0x3bc   :  { %12242 = vmatpush1.bf16.msra.mxu0 %v20389_v49 }
 0x3bd   :  { %12300 = vmatprep.subr.bf16.mxu0 %v14627_v35 }
 0x3be   :  { %v2846_v50 = vpop.f32.mrb[184].mxu1 }
 0x3bf   :  { %v2848_v56 = vpop.f32.mrb[185].mxu1  ;;  %11680 = vmatmul.mubr.msk.f32.gmra.mrb[90].mxu0 %vm89_vm0, %v2846_v50 }
 0x3c2   :  { %v2851_v16 = vpop.f32.mrb[186].mxu1 }
 0x3c3   :  { %v2853_v47 = vpop.f32.mrb[187].mxu1  ;;  %11682 = vmatprep.mubr.msk.f32.mxu0 %vm89_vm0, %v2851_v16 }
 0x3c6   :  { %v2856_v40 = vpop.f32.mrb[188].mxu1 }
 0x3c7   :  { %v2858_v17 = vpop.f32.mrb[189].mxu1  ;;  %11683 = vmatmul.mubr.msk.f32.gmra.mrb[92].mxu0 %vm89_vm0, %v2856_v40 }
 0x3ca   :  { %v2861_v57 = vpop.f32.mrb[190].mxu1 }
 0x3cb   :  { %v2863_v44 = vpop.f32.mrb[191].mxu1  ;;  %11685 = vmatprep.mubr.msk.f32.mxu0 %vm89_vm0, %v2861_v57 }
 0x3ce   :  { %v2866_v46 = vpop.f32.mrb[192].mxu1 }
 0x3cf   :  { %v2868_v6 = vpop.f32.mrb[193].mxu1  ;;  %11686 = vmatmul.mubr.msk.f32.gmra.mrb[94].mxu0 %vm89_vm0, %v2866_v46 }
 0x3d2   :  { %v2871_v3 = vpop.f32.mrb[194].mxu1 }
 0x3d3   :  { %v2873_v56 = vpop.f32.mrb[195].mxu1  ;;  %11688 = vmatprep.mubr.msk.f32.mxu0 %vm89_vm0, %v2871_v3 }
 0x3d6   :  { %v2876_v50 = vpop.f32.mrb[196].mxu1 }
 0x3d7   :  { %v2878_v47 = vpop.f32.mrb[197].mxu1  ;;  %11689 = vmatmul.mubr.msk.f32.gmra.mrb[96].mxu0 %vm89_vm0, %v2876_v50 }
 0x3da   :  { %v2881_v16 = vpop.f32.mrb[198].mxu1 }
 0x3db   :  { %v2883_v17 = vpop.f32.mrb[199].mxu1  ;;  %11691 = vmatprep.mubr.msk.f32.mxu0 %vm89_vm0, %v2881_v16 }
 0x3de   :  { %v2886_v40 = vpop.f32.mrb[200].mxu1 }
 0x3df   :  { %v2888_v44 = vpop.f32.mrb[201].mxu1  ;;  %11692 = vmatmul.mubr.msk.f32.gmra.mrb[98].mxu0 %vm89_vm0, %v2886_v40  ;;  %v20553_v40 = vld [vmem:[#allocation74_spill] sm:$0xff] }
 0x3e0   :  { %vm3370_vm8 = vcmp.eq.s32.totalorder %v13981_v26, %v20553_v40  ;;  %vm3369_vm11 = vcmp.eq.s32.totalorder %v13970_v11, %v20553_v40  ;;  %v20562_v40 = vld [vmem:[#allocation89_spill] sm:$0xff] }
 0x3e2   :  { %v2891_v57 = vpop.f32.mrb[202].mxu1 }
 0x3e3   :  { %v2893_v6 = vpop.f32.mrb[203].mxu1  ;;  %11694 = vmatprep.mubr.msk.f32.mxu0 %vm89_vm0, %v2891_v57 }
 0x3e6   :  { %v2896_v46 = vpop.f32.mrb[204].mxu1 }
 0x3e7   :  { %v2898_v56 = vpop.f32.mrb[205].mxu1  ;;  %11695 = vmatmul.mubr.msk.f32.gmra.mrb[100].mxu0 %vm89_vm0, %v2896_v46  ;;  %v20554_v46 = vld [vmem:[#allocation75_spill] sm:$0xff] }
 0x3e8   :  { %vm3372_vm12 = vcmp.eq.s32.totalorder %v13981_v26, %v20554_v46  ;;  %vm3371_vm13 = vcmp.eq.s32.totalorder %v13970_v11, %v20554_v46  ;;  %v20555_v56 = vld [vmem:[#allocation77_spill] sm:$0xff]  ;;  %v20565_v46 = vld [vmem:[#allocation90_spill] sm:$0xff] }
 0x3e9   :  { %vm3374_vm14 = vcmp.eq.s32.totalorder %v13981_v26, %v20555_v56  ;;  %vm3373_vm15 = vcmp.eq.s32.totalorder %v13970_v11, %v20555_v56  ;;  %v20566_v56 = vld [vmem:[#allocation95_spill] sm:$0xff] }
 0x3ea   :  { %v2901_v3 = vpop.f32.mrb[206].mxu1 }
 0x3eb   :  { %v2903_v47 = vpop.f32.mrb[207].mxu1  ;;  %11697 = vmatprep.mubr.msk.f32.mxu0 %vm89_vm0, %v2901_v3  ;;  %v20556_v3 = vld [vmem:[#allocation80_spill] sm:$0xff] }
 0x3ec   :  { %vm3376_vm1 = vcmp.eq.s32.totalorder %v13981_v26, %v20556_v3  ;;  %vm3375_vm2 = vcmp.eq.s32.totalorder %v13970_v11, %v20556_v3  ;;  %v20557_v47 = vld [vmem:[#allocation78_spill] sm:$0xff]  ;;  %v20567_v3 = vld [vmem:[#allocation93_spill] sm:$0xff] }
 0x3ed   :  { %vm3378_vm3 = vcmp.eq.s32.totalorder %v13981_v26, %v20557_v47  ;;  %vm3377_vm4 = vcmp.eq.s32.totalorder %v13970_v11, %v20557_v47  ;;  %v20568_v47 = vld [vmem:[#allocation98_spill] sm:$0xff] }
 0x3ee   :  { %v2906_v50 = vpop.f32.mrb[208].mxu1 }
 0x3ef   :  { %v2908_v17 = vpop.f32.mrb[209].mxu1  ;;  %11698 = vmatmul.mubr.msk.f32.gmra.mrb[102].mxu0 %vm89_vm0, %v2906_v50  ;;  %v20558_v50 = vld [vmem:[#allocation83_spill] sm:$0xff] }
 0x3f0   :  { %vm3380_vm5 = vcmp.eq.s32.totalorder %v13981_v26, %v20558_v50  ;;  %vm3379_vm6 = vcmp.eq.s32.totalorder %v13970_v11, %v20558_v50  ;;  %v20559_v17 = vld [vmem:[#allocation81_spill] sm:$0xff]  ;;  %v20569_v50 = vld [vmem:[#allocation96_spill] sm:$0xff] }
 0x3f1   :  { %vm3382_vm7 = vcmp.eq.s32.totalorder %v13981_v26, %v20559_v17 }
 0x3f2   :  { %v2911_v16 = vpop.f32.mrb[210].mxu1 }
 0x3f3   :  { %v2913_v44 = vpop.f32.mrb[211].mxu1  ;;  %11700 = vmatprep.mubr.msk.f32.mxu0 %vm89_vm0, %v2911_v16  ;;  %v20560_v16 = vld [vmem:[#allocation86_spill] sm:$0xff] }
 0x3f4   :  { %v20561_v44 = vld [vmem:[#allocation84_spill] sm:$0xff] }
 0x3f6   :  { %v2916_v57 = vpop.f32.mrb[212].mxu1 }
 0x3f7   :  { %v2918_v6 = vpop.f32.mrb[213].mxu1  ;;  %11701 = vmatmul.mubr.msk.f32.gmra.mrb[104].mxu0 %vm89_vm0, %v2916_v57  ;;  %v20563_v57 = vld [vmem:[#allocation87_spill] sm:$0xff] }
 0x3f8   :  { %10406 = vmatprep.mubr.msk.f32.mxu0 %vm3370_vm8, %v20206_v1  ;;  %vm3381_vm8 = vcmp.eq.s32.totalorder %v13970_v11, %v20559_v17  ;;  %v20564_v6 = vld [vmem:[#allocation92_spill] sm:$0xff]  ;;  %v20570_v17 = vld [vmem:[#allocation101_spill] sm:$0xff] }
 0x3fb   :  { %10407 = vmatmul.mubr.msk.f32.vlgmr.msra.gmra.mrb[106].mxu0 %vm3369_vm11, %v20206_v1  ;;  %vm3384_vm11 = vcmp.eq.s32.totalorder %v13981_v26, %v20560_v16 }
 0x3fc   :  { %10408 = vmatprep.mubr.msk.f32.mxu0 %vm3372_vm12, %v20206_v1  ;;  %12302 = vmatpush3.bf16.msra.mxu0 %v14627_v35  ;;  %vm3383_vm12 = vcmp.eq.s32.totalorder %v13970_v11, %v20560_v16  ;;  %v20571_v16 = vld [vmem:[#allocation99_spill] sm:$0xff] }
 0x3fd   :  { %12304 = vmatprep.subr.bf16.mxu0 %v14657_v42 }
 0x3ff   :  { %10409 = vmatmul.mubr.msk.f32.gmra.mrb[108].mxu0 %vm3371_vm13, %v20206_v1  ;;  %vm3386_vm13 = vcmp.eq.s32.totalorder %v13981_v26, %v20561_v44 }
 0x400   :  { %10410 = vmatprep.mubr.msk.f32.mxu0 %vm3374_vm14, %v20206_v1  ;;  %12306 = vmatpush3.bf16.msra.mxu0 %v14657_v42  ;;  %vm3385_vm14 = vcmp.eq.s32.totalorder %v13970_v11, %v20561_v44  ;;  %v20572_v44 = vld [vmem:[#allocation104_spill] sm:$0xff] }
 0x401   :  { %12307 = vmatprep.subr.bf16.mxu0 %v20210_v37 }
 0x403   :  { %10411 = vmatmul.mubr.msk.f32.gmra.mrb[110].mxu0 %vm3373_vm15, %v20206_v1  ;;  %vm3388_vm15 = vcmp.eq.s32.totalorder %v13981_v26, %v20562_v40 }
 0x404   :  { %10412 = vmatprep.mubr.msk.f32.mxu0 %vm3376_vm1, %v20206_v1  ;;  %vm3387_vm1 = vcmp.eq.s32.totalorder %v13970_v11, %v20562_v40  ;;  %v20573_v40 = vld [vmem:[#allocation102_spill] sm:$0xff] }
 0x407   :  { %10413 = vmatmul.mubr.msk.f32.gmra.mrb[112].mxu0 %vm3375_vm2, %v20206_v1  ;;  %vm3390_vm2 = vcmp.eq.s32.totalorder %v13981_v26, %v20563_v57 }
 0x408   :  { %10414 = vmatprep.mubr.msk.f32.mxu0 %vm3378_vm3, %v20206_v1  ;;  %vm3389_vm3 = vcmp.eq.s32.totalorder %v13970_v11, %v20563_v57  ;;  %v20574_v57 = vld [vmem:[#allocation107_spill] sm:$0xff] }
 0x40b   :  { %10415 = vmatmul.mubr.msk.f32.gmra.mrb[114].mxu0 %vm3377_vm4, %v20206_v1  ;;  %vm3392_vm4 = vcmp.eq.s32.totalorder %v13981_v26, %v20564_v6 }
 0x40c   :  { %10416 = vmatprep.mubr.msk.f32.mxu0 %vm3380_vm5, %v20206_v1  ;;  %vm3391_vm5 = vcmp.eq.s32.totalorder %v13970_v11, %v20564_v6  ;;  %v20575_v6 = vld [vmem:[#allocation105_spill] sm:$0xff] }
 0x40f   :  { %10417 = vmatmul.mubr.msk.f32.gmra.mrb[116].mxu0 %vm3379_vm6, %v20206_v1  ;;  %vm3394_vm6 = vcmp.eq.s32.totalorder %v13981_v26, %v20565_v46 }
 0x410   :  { %10418 = vmatprep.mubr.msk.f32.mxu0 %vm3382_vm7, %v20206_v1  ;;  %vm3393_vm7 = vcmp.eq.s32.totalorder %v13970_v11, %v20565_v46 }
 0x413   :  { %10419 = vmatmul.mubr.msk.f32.gmra.mrb[118].mxu0 %vm3381_vm8, %v20206_v1  ;;  %vm3396_vm8 = vcmp.eq.s32.totalorder %v13981_v26, %v20566_v56 }
 0x414   :  { %10420 = vmatprep.mubr.msk.f32.mxu0 %vm3384_vm11, %v20206_v1  ;;  %vm3395_vm11 = vcmp.eq.s32.totalorder %v13970_v11, %v20566_v56 }
 0x417   :  { %10421 = vmatmul.mubr.msk.f32.gmra.mrb[120].mxu0 %vm3383_vm12, %v20206_v1  ;;  %vm3398_vm12 = vcmp.eq.s32.totalorder %v13981_v26, %v20567_v3 }
 0x418   :  { %10422 = vmatprep.mubr.msk.f32.mxu0 %vm3386_vm13, %v20206_v1  ;;  %vm3397_vm13 = vcmp.eq.s32.totalorder %v13970_v11, %v20567_v3  ;;  %v20576_v3 = vld [vmem:[#allocation110_spill] sm:$0xff] }
 0x41b   :  { %10423 = vmatmul.mubr.msk.f32.gmra.mrb[122].mxu0 %vm3385_vm14, %v20206_v1  ;;  %vm3400_vm14 = vcmp.eq.s32.totalorder %v13981_v26, %v20568_v47 }
 0x41c   :  { %10424 = vmatprep.mubr.msk.f32.mxu0 %vm3388_vm15, %v20206_v1  ;;  %vm3399_vm15 = vcmp.eq.s32.totalorder %v13970_v11, %v20568_v47  ;;  %v20577_v47 = vld [vmem:[#allocation108_spill] sm:$0xff] }
 0x41f   :  { %10425 = vmatmul.mubr.msk.f32.gmra.mrb[124].mxu0 %vm3387_vm1, %v20206_v1  ;;  %vm3402_vm1 = vcmp.eq.s32.totalorder %v13981_v26, %v20569_v50 }
 0x420   :  { %10426 = vmatprep.mubr.msk.f32.mxu0 %vm3390_vm2, %v20206_v1  ;;  %vm3401_vm2 = vcmp.eq.s32.totalorder %v13970_v11, %v20569_v50 }
 0x423   :  { %10427 = vmatmul.mubr.msk.f32.gmra.mrb[126].mxu0 %vm3389_vm3, %v20206_v1  ;;  %vm3404_vm3 = vcmp.eq.s32.totalorder %v13981_v26, %v20570_v17 }
 0x424   :  { %10428 = vmatprep.mubr.msk.f32.mxu0 %vm3392_vm4, %v20206_v1  ;;  %vm3403_vm4 = vcmp.eq.s32.totalorder %v13970_v11, %v20570_v17 }
 0x427   :  { %10429 = vmatmul.mubr.msk.f32.gmra.mrb[128].mxu0 %vm3391_vm5, %v20206_v1  ;;  %vm3406_vm5 = vcmp.eq.s32.totalorder %v13981_v26, %v20571_v16 }
 0x428   :  { %10430 = vmatprep.mubr.msk.f32.mxu0 %vm3394_vm6, %v20206_v1  ;;  %vm3405_vm6 = vcmp.eq.s32.totalorder %v13970_v11, %v20571_v16  ;;  %v20578_v16 = vld [vmem:[#allocation113_spill] sm:$0xff] }
 0x42b   :  { %10431 = vmatmul.mubr.msk.f32.gmra.mrb[130].mxu0 %vm3393_vm7, %v20206_v1  ;;  %vm3408_vm7 = vcmp.eq.s32.totalorder %v13981_v26, %v20572_v44 }
 0x42c   :  { %10432 = vmatprep.mubr.msk.f32.mxu0 %vm3396_vm8, %v20206_v1  ;;  %vm3407_vm8 = vcmp.eq.s32.totalorder %v13970_v11, %v20572_v44  ;;  %v20579_v44 = vld [vmem:[#allocation111_spill] sm:$0xff] }
 0x42f   :  { %10433 = vmatmul.mubr.msk.f32.gmra.mrb[132].mxu0 %vm3395_vm11, %v20206_v1  ;;  %vm3410_vm11 = vcmp.eq.s32.totalorder %v13981_v26, %v20573_v40 }
 0x430   :  { %10434 = vmatprep.mubr.msk.f32.mxu0 %vm3398_vm12, %v20206_v1  ;;  %vm3409_vm12 = vcmp.eq.s32.totalorder %v13970_v11, %v20573_v40 }
 0x433   :  { %10435 = vmatmul.mubr.msk.f32.gmra.mrb[134].mxu0 %vm3397_vm13, %v20206_v1  ;;  %vm3412_vm13 = vcmp.eq.s32.totalorder %v13981_v26, %v20574_v57 }
 0x434   :  { %10436 = vmatprep.mubr.msk.f32.mxu0 %vm3400_vm14, %v20206_v1  ;;  %vm3411_vm14 = vcmp.eq.s32.totalorder %v13970_v11, %v20574_v57 }
 0x437   :  { %10437 = vmatmul.mubr.msk.f32.gmra.mrb[136].mxu0 %vm3399_vm15, %v20206_v1  ;;  %vm3414_vm15 = vcmp.eq.s32.totalorder %v13981_v26, %v20575_v6 }
 0x438   :  { %10438 = vmatprep.mubr.msk.f32.mxu0 %vm3402_vm1, %v20206_v1  ;;  %vm3413_vm1 = vcmp.eq.s32.totalorder %v13970_v11, %v20575_v6  ;;  %v20580_v6 = vld [vmem:[#allocation116_spill] sm:$0xff] }
 0x43b   :  { %10439 = vmatmul.mubr.msk.f32.gmra.mrb[138].mxu0 %vm3401_vm2, %v20206_v1  ;;  %vm3416_vm2 = vcmp.eq.s32.totalorder %v13981_v26, %v20576_v3 }
 0x43c   :  { %10440 = vmatprep.mubr.msk.f32.mxu0 %vm3404_vm3, %v20206_v1  ;;  %vm3415_vm3 = vcmp.eq.s32.totalorder %v13970_v11, %v20576_v3  ;;  %v20581_v3 = vld [vmem:[#allocation114_spill] sm:$0xff] }
 0x43f   :  { %10441 = vmatmul.mubr.msk.f32.gmra.mrb[140].mxu0 %vm3403_vm4, %v20206_v1  ;;  %vm3418_vm4 = vcmp.eq.s32.totalorder %v13981_v26, %v20577_v47 }
 0x440   :  { %10442 = vmatprep.mubr.msk.f32.mxu0 %vm3406_vm5, %v20206_v1  ;;  %vm3417_vm5 = vcmp.eq.s32.totalorder %v13970_v11, %v20577_v47 }
 0x443   :  { %10443 = vmatmul.mubr.msk.f32.gmra.mrb[142].mxu0 %vm3405_vm6, %v20206_v1  ;;  %vm3420_vm6 = vcmp.eq.s32.totalorder %v13981_v26, %v20578_v16 }
 0x444   :  { %10444 = vmatprep.mubr.msk.f32.mxu0 %vm3408_vm7, %v20206_v1  ;;  %vm3419_vm7 = vcmp.eq.s32.totalorder %v13970_v11, %v20578_v16 }
 0x447   :  { %10445 = vmatmul.mubr.msk.f32.gmra.mrb[144].mxu0 %vm3407_vm8, %v20206_v1  ;;  %vm3422_vm8 = vcmp.eq.s32.totalorder %v13981_v26, %v20579_v44 }
 0x448   :  { %10446 = vmatprep.mubr.msk.f32.mxu0 %vm3410_vm11, %v20206_v1  ;;  %vm3421_vm11 = vcmp.eq.s32.totalorder %v13970_v11, %v20579_v44  ;;  %v20582_v44 = vld [vmem:[#allocation119_spill] sm:$0xff] }
 0x44b   :  { %10447 = vmatmul.mubr.msk.f32.gmra.mrb[146].mxu0 %vm3409_vm12, %v20206_v1  ;;  %vm3424_vm12 = vcmp.eq.s32.totalorder %v13981_v26, %v20580_v6 }
 0x44c   :  { %10448 = vmatprep.mubr.msk.f32.mxu0 %vm3412_vm13, %v20206_v1  ;;  %vm3423_vm13 = vcmp.eq.s32.totalorder %v13970_v11, %v20580_v6  ;;  %v20583_v6 = vld [vmem:[#allocation117_spill] sm:$0xff] }
 0x44f   :  { %10449 = vmatmul.mubr.msk.f32.gmra.mrb[148].mxu0 %vm3411_vm14, %v20206_v1  ;;  %vm3426_vm14 = vcmp.eq.s32.totalorder %v13981_v26, %v20581_v3 }
 0x450   :  { %10450 = vmatprep.mubr.msk.f32.mxu0 %vm3414_vm15, %v20206_v1  ;;  %vm3425_vm15 = vcmp.eq.s32.totalorder %v13970_v11, %v20581_v3 }
 0x452   :  { %v16013_v46 = vpop.f32.mrb[74].mxu0 }
 0x453   :  { %v16017_v56 = vpop.f32.mrb[75].mxu0  ;;  %10451 = vmatmul.mubr.msk.f32.gmra.mrb[150].mxu0 %vm3413_vm1, %v20206_v1  ;;  %vm3428_vm1 = vcmp.eq.s32.totalorder %v13981_v26, %v20582_v44 }
 0x454   :  { %10452 = vmatprep.mubr.msk.f32.mxu0 %vm3416_vm2, %v20206_v1  ;;  %vm3427_vm2 = vcmp.eq.s32.totalorder %v13970_v11, %v20582_v44 }
 0x457   :  { %10453 = vmatmul.mubr.msk.f32.gmra.mrb[152].mxu0 %vm3415_vm3, %v20206_v1  ;;  %vm3430_vm3 = vcmp.eq.s32.totalorder %v13981_v26, %v20583_v6 }
 0x458   :  { %10454 = vmatprep.mubr.msk.f32.mxu0 %vm3418_vm4, %v20206_v1  ;;  %vm3429_vm4 = vcmp.eq.s32.totalorder %v13970_v11, %v20583_v6 }
 0x45a   :  { %v16029_v50 = vpop.f32.mrb[76].mxu0 }
 0x45b   :  { %v16033_v17 = vpop.f32.mrb[77].mxu0  ;;  %10455 = vmatmul.mubr.msk.f32.gmra.mrb[154].mxu0 %vm3417_vm5, %v20206_v1  ;;  %vm3432_vm5 = vcmp.eq.s32.totalorder %v13981_v26, %v20584_v18 }
 0x45c   :  { %10456 = vmatprep.mubr.msk.f32.mxu0 %vm3420_vm6, %v20206_v1  ;;  %vm3431_vm6 = vcmp.eq.s32.totalorder %v13970_v11, %v20584_v18 }
 0x45f   :  { %10457 = vmatmul.mubr.msk.f32.gmra.mrb[156].mxu0 %vm3419_vm7, %v20206_v1 }
 0x460   :  { %10458 = vmatprep.mubr.msk.f32.mxu0 %vm3422_vm8, %v20206_v1 }
 0x462   :  { %v16045_v40 = vpop.f32.mrb[78].mxu0 }
 0x463   :  { %v16049_v57 = vpop.f32.mrb[79].mxu0  ;;  %10459 = vmatmul.mubr.msk.f32.gmra.mrb[158].mxu0 %vm3421_vm11, %v20206_v1 }
 0x464   :  { %10460 = vmatprep.mubr.msk.f32.mxu0 %vm3424_vm12, %v20206_v1 }
 0x467   :  { %10461 = vmatmul.mubr.msk.f32.gmra.mrb[160].mxu0 %vm3423_vm13, %v20206_v1 }
 0x468   :  { %10462 = vmatprep.mubr.msk.f32.mxu0 %vm3426_vm14, %v20206_v1 }
 0x46a   :  { %v16061_v47 = vpop.f32.mrb[80].mxu0 }
 0x46b   :  { %v16065_v16 = vpop.f32.mrb[81].mxu0  ;;  %10463 = vmatmul.mubr.msk.f32.gmra.mrb[162].mxu0 %vm3425_vm15, %v20206_v1 }
 0x46c   :  { %10464 = vmatprep.mubr.msk.f32.mxu0 %vm3428_vm1, %v20206_v1 }
 0x46f   :  { %10465 = vmatmul.mubr.msk.f32.gmra.mrb[164].mxu0 %vm3427_vm2, %v20206_v1 }
 0x470   :  { %10466 = vmatprep.mubr.msk.f32.mxu0 %vm3430_vm3, %v20206_v1 }
 0x472   :  { %v16077_v3 = vpop.f32.mrb[82].mxu0 }
 0x473   :  { %v16081_v24 = vpop.f32.mrb[83].mxu0  ;;  %10467 = vmatmul.mubr.msk.f32.gmra.mrb[166].mxu0 %vm3429_vm4, %v20206_v1 }
 0x474   :  { %10468 = vmatprep.mubr.msk.f32.mxu0 %vm3432_vm5, %v20206_v1 }
 0x477   :  { %10469 = vmatmul.mubr.msk.f32.gmra.mrb[168].mxu0 %vm3431_vm6, %v20206_v1 }
 0x47a   :  { %v16090_v44 = vpop.f32.mrb[84].mxu0 }
 0x47b   :  { %v16092_v60 = vpop.f32.mrb[85].mxu0 }
 0x482   :  { %v16094_v63 = vpop.f32.mrb[86].mxu0 }
 0x483   :  { %v16096_v6 = vpop.f32.mrb[87].mxu0 }
 0x48a   :  { %v16098_v53 = vpop.f32.mrb[88].mxu0 }
 0x48b   :  { %v16100_v28 = vpop.f32.mrb[89].mxu0 }
 0x492   :  { %v16102_v27 = vpop.f32.mrb[90].mxu0 }
 0x493   :  { %v16104_v51 = vpop.f32.mrb[91].mxu0 }
 0x49a   :  { %v16106_v30 = vpop.f32.mrb[92].mxu0 }
 0x49b   :  { %v16108_v18 = vpop.f32.mrb[93].mxu0 }
 0x4a2   :  { %v16110_v45 = vpop.f32.mrb[94].mxu0 }
 0x4a3   :  { %v16112_v25 = vpop.f32.mrb[95].mxu0 }
 0x4aa   :  { %v16114_v5 = vpop.f32.mrb[96].mxu0 }
 0x4ab   :  { %v16116_v0 = vpop.f32.mrb[97].mxu0 }
 0x4b2   :  { %v16118_v8 = vpop.f32.mrb[98].mxu0 }
 0x4b3   :  { %v16120_v19 = vpop.f32.mrb[99].mxu0 }
 0x4ba   :  { %v16122_v39 = vpop.f32.mrb[100].mxu0 }
 0x4bb   :  { %20585 = vst [vmem:[#allocation74_spill] sm:$0xff] %v16122_v39  ;;  %v16124_v34 = vpop.f32.mrb[101].mxu0 }
 0x4bc   :  { %20586 = vst [vmem:[#allocation75_spill] sm:$0xff] %v16124_v34 }
 0x4c2   :  { %v16126_v12 = vpop.f32.mrb[102].mxu0 }
 0x4c3   :  { %20587 = vst [vmem:[#allocation77_spill] sm:$0xff] %v16126_v12  ;;  %v16128_v36 = vpop.f32.mrb[103].mxu0 }
 0x4c4   :  { %20588 = vst [vmem:[#allocation80_spill] sm:$0xff] %v16128_v36 }
 0x4ca   :  { %v16130_v2 = vpop.f32.mrb[104].mxu0 }
 0x4cb   :  { %20589 = vst [vmem:[#allocation78_spill] sm:$0xff] %v16130_v2  ;;  %v16132_v32 = vpop.f32.mrb[105].mxu0 }
 0x4cc   :  { %20590 = vst [vmem:[#allocation83_spill] sm:$0xff] %v16132_v32 }
 0x4ce   :  { %v3627_v31 = vpop.f32.mrb[106].mxu0 }
 0x4cf   :  { %v3629_v58 = vpop.f32.mrb[107].mxu0  ;;  %11711 = vmatprep.mubr.msk.f32.mxu1 %vm89_vm0, %v3627_v31 }
 0x4d2   :  { %v3632_v61 = vpop.f32.mrb[108].mxu0 }
 0x4d3   :  { %v3634_v15 = vpop.f32.mrb[109].mxu0  ;;  %11712 = vmatmul.mubr.msk.f32.vlgmr.msra.gmra.mrb[214].mxu1 %vm89_vm0, %v3632_v61 }
 0x4d4   :  { %12253 = vmatpush1.bf16.msra.mxu1 %v13646_v59 }
 0x4d5   :  { %12254 = vmatprep.subr.bf16.mxu1 %v20210_v37 }
 0x4d6   :  { %v3637_v62 = vpop.f32.mrb[110].mxu0 }
 0x4d7   :  { %v3639_v12 = vpop.f32.mrb[111].mxu0  ;;  %11714 = vmatprep.mubr.msk.f32.mxu1 %vm89_vm0, %v3637_v62 }
 0x4d8   :  { %12256 = vmatpush1.bf16.msra.mxu1 %v13679_v4 }
 0x4d9   :  { %12257 = vmatprep.subr.bf16.mxu1 %v20210_v37 }
 0x4da   :  { %v3642_v32 = vpop.f32.mrb[112].mxu0 }
 0x4db   :  { %v3644_v58 = vpop.f32.mrb[113].mxu0  ;;  %11715 = vmatmul.mubr.msk.f32.gmra.mrb[216].mxu1 %vm89_vm0, %v3642_v32 }
 0x4dc   :  { %12259 = vmatpush1.bf16.msra.mxu1 %v13706_v13 }
 0x4dd   :  { %12260 = vmatprep.subr.bf16.mxu1 %v20210_v37 }
 0x4de   :  { %v3647_v15 = vpop.f32.mrb[114].mxu0 }
 0x4df   :  { %v3649_v61 = vpop.f32.mrb[115].mxu0  ;;  %11717 = vmatprep.mubr.msk.f32.mxu1 %vm89_vm0, %v3647_v15 }
 0x4e0   :  { %12262 = vmatpush1.bf16.msra.mxu1 %v13725_v23 }
 0x4e1   :  { %12263 = vmatprep.subr.bf16.mxu1 %v20210_v37 }
 0x4e2   :  { %v3652_v62 = vpop.f32.mrb[116].mxu0 }
 0x4e3   :  { %v3654_v31 = vpop.f32.mrb[117].mxu0  ;;  %11718 = vmatmul.mubr.msk.f32.gmra.mrb[218].mxu1 %vm89_vm0, %v3652_v62 }
 0x4e4   :  { %12265 = vmatpush1.bf16.msra.mxu1 %v13745_v38 }
 0x4e5   :  { %12266 = vmatprep.subr.bf16.mxu1 %v20210_v37 }
 0x4e6   :  { %v3657_v32 = vpop.f32.mrb[118].mxu0 }
 0x4e7   :  { %v3659_v12 = vpop.f32.mrb[119].mxu0  ;;  %11720 = vmatprep.mubr.msk.f32.mxu1 %vm89_vm0, %v3657_v32 }
 0x4e8   :  { %12268 = vmatpush1.bf16.msra.mxu1 %v20360_v55 }
 0x4e9   :  { %12269 = vmatprep.subr.bf16.mxu1 %v20210_v37 }
 0x4ea   :  { %v3662_v58 = vpop.f32.mrb[120].mxu0 }
 0x4eb   :  { %v3664_v15 = vpop.f32.mrb[121].mxu0  ;;  %11721 = vmatmul.mubr.msk.f32.gmra.mrb[220].mxu1 %vm89_vm0, %v3662_v58 }
 0x4ec   :  { %12271 = vmatpush1.bf16.msra.mxu1 %v20363_v29 }
 0x4ed   :  { %12272 = vmatprep.subr.bf16.mxu1 %v20210_v37 }
 0x4ee   :  { %v3667_v61 = vpop.f32.mrb[122].mxu0 }
 0x4ef   :  { %v3669_v62 = vpop.f32.mrb[123].mxu0  ;;  %11723 = vmatprep.mubr.msk.f32.mxu1 %vm89_vm0, %v3667_v61 }
 0x4f0   :  { %12274 = vmatpush1.bf16.msra.mxu1 %v20364_v41 }
 0x4f1   :  { %12275 = vmatprep.subr.bf16.mxu1 %v20210_v37 }
 0x4f2   :  { %v3672_v31 = vpop.f32.mrb[124].mxu0 }
 0x4f3   :  { %v3674_v32 = vpop.f32.mrb[125].mxu0  ;;  %11724 = vmatmul.mubr.msk.f32.gmra.mrb[222].mxu1 %vm89_vm0, %v3672_v31 }
 0x4f4   :  { %12277 = vmatpush1.bf16.msra.mxu1 %v20367_v21 }
 0x4f5   :  { %12278 = vmatprep.subr.bf16.mxu1 %v20210_v37 }
 0x4f6   :  { %v3677_v12 = vpop.f32.mrb[126].mxu0 }
 0x4f7   :  { %v3679_v58 = vpop.f32.mrb[127].mxu0  ;;  %11726 = vmatprep.mubr.msk.f32.mxu1 %vm89_vm0, %v3677_v12 }
 0x4f8   :  { %12280 = vmatpush1.bf16.msra.mxu1 %v20370_v48 }
 0x4f9   :  { %12281 = vmatprep.subr.bf16.mxu1 %v20210_v37 }
 0x4fa   :  { %v3682_v15 = vpop.f32.mrb[128].mxu0 }
 0x4fb   :  { %v3684_v61 = vpop.f32.mrb[129].mxu0  ;;  %11727 = vmatmul.mubr.msk.f32.gmra.mrb[224].mxu1 %vm89_vm0, %v3682_v15 }
 0x4fc   :  { %12283 = vmatpush1.bf16.msra.mxu1 %v20371_v20 }
 0x4fd   :  { %12284 = vmatprep.subr.bf16.mxu1 %v20210_v37 }
 0x4fe   :  { %v3687_v62 = vpop.f32.mrb[130].mxu0 }
 0x4ff   :  { %v3689_v31 = vpop.f32.mrb[131].mxu0  ;;  %11729 = vmatprep.mubr.msk.f32.mxu1 %vm89_vm0, %v3687_v62 }
 0x500   :  { %12286 = vmatpush1.bf16.msra.mxu1 %v20375_v14 }
 0x501   :  { %12287 = vmatprep.subr.bf16.mxu1 %v20210_v37 }
 0x502   :  { %v3692_v32 = vpop.f32.mrb[132].mxu0 }
 0x503   :  { %v3694_v12 = vpop.f32.mrb[133].mxu0  ;;  %11730 = vmatmul.mubr.msk.f32.gmra.mrb[226].mxu1 %vm89_vm0, %v3692_v32 }
 0x504   :  { %12289 = vmatpush1.bf16.msra.mxu1 %v20379_v7 }
 0x505   :  { %12290 = vmatprep.subr.bf16.mxu1 %v20210_v37 }
 0x506   :  { %v3697_v58 = vpop.f32.mrb[134].mxu0 }
 0x507   :  { %v3699_v15 = vpop.f32.mrb[135].mxu0  ;;  %11732 = vmatprep.mubr.msk.f32.mxu1 %vm89_vm0, %v3697_v58 }
 0x508   :  { %12292 = vmatpush1.bf16.msra.mxu1 %v20381_v43 }
 0x509   :  { %12293 = vmatprep.subr.bf16.mxu1 %v20210_v37 }
 0x50a   :  { %v3702_v61 = vpop.f32.mrb[136].mxu0 }
 0x50b   :  { %v3704_v62 = vpop.f32.mrb[137].mxu0  ;;  %11733 = vmatmul.mubr.msk.f32.gmra.mrb[228].mxu1 %vm89_vm0, %v3702_v61 }
 0x50c   :  { %12295 = vmatpush1.bf16.msra.mxu1 %v20385_v52 }
 0x50d   :  { %12296 = vmatprep.subr.bf16.mxu1 %v20210_v37 }
 0x50e   :  { %v3707_v31 = vpop.f32.mrb[138].mxu0 }
 0x50f   :  { %v3709_v32 = vpop.f32.mrb[139].mxu0  ;;  %11735 = vmatprep.mubr.msk.f32.mxu1 %vm89_vm0, %v3707_v31 }
 0x510   :  { %12298 = vmatpush1.bf16.msra.mxu1 %v20389_v49 }
 0x511   :  { %12356 = vmatprep.subr.bf16.mxu1 %v14627_v35 }
 0x512   :  { %v3712_v12 = vpop.f32.mrb[140].mxu0 }
 0x513   :  { %v3714_v58 = vpop.f32.mrb[141].mxu0  ;;  %11736 = vmatmul.mubr.msk.f32.gmra.mrb[230].mxu1 %vm89_vm0, %v3712_v12 }
 0x516   :  { %v3717_v15 = vpop.f32.mrb[142].mxu0 }
 0x517   :  { %v3719_v62 = vpop.f32.mrb[143].mxu0  ;;  %11738 = vmatprep.mubr.msk.f32.mxu1 %vm89_vm0, %v3717_v15 }
 0x51a   :  { %v3722_v61 = vpop.f32.mrb[144].mxu0 }
 0x51b   :  { %v3724_v2 = vpop.f32.mrb[145].mxu0  ;;  %11739 = vmatmul.mubr.msk.f32.gmra.mrb[232].mxu1 %vm89_vm0, %v3722_v61 }
 0x51e   :  { %v3727_v36 = vpop.f32.mrb[146].mxu0 }
 0x51f   :  { %v3729_v32 = vpop.f32.mrb[147].mxu0  ;;  %11741 = vmatprep.mubr.msk.f32.mxu1 %vm89_vm0, %v3727_v36 }
 0x522   :  { %v3732_v31 = vpop.f32.mrb[148].mxu0 }
 0x523   :  { %v3734_v34 = vpop.f32.mrb[149].mxu0  ;;  %11742 = vmatmul.mubr.msk.f32.gmra.mrb[234].mxu1 %vm89_vm0, %v3732_v31 }
 0x526   :  { %v3737_v39 = vpop.f32.mrb[150].mxu0 }
 0x527   :  { %v3739_v58 = vpop.f32.mrb[151].mxu0  ;;  %11744 = vmatprep.mubr.msk.f32.mxu1 %vm89_vm0, %v3737_v39 }
 0x52a   :  { %v3742_v12 = vpop.f32.mrb[152].mxu0 }
 0x52b   :  { %v3744_v62 = vpop.f32.mrb[153].mxu0  ;;  %11745 = vmatmul.mubr.msk.f32.gmra.mrb[236].mxu1 %vm89_vm0, %v3742_v12 }
 0x52e   :  { %v3747_v15 = vpop.f32.mrb[154].mxu0 }
 0x52f   :  { %v3749_v2 = vpop.f32.mrb[155].mxu0  ;;  %11747 = vmatprep.mubr.msk.f32.mxu1 %vm89_vm0, %v3747_v15 }
 0x532   :  { %v3752_v61 = vpop.f32.mrb[156].mxu0 }
 0x533   :  { %v3754_v32 = vpop.f32.mrb[157].mxu0  ;;  %11748 = vmatmul.mubr.msk.f32.gmra.mrb[238].mxu1 %vm89_vm0, %v3752_v61  ;;  %v20591_v61 = vld [vmem:[#allocation121_spill] sm:$0xff] }
 0x534   :  { %vm4236_vm7 = vcmp.eq.s32.totalorder %v13981_v26, %v20591_v61  ;;  %vm4235_vm8 = vcmp.eq.s32.totalorder %v13970_v11, %v20591_v61  ;;  %v20600_v61 = vld [vmem:[#allocation136_spill] sm:$0xff] }
 0x536   :  { %v3757_v36 = vpop.f32.mrb[158].mxu0 }
 0x537   :  { %v3759_v34 = vpop.f32.mrb[159].mxu0  ;;  %11750 = vmatprep.mubr.msk.f32.mxu1 %vm89_vm0, %v3757_v36 }
 0x53a   :  { %v3762_v31 = vpop.f32.mrb[160].mxu0 }
 0x53b   :  { %v3764_v58 = vpop.f32.mrb[161].mxu0  ;;  %11751 = vmatmul.mubr.msk.f32.gmra.mrb[240].mxu1 %vm89_vm0, %v3762_v31  ;;  %v20592_v31 = vld [vmem:[#allocation124_spill] sm:$0xff] }
 0x53c   :  { %vm4238_vm11 = vcmp.eq.s32.totalorder %v13981_v26, %v20592_v31  ;;  %vm4237_vm12 = vcmp.eq.s32.totalorder %v13970_v11, %v20592_v31  ;;  %v20593_v58 = vld [vmem:[#allocation127_spill] sm:$0xff]  ;;  %v20608_v31 = vld [vmem:[#allocation142_spill] sm:$0xff] }
 0x53d   :  { %vm4240_vm13 = vcmp.eq.s32.totalorder %v13981_v26, %v20593_v58  ;;  %vm4239_vm14 = vcmp.eq.s32.totalorder %v13970_v11, %v20593_v58 }
 0x53e   :  { %v3767_v39 = vpop.f32.mrb[162].mxu0 }
 0x53f   :  { %v3769_v62 = vpop.f32.mrb[163].mxu0  ;;  %11753 = vmatprep.mubr.msk.f32.mxu1 %vm89_vm0, %v3767_v39  ;;  %v20594_v39 = vld [vmem:[#allocation125_spill] sm:$0xff] }
 0x540   :  { %vm4242_vm15 = vcmp.eq.s32.totalorder %v13981_v26, %v20594_v39  ;;  %vm4241_vm1 = vcmp.eq.s32.totalorder %v13970_v11, %v20594_v39  ;;  %v20595_v62 = vld [vmem:[#allocation130_spill] sm:$0xff] }
 0x541   :  { %vm4244_vm2 = vcmp.eq.s32.totalorder %v13981_v26, %v20595_v62  ;;  %vm4243_vm3 = vcmp.eq.s32.totalorder %v13970_v11, %v20595_v62  ;;  %v20611_v62 = vld [vmem:[#allocation146_spill] sm:$0xff] }
 0x542   :  { %v3772_v12 = vpop.f32.mrb[164].mxu0 }
 0x543   :  { %v3774_v2 = vpop.f32.mrb[165].mxu0  ;;  %11754 = vmatmul.mubr.msk.f32.gmra.mrb[242].mxu1 %vm89_vm0, %v3772_v12  ;;  %v20596_v12 = vld [vmem:[#allocation129_spill] sm:$0xff] }
 0x544   :  { %vm4246_vm4 = vcmp.eq.s32.totalorder %v13981_v26, %v20596_v12  ;;  %vm4245_vm5 = vcmp.eq.s32.totalorder %v13970_v11, %v20596_v12  ;;  %v20597_v2 = vld [vmem:[#allocation132_spill] sm:$0xff]  ;;  %v20612_v12 = vld [vmem:[#allocation143_spill] sm:$0xff] }
 0x545   :  { %vm4248_vm6 = vcmp.eq.s32.totalorder %v13981_v26, %v20597_v2 }
 0x546   :  { %v3777_v15 = vpop.f32.mrb[166].mxu0 }
 0x547   :  { %v3779_v32 = vpop.f32.mrb[167].mxu0  ;;  %11756 = vmatprep.mubr.msk.f32.mxu1 %vm89_vm0, %v3777_v15  ;;  %v20598_v15 = vld [vmem:[#allocation133_spill] sm:$0xff] }
 0x548   :  { %v20599_v32 = vld [vmem:[#allocation135_spill] sm:$0xff] }
 0x54a   :  { %v3782_v36 = vpop.f32.mrb[168].mxu0 }
 0x54b   :  { %v3784_v34 = vpop.f32.mrb[169].mxu0  ;;  %11757 = vmatmul.mubr.msk.f32.gmra.mrb[244].mxu1 %vm89_vm0, %v3782_v36  ;;  %v20601_v36 = vld [vmem:[#allocation137_spill] sm:$0xff] }
 0x54c   :  { %10566 = vmatprep.mubr.msk.f32.mxu1 %vm4236_vm7, %v20206_v1  ;;  %vm4247_vm7 = vcmp.eq.s32.totalorder %v13970_v11, %v20597_v2  ;;  %v20607_v34 = vld [vmem:[#allocation13_spill] sm:$0xff] }
 0x54f   :  { %10567 = vmatmul.mubr.msk.f32.vlgmr.msra.gmra.mrb[246].mxu1 %vm4235_vm8, %v20206_v1  ;;  %vm4250_vm8 = vcmp.eq.s32.totalorder %v13981_v26, %v20598_v15 }
 0x550   :  { %10568 = vmatprep.mubr.msk.f32.mxu1 %vm4238_vm11, %v20206_v1  ;;  %12358 = vmatpush3.bf16.msra.mxu1 %v14627_v35  ;;  %vm4249_vm11 = vcmp.eq.s32.totalorder %v13970_v11, %v20598_v15 }
 0x551   :  { %12360 = vmatprep.subr.bf16.mxu1 %v14657_v42 }
 0x553   :  { %10569 = vmatmul.mubr.msk.f32.gmra.mrb[248].mxu1 %vm4237_vm12, %v20206_v1  ;;  %vm4252_vm12 = vcmp.eq.s32.totalorder %v13981_v26, %v20599_v32 }
 0x554   :  { %10570 = vmatprep.mubr.msk.f32.mxu1 %vm4240_vm13, %v20206_v1  ;;  %12362 = vmatpush3.bf16.msra.mxu1 %v14657_v42  ;;  %vm4251_vm13 = vcmp.eq.s32.totalorder %v13970_v11, %v20599_v32  ;;  %v20615_v32 = vld [vmem:[#allocation17_spill] sm:$0xff] }
 0x555   :  { %12363 = vmatprep.subr.bf16.mxu1 %v20210_v37 }
 0x557   :  { %10571 = vmatmul.mubr.msk.f32.gmra.mrb[250].mxu1 %vm4239_vm14, %v20206_v1  ;;  %vm4254_vm14 = vcmp.eq.s32.totalorder %v13981_v26, %v20600_v61 }
 0x558   :  { %10572 = vmatprep.mubr.msk.f32.mxu1 %vm4242_vm15, %v20206_v1  ;;  %vm4253_vm15 = vcmp.eq.s32.totalorder %v13970_v11, %v20600_v61  ;;  %v20616_v61 = vld [vmem:[#allocation14_spill] sm:$0xff] }
 0x55b   :  { %10573 = vmatmul.mubr.msk.f32.gmra.mrb[252].mxu1 %vm4241_vm1, %v20206_v1  ;;  %vm4256_vm1 = vcmp.eq.s32.totalorder %v13981_v26, %v20601_v36 }
 0x55c   :  { %10574 = vmatprep.mubr.msk.f32.mxu1 %vm4244_vm2, %v20206_v1  ;;  %vm4255_vm2 = vcmp.eq.s32.totalorder %v13970_v11, %v20601_v36 }
 0x55f   :  { %10575 = vmatmul.mubr.msk.f32.gmra.mrb[254].mxu1 %vm4243_vm3, %v20206_v1  ;;  %vm4258_vm3 = vcmp.eq.s32.totalorder %v13981_v26, %v14713_v10 }
 0x560   :  { %10576 = vmatprep.mubr.msk.f32.mxu1 %vm4246_vm4, %v20206_v1  ;;  %vm4257_vm4 = vcmp.eq.s32.totalorder %v13970_v11, %v14713_v10  ;;  %v20602_v10 = vld [vmem:[#allocation138_spill] sm:$0xff] }
 0x563   :  { %10577 = vmatmul.mubr.msk.f32.gmra.mrb[0].mxu1 %vm4245_vm5, %v20206_v1  ;;  %vm4260_vm5 = vcmp.eq.s32.totalorder %v13981_v26, %v14711_v33 }
 0x564   :  { %10578 = vmatprep.mubr.msk.f32.mxu1 %vm4248_vm6, %v20206_v1  ;;  %vm4259_vm6 = vcmp.eq.s32.totalorder %v13970_v11, %v14711_v33  ;;  %v20603_v33 = vld [vmem:[#allocation141_spill] sm:$0xff] }
 0x567   :  { %10579 = vmatmul.mubr.msk.f32.gmra.mrb[2].mxu1 %vm4247_vm7, %v20206_v1  ;;  %vm4262_vm7 = vcmp.eq.s32.totalorder %v13981_v26, %v14725_v9 }
 0x568   :  { %10580 = vmatprep.mubr.msk.f32.mxu1 %vm4250_vm8, %v20206_v1  ;;  %vm4261_vm8 = vcmp.eq.s32.totalorder %v13970_v11, %v14725_v9  ;;  %v20605_v9 = vld [vmem:[#allocation144_spill] sm:$0xff] }
 0x56b   :  { %10581 = vmatmul.mubr.msk.f32.gmra.mrb[4].mxu1 %vm4249_vm11, %v20206_v1  ;;  %vm4264_vm11 = vcmp.eq.s32.totalorder %v13981_v26, %v14723_v22 }
 0x56c   :  { %10582 = vmatprep.mubr.msk.f32.mxu1 %vm4252_vm12, %v20206_v1  ;;  %vm4263_vm12 = vcmp.eq.s32.totalorder %v13970_v11, %v14723_v22  ;;  %v20604_v22 = vld [vmem:[#allocation139_spill] sm:$0xff] }
 0x56f   :  { %10583 = vmatmul.mubr.msk.f32.gmra.mrb[6].mxu1 %vm4251_vm13, %v20206_v1  ;;  %vm4266_vm13 = vcmp.eq.s32.totalorder %v13981_v26, %v14753_v54 }
 0x570   :  { %10584 = vmatprep.mubr.msk.f32.mxu1 %vm4254_vm14, %v20206_v1  ;;  %vm4265_vm14 = vcmp.eq.s32.totalorder %v13970_v11, %v14753_v54  ;;  %v20606_v54 = vld [vmem:[#allocation140_spill] sm:$0xff] }
 0x573   :  { %10585 = vmatmul.mubr.msk.f32.gmra.mrb[8].mxu1 %vm4253_vm15, %v20206_v1  ;;  %vm4268_vm15 = vcmp.eq.s32.totalorder %v13981_v26, %v20602_v10 }
 0x574   :  { %10586 = vmatprep.mubr.msk.f32.mxu1 %vm4256_vm1, %v20206_v1  ;;  %vm4267_vm1 = vcmp.eq.s32.totalorder %v13970_v11, %v20602_v10 }
 0x577   :  { %10587 = vmatmul.mubr.msk.f32.gmra.mrb[10].mxu1 %vm4255_vm2, %v20206_v1  ;;  %vm4270_vm2 = vcmp.eq.s32.totalorder %v13981_v26, %v20603_v33 }
 0x578   :  { %10588 = vmatprep.mubr.msk.f32.mxu1 %vm4258_vm3, %v20206_v1  ;;  %vm4269_vm3 = vcmp.eq.s32.totalorder %v13970_v11, %v20603_v33  ;;  %v20619_v33 = vld [vmem:[#allocation148_spill] sm:$0xff] }
 0x57b   :  { %10589 = vmatmul.mubr.msk.f32.gmra.mrb[12].mxu1 %vm4257_vm4, %v20206_v1  ;;  %vm4272_vm4 = vcmp.eq.s32.totalorder %v13981_v26, %v20604_v22 }
 0x57c   :  { %10590 = vmatprep.mubr.msk.f32.mxu1 %vm4260_vm5, %v20206_v1  ;;  %vm4271_vm5 = vcmp.eq.s32.totalorder %v13970_v11, %v20604_v22  ;;  %v20620_v22 = vld [vmem:[#allocation145_spill] sm:$0xff] }
 0x57f   :  { %10591 = vmatmul.mubr.msk.f32.gmra.mrb[14].mxu1 %vm4259_vm6, %v20206_v1  ;;  %vm4274_vm6 = vcmp.eq.s32.totalorder %v13981_v26, %v20605_v9 }
 0x580   :  { %10592 = vmatprep.mubr.msk.f32.mxu1 %vm4262_vm7, %v20206_v1  ;;  %vm4273_vm7 = vcmp.eq.s32.totalorder %v13970_v11, %v20605_v9 }
 0x583   :  { %10593 = vmatmul.mubr.msk.f32.gmra.mrb[16].mxu1 %vm4261_vm8, %v20206_v1  ;;  %vm4276_vm8 = vcmp.eq.s32.totalorder %v13981_v26, %v20606_v54 }
 0x584   :  { %10594 = vmatprep.mubr.msk.f32.mxu1 %vm4264_vm11, %v20206_v1  ;;  %vm4275_vm11 = vcmp.eq.s32.totalorder %v13970_v11, %v20606_v54 }
 0x587   :  { %10595 = vmatmul.mubr.msk.f32.gmra.mrb[18].mxu1 %vm4263_vm12, %v20206_v1  ;;  %vm4278_vm12 = vcmp.eq.s32.totalorder %v13981_v26, %v20607_v34 }
 0x588   :  { %10596 = vmatprep.mubr.msk.f32.mxu1 %vm4266_vm13, %v20206_v1  ;;  %vm4277_vm13 = vcmp.eq.s32.totalorder %v13970_v11, %v20607_v34  ;;  %v20623_v34 = vld [vmem:[#allocation21_spill] sm:$0xff] }
 0x58b   :  { %10597 = vmatmul.mubr.msk.f32.gmra.mrb[20].mxu1 %vm4265_vm14, %v20206_v1  ;;  %vm4280_vm14 = vcmp.eq.s32.totalorder %v13981_v26, %v20608_v31 }
 0x58c   :  { %10598 = vmatprep.mubr.msk.f32.mxu1 %vm4268_vm15, %v20206_v1  ;;  %vm4279_vm15 = vcmp.eq.s32.totalorder %v13970_v11, %v20608_v31  ;;  %v20624_v31 = vld [vmem:[#allocation15_spill] sm:$0xff] }
 0x58f   :  { %10599 = vmatmul.mubr.msk.f32.gmra.mrb[22].mxu1 %vm4267_vm1, %v20206_v1  ;;  %vm4282_vm1 = vcmp.eq.s32.totalorder %v13981_v26, %v20611_v62 }
 0x590   :  { %10600 = vmatprep.mubr.msk.f32.mxu1 %vm4270_vm2, %v20206_v1  ;;  %vm4281_vm2 = vcmp.eq.s32.totalorder %v13970_v11, %v20611_v62 }
 0x593   :  { %10601 = vmatmul.mubr.msk.f32.gmra.mrb[24].mxu1 %vm4269_vm3, %v20206_v1  ;;  %vm4284_vm3 = vcmp.eq.s32.totalorder %v13981_v26, %v20612_v12 }
 0x594   :  { %10602 = vmatprep.mubr.msk.f32.mxu1 %vm4272_vm4, %v20206_v1  ;;  %vm4283_vm4 = vcmp.eq.s32.totalorder %v13970_v11, %v20612_v12 }
 0x597   :  { %10603 = vmatmul.mubr.msk.f32.gmra.mrb[26].mxu1 %vm4271_vm5, %v20206_v1  ;;  %vm4286_vm5 = vcmp.eq.s32.totalorder %v13981_v26, %v20615_v32 }
 0x598   :  { %10604 = vmatprep.mubr.msk.f32.mxu1 %vm4274_vm6, %v20206_v1  ;;  %vm4285_vm6 = vcmp.eq.s32.totalorder %v13970_v11, %v20615_v32  ;;  %v20627_v32 = vld [vmem:[#allocation20_spill] sm:$0xff] }
 0x59b   :  { %10605 = vmatmul.mubr.msk.f32.gmra.mrb[28].mxu1 %vm4273_vm7, %v20206_v1  ;;  %vm4288_vm7 = vcmp.eq.s32.totalorder %v13981_v26, %v20616_v61 }
 0x59c   :  { %10606 = vmatprep.mubr.msk.f32.mxu1 %vm4276_vm8, %v20206_v1  ;;  %vm4287_vm8 = vcmp.eq.s32.totalorder %v13970_v11, %v20616_v61 }
 0x59f   :  { %10607 = vmatmul.mubr.msk.f32.gmra.mrb[30].mxu1 %vm4275_vm11, %v20206_v1  ;;  %vm4290_vm11 = vcmp.eq.s32.totalorder %v13981_v26, %v20619_v33 }
 0x5a0   :  { %10608 = vmatprep.mubr.msk.f32.mxu1 %vm4278_vm12, %v20206_v1  ;;  %vm4289_vm12 = vcmp.eq.s32.totalorder %v13970_v11, %v20619_v33 }
 0x5a3   :  { %10609 = vmatmul.mubr.msk.f32.gmra.mrb[32].mxu1 %vm4277_vm13, %v20206_v1  ;;  %vm4292_vm13 = vcmp.eq.s32.totalorder %v13981_v26, %v20620_v22 }
 0x5a4   :  { %10610 = vmatprep.mubr.msk.f32.mxu1 %vm4280_vm14, %v20206_v1  ;;  %vm4291_vm14 = vcmp.eq.s32.totalorder %v13970_v11, %v20620_v22 }
 0x5a6   :  { %v16339_v58 = vpop.f32.mrb[214].mxu1 }
 0x5a7   :  { %20609 = vst [vmem:[#allocation81_spill] sm:$0xff] %v16339_v58  ;;  %v16341_v39 = vpop.f32.mrb[215].mxu1  ;;  %10611 = vmatmul.mubr.msk.f32.gmra.mrb[34].mxu1 %vm4279_vm15, %v20206_v1  ;;  %vm4294_vm15 = vcmp.eq.s32.totalorder %v13981_v26, %v20623_v34 }
 0x5a8   :  { %20610 = vst [vmem:[#allocation86_spill] sm:$0xff] %v16341_v39  ;;  %10612 = vmatprep.mubr.msk.f32.mxu1 %vm4282_vm1, %v20206_v1  ;;  %vm4293_vm1 = vcmp.eq.s32.totalorder %v13970_v11, %v20623_v34 }
 0x5ab   :  { %10613 = vmatmul.mubr.msk.f32.gmra.mrb[36].mxu1 %vm4281_vm2, %v20206_v1  ;;  %vm4296_vm2 = vcmp.eq.s32.totalorder %v13981_v26, %v20624_v31 }
 0x5ac   :  { %10614 = vmatprep.mubr.msk.f32.mxu1 %vm4284_vm3, %v20206_v1  ;;  %vm4295_vm3 = vcmp.eq.s32.totalorder %v13970_v11, %v20624_v31 }
 0x5ae   :  { %v16355_v2 = vpop.f32.mrb[216].mxu1 }
 0x5af   :  { %20613 = vst [vmem:[#allocation84_spill] sm:$0xff] %v16355_v2  ;;  %v16357_v15 = vpop.f32.mrb[217].mxu1  ;;  %10615 = vmatmul.mubr.msk.f32.gmra.mrb[38].mxu1 %vm4283_vm4, %v20206_v1  ;;  %vm4298_vm4 = vcmp.eq.s32.totalorder %v13981_v26, %v20627_v32 }
 0x5b0   :  { %20614 = vst [vmem:[#allocation89_spill] sm:$0xff] %v16357_v15  ;;  %10616 = vmatprep.mubr.msk.f32.mxu1 %vm4286_vm5, %v20206_v1  ;;  %vm4297_vm5 = vcmp.eq.s32.totalorder %v13970_v11, %v20627_v32 }
 0x5b3   :  { %10617 = vmatmul.mubr.msk.f32.gmra.mrb[40].mxu1 %vm4285_vm6, %v20206_v1 }
 0x5b4   :  { %10618 = vmatprep.mubr.msk.f32.mxu1 %vm4288_vm7, %v20206_v1 }
 0x5b6   :  { %v16371_v36 = vpop.f32.mrb[218].mxu1 }
 0x5b7   :  { %20617 = vst [vmem:[#allocation87_spill] sm:$0xff] %v16371_v36  ;;  %v16373_v10 = vpop.f32.mrb[219].mxu1  ;;  %10619 = vmatmul.mubr.msk.f32.gmra.mrb[42].mxu1 %vm4287_vm8, %v20206_v1 }
 0x5b8   :  { %20618 = vst [vmem:[#allocation92_spill] sm:$0xff] %v16373_v10  ;;  %10620 = vmatprep.mubr.msk.f32.mxu1 %vm4290_vm11, %v20206_v1 }
 0x5bb   :  { %10621 = vmatmul.mubr.msk.f32.gmra.mrb[44].mxu1 %vm4289_vm12, %v20206_v1 }
 0x5bc   :  { %10622 = vmatprep.mubr.msk.f32.mxu1 %vm4292_vm13, %v20206_v1 }
 0x5be   :  { %v16387_v9 = vpop.f32.mrb[220].mxu1 }
 0x5bf   :  { %20621 = vst [vmem:[#allocation90_spill] sm:$0xff] %v16387_v9  ;;  %v16389_v54 = vpop.f32.mrb[221].mxu1  ;;  %10623 = vmatmul.mubr.msk.f32.gmra.mrb[46].mxu1 %vm4291_vm14, %v20206_v1 }
 0x5c0   :  { %20622 = vst [vmem:[#allocation95_spill] sm:$0xff] %v16389_v54  ;;  %10624 = vmatprep.mubr.msk.f32.mxu1 %vm4294_vm15, %v20206_v1 }
 0x5c3   :  { %10625 = vmatmul.mubr.msk.f32.gmra.mrb[48].mxu1 %vm4293_vm1, %v20206_v1 }
 0x5c4   :  { %10626 = vmatprep.mubr.msk.f32.mxu1 %vm4296_vm2, %v20206_v1 }
 0x5c6   :  { %v16403_v62 = vpop.f32.mrb[222].mxu1 }
 0x5c7   :  { %20625 = vst [vmem:[#allocation93_spill] sm:$0xff] %v16403_v62  ;;  %v16405_v12 = vpop.f32.mrb[223].mxu1  ;;  %10627 = vmatmul.mubr.msk.f32.gmra.mrb[50].mxu1 %vm4295_vm3, %v20206_v1 }
 0x5c8   :  { %20626 = vst [vmem:[#allocation98_spill] sm:$0xff] %v16405_v12  ;;  %10628 = vmatprep.mubr.msk.f32.mxu1 %vm4298_vm4, %v20206_v1 }
 0x5cb   :  { %10629 = vmatmul.mubr.msk.f32.gmra.mrb[52].mxu1 %vm4297_vm5, %v20206_v1 }
 0x5ce   :  { %v16414_v61 = vpop.f32.mrb[224].mxu1 }
 0x5cf   :  { %20628 = vst [vmem:[#allocation96_spill] sm:$0xff] %v16414_v61  ;;  %v16416_v33 = vpop.f32.mrb[225].mxu1 }
 0x5d0   :  { %20629 = vst [vmem:[#allocation101_spill] sm:$0xff] %v16416_v33 }
 0x5d6   :  { %v16418_v22 = vpop.f32.mrb[226].mxu1 }
 0x5d7   :  { %20630 = vst [vmem:[#allocation99_spill] sm:$0xff] %v16418_v22  ;;  %v16420_v34 = vpop.f32.mrb[227].mxu1 }
 0x5d8   :  { %20631 = vst [vmem:[#allocation104_spill] sm:$0xff] %v16420_v34 }
 0x5de   :  { %v16422_v31 = vpop.f32.mrb[228].mxu1 }
 0x5df   :  { %20632 = vst [vmem:[#allocation102_spill] sm:$0xff] %v16422_v31  ;;  %v16424_v62 = vpop.f32.mrb[229].mxu1 }
 0x5e0   :  { %20633 = vst [vmem:[#allocation107_spill] sm:$0xff] %v16424_v62 }
 0x5e6   :  { %v16426_v12 = vpop.f32.mrb[230].mxu1 }
 0x5e7   :  { %20634 = vst [vmem:[#allocation105_spill] sm:$0xff] %v16426_v12  ;;  %v16428_v9 = vpop.f32.mrb[231].mxu1 }
 0x5e8   :  { %20635 = vst [vmem:[#allocation110_spill] sm:$0xff] %v16428_v9 }
 0x5ee   :  { %v16430_v54 = vpop.f32.mrb[232].mxu1 }
 0x5ef   :  { %20636 = vst [vmem:[#allocation108_spill] sm:$0xff] %v16430_v54  ;;  %v16432_v32 = vpop.f32.mrb[233].mxu1 }
 0x5f0   :  { %20637 = vst [vmem:[#allocation113_spill] sm:$0xff] %v16432_v32 }
 0x5f6   :  { %v16434_v36 = vpop.f32.mrb[234].mxu1 }
 0x5f7   :  { %20638 = vst [vmem:[#allocation111_spill] sm:$0xff] %v16434_v36  ;;  %v16436_v61 = vpop.f32.mrb[235].mxu1 }
 0x5f8   :  { %20639 = vst [vmem:[#allocation116_spill] sm:$0xff] %v16436_v61 }
 0x5fe   :  { %v16438_v33 = vpop.f32.mrb[236].mxu1 }
 0x5ff   :  { %20640 = vst [vmem:[#allocation114_spill] sm:$0xff] %v16438_v33  ;;  %v16440_v22 = vpop.f32.mrb[237].mxu1 }
 0x600   :  { %20641 = vst [vmem:[#allocation119_spill] sm:$0xff] %v16440_v22 }
 0x606   :  { %v16442_v34 = vpop.f32.mrb[238].mxu1 }
 0x607   :  { %20642 = vst [vmem:[#allocation117_spill] sm:$0xff] %v16442_v34  ;;  %v16444_v31 = vpop.f32.mrb[239].mxu1 }
 0x608   :  { %20643 = vst [vmem:[#allocation122_spill] sm:$0xff] %v16444_v31 }
 0x60e   :  { %v16446_v62 = vpop.f32.mrb[240].mxu1 }
 0x60f   :  { %20644 = vst [vmem:[#allocation121_spill] sm:$0xff] %v16446_v62  ;;  %v16448_v12 = vpop.f32.mrb[241].mxu1 }
 0x610   :  { %20645 = vst [vmem:[#allocation124_spill] sm:$0xff] %v16448_v12 }
 0x616   :  { %v16450_v9 = vpop.f32.mrb[242].mxu1 }
 0x617   :  { %20646 = vst [vmem:[#allocation127_spill] sm:$0xff] %v16450_v9  ;;  %v16452_v54 = vpop.f32.mrb[243].mxu1 }
 0x618   :  { %20647 = vst [vmem:[#allocation125_spill] sm:$0xff] %v16452_v54 }
 0x61e   :  { %v16454_v32 = vpop.f32.mrb[244].mxu1 }
 0x61f   :  { %20648 = vst [vmem:[#allocation130_spill] sm:$0xff] %v16454_v32  ;;  %v16456_v36 = vpop.f32.mrb[245].mxu1 }
 0x620   :  { %20649 = vst [vmem:[#allocation129_spill] sm:$0xff] %v16456_v36 }
 0x622   :  { %v4493_v61 = vpop.f32.mrb[246].mxu1 }
 0x623   :  { %v4495_v33 = vpop.f32.mrb[247].mxu1  ;;  %11767 = vmatprep.mubr.msk.f32.mxu0 %vm89_vm0, %v4493_v61 }
 0x626   :  { %v4498_v22 = vpop.f32.mrb[248].mxu1 }
 0x627   :  { %v4500_v34 = vpop.f32.mrb[249].mxu1  ;;  %11768 = vmatmul.mubr.msk.f32.vlgmr.msra.gmra.mrb[170].mxu0 %vm89_vm0, %v4498_v22 }
 0x628   :  { %12309 = vmatpush1.bf16.msra.mxu0 %v13646_v59 }
 0x629   :  { %12310 = vmatprep.subr.bf16.mxu0 %v20210_v37 }
 0x62a   :  { %v4503_v62 = vpop.f32.mrb[250].mxu1 }
 0x62b   :  { %v4505_v9 = vpop.f32.mrb[251].mxu1  ;;  %11770 = vmatprep.mubr.msk.f32.mxu0 %vm89_vm0, %v4503_v62 }
 0x62c   :  { %12312 = vmatpush1.bf16.msra.mxu0 %v13679_v4 }
 0x62d   :  { %12313 = vmatprep.subr.bf16.mxu0 %v20210_v37 }
 0x62e   :  { %v4508_v32 = vpop.f32.mrb[252].mxu1 }
 0x62f   :  { %v4510_v33 = vpop.f32.mrb[253].mxu1  ;;  %11771 = vmatmul.mubr.msk.f32.gmra.mrb[172].mxu0 %vm89_vm0, %v4508_v32 }
 0x630   :  { %12315 = vmatpush1.bf16.msra.mxu0 %v13706_v13 }
 0x631   :  { %12316 = vmatprep.subr.bf16.mxu0 %v20210_v37 }
 0x632   :  { %v4513_v61 = vpop.f32.mrb[254].mxu1 }
 0x633   :  { %v4515_v22 = vpop.f32.mrb[255].mxu1  ;;  %11773 = vmatprep.mubr.msk.f32.mxu0 %vm89_vm0, %v4513_v61 }
 0x634   :  { %12318 = vmatpush1.bf16.msra.mxu0 %v13725_v23 }
 0x635   :  { %12319 = vmatprep.subr.bf16.mxu0 %v20210_v37 }
 0x636   :  { %v4518_v9 = vpop.f32.mrb[0].mxu1 }
 0x637   :  { %v4520_v62 = vpop.f32.mrb[1].mxu1  ;;  %11774 = vmatmul.mubr.msk.f32.gmra.mrb[174].mxu0 %vm89_vm0, %v4518_v9 }
 0x638   :  { %12321 = vmatpush1.bf16.msra.mxu0 %v13745_v38 }
 0x639   :  { %12322 = vmatprep.subr.bf16.mxu0 %v20210_v37 }
 0x63a   :  { %v4523_v34 = vpop.f32.mrb[2].mxu1 }
 0x63b   :  { %v4525_v32 = vpop.f32.mrb[3].mxu1  ;;  %11776 = vmatprep.mubr.msk.f32.mxu0 %vm89_vm0, %v4523_v34 }
 0x63c   :  { %12324 = vmatpush1.bf16.msra.mxu0 %v20360_v55 }
 0x63d   :  { %12325 = vmatprep.subr.bf16.mxu0 %v20210_v37 }
 0x63e   :  { %v4528_v33 = vpop.f32.mrb[4].mxu1 }
 0x63f   :  { %v4530_v61 = vpop.f32.mrb[5].mxu1  ;;  %11777 = vmatmul.mubr.msk.f32.gmra.mrb[176].mxu0 %vm89_vm0, %v4528_v33 }
 0x640   :  { %12327 = vmatpush1.bf16.msra.mxu0 %v20363_v29 }
 0x641   :  { %12328 = vmatprep.subr.bf16.mxu0 %v20210_v37 }
 0x642   :  { %v4533_v22 = vpop.f32.mrb[6].mxu1 }
 0x643   :  { %v4535_v9 = vpop.f32.mrb[7].mxu1  ;;  %11779 = vmatprep.mubr.msk.f32.mxu0 %vm89_vm0, %v4533_v22 }
 0x644   :  { %12330 = vmatpush1.bf16.msra.mxu0 %v20364_v41 }
 0x645   :  { %12331 = vmatprep.subr.bf16.mxu0 %v20210_v37 }
 0x646   :  { %v4538_v62 = vpop.f32.mrb[8].mxu1 }
 0x647   :  { %v4540_v34 = vpop.f32.mrb[9].mxu1  ;;  %11780 = vmatmul.mubr.msk.f32.gmra.mrb[178].mxu0 %vm89_vm0, %v4538_v62 }
 0x648   :  { %12333 = vmatpush1.bf16.msra.mxu0 %v20367_v21  ;;  %v16494_v34 = vpop.permute.xlu0 %6768 }
 0x649   :  { %12334 = vmatprep.subr.bf16.mxu0 %v20210_v37  ;;  %20650 = vst [vmem:[#allocation132_spill] sm:$0xff] %v16494_v34 }
 0x64a   :  { %v4543_v32 = vpop.f32.mrb[10].mxu1 }
 0x64b   :  { %v4545_v33 = vpop.f32.mrb[11].mxu1  ;;  %11782 = vmatprep.mubr.msk.f32.mxu0 %vm89_vm0, %v4543_v32 }
 0x64c   :  { %12336 = vmatpush1.bf16.msra.mxu0 %v20370_v48 }
 0x64d   :  { %12337 = vmatprep.subr.bf16.mxu0 %v20210_v37 }
 0x64e   :  { %v4548_v61 = vpop.f32.mrb[12].mxu1 }
 0x64f   :  { %v4550_v22 = vpop.f32.mrb[13].mxu1  ;;  %11783 = vmatmul.mubr.msk.f32.gmra.mrb[180].mxu0 %vm89_vm0, %v4548_v61 }
 0x650   :  { %12339 = vmatpush1.bf16.msra.mxu0 %v20371_v20  ;;  %v16500_v22 = vpop.permute.xlu0 %6774 }
 0x651   :  { %12340 = vmatprep.subr.bf16.mxu0 %v20210_v37  ;;  %20651 = vst [vmem:[#allocation133_spill] sm:$0xff] %v16500_v22 }
 0x652   :  { %v4553_v9 = vpop.f32.mrb[14].mxu1 }
 0x653   :  { %v4555_v62 = vpop.f32.mrb[15].mxu1  ;;  %11785 = vmatprep.mubr.msk.f32.mxu0 %vm89_vm0, %v4553_v9 }
 0x654   :  { %12342 = vmatpush1.bf16.msra.mxu0 %v20375_v14 }
 0x655   :  { %12343 = vmatprep.subr.bf16.mxu0 %v20210_v37 }
 0x656   :  { %v4558_v32 = vpop.f32.mrb[16].mxu1 }
 0x657   :  { %v4560_v33 = vpop.f32.mrb[17].mxu1  ;;  %11786 = vmatmul.mubr.msk.f32.gmra.mrb[182].mxu0 %vm89_vm0, %v4558_v32  ;;  %v16507_v32 = vpop.permute.xlu0 %6780 }
 0x658   :  { %12345 = vmatpush1.bf16.msra.mxu0 %v20379_v7  ;;  %20652 = vst [vmem:[#allocation135_spill] sm:$0xff] %v16507_v32 }
 0x659   :  { %12346 = vmatprep.subr.bf16.mxu0 %v20210_v37 }
 0x65a   :  { %v4563_v61 = vpop.f32.mrb[18].mxu1 }
 0x65b   :  { %v4565_v62 = vpop.f32.mrb[19].mxu1  ;;  %11788 = vmatprep.mubr.msk.f32.mxu0 %vm89_vm0, %v4563_v61 }
 0x65c   :  { %12348 = vmatpush1.bf16.msra.mxu0 %v20381_v43  ;;  %v16513_v62 = vpop.permute.xlu0 %6786 }
 0x65d   :  { %12349 = vmatprep.subr.bf16.mxu0 %v20210_v37  ;;  %20653 = vst [vmem:[#allocation136_spill] sm:$0xff] %v16513_v62 }
 0x65e   :  { %v4568_v9 = vpop.f32.mrb[20].mxu1 }
 0x65f   :  { %v4570_v36 = vpop.f32.mrb[21].mxu1  ;;  %11789 = vmatmul.mubr.msk.f32.gmra.mrb[184].mxu0 %vm89_vm0, %v4568_v9 }
 0x660   :  { %12351 = vmatpush1.bf16.msra.mxu0 %v20385_v52  ;;  %v16517_v31 = vpop.permute.xlu0 %6792 }
 0x661   :  { %12352 = vmatprep.subr.bf16.mxu0 %v20210_v37  ;;  %20654 = vst [vmem:[#allocation137_spill] sm:$0xff] %v16517_v31 }
 0x662   :  { %v4573_v33 = vpop.f32.mrb[22].mxu1 }
 0x663   :  { %v4575_v54 = vpop.f32.mrb[23].mxu1  ;;  %11791 = vmatprep.mubr.msk.f32.mxu0 %vm89_vm0, %v4573_v33 }
 0x664   :  { %12354 = vmatpush1.bf16.msra.mxu0 %v20389_v49  ;;  %v16520_v2 = vpop.permute.xlu0 %6798 }
 0x665   :  { %12412 = vmatprep.subr.bf16.mxu0 %v14627_v35  ;;  %20655 = vst [vmem:[#allocation138_spill] sm:$0xff] %v16520_v2 }
 0x666   :  { %v4578_v61 = vpop.f32.mrb[24].mxu1 }
 0x667   :  { %v4580_v36 = vpop.f32.mrb[25].mxu1  ;;  %11792 = vmatmul.mubr.msk.f32.gmra.mrb[186].mxu0 %vm89_vm0, %v4578_v61 }
 0x668   :  { %v16524_v61 = vpop.permute.xlu0 %6804 }
 0x669   :  { %20656 = vst [vmem:[#allocation141_spill] sm:$0xff] %v16524_v61 }
 0x66a   :  { %v4583_v9 = vpop.f32.mrb[26].mxu1 }
 0x66b   :  { %v4585_v12 = vpop.f32.mrb[27].mxu1  ;;  %11794 = vmatprep.mubr.msk.f32.mxu0 %vm89_vm0, %v4583_v9 }
 0x66e   :  { %v4588_v10 = vpop.f32.mrb[28].mxu1 }
 0x66f   :  { %v4590_v54 = vpop.f32.mrb[29].mxu1  ;;  %11795 = vmatmul.mubr.msk.f32.gmra.mrb[188].mxu0 %vm89_vm0, %v4588_v10 }
 0x670   :  { %v16527_v54 = vpop.permute.xlu0 %6810 }
 0x671   :  { %20657 = vst [vmem:[#allocation139_spill] sm:$0xff] %v16527_v54  ;;  %v16537_v54 = vpop.permute.xlu1 %7610 }
 0x672   :  { %v4593_v33 = vpop.f32.mrb[30].mxu1  ;;  %20660 = vst [vmem:[#allocation13_spill] sm:$0xff] %v16537_v54 }
 0x673   :  { %v4595_v15 = vpop.f32.mrb[31].mxu1  ;;  %11797 = vmatprep.mubr.msk.f32.mxu0 %vm89_vm0, %v4593_v33 }
 0x674   :  { %v16531_v33 = vpop.permute.xlu0 %6816 }
 0x675   :  { %20658 = vst [vmem:[#allocation144_spill] sm:$0xff] %v16531_v33 }
 0x676   :  { %v4598_v58 = vpop.f32.mrb[32].mxu1 }
 0x677   :  { %v4600_v36 = vpop.f32.mrb[33].mxu1  ;;  %11798 = vmatmul.mubr.msk.f32.gmra.mrb[190].mxu0 %vm89_vm0, %v4598_v58 }
 0x67a   :  { %v4603_v12 = vpop.f32.mrb[34].mxu1 }
 0x67b   :  { %v4605_v9 = vpop.f32.mrb[35].mxu1  ;;  %11800 = vmatprep.mubr.msk.f32.mxu0 %vm89_vm0, %v4603_v12 }
 0x67c   :  { %v16534_v9 = vpop.permute.xlu0 %6822 }
 0x67d   :  { %20659 = vst [vmem:[#allocation140_spill] sm:$0xff] %v16534_v9  ;;  %v20718_v9 = vld [vmem:[#allocation154_spill] sm:$0xff] }
 0x67e   :  { %v4608_v39 = vpop.f32.mrb[36].mxu1 }
 0x67f   :  { %v4610_v10 = vpop.f32.mrb[37].mxu1  ;;  %11801 = vmatmul.mubr.msk.f32.gmra.mrb[192].mxu0 %vm89_vm0, %v4608_v39 }
 0x682   :  { %v4613_v2 = vpop.f32.mrb[38].mxu1 }
 0x683   :  { %v4615_v15 = vpop.f32.mrb[39].mxu1  ;;  %11803 = vmatprep.mubr.msk.f32.mxu0 %vm89_vm0, %v4613_v2  ;;  %v16542_v2 = vpop.permute.xlu1 %7616 }
 0x684   :  { %v16540_v15 = vpop.permute.xlu0 %6828  ;;  %20662 = vst [vmem:[#allocation146_spill] sm:$0xff] %v16542_v2 }
 0x685   :  { %20661 = vst [vmem:[#allocation142_spill] sm:$0xff] %v16540_v15  ;;  %v20666_v15 = vld [vmem:[#allocation16_spill] sm:$0xff] }
 0x686   :  { %v4618_v36 = vpop.f32.mrb[40].mxu1  ;;  %vm5102_vm6 = vcmp.eq.s32.totalorder %v13981_v26, %v20666_v15  ;;  %vm5101_vm7 = vcmp.eq.s32.totalorder %v13970_v11, %v20666_v15  ;;  %v20671_v15 = vld [vmem:[#allocation147_spill] sm:$0xff] }
 0x687   :  { %v4620_v58 = vpop.f32.mrb[41].mxu1  ;;  %11804 = vmatmul.mubr.msk.f32.gmra.mrb[194].mxu0 %vm89_vm0, %v4618_v36  ;;  %vm5106_vm12 = vcmp.eq.s32.totalorder %v13981_v26, %v20671_v15  ;;  %vm5105_vm13 = vcmp.eq.s32.totalorder %v13970_v11, %v20671_v15  ;;  %v20678_v15 = vld [vmem:[#allocation19_spill] sm:$0xff] }
 0x688   :  { %v16545_v31 = vpop.permute.xlu0 %7604  ;;  %vm5112_vm3 = vcmp.eq.s32.totalorder %v13981_v26, %v20678_v15  ;;  %vm5111_vm4 = vcmp.eq.s32.totalorder %v13970_v11, %v20678_v15  ;;  %v20685_v15 = vld [vmem:[#allocation26_spill] sm:$0xff] }
 0x689   :  { %20663 = vst [vmem:[#allocation143_spill] sm:$0xff] %v16545_v31 }
 0x68a   :  { %v4623_v61 = vpop.f32.mrb[42].mxu1 }
 0x68b   :  { %v4625_v12 = vpop.f32.mrb[43].mxu1  ;;  %11806 = vmatprep.mubr.msk.f32.mxu0 %vm89_vm0, %v4623_v61  ;;  %v16548_v61 = vpop.permute.xlu1 %7622 }
 0x68c   :  { %20664 = vst [vmem:[#allocation17_spill] sm:$0xff] %v16548_v61 }
 0x68e   :  { %v4628_v10 = vpop.f32.mrb[44].mxu1 }
 0x68f   :  { %v4630_v39 = vpop.f32.mrb[45].mxu1  ;;  %11807 = vmatmul.mubr.msk.f32.gmra.mrb[196].mxu0 %vm89_vm0, %v4628_v10  ;;  %v16551_v10 = vpop.permute.xlu0 %7613 }
 0x690   :  { %20665 = vst [vmem:[#allocation14_spill] sm:$0xff] %v16551_v10 }
 0x692   :  { %v4633_v33 = vpop.f32.mrb[46].mxu1 }
 0x693   :  { %v4635_v58 = vpop.f32.mrb[47].mxu1  ;;  %11809 = vmatprep.mubr.msk.f32.mxu0 %vm89_vm0, %v4633_v33 }
 0x694   :  { %v16555_v58 = vpop.permute.xlu1 %7628 }
 0x695   :  { %20667 = vst [vmem:[#allocation148_spill] sm:$0xff] %v16555_v58 }
 0x696   :  { %v4638_v36 = vpop.f32.mrb[48].mxu1 }
 0x697   :  { %v4640_v12 = vpop.f32.mrb[49].mxu1  ;;  %11810 = vmatmul.mubr.msk.f32.gmra.mrb[198].mxu0 %vm89_vm0, %v4638_v36  ;;  %v20668_v36 = vld [vmem:[#allocation22_spill] sm:$0xff] }
 0x698   :  { %vm5104_vm8 = vcmp.eq.s32.totalorder %v13981_v26, %v20668_v36  ;;  %v16566_v12 = vpop.permute.xlu1 %7634  ;;  %vm5103_vm11 = vcmp.eq.s32.totalorder %v13970_v11, %v20668_v36  ;;  %v20675_v36 = vld [vmem:[#allocation25_spill] sm:$0xff] }
 0x699   :  { %20670 = vst [vmem:[#allocation21_spill] sm:$0xff] %v16566_v12  ;;  %vm5110_vm1 = vcmp.eq.s32.totalorder %v13981_v26, %v20675_v36  ;;  %vm5109_vm2 = vcmp.eq.s32.totalorder %v13970_v11, %v20675_v36  ;;  %v20682_v36 = vld [vmem:[#allocation149_spill] sm:$0xff] }
 0x69a   :  { %v4643_v54 = vpop.f32.mrb[50].mxu1 }
 0x69b   :  { %v4645_v39 = vpop.f32.mrb[51].mxu1  ;;  %11812 = vmatprep.mubr.msk.f32.mxu0 %vm89_vm0, %v4643_v54  ;;  %v16564_v54 = vpop.permute.xlu0 %7619 }
 0x69c   :  { %20669 = vst [vmem:[#allocation145_spill] sm:$0xff] %v16564_v54  ;;  %v16581_v39 = vpop.permute.xlu1 %7640 }
 0x69d   :  { %20673 = vst [vmem:[#allocation20_spill] sm:$0xff] %v16581_v39 }
 0x69e   :  { %v4648_v33 = vpop.f32.mrb[52].mxu1 }
 0x69f   :  { %v4650_v2 = vpop.f32.mrb[53].mxu1  ;;  %11813 = vmatmul.mubr.msk.f32.gmra.mrb[200].mxu0 %vm89_vm0, %v4648_v33  ;;  %v20674_v33 = vld [vmem:[#allocation18_spill] sm:$0xff] }
 0x6a0   :  { %10726 = vmatprep.mubr.msk.f32.mxu0 %vm5102_vm6, %v20206_v1  ;;  %v16579_v2 = vpop.permute.xlu0 %7625  ;;  %vm5108_vm14 = vcmp.eq.s32.totalorder %v13981_v26, %v20674_v33  ;;  %vm5107_vm15 = vcmp.eq.s32.totalorder %v13970_v11, %v20674_v33  ;;  %v16596_v39 = vpop.permute.xlu1 %7646 }
 0x6a1   :  { %20672 = vst [vmem:[#allocation15_spill] sm:$0xff] %v16579_v2  ;;  %20677 = vst [vmem:[#allocation22_spill] sm:$0xff] %v16596_v39  ;;  %v20681_v39 = vld [vmem:[#allocation24_spill] sm:$0xff] }
 0x6a2   :  { %vm5114_vm5 = vcmp.eq.s32.totalorder %v13981_v26, %v20681_v39  ;;  %vm5113_vm6 = vcmp.eq.s32.totalorder %v13970_v11, %v20681_v39 }
 0x6a3   :  { %10727 = vmatmul.mubr.msk.f32.vlgmr.msra.gmra.mrb[202].mxu0 %vm5101_vm7, %v20206_v1  ;;  %vm5116_vm7 = vcmp.eq.s32.totalorder %v13981_v26, %v20682_v36 }
 0x6a4   :  { %10728 = vmatprep.mubr.msk.f32.mxu0 %vm5104_vm8, %v20206_v1  ;;  %12414 = vmatpush3.bf16.msra.mxu0 %v14627_v35  ;;  %v16594_v12 = vpop.permute.xlu0 %7631  ;;  %v16607_v58 = vpop.permute.xlu1 %7652  ;;  %vm5115_vm8 = vcmp.eq.s32.totalorder %v13970_v11, %v20682_v36  ;;  %v20689_v36 = vld [vmem:[#allocation29_spill] sm:$0xff] }
 0x6a5   :  { %12416 = vmatprep.subr.bf16.mxu0 %v14657_v42  ;;  %20676 = vst [vmem:[#allocation16_spill] sm:$0xff] %v16594_v12  ;;  %20680 = vst [vmem:[#allocation18_spill] sm:$0xff] %v16607_v58 }
 0x6a7   :  { %10729 = vmatmul.mubr.msk.f32.gmra.mrb[204].mxu0 %vm5103_vm11, %v20206_v1  ;;  %vm5118_vm11 = vcmp.eq.s32.totalorder %v13981_v26, %v20685_v15 }
 0x6a8   :  { %10730 = vmatprep.mubr.msk.f32.mxu0 %vm5106_vm12, %v20206_v1  ;;  %12418 = vmatpush3.bf16.msra.mxu0 %v14657_v42  ;;  %v16605_v33 = vpop.permute.xlu0 %7637  ;;  %v16622_v58 = vpop.permute.xlu1 %7658  ;;  %vm5117_vm12 = vcmp.eq.s32.totalorder %v13970_v11, %v20685_v15  ;;  %v20692_v15 = vld [vmem:[#allocation150_spill] sm:$0xff] }
 0x6a9   :  { %12419 = vmatprep.subr.bf16.mxu0 %v20210_v37  ;;  %20679 = vst [vmem:[#allocation147_spill] sm:$0xff] %v16605_v33  ;;  %20684 = vst [vmem:[#allocation19_spill] sm:$0xff] %v16622_v58  ;;  %v20688_v58 = vld [vmem:[#allocation23_spill] sm:$0xff] }
 0x6ab   :  { %10731 = vmatmul.mubr.msk.f32.gmra.mrb[206].mxu0 %vm5105_vm13, %v20206_v1  ;;  %vm5120_vm13 = vcmp.eq.s32.totalorder %v13981_v26, %v20688_v58 }
 0x6ac   :  { %10732 = vmatprep.mubr.msk.f32.mxu0 %vm5108_vm14, %v20206_v1  ;;  %v16620_v33 = vpop.permute.xlu0 %7643  ;;  %v16633_v12 = vpop.permute.xlu1 %7664  ;;  %vm5119_vm14 = vcmp.eq.s32.totalorder %v13970_v11, %v20688_v58 }
 0x6ad   :  { %20683 = vst [vmem:[#allocation25_spill] sm:$0xff] %v16620_v33  ;;  %20687 = vst [vmem:[#allocation149_spill] sm:$0xff] %v16633_v12 }
 0x6af   :  { %10733 = vmatmul.mubr.msk.f32.gmra.mrb[208].mxu0 %vm5107_vm15, %v20206_v1  ;;  %vm5122_vm15 = vcmp.eq.s32.totalorder %v13981_v26, %v20689_v36 }
 0x6b0   :  { %10734 = vmatprep.mubr.msk.f32.mxu0 %vm5110_vm1, %v20206_v1  ;;  %v16631_v39 = vpop.permute.xlu0 %7649  ;;  %v16648_v12 = vpop.permute.xlu1 %7670  ;;  %vm5121_vm1 = vcmp.eq.s32.totalorder %v13970_v11, %v20689_v36  ;;  %v20696_v36 = vld [vmem:[#allocation151_spill] sm:$0xff] }
 0x6b1   :  { %20686 = vst [vmem:[#allocation24_spill] sm:$0xff] %v16631_v39  ;;  %20691 = vst [vmem:[#allocation23_spill] sm:$0xff] %v16648_v12  ;;  %v20695_v12 = vld [vmem:[#allocation31_spill] sm:$0xff] }
 0x6b3   :  { %10735 = vmatmul.mubr.msk.f32.gmra.mrb[210].mxu0 %vm5109_vm2, %v20206_v1  ;;  %vm5124_vm2 = vcmp.eq.s32.totalorder %v13981_v26, %v20692_v15 }
 0x6b4   :  { %10736 = vmatprep.mubr.msk.f32.mxu0 %vm5112_vm3, %v20206_v1  ;;  %v16646_v39 = vpop.permute.xlu0 %7655  ;;  %v16659_v33 = vpop.permute.xlu1 %7676  ;;  %vm5123_vm3 = vcmp.eq.s32.totalorder %v13970_v11, %v20692_v15  ;;  %v20699_v15 = vld [vmem:[#allocation30_spill] sm:$0xff] }
 0x6b5   :  { %20690 = vst [vmem:[#allocation26_spill] sm:$0xff] %v16646_v39  ;;  %20694 = vst [vmem:[#allocation150_spill] sm:$0xff] %v16659_v33 }
 0x6b7   :  { %10737 = vmatmul.mubr.msk.f32.gmra.mrb[212].mxu0 %vm5111_vm4, %v20206_v1  ;;  %vm5126_vm4 = vcmp.eq.s32.totalorder %v13981_v26, %v20695_v12 }
 0x6b8   :  { %10738 = vmatprep.mubr.msk.f32.mxu0 %vm5114_vm5, %v20206_v1  ;;  %v16657_v58 = vpop.permute.xlu0 %7661  ;;  %vm5125_vm5 = vcmp.eq.s32.totalorder %v13970_v11, %v20695_v12  ;;  %v16674_v33 = vpop.permute.xlu1 %7682 }
 0x6b9   :  { %20693 = vst [vmem:[#allocation29_spill] sm:$0xff] %v16657_v58  ;;  %20698 = vst [vmem:[#allocation151_spill] sm:$0xff] %v16674_v33  ;;  %v20702_v33 = vld [vmem:[#allocation27_spill] sm:$0xff] }
 0x6bb   :  { %10739 = vmatmul.mubr.msk.f32.gmra.mrb[214].mxu0 %vm5113_vm6, %v20206_v1  ;;  %vm5128_vm6 = vcmp.eq.s32.totalorder %v13981_v26, %v20696_v36 }
 0x6bc   :  { %10740 = vmatprep.mubr.msk.f32.mxu0 %vm5116_vm7, %v20206_v1  ;;  %v16672_v58 = vpop.permute.xlu0 %7667  ;;  %vm5127_vm7 = vcmp.eq.s32.totalorder %v13970_v11, %v20696_v36  ;;  %v16685_v39 = vpop.permute.xlu1 %7688  ;;  %v20703_v36 = vld [vmem:[#allocation32_spill] sm:$0xff] }
 0x6bd   :  { %20697 = vst [vmem:[#allocation31_spill] sm:$0xff] %v16672_v58  ;;  %20701 = vst [vmem:[#allocation211_spill] sm:$0xff] %v16685_v39 }
 0x6bf   :  { %10741 = vmatmul.mubr.msk.f32.gmra.mrb[216].mxu0 %vm5115_vm8, %v20206_v1  ;;  %vm5130_vm8 = vcmp.eq.s32.totalorder %v13981_v26, %v20699_v15 }
 0x6c0   :  { %10742 = vmatprep.mubr.msk.f32.mxu0 %vm5118_vm11, %v20206_v1  ;;  %v16683_v12 = vpop.permute.xlu0 %7673  ;;  %vm5129_vm11 = vcmp.eq.s32.totalorder %v13970_v11, %v20699_v15  ;;  %v16700_v39 = vpop.permute.xlu1 %7694  ;;  %v20706_v15 = vld [vmem:[#allocation152_spill] sm:$0xff] }
 0x6c1   :  { %20700 = vst [vmem:[#allocation30_spill] sm:$0xff] %v16683_v12  ;;  %20705 = vst [vmem:[#allocation32_spill] sm:$0xff] %v16700_v39  ;;  %v20709_v39 = vld [vmem:[#allocation156_spill] sm:$0xff] }
 0x6c3   :  { %10743 = vmatmul.mubr.msk.f32.gmra.mrb[218].mxu0 %vm5117_vm12, %v20206_v1  ;;  %vm5132_vm12 = vcmp.eq.s32.totalorder %v13981_v26, %v20702_v33 }
 0x6c4   :  { %10744 = vmatprep.mubr.msk.f32.mxu0 %vm5120_vm13, %v20206_v1  ;;  %vm5131_vm13 = vcmp.eq.s32.totalorder %v13970_v11, %v20702_v33  ;;  %v16698_v12 = vpop.permute.xlu0 %7679  ;;  %v16711_v58 = vpop.permute.xlu1 %1958 }
 0x6c5   :  { %20704 = vst [vmem:[#allocation27_spill] sm:$0xff] %v16698_v12  ;;  %20708 = vst [vmem:[#allocation212_spill] sm:$0xff] %v16711_v58  ;;  %v3083_v54 = vadd.f32 %v16017_v56, %v16711_v58 }
 0x6c7   :  { %10745 = vmatmul.mubr.msk.f32.gmra.mrb[220].mxu0 %vm5119_vm14, %v20206_v1  ;;  %vm5134_vm14 = vcmp.eq.s32.totalorder %v13981_v26, %v20703_v36  ;;  %v3241_v56 = vmax.f32 %v3083_v54, 0.0 }
 0x6c8   :  { %10746 = vmatprep.mubr.msk.f32.mxu0 %vm5122_vm15, %v20206_v1  ;;  %vm5133_vm15 = vcmp.eq.s32.totalorder %v13970_v11, %v20703_v36  ;;  %v16709_v33 = vpop.permute.xlu0 %7685  ;;  %v20710_v36 = vld [vmem:[#allocation28_spill] sm:$0xff]  ;;  %v16726_v12 = vpop.permute.xlu1 %1962 }
 0x6c9   :  { %20707 = vst [vmem:[#allocation152_spill] sm:$0xff] %v16709_v33 }
 0x6cb   :  { %10747 = vmatmul.mubr.msk.f32.gmra.mrb[222].mxu0 %vm5121_vm1, %v20206_v1  ;;  %vm5136_vm1 = vcmp.eq.s32.totalorder %v13981_v26, %v20706_v15 }
 0x6cc   :  { %10748 = vmatprep.mubr.msk.f32.mxu0 %vm5124_vm2, %v20206_v1  ;;  %vm5135_vm2 = vcmp.eq.s32.totalorder %v13970_v11, %v20706_v15  ;;  %v16724_v33 = vpop.permute.xlu0 %7691  ;;  %v20712_v15 = vld [vmem:[#allocation158_spill] sm:$0xff]  ;;  %v16737_v2 = vpop.permute.xlu1 %1966 }
 0x6cd   :  { %20711 = vst [vmem:[#allocation156_spill] sm:$0xff] %v16724_v33  ;;  %v20714_v33 = vld [vmem:[#allocation153_spill] sm:$0xff] }
 0x6cf   :  { %10749 = vmatmul.mubr.msk.f32.gmra.mrb[224].mxu0 %vm5123_vm3, %v20206_v1  ;;  %vm5138_vm3 = vcmp.eq.s32.totalorder %v13981_v26, %v20709_v39 }
 0x6d0   :  { %10750 = vmatprep.mubr.msk.f32.mxu0 %vm5126_vm4, %v20206_v1  ;;  %vm5137_vm4 = vcmp.eq.s32.totalorder %v13970_v11, %v20709_v39  ;;  %v16735_v39 = vpop.permute.xlu0 %7697  ;;  %v16752_v61 = vpop.permute.xlu1 %1970 }
 0x6d1   :  { %20713 = vst [vmem:[#allocation28_spill] sm:$0xff] %v16735_v39  ;;  %20717 = vst [vmem:[#allocation153_spill] sm:$0xff] %v16752_v61 }
 0x6d3   :  { %10751 = vmatmul.mubr.msk.f32.gmra.mrb[226].mxu0 %vm5125_vm5, %v20206_v1  ;;  %vm5140_vm5 = vcmp.eq.s32.totalorder %v13981_v26, %v20710_v36 }
 0x6d4   :  { %10752 = vmatprep.mubr.msk.f32.mxu0 %vm5128_vm6, %v20206_v1  ;;  %vm5139_vm6 = vcmp.eq.s32.totalorder %v13970_v11, %v20710_v36  ;;  %v20715_v36 = vld [vmem:[#allocation160_spill] sm:$0xff]  ;;  %v16750_v39 = vpop.permute.xlu0 %1960  ;;  %v16767_v22 = vpop.permute.xlu1 %1974 }
 0x6d5   :  { %20716 = vst [vmem:[#allocation158_spill] sm:$0xff] %v16750_v39  ;;  %20719 = vst [vmem:[#allocation160_spill] sm:$0xff] %v16767_v22 }
 0x6d7   :  { %10753 = vmatmul.mubr.msk.f32.gmra.mrb[228].mxu0 %vm5127_vm7, %v20206_v1  ;;  %vm5142_vm7 = vcmp.eq.s32.totalorder %v13981_v26, %v20712_v15 }
 0x6d8   :  { %10754 = vmatprep.mubr.msk.f32.mxu0 %vm5130_vm8, %v20206_v1  ;;  %vm5141_vm8 = vcmp.eq.s32.totalorder %v13970_v11, %v20712_v15  ;;  %v3088_v15 = vadd.f32 %v16013_v46, %v16750_v39 }
 0x6da   :  { %v3242_v46 = vmax.f32 %v3088_v15, 0.0 }
 0x6db   :  { %10755 = vmatmul.mubr.msk.f32.gmra.mrb[230].mxu0 %vm5129_vm11, %v20206_v1  ;;  %vm5144_vm11 = vcmp.eq.s32.totalorder %v13981_v26, %v20714_v33 }
 0x6dc   :  { %10756 = vmatprep.mubr.msk.f32.mxu0 %vm5132_vm12, %v20206_v1  ;;  %vm5143_vm12 = vcmp.eq.s32.totalorder %v13970_v11, %v20714_v33 }
 0x6df   :  { %10757 = vmatmul.mubr.msk.f32.gmra.mrb[232].mxu0 %vm5131_vm13, %v20206_v1  ;;  %vm5146_vm13 = vcmp.eq.s32.totalorder %v13981_v26, %v20715_v36 }
 0x6e0   :  { %10758 = vmatprep.mubr.msk.f32.mxu0 %vm5134_vm14, %v20206_v1  ;;  %vm5145_vm14 = vcmp.eq.s32.totalorder %v13970_v11, %v20715_v36 }
 0x6e3   :  { %10759 = vmatmul.mubr.msk.f32.gmra.mrb[234].mxu0 %vm5133_vm15, %v20206_v1  ;;  %vm5148_vm15 = vcmp.eq.s32.totalorder %v13981_v26, %v20718_v9 }
 0x6e4   :  { %10760 = vmatprep.mubr.msk.f32.mxu0 %vm5136_vm1, %v20206_v1  ;;  %vm5147_vm1 = vcmp.eq.s32.totalorder %v13970_v11, %v20718_v9 }
 0x6e7   :  { %10761 = vmatmul.mubr.msk.f32.gmra.mrb[236].mxu0 %vm5135_vm2, %v20206_v1 }
 0x6e8   :  { %10762 = vmatprep.mubr.msk.f32.mxu0 %vm5138_vm3, %v20206_v1 }
 0x6eb   :  { %10763 = vmatmul.mubr.msk.f32.gmra.mrb[238].mxu0 %vm5137_vm4, %v20206_v1 }
 0x6ec   :  { %10764 = vmatprep.mubr.msk.f32.mxu0 %vm5140_vm5, %v20206_v1 }
 0x6ef   :  { %10765 = vmatmul.mubr.msk.f32.gmra.mrb[240].mxu0 %vm5139_vm6, %v20206_v1 }
 0x6f0   :  { %10766 = vmatprep.mubr.msk.f32.mxu0 %vm5142_vm7, %v20206_v1 }
 0x6f3   :  { %10767 = vmatmul.mubr.msk.f32.gmra.mrb[242].mxu0 %vm5141_vm8, %v20206_v1 }
 0x6f4   :  { %10768 = vmatprep.mubr.msk.f32.mxu0 %vm5144_vm11, %v20206_v1 }
 0x6f7   :  { %10769 = vmatmul.mubr.msk.f32.gmra.mrb[244].mxu0 %vm5143_vm12, %v20206_v1 }
 0x6f8   :  { %10770 = vmatprep.mubr.msk.f32.mxu0 %vm5146_vm13, %v20206_v1 }
 0x6fa   :  { %v11769_v10 = vpop.f32.mrb[170].mxu0 }
 0x6fb   :  { %v4820_v33 = vadd.f32 %v11769_v10, %v16750_v39  ;;  %v4814_v31 = vpop.f32.mrb[171].mxu0  ;;  %10771 = vmatmul.mubr.msk.f32.gmra.mrb[246].mxu0 %vm5145_vm14, %v20206_v1  ;;  %v20720_v10 = vld [vmem:[#allocation162_spill] sm:$0xff]  ;;  %v16774_v39 = vpop.permute.xlu0 %1964 }
 0x6fc   :  { %v4815_v62 = vadd.f32 %v4814_v31, %v16711_v58  ;;  %10772 = vmatprep.mubr.msk.f32.mxu0 %vm5148_vm15, %v20206_v1  ;;  %vm5150_vm2 = vcmp.eq.s32.totalorder %v13981_v26, %v20720_v10  ;;  %20721 = vst [vmem:[#allocation154_spill] sm:$0xff] %v16774_v39  ;;  %v3098_v15 = vadd.f32 %v16029_v50, %v16774_v39 }
 0x6fd   :  { %v4974_v32 = vmax.f32 %v4820_v33, 0.0  ;;  %vm5149_vm3 = vcmp.eq.s32.totalorder %v13970_v11, %v20720_v10  ;;  %v20722_v33 = vld [vmem:[#allocation155_spill] sm:$0xff] }
 0x6fe   :  { %v4973_v34 = vmax.f32 %v4815_v62, 0.0  ;;  %v3093_v62 = vadd.f32 %v16033_v17, %v16726_v12  ;;  %vm5152_vm4 = vcmp.eq.s32.totalorder %v13981_v26, %v20722_v33  ;;  %vm5151_vm5 = vcmp.eq.s32.totalorder %v13970_v11, %v20722_v33 }
 0x6ff   :  { %10773 = vmatmul.mubr.msk.f32.gmra.mrb[248].mxu0 %vm5147_vm1, %v20206_v1  ;;  %v12785_v36 = vpack.i.bf16 %v3242_v46, %v4974_v32  ;;  %v3244_v46 = vmax.f32 %v3098_v15, 0.0 }
 0x700   :  { %10774 = vmatprep.mubr.msk.f32.mxu0 %vm5150_vm2, %v20206_v1  ;;  %v12790_v31 = vpack.i.bf16 %v3241_v56, %v4973_v34  ;;  %v16788_v34 = vpop.permute.xlu1 %1978  ;;  %v3243_v56 = vmax.f32 %v3093_v62, 0.0  ;;  %v3103_v62 = vadd.f32 %v16049_v57, %v16737_v2 }
 0x701   :  { %12786 = vrot.lane.b32.xlu1 %v12785_v36, %s13288_s13  ;;  %20723 = vst [vmem:[#allocation162_spill] sm:$0xff] %v16788_v34  ;;  %v20724_v36 = vld [vmem:[#allocation2_spill] sm:$0xff] }
 0x702   :  { %v11772_v9 = vpop.f32.mrb[172].mxu0  ;;  %vm5154_vm6 = vcmp.eq.s32.totalorder %v13981_v26, %v20724_v36  ;;  %vm5153_vm7 = vcmp.eq.s32.totalorder %v13970_v11, %v20724_v36  ;;  %v3245_v57 = vmax.f32 %v3103_v62, 0.0  ;;  %v20728_v36 = vld [vmem:[#allocation3_spill] sm:$0xff]  ;;  %v3113_v62 = vadd.f32 %v16065_v16, %v16752_v61 }
 0x703   :  { %v4830_v54 = vadd.f32 %v11772_v9, %v16774_v39  ;;  %v4824_v32 = vpop.f32.mrb[173].mxu0  ;;  %10775 = vmatmul.mubr.msk.f32.gmra.mrb[250].mxu0 %vm5149_vm3, %v20206_v1  ;;  %v16798_v39 = vpop.permute.xlu0 %1968  ;;  %vm5158_vm12 = vcmp.eq.s32.totalorder %v13981_v26, %v20728_v36  ;;  %vm5157_vm13 = vcmp.eq.s32.totalorder %v13970_v11, %v20728_v36 }
 0x704   :  { %v4825_v50 = vadd.f32 %v4824_v32, %v16726_v12  ;;  %10776 = vmatprep.mubr.msk.f32.mxu0 %vm5152_vm4, %v20206_v1  ;;  %20725 = vst [vmem:[#allocation155_spill] sm:$0xff] %v16798_v39  ;;  %v3108_v15 = vadd.f32 %v16045_v40, %v16798_v39 }
 0x705   :  { %v4976_v17 = vmax.f32 %v4830_v54, 0.0  ;;  %12791 = vrot.lane.b32.xlu1 %v12790_v31, %s13288_s13  ;;  %v16804_v31 = vpop.permute.xlu1 %1982 }
 0x706   :  { %v4975_v10 = vmax.f32 %v4825_v50, 0.0  ;;  %20726 = vst [vmem:[#allocation2_spill] sm:$0xff] %v16804_v31 }
 0x707   :  { %10777 = vmatmul.mubr.msk.f32.gmra.mrb[252].mxu0 %vm5151_vm5, %v20206_v1  ;;  %v12795_v9 = vpack.i.bf16 %v3244_v46, %v4976_v17  ;;  %v20727_v46 = vld [vmem:[#allocation157_spill] sm:$0xff]  ;;  %v3246_v17 = vmax.f32 %v3108_v15, 0.0 }
 0x708   :  { %10778 = vmatprep.mubr.msk.f32.mxu0 %vm5154_vm6, %v20206_v1  ;;  %v12800_v32 = vpack.i.bf16 %v3243_v56, %v4975_v10  ;;  %vm5156_vm8 = vcmp.eq.s32.totalorder %v13981_v26, %v20727_v46  ;;  %vm5155_vm11 = vcmp.eq.s32.totalorder %v13970_v11, %v20727_v46 }
 0x709   :  { %12796 = vrot.lane.b32.xlu1 %v12795_v9, %s13288_s13 }
 0x70a   :  { %v11775_v54 = vpop.f32.mrb[174].mxu0 }
 0x70b   :  { %v4840_v33 = vadd.f32 %v11775_v54, %v16798_v39  ;;  %v4834_v50 = vpop.f32.mrb[175].mxu0  ;;  %10779 = vmatmul.mubr.msk.f32.gmra.mrb[254].mxu0 %vm5153_vm7, %v20206_v1  ;;  %v16822_v54 = vpop.permute.xlu0 %1972 }
 0x70c   :  { %v4835_v40 = vadd.f32 %v4834_v50, %v16737_v2  ;;  %10780 = vmatprep.mubr.msk.f32.mxu0 %vm5156_vm8, %v20206_v1  ;;  %20729 = vst [vmem:[#allocation157_spill] sm:$0xff] %v16822_v54  ;;  %v16824_v50 = vpop.permute.xlu1 %1986 }
 0x70d   :  { %v4978_v56 = vmax.f32 %v4840_v33, 0.0  ;;  %12801 = vrot.lane.b32.xlu1 %v12800_v32, %s13288_s13  ;;  %20730 = vst [vmem:[#allocation3_spill] sm:$0xff] %v16824_v50  ;;  %v3118_v32 = vadd.f32 %v16061_v47, %v16822_v54 }
 0x70e   :  { %v4977_v10 = vmax.f32 %v4835_v40, 0.0 }
 0x70f   :  { %10781 = vmatmul.mubr.msk.f32.gmra.mrb[0].mxu0 %vm5155_vm11, %v20206_v1  ;;  %v12805_v9 = vpack.i.bf16 %v3246_v17, %v4978_v56  ;;  %v20731_v17 = vld [vmem:[#allocation159_spill] sm:$0xff]  ;;  %v3248_v47 = vmax.f32 %v3118_v32, 0.0 }
 0x710   :  { %10782 = vmatprep.mubr.msk.f32.mxu0 %vm5158_vm12, %v20206_v1  ;;  %v12810_v15 = vpack.i.bf16 %v3245_v57, %v4977_v10  ;;  %vm5160_vm14 = vcmp.eq.s32.totalorder %v13981_v26, %v20731_v17  ;;  %vm5159_vm15 = vcmp.eq.s32.totalorder %v13970_v11, %v20731_v17  ;;  %v16843_v16 = vpop.permute.xlu1 %1988  ;;  %v3247_v10 = vmax.f32 %v3113_v62, 0.0 }
 0x711   :  { %12806 = vrot.lane.b32.xlu1 %v12805_v9, %s13288_s13  ;;  %20732 = vst [vmem:[#allocation159_spill] sm:$0xff] %v16843_v16  ;;  %v20733_v9 = vld [vmem:[#allocation5_spill] sm:$0xff]  ;;  %v3123_v62 = vadd.f32 %v16081_v24, %v16767_v22 }
 0x712   :  { %v11778_v33 = vpop.f32.mrb[176].mxu0  ;;  %vm5162_vm1 = vcmp.eq.s32.totalorder %v13981_v26, %v20733_v9  ;;  %vm5161_vm2 = vcmp.eq.s32.totalorder %v13970_v11, %v20733_v9 }
 0x713   :  { %v4850_v46 = vadd.f32 %v11778_v33, %v16822_v54  ;;  %v4844_v40 = vpop.f32.mrb[177].mxu0  ;;  %10783 = vmatmul.mubr.msk.f32.gmra.mrb[2].mxu0 %vm5157_vm13, %v20206_v1  ;;  %v3249_v24 = vmax.f32 %v3123_v62, 0.0 }
 0x714   :  { %v4845_v56 = vadd.f32 %v4844_v40, %v16752_v61  ;;  %10784 = vmatprep.mubr.msk.f32.mxu0 %vm5160_vm14, %v20206_v1  ;;  %v16848_v40 = vpop.permute.xlu0 %1976 }
 0x715   :  { %v4980_v57 = vmax.f32 %v4850_v46, 0.0  ;;  %12811 = vrot.lane.b32.xlu1 %v12810_v15, %s13288_s13  ;;  %20734 = vst [vmem:[#allocation5_spill] sm:$0xff] %v16848_v40  ;;  %v3128_v15 = vadd.f32 %v16077_v3, %v16848_v40  ;;  %v16863_v3 = vpop.permute.xlu1 %1990 }
 0x716   :  { %v4979_v36 = vmax.f32 %v4845_v56, 0.0 }
 0x717   :  { %10785 = vmatmul.mubr.msk.f32.gmra.mrb[4].mxu0 %vm5159_vm15, %v20206_v1  ;;  %v12815_v33 = vpack.i.bf16 %v3248_v47, %v4980_v57  ;;  %v20735_v47 = vld [vmem:[#allocation161_spill] sm:$0xff] }
 0x718   :  { %10786 = vmatprep.mubr.msk.f32.mxu0 %vm5162_vm1, %v20206_v1  ;;  %v12820_v32 = vpack.i.bf16 %v3247_v10, %v4979_v36  ;;  %vm5164_vm3 = vcmp.eq.s32.totalorder %v13981_v26, %v20735_v47  ;;  %20736 = vst [vmem:[#allocation161_spill] sm:$0xff] %v16863_v3  ;;  %v3250_v10 = vmax.f32 %v3128_v15, 0.0  ;;  %vm5163_vm4 = vcmp.eq.s32.totalorder %v13970_v11, %v20735_v47 }
 0x719   :  { %12816 = vrot.lane.b32.xlu0 %v12815_v33, %s13288_s13  ;;  %v3133_v15 = vadd.f32 %v16092_v60, %v16788_v34 }
 0x71a   :  { %v11781_v46 = vpop.f32.mrb[178].mxu0  ;;  %12821 = vrot.lane.b32.xlu1 %v12820_v32, %s13288_s13  ;;  %v16872_v32 = vpop.permute.xlu0 %1980 }
 0x71b   :  { %v4860_v17 = vadd.f32 %v11781_v46, %v16848_v40  ;;  %v4854_v56 = vpop.f32.mrb[179].mxu0  ;;  %10787 = vmatmul.mubr.msk.f32.gmra.mrb[6].mxu0 %vm5161_vm2, %v20206_v1  ;;  %20737 = vst [vmem:[#allocation213_spill] sm:$0xff] %v16872_v32  ;;  %v16878_v40 = vpop.permute.xlu1 %1992 }
 0x71c   :  { %v4855_v57 = vadd.f32 %v4854_v56, %v16767_v22  ;;  %10788 = vmatprep.mubr.msk.f32.mxu0 %vm5164_vm3, %v20206_v1  ;;  %v3138_v56 = vadd.f32 %v16090_v44, %v16872_v32  ;;  %20738 = vst [vmem:[#allocation214_spill] sm:$0xff] %v16878_v40  ;;  %v3251_v22 = vmax.f32 %v3133_v15, 0.0 }
 0x71d   :  { %v4982_v36 = vmax.f32 %v4860_v17, 0.0 }
 0x71e   :  { %v4981_v9 = vmax.f32 %v4855_v57, 0.0 }
 0x71f   :  { %10789 = vmatmul.mubr.msk.f32.gmra.mrb[8].mxu0 %vm5163_vm4, %v20206_v1  ;;  %v16870_v33 = vpack.i.bf16 %v3250_v10, %v4982_v36  ;;  %v3252_v10 = vmax.f32 %v3138_v56, 0.0  ;;  %v16888_v44 = vpop.permute.xlu1 %1994 }
 0x720   :  { %v16874_v46 = vpack.i.bf16 %v3249_v24, %v4981_v9  ;;  %v16886_v9 = vpop.permute.xlu0 %1984 }
 0x721   :  { %20739 = vst [vmem:[#allocation215_spill] sm:$0xff] %v16886_v9  ;;  %v3148_v60 = vadd.f32 %v16094_v63, %v16886_v9  ;;  %v3158_v63 = vadd.f32 %v16098_v53, %v16843_v16 }
 0x722   :  { %v11784_v17 = vpop.f32.mrb[180].mxu0 }
 0x723   :  { %v4870_v62 = vadd.f32 %v11784_v17, %v16872_v32  ;;  %v4864_v47 = vpop.f32.mrb[181].mxu0  ;;  %v3143_v17 = vadd.f32 %v16096_v6, %v16804_v31  ;;  %v3153_v6 = vadd.f32 %v16100_v28, %v16824_v50 }
 0x724   :  { %v4865_v57 = vadd.f32 %v4864_v47, %v16788_v34  ;;  %v3254_v47 = vmax.f32 %v3148_v60, 0.0  ;;  %v16911_v60 = vld [vmem:[%s19746_s7] ss:$0 sm:$0xff] }
 0x725   :  { %v4984_v36 = vmax.f32 %v4870_v62, 0.0  ;;  %v3255_v28 = vmax.f32 %v3153_v6, 0.0  ;;  %v3163_v6 = vadd.f32 %v16104_v51, %v16863_v3 }
 0x726   :  { %v4983_v54 = vmax.f32 %v4865_v57, 0.0 }
 0x727   :  { %v16884_v24 = vpack.i.bf16 %v3252_v10, %v4984_v36  ;;  %v16898_v10 = vpop.permute.xlu1 %1998  ;;  %v3253_v36 = vmax.f32 %v3143_v17, 0.0 }
 0x728   :  { %v16890_v61 = vpack.i.bf16 %v3251_v22, %v4983_v54 }
 0x72a   :  { %v11787_v32 = vpop.f32.mrb[182].mxu0 }
 0x72b   :  { %v4880_v56 = vadd.f32 %v11787_v32, %v16886_v9  ;;  %v4874_v62 = vpop.f32.mrb[183].mxu0 }
 0x72c   :  { %v4875_v15 = vadd.f32 %v4874_v62, %v16804_v31 }
 0x72d   :  { %v4986_v57 = vmax.f32 %v4880_v56, 0.0  ;;  %v20740_v56 = vld [vmem:[#allocation82_spill] sm:$0xff] }
 0x72e   :  { %v4985_v34 = vmax.f32 %v4875_v15, 0.0  ;;  %v16915_v17 = vadd.f32 %v16911_v60, %v20740_v56  ;;  %v16918_v15 = vpop.permute.xlu1 %2000  ;;  %v20742_v56 = vld [vmem:[#allocation76_spill] sm:$0xff] }
 0x72f   :  { %v16900_v22 = vpack.i.bf16 %v3254_v47, %v4986_v57  ;;  %v3256_v47 = vmax.f32 %v3158_v63, 0.0  ;;  %v3168_v63 = vadd.f32 %v16102_v27, %v16878_v40 }
 0x730   :  { %v16902_v54 = vpack.i.bf16 %v3253_v36, %v4985_v34  ;;  %20741 = vst [vmem:[#allocation82_spill] sm:$0xff] %v16915_v17  ;;  %v936_v9 = vsel %vm860_vm10, %v16915_v17, -inf }
 0x732   :  { %v11790_v32 = vpop.f32.mrb[184].mxu0 }
 0x733   :  { %v4890_v62 = vadd.f32 %v11790_v32, %v16843_v16  ;;  %v4884_v34 = vpop.f32.mrb[185].mxu0  ;;  %v16929_v32 = vadd.f32 %v16911_v60, %v20742_v56  ;;  %v16931_v16 = vpop.xlane.xlu0 %862  ;;  %v3257_v56 = vmax.f32 %v3163_v6, 0.0 }
 0x734   :  { %v4885_v53 = vadd.f32 %v4884_v34, %v16824_v50  ;;  %20744 = vst [vmem:[#allocation216_spill] sm:$0xff] %v16931_v16 }
 0x735   :  { %v4988_v57 = vmax.f32 %v4890_v62, 0.0  ;;  %20743 = vst [vmem:[#allocation76_spill] sm:$0xff] %v16929_v32  ;;  %v16935_v62 = vpop.permute.xlu1 %2002 }
 0x736   :  { %v4987_v36 = vmax.f32 %v4885_v53, 0.0 }
 0x737   :  { %v16923_v31 = vpack.i.bf16 %v3256_v47, %v4988_v57  ;;  %v3258_v57 = vmax.f32 %v3168_v63, 0.0  ;;  %v16943_v16 = vpop.permute.xlu0 %1996  ;;  %v3173_v63 = vadd.f32 %v16108_v18, %v16888_v44  ;;  %v3183_v18 = vadd.f32 %v16112_v25, %v16898_v10 }
 0x738   :  { %937 = vmax.xlane.f32.xlu0 %v936_v9  ;;  %v16925_v39 = vpack.i.bf16 %v3255_v28, %v4987_v36  ;;  %v933_v36 = vsel %vm860_vm10, %v16929_v32, -inf  ;;  %20745 = vst [vmem:[#allocation217_spill] sm:$0xff] %v16943_v16 }
 0x739   :  { %v16945_v50 = vpop.permute.xlu1 %2004 }
 0x73a   :  { %v11793_v34 = vpop.f32.mrb[186].mxu0  ;;  %v3198_v25 = vadd.f32 %v16114_v5, %v16945_v50 }
 0x73b   :  { %v4900_v53 = vadd.f32 %v11793_v34, %v16878_v40  ;;  %v4894_v9 = vpop.f32.mrb[187].mxu0  ;;  %v3178_v34 = vadd.f32 %v16106_v30, %v16943_v16  ;;  %v3188_v30 = vadd.f32 %v16110_v45, %v16918_v15 }
 0x73c   :  { %v4895_v47 = vadd.f32 %v4894_v9, %v16863_v3 }
 0x73d   :  { %v4990_v28 = vmax.f32 %v4900_v53, 0.0 }
 0x73e   :  { %v4989_v17 = vmax.f32 %v4895_v47, 0.0  ;;  %934 = vmax.xlane.f32.xlu1 %v933_v36  ;;  %v3260_v47 = vmax.f32 %v3178_v34, 0.0  ;;  %v3259_v36 = vmax.f32 %v3173_v63, 0.0 }
 0x73f   :  { %v12865_v27 = vpack.i.bf16 %v3258_v57, %v4990_v28  ;;  %v16955_v28 = vpop.permute.xlu1 %2006 }
 0x740   :  { %v16947_v51 = vpack.i.bf16 %v3257_v56, %v4989_v17 }
 0x742   :  { %v11796_v53 = vpop.f32.mrb[188].mxu0 }
 0x743   :  { %v4910_v9 = vadd.f32 %v11796_v53, %v16943_v16  ;;  %v4904_v32 = vpop.f32.mrb[189].mxu0 }
 0x744   :  { %v4905_v6 = vadd.f32 %v4904_v32, %v16888_v44  ;;  %v16964_v32 = vpop.permute.xlu1 %2008 }
 0x745   :  { %v4992_v57 = vmax.f32 %v4910_v9, 0.0  ;;  %v3262_v9 = vmax.f32 %v3188_v30, 0.0  ;;  %v3264_v30 = vmax.f32 %v3198_v25, 0.0 }
 0x746   :  { %v4991_v40 = vmax.f32 %v4905_v6, 0.0  ;;  %v3261_v6 = vmax.f32 %v3183_v18, 0.0 }
 0x747   :  { %v12875_v17 = vpack.i.bf16 %v3260_v47, %v4992_v57 }
 0x748   :  { %v16957_v56 = vpack.i.bf16 %v3259_v36, %v4991_v40 }
 0x74a   :  { %v11799_v3 = vpop.f32.mrb[190].mxu0 }
 0x74b   :  { %v4920_v53 = vadd.f32 %v11799_v3, %v16918_v15  ;;  %v4914_v16 = vpop.f32.mrb[191].mxu0  ;;  %v16974_v3 = vpop.permute.xlu1 %2010 }
 0x74c   :  { %v4915_v34 = vadd.f32 %v4914_v16, %v16898_v10  ;;  %v3193_v16 = vadd.f32 %v16116_v0, %v16935_v62 }
 0x74d   :  { %v4994_v63 = vmax.f32 %v4920_v53, 0.0 }
 0x74e   :  { %v4993_v47 = vmax.f32 %v4915_v34, 0.0  ;;  %12826 = vrot.lane.b32.xlu0 %v16870_v33, %s13288_s13  ;;  %v3263_v53 = vmax.f32 %v3193_v16, 0.0 }
 0x74f   :  { %12866 = vrot.lane.b32.xlu1 %v12865_v27, %s13288_s13  ;;  %v12885_v45 = vpack.i.bf16 %v3262_v9, %v4994_v63  ;;  %v16986_v34 = vpop.permute.xlu1 %2012  ;;  %v3208_v9 = vadd.f32 %v16118_v8, %v16964_v32 }
 0x750   :  { %v16970_v40 = vpack.i.bf16 %v3261_v6, %v4993_v47 }
 0x752   :  { %v11802_v57 = vpop.f32.mrb[192].mxu0  ;;  %12831 = vrot.lane.b32.xlu0 %v16874_v46, %s13288_s13 }
 0x753   :  { %v4930_v36 = vadd.f32 %v11802_v57, %v16945_v50  ;;  %v4924_v33 = vpop.f32.mrb[193].mxu0  ;;  %12876 = vrot.lane.b32.xlu1 %v12875_v17, %s13288_s13  ;;  %v3203_v17 = vadd.f32 %v16120_v19, %v16955_v28  ;;  %v16999_v16 = vpop.permute.xlu1 %2014 }
 0x754   :  { %v4925_v27 = vadd.f32 %v4924_v33, %v16935_v62 }
 0x755   :  { %v4996_v18 = vmax.f32 %v4930_v36, 0.0  ;;  %v3265_v57 = vmax.f32 %v3203_v17, 0.0 }
 0x756   :  { %v4995_v5 = vmax.f32 %v4925_v27, 0.0  ;;  %12836 = vrot.lane.b32.xlu0 %v16884_v24, %s13288_s13  ;;  %v20747_v27 = vld [vmem:[#allocation75_spill] sm:$0xff] }
 0x757   :  { %12886 = vrot.lane.b32.xlu1 %v12885_v45, %s13288_s13  ;;  %v12895_v0 = vpack.i.bf16 %v3264_v30, %v4996_v18  ;;  %v3266_v45 = vmax.f32 %v3208_v9, 0.0  ;;  %v3213_v30 = vadd.f32 %v20747_v27, %v16974_v3 }
 0x758   :  { %v16988_v46 = vpack.i.bf16 %v3263_v53, %v4995_v5 }
 0x75a   :  { %v11805_v63 = vpop.f32.mrb[194].mxu0  ;;  %12841 = vrot.lane.b32.xlu0 %v16890_v61, %s13288_s13  ;;  %v20746_v61 = vld [vmem:[#allocation74_spill] sm:$0xff] }
 0x75b   :  { %v4940_v6 = vadd.f32 %v11805_v63, %v16964_v32  ;;  %v4934_v24 = vpop.f32.mrb[195].mxu0  ;;  %12896 = vrot.lane.b32.xlu1 %v12895_v0, %s13288_s13  ;;  %v3218_v33 = vadd.f32 %v20746_v61, %v16986_v34  ;;  %v17011_v0 = vpop.permute.xlu1 %2016  ;;  %v3267_v63 = vmax.f32 %v3213_v30, 0.0 }
 0x75c   :  { %v4935_v47 = vadd.f32 %v4934_v24, %v16955_v28 }
 0x75d   :  { %v4998_v25 = vmax.f32 %v4940_v6, 0.0  ;;  %v3268_v9 = vmax.f32 %v3218_v33, 0.0 }
 0x75e   :  { %v4997_v8 = vmax.f32 %v4935_v47, 0.0  ;;  %12846 = vrot.lane.b32.xlu0 %v16900_v22, %s13288_s13 }
 0x75f   :  { %v12905_v19 = vpack.i.bf16 %v3266_v45, %v4998_v25  ;;  %v20748_v45 = vld [vmem:[#allocation77_spill] sm:$0xff] }
 0x760   :  { %v12910_v36 = vpack.i.bf16 %v3265_v57, %v4997_v8  ;;  %v3228_v25 = vadd.f32 %v20748_v45, %v17011_v0  ;;  %v20749_v57 = vld [vmem:[#allocation80_spill] sm:$0xff] }
 0x761   :  { %12906 = vrot.lane.b32.xlu1 %v12905_v19, %s13288_s13  ;;  %v3223_v8 = vadd.f32 %v20749_v57, %v16999_v16 }
 0x762   :  { %v11808_v18 = vpop.f32.mrb[196].mxu0  ;;  %12851 = vrot.lane.b32.xlu0 %v16902_v54, %s13288_s13  ;;  %v17019_v54 = vpop.permute.xlu1 %2018  ;;  %v3270_v27 = vmax.f32 %v3228_v25, 0.0 }
 0x763   :  { %v4950_v53 = vadd.f32 %v11808_v18, %v16986_v34  ;;  %v4944_v5 = vpop.f32.mrb[197].mxu0  ;;  %v3269_v18 = vmax.f32 %v3223_v8, 0.0 }
 0x764   :  { %v4945_v22 = vadd.f32 %v4944_v5, %v16974_v3 }
 0x765   :  { %v5000_v17 = vmax.f32 %v4950_v53, 0.0 }
 0x766   :  { %v4999_v6 = vmax.f32 %v4945_v22, 0.0  ;;  %12856 = vrot.lane.b32.xlu0 %v16923_v31, %s13288_s13  ;;  %v17029_v22 = vpop.permute.xlu1 %2020 }
 0x767   :  { %v12915_v24 = vpack.i.bf16 %v3268_v9, %v5000_v17  ;;  %v20750_v17 = vld [vmem:[#allocation78_spill] sm:$0xff] }
 0x768   :  { %v12920_v47 = vpack.i.bf16 %v3267_v63, %v4999_v6  ;;  %v3238_v63 = vadd.f32 %v20750_v17, %v17029_v22 }
 0x769   :  { %12916 = vrot.lane.b32.xlu1 %v12915_v24, %s13288_s13 }
 0x76a   :  { %v11811_v19 = vpop.f32.mrb[198].mxu0  ;;  %12861 = vrot.lane.b32.xlu0 %v16925_v39, %s13288_s13  ;;  %v20751_v39 = vld [vmem:[#allocation83_spill] sm:$0xff]  ;;  %v3272_v57 = vmax.f32 %v3238_v63, 0.0 }
 0x76b   :  { %v4960_v61 = vadd.f32 %v11811_v19, %v17011_v0  ;;  %v4954_v33 = vpop.f32.mrb[199].mxu0  ;;  %v3233_v6 = vadd.f32 %v20751_v39, %v17019_v54 }
 0x76c   :  { %v4955_v31 = vadd.f32 %v4954_v33, %v16999_v16 }
 0x76d   :  { %v5002_v30 = vmax.f32 %v4960_v61, 0.0  ;;  %v3271_v19 = vmax.f32 %v3233_v6, 0.0 }
 0x76e   :  { %v5001_v53 = vmax.f32 %v4955_v31, 0.0  ;;  %12871 = vrot.lane.b32.xlu0 %v16947_v51, %s13288_s13 }
 0x76f   :  { %v12925_v5 = vpack.i.bf16 %v3270_v27, %v5002_v30 }
 0x770   :  { %v12930_v9 = vpack.i.bf16 %v3269_v18, %v5001_v53 }
 0x771   :  { %12926 = vrot.lane.b32.xlu1 %v12925_v5, %s13288_s13 }
 0x772   :  { %v11814_v24 = vpop.f32.mrb[200].mxu0  ;;  %12881 = vrot.lane.b32.xlu0 %v16957_v56, %s13288_s13 }
 0x773   :  { %v4970_v45 = vadd.f32 %v11814_v24, %v17029_v22  ;;  %v4964_v25 = vpop.f32.mrb[201].mxu0 }
 0x774   :  { %v4965_v51 = vadd.f32 %v4964_v25, %v17019_v54 }
 0x775   :  { %v5004_v8 = vmax.f32 %v4970_v45, 0.0 }
 0x776   :  { %v5003_v61 = vmax.f32 %v4965_v51, 0.0  ;;  %v5359_v33 = vpop.f32.mrb[202].mxu0  ;;  %12891 = vrot.lane.b32.xlu0 %v16970_v40, %s13288_s13 }
 0x777   :  { %v5361_v31 = vpop.f32.mrb[203].mxu0  ;;  %11823 = vmatprep.mubr.msk.f32.mxu1 %vm89_vm0, %v5359_v33  ;;  %v17043_v27 = vpack.i.bf16 %v3272_v57, %v5004_v8 }
 0x778   :  { %v12940_v30 = vpack.i.bf16 %v3271_v19, %v5003_v61 }
 0x77a   :  { %v5364_v56 = vpop.f32.mrb[204].mxu0  ;;  %12901 = vrot.lane.b32.xlu0 %v16988_v46, %s13288_s13 }
 0x77b   :  { %v5366_v18 = vpop.f32.mrb[205].mxu0  ;;  %11824 = vmatmul.mubr.msk.f32.vlgmr.msra.gmra.mrb[54].mxu1 %vm89_vm0, %v5364_v56 }
 0x77c   :  { %12365 = vmatpush1.bf16.msra.mxu1 %v13646_v59 }
 0x77d   :  { %12366 = vmatprep.subr.bf16.mxu1 %v20210_v37 }
 0x77e   :  { %v5369_v53 = vpop.f32.mrb[206].mxu0  ;;  %12911 = vrot.lane.b32.xlu0 %v12910_v36, %s13288_s13 }
 0x77f   :  { %v5371_v40 = vpop.f32.mrb[207].mxu0  ;;  %11826 = vmatprep.mubr.msk.f32.mxu1 %vm89_vm0, %v5369_v53 }
 0x780   :  { %12368 = vmatpush1.bf16.msra.mxu1 %v13679_v4 }
 0x781   :  { %12369 = vmatprep.subr.bf16.mxu1 %v20210_v37 }
 0x782   :  { %v5374_v5 = vpop.f32.mrb[208].mxu0  ;;  %12921 = vrot.lane.b32.xlu0 %v12920_v47, %s13288_s13 }
 0x783   :  { %v5376_v46 = vpop.f32.mrb[209].mxu0  ;;  %11827 = vmatmul.mubr.msk.f32.gmra.mrb[56].mxu1 %vm89_vm0, %v5374_v5 }
 0x784   :  { %12371 = vmatpush1.bf16.msra.mxu1 %v13706_v13 }
 0x785   :  { %12372 = vmatprep.subr.bf16.mxu1 %v20210_v37 }
 0x786   :  { %v5379_v17 = vpop.f32.mrb[210].mxu0  ;;  %12931 = vrot.lane.b32.xlu0 %v12930_v9, %s13288_s13  ;;  %v20752_v9 = vld [vmem:[#allocation49_spill] sm:$0xff] }
 0x787   :  { %v5381_v36 = vpop.f32.mrb[211].mxu0  ;;  %11829 = vmatprep.mubr.msk.f32.mxu1 %vm89_vm0, %v5379_v17  ;;  %v17069_v24 = vadd.f32 %v16911_v60, %v20752_v9 }
 0x788   :  { %12374 = vmatpush1.bf16.msra.mxu1 %v13725_v23 }
 0x789   :  { %12375 = vmatprep.subr.bf16.mxu1 %v20210_v37  ;;  %20753 = vst [vmem:[#allocation74_spill] sm:$0xff] %v17069_v24  ;;  %v939_v51 = vsel %vm860_vm10, %v17069_v24, -inf }
 0x78a   :  { %v5384_v63 = vpop.f32.mrb[212].mxu0  ;;  %12941 = vrot.lane.b32.xlu0 %v12940_v30, %s13288_s13 }
 0x78b   :  { %v5386_v47 = vpop.f32.mrb[213].mxu0  ;;  %11830 = vmatmul.mubr.msk.f32.gmra.mrb[58].mxu1 %vm89_vm0, %v5384_v63 }
 0x78c   :  { %12377 = vmatpush1.bf16.msra.mxu1 %v13745_v38 }
 0x78d   :  { %12378 = vmatprep.subr.bf16.mxu1 %v20210_v37 }
 0x78e   :  { %v5389_v39 = vpop.f32.mrb[214].mxu0 }
 0x78f   :  { %v5391_v6 = vpop.f32.mrb[215].mxu0  ;;  %11832 = vmatprep.mubr.msk.f32.mxu1 %vm89_vm0, %v5389_v39 }
 0x790   :  { %12380 = vmatpush1.bf16.msra.mxu1 %v20360_v55 }
 0x791   :  { %12381 = vmatprep.subr.bf16.mxu1 %v20210_v37 }
 0x792   :  { %v5394_v45 = vpop.f32.mrb[216].mxu0 }
 0x793   :  { %v5396_v25 = vpop.f32.mrb[217].mxu0  ;;  %11833 = vmatmul.mubr.msk.f32.gmra.mrb[60].mxu1 %vm89_vm0, %v5394_v45 }
 0x794   :  { %12383 = vmatpush1.bf16.msra.mxu1 %v20363_v29 }
 0x795   :  { %940 = vmax.xlane.f32.xlu1 %v939_v51  ;;  %12384 = vmatprep.subr.bf16.mxu1 %v20210_v37 }
 0x796   :  { %v5399_v57 = vpop.f32.mrb[218].mxu0 }
 0x797   :  { %v5401_v8 = vpop.f32.mrb[219].mxu0  ;;  %11835 = vmatprep.mubr.msk.f32.mxu1 %vm89_vm0, %v5399_v57 }
 0x798   :  { %12386 = vmatpush1.bf16.msra.mxu1 %v20364_v41 }
 0x799   :  { %12387 = vmatprep.subr.bf16.mxu1 %v20210_v37 }
 0x79a   :  { %v5404_v60 = vpop.f32.mrb[220].mxu0 }
 0x79b   :  { %v5406_v19 = vpop.f32.mrb[221].mxu0  ;;  %11836 = vmatmul.mubr.msk.f32.gmra.mrb[62].mxu1 %vm89_vm0, %v5404_v60 }
 0x79c   :  { %12389 = vmatpush1.bf16.msra.mxu1 %v20367_v21 }
 0x79d   :  { %12390 = vmatprep.subr.bf16.mxu1 %v20210_v37 }
 0x79e   :  { %v5409_v61 = vpop.f32.mrb[222].mxu0 }
 0x79f   :  { %v5411_v33 = vpop.f32.mrb[223].mxu0  ;;  %11838 = vmatprep.mubr.msk.f32.mxu1 %vm89_vm0, %v5409_v61 }
 0x7a0   :  { %12392 = vmatpush1.bf16.msra.mxu1 %v20370_v48 }
 0x7a1   :  { %12393 = vmatprep.subr.bf16.mxu1 %v20210_v37 }
 0x7a2   :  { %v5414_v31 = vpop.f32.mrb[224].mxu0 }
 0x7a3   :  { %v5416_v30 = vpop.f32.mrb[225].mxu0  ;;  %11839 = vmatmul.mubr.msk.f32.gmra.mrb[64].mxu1 %vm89_vm0, %v5414_v31 }
 0x7a4   :  { %12395 = vmatpush1.bf16.msra.mxu1 %v20371_v20 }
 0x7a5   :  { %12396 = vmatprep.subr.bf16.mxu1 %v20210_v37 }
 0x7a6   :  { %v5419_v56 = vpop.f32.mrb[226].mxu0  ;;  %12936 = vrot.lane.b32.xlu1 %v17043_v27, %s13288_s13 }
 0x7a7   :  { %v5421_v18 = vpop.f32.mrb[227].mxu0  ;;  %11841 = vmatprep.mubr.msk.f32.mxu1 %vm89_vm0, %v5419_v56 }
 0x7a8   :  { %12398 = vmatpush1.bf16.msra.mxu1 %v20375_v14 }
 0x7a9   :  { %12399 = vmatprep.subr.bf16.mxu1 %v20210_v37 }
 0x7aa   :  { %v5424_v53 = vpop.f32.mrb[228].mxu0 }
 0x7ab   :  { %v5426_v40 = vpop.f32.mrb[229].mxu0  ;;  %11842 = vmatmul.mubr.msk.f32.gmra.mrb[66].mxu1 %vm89_vm0, %v5424_v53 }
 0x7ac   :  { %12401 = vmatpush1.bf16.msra.mxu1 %v20379_v7 }
 0x7ad   :  { %12402 = vmatprep.subr.bf16.mxu1 %v20210_v37 }
 0x7ae   :  { %v5429_v5 = vpop.f32.mrb[230].mxu0 }
 0x7af   :  { %v5431_v46 = vpop.f32.mrb[231].mxu0  ;;  %11844 = vmatprep.mubr.msk.f32.mxu1 %vm89_vm0, %v5429_v5 }
 0x7b0   :  { %12404 = vmatpush1.bf16.msra.mxu1 %v20381_v43 }
 0x7b1   :  { %12405 = vmatprep.subr.bf16.mxu1 %v20210_v37 }
 0x7b2   :  { %v5434_v27 = vpop.f32.mrb[232].mxu0 }
 0x7b3   :  { %v5436_v17 = vpop.f32.mrb[233].mxu0  ;;  %11845 = vmatmul.mubr.msk.f32.gmra.mrb[68].mxu1 %vm89_vm0, %v5434_v27 }
 0x7b4   :  { %12407 = vmatpush1.bf16.msra.mxu1 %v20385_v52 }
 0x7b5   :  { %12408 = vmatprep.subr.bf16.mxu1 %v20210_v37 }
 0x7b6   :  { %v5439_v36 = vpop.f32.mrb[234].mxu0 }
 0x7b7   :  { %v5441_v63 = vpop.f32.mrb[235].mxu0  ;;  %11847 = vmatprep.mubr.msk.f32.mxu1 %vm89_vm0, %v5439_v36 }
 0x7b8   :  { %12410 = vmatpush1.bf16.msra.mxu1 %v20389_v49 }
 0x7b9   :  { %12468 = vmatprep.subr.bf16.mxu1 %v14627_v35 }
 0x7ba   :  { %v5444_v47 = vpop.f32.mrb[236].mxu0 }
 0x7bb   :  { %v5446_v39 = vpop.f32.mrb[237].mxu0  ;;  %11848 = vmatmul.mubr.msk.f32.gmra.mrb[70].mxu1 %vm89_vm0, %v5444_v47 }
 0x7be   :  { %v5449_v6 = vpop.f32.mrb[238].mxu0 }
 0x7bf   :  { %v5451_v9 = vpop.f32.mrb[239].mxu0  ;;  %11850 = vmatprep.mubr.msk.f32.mxu1 %vm89_vm0, %v5449_v6 }
 0x7c0   :  { %v20754_v9 = vld [vmem:[#allocation6_spill] sm:$0xff] }
 0x7c1   :  { %vm5968_vm5 = vcmp.eq.s32.totalorder %v13981_v26, %v20754_v9  ;;  %vm5967_vm6 = vcmp.eq.s32.totalorder %v13970_v11, %v20754_v9 }
 0x7c2   :  { %v5454_v45 = vpop.f32.mrb[240].mxu0 }
 0x7c3   :  { %v5456_v25 = vpop.f32.mrb[241].mxu0  ;;  %11851 = vmatmul.mubr.msk.f32.gmra.mrb[72].mxu1 %vm89_vm0, %v5454_v45 }
 0x7c6   :  { %v5459_v51 = vpop.f32.mrb[242].mxu0 }
 0x7c7   :  { %v5461_v57 = vpop.f32.mrb[243].mxu0  ;;  %11853 = vmatprep.mubr.msk.f32.mxu1 %vm89_vm0, %v5459_v51  ;;  %v20755_v51 = vld [vmem:[#allocation163_spill] sm:$0xff] }
 0x7c8   :  { %vm5970_vm7 = vcmp.eq.s32.totalorder %v13981_v26, %v20755_v51  ;;  %vm5969_vm8 = vcmp.eq.s32.totalorder %v13970_v11, %v20755_v51  ;;  %v20756_v57 = vld [vmem:[#allocation164_spill] sm:$0xff]  ;;  %v20780_v51 = vld [vmem:[#allocation79_spill] sm:$0xff] }
 0x7c9   :  { %vm5972_vm11 = vcmp.eq.s32.totalorder %v13981_v26, %v20756_v57  ;;  %vm5971_vm12 = vcmp.eq.s32.totalorder %v13970_v11, %v20756_v57 }
 0x7ca   :  { %v5464_v8 = vpop.f32.mrb[244].mxu0 }
 0x7cb   :  { %v5466_v60 = vpop.f32.mrb[245].mxu0  ;;  %11854 = vmatmul.mubr.msk.f32.gmra.mrb[74].mxu1 %vm89_vm0, %v5464_v8  ;;  %v20757_v8 = vld [vmem:[#allocation52_spill] sm:$0xff] }
 0x7cc   :  { %vm5974_vm13 = vcmp.eq.s32.totalorder %v13981_v26, %v20757_v8  ;;  %vm5973_vm14 = vcmp.eq.s32.totalorder %v13970_v11, %v20757_v8  ;;  %v20758_v60 = vld [vmem:[#allocation4_spill] sm:$0xff] }
 0x7cd   :  { %vm5976_vm15 = vcmp.eq.s32.totalorder %v13981_v26, %v20758_v60  ;;  %vm5975_vm1 = vcmp.eq.s32.totalorder %v13970_v11, %v20758_v60  ;;  %v20783_v60 = vld [vmem:[#allocation172_spill] sm:$0xff] }
 0x7ce   :  { %v5469_v19 = vpop.f32.mrb[246].mxu0 }
 0x7cf   :  { %v5471_v61 = vpop.f32.mrb[247].mxu0  ;;  %11856 = vmatprep.mubr.msk.f32.mxu1 %vm89_vm0, %v5469_v19  ;;  %v20759_v19 = vld [vmem:[#allocation58_spill] sm:$0xff] }
 0x7d0   :  { %vm5978_vm2 = vcmp.eq.s32.totalorder %v13981_v26, %v20759_v19  ;;  %vm5977_vm3 = vcmp.eq.s32.totalorder %v13970_v11, %v20759_v19  ;;  %v20760_v61 = vld [vmem:[#allocation165_spill] sm:$0xff]  ;;  %v20784_v19 = vld [vmem:[#allocation167_spill] sm:$0xff] }
 0x7d1   :  { %vm5980_vm4 = vcmp.eq.s32.totalorder %v13981_v26, %v20760_v61 }
 0x7d2   :  { %v5474_v33 = vpop.f32.mrb[248].mxu0 }
 0x7d3   :  { %v5476_v31 = vpop.f32.mrb[249].mxu0  ;;  %11857 = vmatmul.mubr.msk.f32.gmra.mrb[76].mxu1 %vm89_vm0, %v5474_v33  ;;  %v20761_v33 = vld [vmem:[#allocation64_spill] sm:$0xff] }
 0x7d4   :  { %v20762_v31 = vld [vmem:[#allocation7_spill] sm:$0xff] }
 0x7d6   :  { %v5479_v30 = vpop.f32.mrb[250].mxu0 }
 0x7d7   :  { %v5481_v56 = vpop.f32.mrb[251].mxu0  ;;  %11859 = vmatprep.mubr.msk.f32.mxu1 %vm89_vm0, %v5479_v30  ;;  %v20763_v30 = vld [vmem:[#allocation70_spill] sm:$0xff] }
 0x7d8   :  { %v20764_v56 = vld [vmem:[#allocation8_spill] sm:$0xff] }
 0x7da   :  { %v5484_v18 = vpop.f32.mrb[252].mxu0 }
 0x7db   :  { %v5486_v53 = vpop.f32.mrb[253].mxu0  ;;  %11860 = vmatmul.mubr.msk.f32.gmra.mrb[78].mxu1 %vm89_vm0, %v5484_v18  ;;  %v20765_v18 = vld [vmem:[#allocation166_spill] sm:$0xff] }
 0x7dc   :  { %v20766_v53 = vld [vmem:[#allocation9_spill] sm:$0xff] }
 0x7de   :  { %v5489_v40 = vpop.f32.mrb[254].mxu0 }
 0x7df   :  { %v5491_v5 = vpop.f32.mrb[255].mxu0  ;;  %11862 = vmatprep.mubr.msk.f32.mxu1 %vm89_vm0, %v5489_v40  ;;  %v20767_v40 = vld [vmem:[#allocation109_spill] sm:$0xff] }
 0x7e0   :  { %v20768_v5 = vld [vmem:[#allocation10_spill] sm:$0xff] }
 0x7e2   :  { %v5494_v46 = vpop.f32.mrb[0].mxu0 }
 0x7e3   :  { %v5496_v27 = vpop.f32.mrb[1].mxu0  ;;  %11863 = vmatmul.mubr.msk.f32.gmra.mrb[80].mxu1 %vm89_vm0, %v5494_v46  ;;  %v20769_v46 = vld [vmem:[#allocation106_spill] sm:$0xff] }
 0x7e4   :  { %v20770_v27 = vld [vmem:[#allocation11_spill] sm:$0xff] }
 0x7e6   :  { %v5499_v17 = vpop.f32.mrb[2].mxu0 }
 0x7e7   :  { %v5501_v36 = vpop.f32.mrb[3].mxu0  ;;  %11865 = vmatprep.mubr.msk.f32.mxu1 %vm89_vm0, %v5499_v17  ;;  %v20771_v17 = vld [vmem:[#allocation118_spill] sm:$0xff] }
 0x7e8   :  { %v20772_v36 = vld [vmem:[#allocation12_spill] sm:$0xff] }
 0x7ea   :  { %v5504_v63 = vpop.f32.mrb[4].mxu0 }
 0x7eb   :  { %v5506_v47 = vpop.f32.mrb[5].mxu0  ;;  %11866 = vmatmul.mubr.msk.f32.gmra.mrb[82].mxu1 %vm89_vm0, %v5504_v63  ;;  %v20773_v63 = vld [vmem:[#allocation123_spill] sm:$0xff] }
 0x7ec   :  { %v20774_v47 = vld [vmem:[#allocation88_spill] sm:$0xff] }
 0x7ee   :  { %v5509_v39 = vpop.f32.mrb[6].mxu0 }
 0x7ef   :  { %v5511_v6 = vpop.f32.mrb[7].mxu0  ;;  %11868 = vmatprep.mubr.msk.f32.mxu1 %vm89_vm0, %v5509_v39  ;;  %v20775_v39 = vld [vmem:[#allocation128_spill] sm:$0xff] }
 0x7f0   :  { %v20776_v6 = vld [vmem:[#allocation61_spill] sm:$0xff] }
 0x7f2   :  { %v5514_v45 = vpop.f32.mrb[8].mxu0 }
 0x7f3   :  { %v5516_v25 = vpop.f32.mrb[9].mxu0  ;;  %11869 = vmatmul.mubr.msk.f32.gmra.mrb[84].mxu1 %vm89_vm0, %v5514_v45 }
 0x7f4   :  { %10886 = vmatprep.mubr.msk.f32.mxu1 %vm5968_vm5, %v20206_v1  ;;  %vm5979_vm5 = vcmp.eq.s32.totalorder %v13970_v11, %v20760_v61  ;;  %v20779_v25 = vld [vmem:[#allocation134_spill] sm:$0xff] }
 0x7f7   :  { %10887 = vmatmul.mubr.msk.f32.vlgmr.msra.gmra.mrb[86].mxu1 %vm5967_vm6, %v20206_v1  ;;  %vm5982_vm6 = vcmp.eq.s32.totalorder %v13981_v26, %v20761_v33 }
 0x7f8   :  { %10888 = vmatprep.mubr.msk.f32.mxu1 %vm5970_vm7, %v20206_v1  ;;  %12470 = vmatpush3.bf16.msra.mxu1 %v14627_v35  ;;  %vm5981_vm7 = vcmp.eq.s32.totalorder %v13970_v11, %v20761_v33 }
 0x7f9   :  { %12472 = vmatprep.subr.bf16.mxu1 %v14657_v42 }
 0x7fb   :  { %10889 = vmatmul.mubr.msk.f32.gmra.mrb[88].mxu1 %vm5969_vm8, %v20206_v1  ;;  %vm5984_vm8 = vcmp.eq.s32.totalorder %v13981_v26, %v20762_v31 }
 0x7fc   :  { %10890 = vmatprep.mubr.msk.f32.mxu1 %vm5972_vm11, %v20206_v1  ;;  %12474 = vmatpush3.bf16.msra.mxu1 %v14657_v42  ;;  %vm5983_vm11 = vcmp.eq.s32.totalorder %v13970_v11, %v20762_v31  ;;  %v20787_v31 = vld [vmem:[#allocation176_spill] sm:$0xff] }
 0x7fd   :  { %12475 = vmatprep.subr.bf16.mxu1 %v20210_v37 }
 0x7ff   :  { %10891 = vmatmul.mubr.msk.f32.gmra.mrb[90].mxu1 %vm5971_vm12, %v20206_v1  ;;  %vm5986_vm12 = vcmp.eq.s32.totalorder %v13981_v26, %v20763_v30 }
 0x800   :  { %10892 = vmatprep.mubr.msk.f32.mxu1 %vm5974_vm13, %v20206_v1  ;;  %vm5985_vm13 = vcmp.eq.s32.totalorder %v13970_v11, %v20763_v30  ;;  %v20788_v30 = vld [vmem:[#allocation97_spill] sm:$0xff] }
 0x803   :  { %10893 = vmatmul.mubr.msk.f32.gmra.mrb[92].mxu1 %vm5973_vm14, %v20206_v1  ;;  %vm5988_vm14 = vcmp.eq.s32.totalorder %v13981_v26, %v20764_v56 }
 0x804   :  { %10894 = vmatprep.mubr.msk.f32.mxu1 %vm5976_vm15, %v20206_v1  ;;  %vm5987_vm15 = vcmp.eq.s32.totalorder %v13970_v11, %v20764_v56 }
 0x807   :  { %10895 = vmatmul.mubr.msk.f32.gmra.mrb[94].mxu1 %vm5975_vm1, %v20206_v1  ;;  %vm5990_vm1 = vcmp.eq.s32.totalorder %v13981_v26, %v20765_v18 }
 0x808   :  { %10896 = vmatprep.mubr.msk.f32.mxu1 %vm5978_vm2, %v20206_v1  ;;  %vm5989_vm2 = vcmp.eq.s32.totalorder %v13970_v11, %v20765_v18 }
 0x80b   :  { %10897 = vmatmul.mubr.msk.f32.gmra.mrb[96].mxu1 %vm5977_vm3, %v20206_v1  ;;  %vm5992_vm3 = vcmp.eq.s32.totalorder %v13981_v26, %v20766_v53 }
 0x80c   :  { %10898 = vmatprep.mubr.msk.f32.mxu1 %vm5980_vm4, %v20206_v1  ;;  %vm5991_vm4 = vcmp.eq.s32.totalorder %v13970_v11, %v20766_v53  ;;  %v20791_v53 = vld [vmem:[#allocation178_spill] sm:$0xff] }
 0x80f   :  { %10899 = vmatmul.mubr.msk.f32.gmra.mrb[98].mxu1 %vm5979_vm5, %v20206_v1  ;;  %vm5994_vm5 = vcmp.eq.s32.totalorder %v13981_v26, %v20767_v40 }
 0x810   :  { %10900 = vmatprep.mubr.msk.f32.mxu1 %vm5982_vm6, %v20206_v1  ;;  %vm5993_vm6 = vcmp.eq.s32.totalorder %v13970_v11, %v20767_v40  ;;  %v20792_v40 = vld [vmem:[#allocation100_spill] sm:$0xff] }
 0x813   :  { %10901 = vmatmul.mubr.msk.f32.gmra.mrb[100].mxu1 %vm5981_vm7, %v20206_v1  ;;  %vm5996_vm7 = vcmp.eq.s32.totalorder %v13981_v26, %v20768_v5 }
 0x814   :  { %10902 = vmatprep.mubr.msk.f32.mxu1 %vm5984_vm8, %v20206_v1  ;;  %vm5995_vm8 = vcmp.eq.s32.totalorder %v13970_v11, %v20768_v5 }
 0x817   :  { %10903 = vmatmul.mubr.msk.f32.gmra.mrb[102].mxu1 %vm5983_vm11, %v20206_v1  ;;  %vm5998_vm11 = vcmp.eq.s32.totalorder %v13981_v26, %v20769_v46 }
 0x818   :  { %10904 = vmatprep.mubr.msk.f32.mxu1 %vm5986_vm12, %v20206_v1  ;;  %vm5997_vm12 = vcmp.eq.s32.totalorder %v13970_v11, %v20769_v46 }
 0x81b   :  { %10905 = vmatmul.mubr.msk.f32.gmra.mrb[104].mxu1 %vm5985_vm13, %v20206_v1  ;;  %vm6000_vm13 = vcmp.eq.s32.totalorder %v13981_v26, %v20770_v27 }
 0x81c   :  { %10906 = vmatprep.mubr.msk.f32.mxu1 %vm5988_vm14, %v20206_v1  ;;  %vm5999_vm14 = vcmp.eq.s32.totalorder %v13970_v11, %v20770_v27  ;;  %v20795_v27 = vld [vmem:[#allocation181_spill] sm:$0xff] }
 0x81f   :  { %10907 = vmatmul.mubr.msk.f32.gmra.mrb[106].mxu1 %vm5987_vm15, %v20206_v1  ;;  %vm6002_vm15 = vcmp.eq.s32.totalorder %v13981_v26, %v20771_v17 }
 0x820   :  { %10908 = vmatprep.mubr.msk.f32.mxu1 %vm5990_vm1, %v20206_v1  ;;  %vm6001_vm1 = vcmp.eq.s32.totalorder %v13970_v11, %v20771_v17 }
 0x823   :  { %10909 = vmatmul.mubr.msk.f32.gmra.mrb[108].mxu1 %vm5989_vm2, %v20206_v1  ;;  %vm6004_vm2 = vcmp.eq.s32.totalorder %v13981_v26, %v20772_v36 }
 0x824   :  { %10910 = vmatprep.mubr.msk.f32.mxu1 %vm5992_vm3, %v20206_v1  ;;  %vm6003_vm3 = vcmp.eq.s32.totalorder %v13970_v11, %v20772_v36 }
 0x827   :  { %10911 = vmatmul.mubr.msk.f32.gmra.mrb[110].mxu1 %vm5991_vm4, %v20206_v1  ;;  %vm6006_vm4 = vcmp.eq.s32.totalorder %v13981_v26, %v20773_v63 }
 0x828   :  { %10912 = vmatprep.mubr.msk.f32.mxu1 %vm5994_vm5, %v20206_v1  ;;  %vm6005_vm5 = vcmp.eq.s32.totalorder %v13970_v11, %v20773_v63 }
 0x82b   :  { %10913 = vmatmul.mubr.msk.f32.gmra.mrb[112].mxu1 %vm5993_vm6, %v20206_v1  ;;  %vm6008_vm6 = vcmp.eq.s32.totalorder %v13981_v26, %v20774_v47 }
 0x82c   :  { %10914 = vmatprep.mubr.msk.f32.mxu1 %vm5996_vm7, %v20206_v1  ;;  %vm6007_vm7 = vcmp.eq.s32.totalorder %v13970_v11, %v20774_v47 }
 0x82f   :  { %10915 = vmatmul.mubr.msk.f32.gmra.mrb[114].mxu1 %vm5995_vm8, %v20206_v1  ;;  %vm6010_vm8 = vcmp.eq.s32.totalorder %v13981_v26, %v20775_v39 }
 0x830   :  { %10916 = vmatprep.mubr.msk.f32.mxu1 %vm5998_vm11, %v20206_v1  ;;  %vm6009_vm11 = vcmp.eq.s32.totalorder %v13970_v11, %v20775_v39 }
 0x833   :  { %10917 = vmatmul.mubr.msk.f32.gmra.mrb[116].mxu1 %vm5997_vm12, %v20206_v1  ;;  %vm6012_vm12 = vcmp.eq.s32.totalorder %v13981_v26, %v20776_v6 }
 0x834   :  { %10918 = vmatprep.mubr.msk.f32.mxu1 %vm6000_vm13, %v20206_v1  ;;  %vm6011_vm13 = vcmp.eq.s32.totalorder %v13970_v11, %v20776_v6 }
 0x837   :  { %10919 = vmatmul.mubr.msk.f32.gmra.mrb[118].mxu1 %vm5999_vm14, %v20206_v1  ;;  %vm6014_vm14 = vcmp.eq.s32.totalorder %v13981_v26, %v20779_v25 }
 0x838   :  { %10920 = vmatprep.mubr.msk.f32.mxu1 %vm6002_vm15, %v20206_v1  ;;  %vm6013_vm15 = vcmp.eq.s32.totalorder %v13970_v11, %v20779_v25 }
 0x83b   :  { %10921 = vmatmul.mubr.msk.f32.gmra.mrb[120].mxu1 %vm6001_vm1, %v20206_v1  ;;  %vm6016_vm1 = vcmp.eq.s32.totalorder %v13981_v26, %v20780_v51 }
 0x83c   :  { %10922 = vmatprep.mubr.msk.f32.mxu1 %vm6004_vm2, %v20206_v1  ;;  %vm6015_vm2 = vcmp.eq.s32.totalorder %v13970_v11, %v20780_v51 }
 0x83f   :  { %10923 = vmatmul.mubr.msk.f32.gmra.mrb[122].mxu1 %vm6003_vm3, %v20206_v1  ;;  %vm6018_vm3 = vcmp.eq.s32.totalorder %v13981_v26, %v20783_v60 }
 0x840   :  { %10924 = vmatprep.mubr.msk.f32.mxu1 %vm6006_vm4, %v20206_v1  ;;  %vm6017_vm4 = vcmp.eq.s32.totalorder %v13970_v11, %v20783_v60 }
 0x843   :  { %10925 = vmatmul.mubr.msk.f32.gmra.mrb[124].mxu1 %vm6005_vm5, %v20206_v1  ;;  %vm6020_vm5 = vcmp.eq.s32.totalorder %v13981_v26, %v20784_v19 }
 0x844   :  { %10926 = vmatprep.mubr.msk.f32.mxu1 %vm6008_vm6, %v20206_v1  ;;  %vm6019_vm6 = vcmp.eq.s32.totalorder %v13970_v11, %v20784_v19 }
 0x847   :  { %10927 = vmatmul.mubr.msk.f32.gmra.mrb[126].mxu1 %vm6007_vm7, %v20206_v1  ;;  %vm6022_vm7 = vcmp.eq.s32.totalorder %v13981_v26, %v20787_v31 }
 0x848   :  { %10928 = vmatprep.mubr.msk.f32.mxu1 %vm6010_vm8, %v20206_v1  ;;  %vm6021_vm8 = vcmp.eq.s32.totalorder %v13970_v11, %v20787_v31 }
 0x84b   :  { %10929 = vmatmul.mubr.msk.f32.gmra.mrb[128].mxu1 %vm6009_vm11, %v20206_v1  ;;  %vm6024_vm11 = vcmp.eq.s32.totalorder %v13981_v26, %v20788_v30 }
 0x84c   :  { %10930 = vmatprep.mubr.msk.f32.mxu1 %vm6012_vm12, %v20206_v1  ;;  %vm6023_vm12 = vcmp.eq.s32.totalorder %v13970_v11, %v20788_v30 }
 0x84e   :  { %v17263_v9 = vpop.f32.mrb[54].mxu1 }
 0x84f   :  { %20777 = vst [vmem:[#allocation75_spill] sm:$0xff] %v17263_v9  ;;  %v17265_v45 = vpop.f32.mrb[55].mxu1  ;;  %10931 = vmatmul.mubr.msk.f32.gmra.mrb[130].mxu1 %vm6011_vm13, %v20206_v1  ;;  %vm6026_vm13 = vcmp.eq.s32.totalorder %v13981_v26, %v20791_v53 }
 0x850   :  { %20778 = vst [vmem:[#allocation77_spill] sm:$0xff] %v17265_v45  ;;  %10932 = vmatprep.mubr.msk.f32.mxu1 %vm6014_vm14, %v20206_v1  ;;  %vm6025_vm14 = vcmp.eq.s32.totalorder %v13970_v11, %v20791_v53 }
 0x853   :  { %10933 = vmatmul.mubr.msk.f32.gmra.mrb[132].mxu1 %vm6013_vm15, %v20206_v1  ;;  %vm6028_vm15 = vcmp.eq.s32.totalorder %v13981_v26, %v20792_v40 }
 0x854   :  { %10934 = vmatprep.mubr.msk.f32.mxu1 %vm6016_vm1, %v20206_v1  ;;  %vm6027_vm1 = vcmp.eq.s32.totalorder %v13970_v11, %v20792_v40 }
 0x856   :  { %v17279_v57 = vpop.f32.mrb[56].mxu1 }
 0x857   :  { %20781 = vst [vmem:[#allocation80_spill] sm:$0xff] %v17279_v57  ;;  %v17281_v8 = vpop.f32.mrb[57].mxu1  ;;  %10935 = vmatmul.mubr.msk.f32.gmra.mrb[134].mxu1 %vm6015_vm2, %v20206_v1  ;;  %vm6030_vm2 = vcmp.eq.s32.totalorder %v13981_v26, %v20795_v27 }
 0x858   :  { %20782 = vst [vmem:[#allocation78_spill] sm:$0xff] %v17281_v8  ;;  %10936 = vmatprep.mubr.msk.f32.mxu1 %vm6018_vm3, %v20206_v1  ;;  %vm6029_vm3 = vcmp.eq.s32.totalorder %v13970_v11, %v20795_v27 }
 0x85b   :  { %10937 = vmatmul.mubr.msk.f32.gmra.mrb[136].mxu1 %vm6017_vm4, %v20206_v1 }
 0x85c   :  { %10938 = vmatprep.mubr.msk.f32.mxu1 %vm6020_vm5, %v20206_v1 }
 0x85e   :  { %v17295_v61 = vpop.f32.mrb[58].mxu1 }
 0x85f   :  { %20785 = vst [vmem:[#allocation83_spill] sm:$0xff] %v17295_v61  ;;  %v17297_v33 = vpop.f32.mrb[59].mxu1  ;;  %10939 = vmatmul.mubr.msk.f32.gmra.mrb[138].mxu1 %vm6019_vm6, %v20206_v1 }
 0x860   :  { %20786 = vst [vmem:[#allocation49_spill] sm:$0xff] %v17297_v33  ;;  %10940 = vmatprep.mubr.msk.f32.mxu1 %vm6022_vm7, %v20206_v1 }
 0x863   :  { %10941 = vmatmul.mubr.msk.f32.gmra.mrb[140].mxu1 %vm6021_vm8, %v20206_v1 }
 0x864   :  { %10942 = vmatprep.mubr.msk.f32.mxu1 %vm6024_vm11, %v20206_v1 }
 0x866   :  { %v17311_v56 = vpop.f32.mrb[60].mxu1 }
 0x867   :  { %20789 = vst [vmem:[#allocation6_spill] sm:$0xff] %v17311_v56  ;;  %v17313_v18 = vpop.f32.mrb[61].mxu1  ;;  %10943 = vmatmul.mubr.msk.f32.gmra.mrb[142].mxu1 %vm6023_vm12, %v20206_v1 }
 0x868   :  { %20790 = vst [vmem:[#allocation163_spill] sm:$0xff] %v17313_v18  ;;  %10944 = vmatprep.mubr.msk.f32.mxu1 %vm6026_vm13, %v20206_v1 }
 0x86b   :  { %10945 = vmatmul.mubr.msk.f32.gmra.mrb[144].mxu1 %vm6025_vm14, %v20206_v1 }
 0x86c   :  { %10946 = vmatprep.mubr.msk.f32.mxu1 %vm6028_vm15, %v20206_v1 }
 0x86e   :  { %v17327_v5 = vpop.f32.mrb[62].mxu1 }
 0x86f   :  { %20793 = vst [vmem:[#allocation164_spill] sm:$0xff] %v17327_v5  ;;  %v17329_v46 = vpop.f32.mrb[63].mxu1  ;;  %10947 = vmatmul.mubr.msk.f32.gmra.mrb[146].mxu1 %vm6027_vm1, %v20206_v1 }
 0x870   :  { %20794 = vst [vmem:[#allocation52_spill] sm:$0xff] %v17329_v46  ;;  %10948 = vmatprep.mubr.msk.f32.mxu1 %vm6030_vm2, %v20206_v1 }
 0x873   :  { %10949 = vmatmul.mubr.msk.f32.gmra.mrb[148].mxu1 %vm6029_vm3, %v20206_v1 }
 0x876   :  { %v17338_v17 = vpop.f32.mrb[64].mxu1 }
 0x877   :  { %20796 = vst [vmem:[#allocation4_spill] sm:$0xff] %v17338_v17  ;;  %v17340_v36 = vpop.f32.mrb[65].mxu1 }
 0x878   :  { %20797 = vst [vmem:[#allocation58_spill] sm:$0xff] %v17340_v36 }
 0x87e   :  { %v17342_v63 = vpop.f32.mrb[66].mxu1 }
 0x87f   :  { %20798 = vst [vmem:[#allocation165_spill] sm:$0xff] %v17342_v63  ;;  %v17344_v47 = vpop.f32.mrb[67].mxu1 }
 0x880   :  { %20799 = vst [vmem:[#allocation64_spill] sm:$0xff] %v17344_v47 }
 0x886   :  { %v17346_v39 = vpop.f32.mrb[68].mxu1 }
 0x887   :  { %20800 = vst [vmem:[#allocation7_spill] sm:$0xff] %v17346_v39  ;;  %v17348_v6 = vpop.f32.mrb[69].mxu1 }
 0x888   :  { %20801 = vst [vmem:[#allocation70_spill] sm:$0xff] %v17348_v6 }
 0x88e   :  { %v17350_v25 = vpop.f32.mrb[70].mxu1 }
 0x88f   :  { %20802 = vst [vmem:[#allocation8_spill] sm:$0xff] %v17350_v25  ;;  %v17352_v51 = vpop.f32.mrb[71].mxu1 }
 0x890   :  { %20803 = vst [vmem:[#allocation166_spill] sm:$0xff] %v17352_v51 }
 0x896   :  { %v17354_v60 = vpop.f32.mrb[72].mxu1 }
 0x897   :  { %20804 = vst [vmem:[#allocation9_spill] sm:$0xff] %v17354_v60  ;;  %v17356_v19 = vpop.f32.mrb[73].mxu1 }
 0x898   :  { %20805 = vst [vmem:[#allocation109_spill] sm:$0xff] %v17356_v19 }
 0x89e   :  { %v17358_v31 = vpop.f32.mrb[74].mxu1 }
 0x89f   :  { %20806 = vst [vmem:[#allocation10_spill] sm:$0xff] %v17358_v31  ;;  %v17360_v30 = vpop.f32.mrb[75].mxu1 }
 0x8a0   :  { %20807 = vst [vmem:[#allocation106_spill] sm:$0xff] %v17360_v30 }
 0x8a6   :  { %v17362_v53 = vpop.f32.mrb[76].mxu1 }
 0x8a7   :  { %20808 = vst [vmem:[#allocation11_spill] sm:$0xff] %v17362_v53  ;;  %v17364_v40 = vpop.f32.mrb[77].mxu1 }
 0x8a8   :  { %20809 = vst [vmem:[#allocation118_spill] sm:$0xff] %v17364_v40 }
 0x8ae   :  { %v17366_v27 = vpop.f32.mrb[78].mxu1 }
 0x8af   :  { %20810 = vst [vmem:[#allocation12_spill] sm:$0xff] %v17366_v27  ;;  %v17368_v24 = vpop.f32.mrb[79].mxu1 }
 0x8b0   :  { %20811 = vst [vmem:[#allocation123_spill] sm:$0xff] %v17368_v24 }
 0x8b6   :  { %v17370_v39 = vpop.f32.mrb[80].mxu1 }
 0x8b7   :  { %20812 = vst [vmem:[#allocation88_spill] sm:$0xff] %v17370_v39  ;;  %v17372_v25 = vpop.f32.mrb[81].mxu1 }
 0x8b8   :  { %20813 = vst [vmem:[#allocation128_spill] sm:$0xff] %v17372_v25 }
 0x8be   :  { %v17374_v51 = vpop.f32.mrb[82].mxu1 }
 0x8bf   :  { %20814 = vst [vmem:[#allocation61_spill] sm:$0xff] %v17374_v51  ;;  %v17376_v60 = vpop.f32.mrb[83].mxu1 }
 0x8c0   :  { %20815 = vst [vmem:[#allocation134_spill] sm:$0xff] %v17376_v60 }
 0x8c6   :  { %v17378_v19 = vpop.f32.mrb[84].mxu1 }
 0x8c7   :  { %20816 = vst [vmem:[#allocation79_spill] sm:$0xff] %v17378_v19  ;;  %v17380_v31 = vpop.f32.mrb[85].mxu1 }
 0x8c8   :  { %20817 = vst [vmem:[#allocation172_spill] sm:$0xff] %v17380_v31 }
 0x8ca   :  { %v6225_v30 = vpop.f32.mrb[86].mxu1 }
 0x8cb   :  { %v6227_v53 = vpop.f32.mrb[87].mxu1  ;;  %11879 = vmatprep.mubr.msk.f32.mxu0 %vm89_vm0, %v6225_v30 }
 0x8ce   :  { %v6230_v40 = vpop.f32.mrb[88].mxu1 }
 0x8cf   :  { %v6232_v27 = vpop.f32.mrb[89].mxu1  ;;  %11880 = vmatmul.mubr.msk.f32.vlgmr.msra.gmra.mrb[10].mxu0 %vm89_vm0, %v6230_v40 }
 0x8d0   :  { %12421 = vmatpush1.bf16.msra.mxu0 %v13646_v59 }
 0x8d1   :  { %12422 = vmatprep.subr.bf16.mxu0 %v20210_v37 }
 0x8d2   :  { %v6235_v39 = vpop.f32.mrb[90].mxu1 }
 0x8d3   :  { %v6237_v51 = vpop.f32.mrb[91].mxu1  ;;  %11882 = vmatprep.mubr.msk.f32.mxu0 %vm89_vm0, %v6235_v39 }
 0x8d4   :  { %12424 = vmatpush1.bf16.msra.mxu0 %v13679_v4 }
 0x8d5   :  { %12425 = vmatprep.subr.bf16.mxu0 %v20210_v37 }
 0x8d6   :  { %v6240_v19 = vpop.f32.mrb[92].mxu1 }
 0x8d7   :  { %v6242_v53 = vpop.f32.mrb[93].mxu1  ;;  %11883 = vmatmul.mubr.msk.f32.gmra.mrb[12].mxu0 %vm89_vm0, %v6240_v19 }
 0x8d8   :  { %12427 = vmatpush1.bf16.msra.mxu0 %v13706_v13 }
 0x8d9   :  { %12428 = vmatprep.subr.bf16.mxu0 %v20210_v37 }
 0x8da   :  { %v6245_v30 = vpop.f32.mrb[94].mxu1 }
 0x8db   :  { %v6247_v40 = vpop.f32.mrb[95].mxu1  ;;  %11885 = vmatprep.mubr.msk.f32.mxu0 %vm89_vm0, %v6245_v30 }
 0x8dc   :  { %12430 = vmatpush1.bf16.msra.mxu0 %v13725_v23 }
 0x8dd   :  { %12431 = vmatprep.subr.bf16.mxu0 %v20210_v37 }
 0x8de   :  { %v6250_v39 = vpop.f32.mrb[96].mxu1 }
 0x8df   :  { %v6252_v51 = vpop.f32.mrb[97].mxu1  ;;  %11886 = vmatmul.mubr.msk.f32.gmra.mrb[14].mxu0 %vm89_vm0, %v6250_v39 }
 0x8e0   :  { %12433 = vmatpush1.bf16.msra.mxu0 %v13745_v38 }
 0x8e1   :  { %12434 = vmatprep.subr.bf16.mxu0 %v20210_v37 }
 0x8e2   :  { %v6255_v19 = vpop.f32.mrb[98].mxu1 }
 0x8e3   :  { %v6257_v27 = vpop.f32.mrb[99].mxu1  ;;  %11888 = vmatprep.mubr.msk.f32.mxu0 %vm89_vm0, %v6255_v19 }
 0x8e4   :  { %12436 = vmatpush1.bf16.msra.mxu0 %v20360_v55 }
 0x8e5   :  { %12437 = vmatprep.subr.bf16.mxu0 %v20210_v37 }
 0x8e6   :  { %v6260_v53 = vpop.f32.mrb[100].mxu1 }
 0x8e7   :  { %v6262_v30 = vpop.f32.mrb[101].mxu1  ;;  %11889 = vmatmul.mubr.msk.f32.gmra.mrb[16].mxu0 %vm89_vm0, %v6260_v53 }
 0x8e8   :  { %12439 = vmatpush1.bf16.msra.mxu0 %v20363_v29 }
 0x8e9   :  { %12440 = vmatprep.subr.bf16.mxu0 %v20210_v37 }
 0x8ea   :  { %v6265_v40 = vpop.f32.mrb[102].mxu1 }
 0x8eb   :  { %v6267_v39 = vpop.f32.mrb[103].mxu1  ;;  %11891 = vmatprep.mubr.msk.f32.mxu0 %vm89_vm0, %v6265_v40 }
 0x8ec   :  { %12442 = vmatpush1.bf16.msra.mxu0 %v20364_v41 }
 0x8ed   :  { %12443 = vmatprep.subr.bf16.mxu0 %v20210_v37 }
 0x8ee   :  { %v6270_v51 = vpop.f32.mrb[104].mxu1 }
 0x8ef   :  { %v6272_v19 = vpop.f32.mrb[105].mxu1  ;;  %11892 = vmatmul.mubr.msk.f32.gmra.mrb[18].mxu0 %vm89_vm0, %v6270_v51 }
 0x8f0   :  { %12445 = vmatpush1.bf16.msra.mxu0 %v20367_v21 }
 0x8f1   :  { %12446 = vmatprep.subr.bf16.mxu0 %v20210_v37 }
 0x8f2   :  { %v6275_v27 = vpop.f32.mrb[106].mxu1 }
 0x8f3   :  { %v6277_v53 = vpop.f32.mrb[107].mxu1  ;;  %11894 = vmatprep.mubr.msk.f32.mxu0 %vm89_vm0, %v6275_v27 }
 0x8f4   :  { %12448 = vmatpush1.bf16.msra.mxu0 %v20370_v48 }
 0x8f5   :  { %12449 = vmatprep.subr.bf16.mxu0 %v20210_v37 }
 0x8f6   :  { %v6280_v30 = vpop.f32.mrb[108].mxu1 }
 0x8f7   :  { %v6282_v40 = vpop.f32.mrb[109].mxu1  ;;  %11895 = vmatmul.mubr.msk.f32.gmra.mrb[20].mxu0 %vm89_vm0, %v6280_v30 }
 0x8f8   :  { %12451 = vmatpush1.bf16.msra.mxu0 %v20371_v20 }
 0x8f9   :  { %12452 = vmatprep.subr.bf16.mxu0 %v20210_v37 }
 0x8fa   :  { %v6285_v39 = vpop.f32.mrb[110].mxu1 }
 0x8fb   :  { %v6287_v51 = vpop.f32.mrb[111].mxu1  ;;  %11897 = vmatprep.mubr.msk.f32.mxu0 %vm89_vm0, %v6285_v39 }
 0x8fc   :  { %12454 = vmatpush1.bf16.msra.mxu0 %v20375_v14 }
 0x8fd   :  { %12455 = vmatprep.subr.bf16.mxu0 %v20210_v37 }
 0x8fe   :  { %v6290_v19 = vpop.f32.mrb[112].mxu1 }
 0x8ff   :  { %v6292_v27 = vpop.f32.mrb[113].mxu1  ;;  %11898 = vmatmul.mubr.msk.f32.gmra.mrb[22].mxu0 %vm89_vm0, %v6290_v19 }
 0x900   :  { %12457 = vmatpush1.bf16.msra.mxu0 %v20379_v7 }
 0x901   :  { %12458 = vmatprep.subr.bf16.mxu0 %v20210_v37 }
 0x902   :  { %v6295_v53 = vpop.f32.mrb[114].mxu1 }
 0x903   :  { %v6297_v30 = vpop.f32.mrb[115].mxu1  ;;  %11900 = vmatprep.mubr.msk.f32.mxu0 %vm89_vm0, %v6295_v53 }
 0x904   :  { %12460 = vmatpush1.bf16.msra.mxu0 %v20381_v43 }
 0x905   :  { %12461 = vmatprep.subr.bf16.mxu0 %v20210_v37 }
 0x906   :  { %v6300_v40 = vpop.f32.mrb[116].mxu1 }
 0x907   :  { %v6302_v39 = vpop.f32.mrb[117].mxu1  ;;  %11901 = vmatmul.mubr.msk.f32.gmra.mrb[24].mxu0 %vm89_vm0, %v6300_v40 }
 0x908   :  { %12463 = vmatpush1.bf16.msra.mxu0 %v20385_v52 }
 0x909   :  { %12464 = vmatprep.subr.bf16.mxu0 %v20210_v37 }
 0x90a   :  { %v6305_v51 = vpop.f32.mrb[118].mxu1 }
 0x90b   :  { %v6307_v19 = vpop.f32.mrb[119].mxu1  ;;  %11903 = vmatprep.mubr.msk.f32.mxu0 %vm89_vm0, %v6305_v51 }
 0x90c   :  { %12466 = vmatpush1.bf16.msra.mxu0 %v20389_v49 }
 0x90d   :  { %12524 = vmatprep.subr.bf16.mxu0 %v14627_v35 }
 0x90e   :  { %v6310_v27 = vpop.f32.mrb[120].mxu1 }
 0x90f   :  { %v6312_v53 = vpop.f32.mrb[121].mxu1  ;;  %11904 = vmatmul.mubr.msk.f32.gmra.mrb[26].mxu0 %vm89_vm0, %v6310_v27 }
 0x912   :  { %v6315_v30 = vpop.f32.mrb[122].mxu1 }
 0x913   :  { %v6317_v39 = vpop.f32.mrb[123].mxu1  ;;  %11906 = vmatprep.mubr.msk.f32.mxu0 %vm89_vm0, %v6315_v30 }
 0x916   :  { %v6320_v40 = vpop.f32.mrb[124].mxu1 }
 0x917   :  { %v6322_v31 = vpop.f32.mrb[125].mxu1  ;;  %11907 = vmatmul.mubr.msk.f32.gmra.mrb[28].mxu0 %vm89_vm0, %v6320_v40 }
 0x91a   :  { %v6325_v60 = vpop.f32.mrb[126].mxu1 }
 0x91b   :  { %v6327_v19 = vpop.f32.mrb[127].mxu1  ;;  %11909 = vmatprep.mubr.msk.f32.mxu0 %vm89_vm0, %v6325_v60 }
 0x91e   :  { %v6330_v51 = vpop.f32.mrb[128].mxu1 }
 0x91f   :  { %v6332_v25 = vpop.f32.mrb[129].mxu1  ;;  %11910 = vmatmul.mubr.msk.f32.gmra.mrb[30].mxu0 %vm89_vm0, %v6330_v51 }
 0x922   :  { %v6335_v24 = vpop.f32.mrb[130].mxu1 }
 0x923   :  { %v6337_v53 = vpop.f32.mrb[131].mxu1  ;;  %11912 = vmatprep.mubr.msk.f32.mxu0 %vm89_vm0, %v6335_v24 }
 0x926   :  { %v6340_v27 = vpop.f32.mrb[132].mxu1 }
 0x927   :  { %v6342_v39 = vpop.f32.mrb[133].mxu1  ;;  %11913 = vmatmul.mubr.msk.f32.gmra.mrb[32].mxu0 %vm89_vm0, %v6340_v27 }
 0x92a   :  { %v6345_v30 = vpop.f32.mrb[134].mxu1 }
 0x92b   :  { %v6347_v31 = vpop.f32.mrb[135].mxu1  ;;  %11915 = vmatprep.mubr.msk.f32.mxu0 %vm89_vm0, %v6345_v30 }
 0x92e   :  { %v6350_v40 = vpop.f32.mrb[136].mxu1 }
 0x92f   :  { %v6352_v19 = vpop.f32.mrb[137].mxu1  ;;  %11916 = vmatmul.mubr.msk.f32.gmra.mrb[34].mxu0 %vm89_vm0, %v6350_v40  ;;  %v20818_v40 = vld [vmem:[#allocation103_spill] sm:$0xff] }
 0x930   :  { %vm6834_vm4 = vcmp.eq.s32.totalorder %v13981_v26, %v20818_v40  ;;  %vm6833_vm5 = vcmp.eq.s32.totalorder %v13970_v11, %v20818_v40  ;;  %v20829_v40 = vld [vmem:[#allocation170_spill] sm:$0xff] }
 0x932   :  { %v6355_v60 = vpop.f32.mrb[138].mxu1 }
 0x933   :  { %v6357_v25 = vpop.f32.mrb[139].mxu1  ;;  %11918 = vmatprep.mubr.msk.f32.mxu0 %vm89_vm0, %v6355_v60 }
 0x936   :  { %v6360_v51 = vpop.f32.mrb[140].mxu1 }
 0x937   :  { %v6362_v53 = vpop.f32.mrb[141].mxu1  ;;  %11919 = vmatmul.mubr.msk.f32.gmra.mrb[36].mxu0 %vm89_vm0, %v6360_v51  ;;  %v20819_v51 = vld [vmem:[#allocation184_spill] sm:$0xff] }
 0x938   :  { %vm6836_vm6 = vcmp.eq.s32.totalorder %v13981_v26, %v20819_v51  ;;  %vm6835_vm7 = vcmp.eq.s32.totalorder %v13970_v11, %v20819_v51  ;;  %v20820_v53 = vld [vmem:[#allocation112_spill] sm:$0xff]  ;;  %v20832_v51 = vld [vmem:[#allocation135_spill] sm:$0xff] }
 0x939   :  { %vm6838_vm8 = vcmp.eq.s32.totalorder %v13981_v26, %v20820_v53  ;;  %vm6837_vm11 = vcmp.eq.s32.totalorder %v13970_v11, %v20820_v53  ;;  %v20833_v53 = vld [vmem:[#allocation182_spill] sm:$0xff] }
 0x93a   :  { %v6365_v24 = vpop.f32.mrb[142].mxu1 }
 0x93b   :  { %v6367_v39 = vpop.f32.mrb[143].mxu1  ;;  %11921 = vmatprep.mubr.msk.f32.mxu0 %vm89_vm0, %v6365_v24  ;;  %v20821_v24 = vld [vmem:[#allocation115_spill] sm:$0xff] }
 0x93c   :  { %vm6840_vm12 = vcmp.eq.s32.totalorder %v13981_v26, %v20821_v24  ;;  %vm6839_vm13 = vcmp.eq.s32.totalorder %v13970_v11, %v20821_v24  ;;  %v20824_v39 = vld [vmem:[#allocation193_spill] sm:$0xff]  ;;  %v20834_v24 = vld [vmem:[#allocation136_spill] sm:$0xff] }
 0x93d   :  { %vm6846_vm3 = vcmp.eq.s32.totalorder %v13981_v26, %v20824_v39 }
 0x93e   :  { %v6370_v27 = vpop.f32.mrb[144].mxu1 }
 0x93f   :  { %v6372_v31 = vpop.f32.mrb[145].mxu1  ;;  %11922 = vmatmul.mubr.msk.f32.gmra.mrb[38].mxu0 %vm89_vm0, %v6370_v27  ;;  %v20825_v27 = vld [vmem:[#allocation126_spill] sm:$0xff] }
 0x940   :  { %v20826_v31 = vld [vmem:[#allocation197_spill] sm:$0xff] }
 0x942   :  { %v6375_v30 = vpop.f32.mrb[146].mxu1 }
 0x943   :  { %v6377_v19 = vpop.f32.mrb[147].mxu1  ;;  %11924 = vmatprep.mubr.msk.f32.mxu0 %vm89_vm0, %v6375_v30  ;;  %v20827_v30 = vld [vmem:[#allocation169_spill] sm:$0xff] }
 0x944   :  { %v20828_v19 = vld [vmem:[#allocation132_spill] sm:$0xff] }
 0x946   :  { %v6380_v60 = vpop.f32.mrb[148].mxu1 }
 0x947   :  { %v6382_v25 = vpop.f32.mrb[149].mxu1  ;;  %11925 = vmatmul.mubr.msk.f32.gmra.mrb[40].mxu0 %vm89_vm0, %v6380_v60  ;;  %v20830_v60 = vld [vmem:[#allocation133_spill] sm:$0xff] }
 0x948   :  { %11046 = vmatprep.mubr.msk.f32.mxu0 %vm6834_vm4, %v20206_v1  ;;  %vm6845_vm4 = vcmp.eq.s32.totalorder %v13970_v11, %v20824_v39  ;;  %v20831_v25 = vld [vmem:[#allocation174_spill] sm:$0xff]  ;;  %v20837_v39 = vld [vmem:[#allocation189_spill] sm:$0xff] }
 0x94b   :  { %11047 = vmatmul.mubr.msk.f32.vlgmr.msra.gmra.mrb[42].mxu0 %vm6833_vm5, %v20206_v1  ;;  %vm6848_vm5 = vcmp.eq.s32.totalorder %v13981_v26, %v20825_v27 }
 0x94c   :  { %11048 = vmatprep.mubr.msk.f32.mxu0 %vm6836_vm6, %v20206_v1  ;;  %12526 = vmatpush3.bf16.msra.mxu0 %v14627_v35  ;;  %v20822_v35 = vld [vmem:[#allocation188_spill] sm:$0xff]  ;;  %vm6847_vm6 = vcmp.eq.s32.totalorder %v13970_v11, %v20825_v27  ;;  %v20838_v27 = vld [vmem:[#allocation138_spill] sm:$0xff] }
 0x94d   :  { %12528 = vmatprep.subr.bf16.mxu0 %v14657_v42  ;;  %vm6842_vm14 = vcmp.eq.s32.totalorder %v13981_v26, %v20822_v35  ;;  %vm6841_vm15 = vcmp.eq.s32.totalorder %v13970_v11, %v20822_v35  ;;  %v20835_v35 = vld [vmem:[#allocation186_spill] sm:$0xff] }
 0x94f   :  { %11049 = vmatmul.mubr.msk.f32.gmra.mrb[44].mxu0 %vm6835_vm7, %v20206_v1  ;;  %vm6850_vm7 = vcmp.eq.s32.totalorder %v13981_v26, %v20826_v31 }
 0x950   :  { %11050 = vmatprep.mubr.msk.f32.mxu0 %vm6838_vm8, %v20206_v1  ;;  %12530 = vmatpush3.bf16.msra.mxu0 %v14657_v42  ;;  %v20823_v42 = vld [vmem:[#allocation120_spill] sm:$0xff]  ;;  %vm6849_vm8 = vcmp.eq.s32.totalorder %v13970_v11, %v20826_v31  ;;  %v20839_v31 = vld [vmem:[#allocation195_spill] sm:$0xff] }
 0x951   :  { %12531 = vmatprep.subr.bf16.mxu0 %v20210_v37  ;;  %vm6844_vm1 = vcmp.eq.s32.totalorder %v13981_v26, %v20823_v42  ;;  %vm6843_vm2 = vcmp.eq.s32.totalorder %v13970_v11, %v20823_v42  ;;  %v20836_v42 = vld [vmem:[#allocation137_spill] sm:$0xff] }
 0x953   :  { %11051 = vmatmul.mubr.msk.f32.gmra.mrb[46].mxu0 %vm6837_vm11, %v20206_v1  ;;  %vm6852_vm11 = vcmp.eq.s32.totalorder %v13981_v26, %v20827_v30 }
 0x954   :  { %11052 = vmatprep.mubr.msk.f32.mxu0 %vm6840_vm12, %v20206_v1  ;;  %vm6851_vm12 = vcmp.eq.s32.totalorder %v13970_v11, %v20827_v30  ;;  %v20840_v30 = vld [vmem:[#allocation141_spill] sm:$0xff] }
 0x957   :  { %11053 = vmatmul.mubr.msk.f32.gmra.mrb[48].mxu0 %vm6839_vm13, %v20206_v1  ;;  %vm6854_vm13 = vcmp.eq.s32.totalorder %v13981_v26, %v20828_v19 }
 0x958   :  { %11054 = vmatprep.mubr.msk.f32.mxu0 %vm6842_vm14, %v20206_v1  ;;  %vm6853_vm14 = vcmp.eq.s32.totalorder %v13970_v11, %v20828_v19 }
 0x95b   :  { %11055 = vmatmul.mubr.msk.f32.gmra.mrb[50].mxu0 %vm6841_vm15, %v20206_v1  ;;  %vm6856_vm15 = vcmp.eq.s32.totalorder %v13981_v26, %v20829_v40 }
 0x95c   :  { %11056 = vmatprep.mubr.msk.f32.mxu0 %vm6844_vm1, %v20206_v1  ;;  %vm6855_vm1 = vcmp.eq.s32.totalorder %v13970_v11, %v20829_v40 }
 0x95f   :  { %11057 = vmatmul.mubr.msk.f32.gmra.mrb[52].mxu0 %vm6843_vm2, %v20206_v1  ;;  %vm6858_vm2 = vcmp.eq.s32.totalorder %v13981_v26, %v20830_v60 }
 0x960   :  { %11058 = vmatprep.mubr.msk.f32.mxu0 %vm6846_vm3, %v20206_v1  ;;  %vm6857_vm3 = vcmp.eq.s32.totalorder %v13970_v11, %v20830_v60  ;;  %v20841_v60 = vld [vmem:[#allocation198_spill] sm:$0xff] }
 0x963   :  { %11059 = vmatmul.mubr.msk.f32.gmra.mrb[54].mxu0 %vm6845_vm4, %v20206_v1  ;;  %vm6860_vm4 = vcmp.eq.s32.totalorder %v13981_v26, %v20831_v25 }
 0x964   :  { %11060 = vmatprep.mubr.msk.f32.mxu0 %vm6848_vm5, %v20206_v1  ;;  %vm6859_vm5 = vcmp.eq.s32.totalorder %v13970_v11, %v20831_v25  ;;  %v20842_v25 = vld [vmem:[#allocation139_spill] sm:$0xff] }
 0x967   :  { %11061 = vmatmul.mubr.msk.f32.gmra.mrb[56].mxu0 %vm6847_vm6, %v20206_v1  ;;  %vm6862_vm6 = vcmp.eq.s32.totalorder %v13981_v26, %v20832_v51 }
 0x968   :  { %11062 = vmatprep.mubr.msk.f32.mxu0 %vm6850_vm7, %v20206_v1  ;;  %vm6861_vm7 = vcmp.eq.s32.totalorder %v13970_v11, %v20832_v51 }
 0x96b   :  { %11063 = vmatmul.mubr.msk.f32.gmra.mrb[58].mxu0 %vm6849_vm8, %v20206_v1  ;;  %vm6864_vm8 = vcmp.eq.s32.totalorder %v13981_v26, %v20833_v53 }
 0x96c   :  { %11064 = vmatprep.mubr.msk.f32.mxu0 %vm6852_vm11, %v20206_v1  ;;  %vm6863_vm11 = vcmp.eq.s32.totalorder %v13970_v11, %v20833_v53 }
 0x96f   :  { %11065 = vmatmul.mubr.msk.f32.gmra.mrb[60].mxu0 %vm6851_vm12, %v20206_v1  ;;  %vm6866_vm12 = vcmp.eq.s32.totalorder %v13981_v26, %v20834_v24 }
 0x970   :  { %11066 = vmatprep.mubr.msk.f32.mxu0 %vm6854_vm13, %v20206_v1  ;;  %vm6865_vm13 = vcmp.eq.s32.totalorder %v13970_v11, %v20834_v24  ;;  %v20843_v24 = vld [vmem:[#allocation201_spill] sm:$0xff] }
 0x973   :  { %11067 = vmatmul.mubr.msk.f32.gmra.mrb[62].mxu0 %vm6853_vm14, %v20206_v1  ;;  %vm6868_vm14 = vcmp.eq.s32.totalorder %v13981_v26, %v20835_v35 }
 0x974   :  { %11068 = vmatprep.mubr.msk.f32.mxu0 %vm6856_vm15, %v20206_v1  ;;  %vm6867_vm15 = vcmp.eq.s32.totalorder %v13970_v11, %v20835_v35  ;;  %v20844_v35 = vld [vmem:[#allocation144_spill] sm:$0xff] }
 0x977   :  { %11069 = vmatmul.mubr.msk.f32.gmra.mrb[64].mxu0 %vm6855_vm1, %v20206_v1  ;;  %vm6870_vm1 = vcmp.eq.s32.totalorder %v13981_v26, %v20836_v42 }
 0x978   :  { %11070 = vmatprep.mubr.msk.f32.mxu0 %vm6858_vm2, %v20206_v1  ;;  %vm6869_vm2 = vcmp.eq.s32.totalorder %v13970_v11, %v20836_v42 }
 0x97b   :  { %11071 = vmatmul.mubr.msk.f32.gmra.mrb[66].mxu0 %vm6857_vm3, %v20206_v1  ;;  %vm6872_vm3 = vcmp.eq.s32.totalorder %v13981_v26, %v20837_v39 }
 0x97c   :  { %11072 = vmatprep.mubr.msk.f32.mxu0 %vm6860_vm4, %v20206_v1  ;;  %vm6871_vm4 = vcmp.eq.s32.totalorder %v13970_v11, %v20837_v39 }
 0x97f   :  { %11073 = vmatmul.mubr.msk.f32.gmra.mrb[68].mxu0 %vm6859_vm5, %v20206_v1  ;;  %vm6874_vm5 = vcmp.eq.s32.totalorder %v13981_v26, %v20838_v27 }
 0x980   :  { %11074 = vmatprep.mubr.msk.f32.mxu0 %vm6862_vm6, %v20206_v1  ;;  %vm6873_vm6 = vcmp.eq.s32.totalorder %v13970_v11, %v20838_v27  ;;  %v20845_v27 = vld [vmem:[#allocation202_spill] sm:$0xff] }
 0x983   :  { %11075 = vmatmul.mubr.msk.f32.gmra.mrb[70].mxu0 %vm6861_vm7, %v20206_v1  ;;  %vm6876_vm7 = vcmp.eq.s32.totalorder %v13981_v26, %v20839_v31 }
 0x984   :  { %11076 = vmatprep.mubr.msk.f32.mxu0 %vm6864_vm8, %v20206_v1  ;;  %vm6875_vm8 = vcmp.eq.s32.totalorder %v13970_v11, %v20839_v31  ;;  %v20846_v31 = vld [vmem:[#allocation140_spill] sm:$0xff] }
 0x987   :  { %11077 = vmatmul.mubr.msk.f32.gmra.mrb[72].mxu0 %vm6863_vm11, %v20206_v1  ;;  %vm6878_vm11 = vcmp.eq.s32.totalorder %v13981_v26, %v20840_v30 }
 0x988   :  { %11078 = vmatprep.mubr.msk.f32.mxu0 %vm6866_vm12, %v20206_v1  ;;  %vm6877_vm12 = vcmp.eq.s32.totalorder %v13970_v11, %v20840_v30 }
 0x98b   :  { %11079 = vmatmul.mubr.msk.f32.gmra.mrb[74].mxu0 %vm6865_vm13, %v20206_v1  ;;  %vm6880_vm13 = vcmp.eq.s32.totalorder %v13981_v26, %v20841_v60 }
 0x98c   :  { %11080 = vmatprep.mubr.msk.f32.mxu0 %vm6868_vm14, %v20206_v1  ;;  %vm6879_vm14 = vcmp.eq.s32.totalorder %v13970_v11, %v20841_v60 }
 0x98f   :  { %11081 = vmatmul.mubr.msk.f32.gmra.mrb[76].mxu0 %vm6867_vm15, %v20206_v1  ;;  %vm6882_vm15 = vcmp.eq.s32.totalorder %v13981_v26, %v20842_v25 }
 0x990   :  { %11082 = vmatprep.mubr.msk.f32.mxu0 %vm6870_vm1, %v20206_v1  ;;  %vm6881_vm1 = vcmp.eq.s32.totalorder %v13970_v11, %v20842_v25  ;;  %v20847_v25 = vld [vmem:[#allocation207_spill] sm:$0xff] }
 0x993   :  { %11083 = vmatmul.mubr.msk.f32.gmra.mrb[78].mxu0 %vm6869_vm2, %v20206_v1  ;;  %vm6884_vm2 = vcmp.eq.s32.totalorder %v13981_v26, %v20843_v24 }
 0x994   :  { %11084 = vmatprep.mubr.msk.f32.mxu0 %vm6872_vm3, %v20206_v1  ;;  %vm6883_vm3 = vcmp.eq.s32.totalorder %v13970_v11, %v20843_v24  ;;  %v20848_v24 = vld [vmem:[#allocation142_spill] sm:$0xff] }
 0x997   :  { %11085 = vmatmul.mubr.msk.f32.gmra.mrb[80].mxu0 %vm6871_vm4, %v20206_v1  ;;  %vm6886_vm4 = vcmp.eq.s32.totalorder %v13981_v26, %v20844_v35 }
 0x998   :  { %11086 = vmatprep.mubr.msk.f32.mxu0 %vm6874_vm5, %v20206_v1  ;;  %vm6885_vm5 = vcmp.eq.s32.totalorder %v13970_v11, %v20844_v35 }
 0x99b   :  { %11087 = vmatmul.mubr.msk.f32.gmra.mrb[82].mxu0 %vm6873_vm6, %v20206_v1  ;;  %vm6888_vm6 = vcmp.eq.s32.totalorder %v13981_v26, %v20845_v27 }
 0x99c   :  { %11088 = vmatprep.mubr.msk.f32.mxu0 %vm6876_vm7, %v20206_v1  ;;  %vm6887_vm7 = vcmp.eq.s32.totalorder %v13970_v11, %v20845_v27 }
 0x99f   :  { %11089 = vmatmul.mubr.msk.f32.gmra.mrb[84].mxu0 %vm6875_vm8, %v20206_v1  ;;  %vm6890_vm8 = vcmp.eq.s32.totalorder %v13981_v26, %v20846_v31 }
 0x9a0   :  { %11090 = vmatprep.mubr.msk.f32.mxu0 %vm6878_vm11, %v20206_v1  ;;  %vm6889_vm11 = vcmp.eq.s32.totalorder %v13970_v11, %v20846_v31  ;;  %v20849_v31 = vld [vmem:[#allocation208_spill] sm:$0xff] }
 0x9a2   :  { %v17587_v19 = vpop.f32.mrb[10].mxu0 }
 0x9a3   :  { %v17589_v40 = vpop.f32.mrb[11].mxu0  ;;  %11091 = vmatmul.mubr.msk.f32.gmra.mrb[86].mxu0 %vm6877_vm12, %v20206_v1  ;;  %vm6892_vm12 = vcmp.eq.s32.totalorder %v13981_v26, %v20847_v25 }
 0x9a4   :  { %11092 = vmatprep.mubr.msk.f32.mxu0 %vm6880_vm13, %v20206_v1  ;;  %vm6891_vm13 = vcmp.eq.s32.totalorder %v13970_v11, %v20847_v25 }
 0x9a7   :  { %11093 = vmatmul.mubr.msk.f32.gmra.mrb[88].mxu0 %vm6879_vm14, %v20206_v1  ;;  %vm6894_vm14 = vcmp.eq.s32.totalorder %v13981_v26, %v20848_v24 }
 0x9a8   :  { %11094 = vmatprep.mubr.msk.f32.mxu0 %vm6882_vm15, %v20206_v1  ;;  %vm6893_vm15 = vcmp.eq.s32.totalorder %v13970_v11, %v20848_v24 }
 0x9aa   :  { %v17603_v51 = vpop.f32.mrb[12].mxu0 }
 0x9ab   :  { %v17605_v53 = vpop.f32.mrb[13].mxu0  ;;  %11095 = vmatmul.mubr.msk.f32.gmra.mrb[90].mxu0 %vm6881_vm1, %v20206_v1  ;;  %vm6896_vm1 = vcmp.eq.s32.totalorder %v13981_v26, %v20849_v31 }
 0x9ac   :  { %11096 = vmatprep.mubr.msk.f32.mxu0 %vm6884_vm2, %v20206_v1  ;;  %vm6895_vm2 = vcmp.eq.s32.totalorder %v13970_v11, %v20849_v31 }
 0x9af   :  { %11097 = vmatmul.mubr.msk.f32.gmra.mrb[92].mxu0 %vm6883_vm3, %v20206_v1 }
 0x9b0   :  { %11098 = vmatprep.mubr.msk.f32.mxu0 %vm6886_vm4, %v20206_v1 }
 0x9b2   :  { %v17619_v42 = vpop.f32.mrb[14].mxu0 }
 0x9b3   :  { %v17621_v39 = vpop.f32.mrb[15].mxu0  ;;  %11099 = vmatmul.mubr.msk.f32.gmra.mrb[94].mxu0 %vm6885_vm5, %v20206_v1 }
 0x9b4   :  { %11100 = vmatprep.mubr.msk.f32.mxu0 %vm6888_vm6, %v20206_v1 }
 0x9b7   :  { %11101 = vmatmul.mubr.msk.f32.gmra.mrb[96].mxu0 %vm6887_vm7, %v20206_v1 }
 0x9b8   :  { %11102 = vmatprep.mubr.msk.f32.mxu0 %vm6890_vm8, %v20206_v1 }
 0x9ba   :  { %v17635_v30 = vpop.f32.mrb[16].mxu0 }
 0x9bb   :  { %v17637_v60 = vpop.f32.mrb[17].mxu0  ;;  %11103 = vmatmul.mubr.msk.f32.gmra.mrb[98].mxu0 %vm6889_vm11, %v20206_v1 }
 0x9bc   :  { %11104 = vmatprep.mubr.msk.f32.mxu0 %vm6892_vm12, %v20206_v1 }
 0x9bf   :  { %11105 = vmatmul.mubr.msk.f32.gmra.mrb[100].mxu0 %vm6891_vm13, %v20206_v1 }
 0x9c0   :  { %11106 = vmatprep.mubr.msk.f32.mxu0 %vm6894_vm14, %v20206_v1 }
 0x9c2   :  { %v17651_v35 = vpop.f32.mrb[18].mxu0 }
 0x9c3   :  { %v17653_v27 = vpop.f32.mrb[19].mxu0  ;;  %11107 = vmatmul.mubr.msk.f32.gmra.mrb[102].mxu0 %vm6893_vm15, %v20206_v1 }
 0x9c4   :  { %11108 = vmatprep.mubr.msk.f32.mxu0 %vm6896_vm1, %v20206_v1 }
 0x9c7   :  { %11109 = vmatmul.mubr.msk.f32.gmra.mrb[104].mxu0 %vm6895_vm2, %v20206_v1 }
 0x9ca   :  { %v17662_v25 = vpop.f32.mrb[20].mxu0 }
 0x9cb   :  { %v17664_v6 = vpop.f32.mrb[21].mxu0 }
 0x9d2   :  { %v17666_v24 = vpop.f32.mrb[22].mxu0 }
 0x9d3   :  { %20850 = vst [vmem:[#allocation167_spill] sm:$0xff] %v17666_v24  ;;  %v17668_v63 = vpop.f32.mrb[23].mxu0 }
 0x9d4   :  { %20851 = vst [vmem:[#allocation176_spill] sm:$0xff] %v17668_v63 }
 0x9da   :  { %v17670_v47 = vpop.f32.mrb[24].mxu0 }
 0x9db   :  { %20852 = vst [vmem:[#allocation97_spill] sm:$0xff] %v17670_v47  ;;  %v17672_v17 = vpop.f32.mrb[25].mxu0 }
 0x9dc   :  { %20853 = vst [vmem:[#allocation178_spill] sm:$0xff] %v17672_v17  ;;  %v20989_v17 = vld [vmem:[#allocation96_spill] sm:$0xff] }
 0x9e2   :  { %v17674_v36 = vpop.f32.mrb[26].mxu0 }
 0x9e3   :  { %20854 = vst [vmem:[#allocation100_spill] sm:$0xff] %v17674_v36  ;;  %v17676_v5 = vpop.f32.mrb[27].mxu0 }
 0x9e4   :  { %20855 = vst [vmem:[#allocation181_spill] sm:$0xff] %v17676_v5 }
 0x9ea   :  { %v17678_v46 = vpop.f32.mrb[28].mxu0 }
 0x9eb   :  { %20856 = vst [vmem:[#allocation103_spill] sm:$0xff] %v17678_v46  ;;  %v17680_v31 = vpop.f32.mrb[29].mxu0 }
 0x9ec   :  { %20857 = vst [vmem:[#allocation184_spill] sm:$0xff] %v17680_v31 }
 0x9f2   :  { %v17682_v56 = vpop.f32.mrb[30].mxu0 }
 0x9f3   :  { %20858 = vst [vmem:[#allocation112_spill] sm:$0xff] %v17682_v56  ;;  %v17684_v18 = vpop.f32.mrb[31].mxu0 }
 0x9f4   :  { %20859 = vst [vmem:[#allocation115_spill] sm:$0xff] %v17684_v18 }
 0x9fa   :  { %v17686_v61 = vpop.f32.mrb[32].mxu0 }
 0x9fb   :  { %20860 = vst [vmem:[#allocation188_spill] sm:$0xff] %v17686_v61  ;;  %v17688_v33 = vpop.f32.mrb[33].mxu0 }
 0x9fc   :  { %20861 = vst [vmem:[#allocation120_spill] sm:$0xff] %v17688_v33 }
 0xa02   :  { %v17690_v57 = vpop.f32.mrb[34].mxu0 }
 0xa03   :  { %20862 = vst [vmem:[#allocation193_spill] sm:$0xff] %v17690_v57  ;;  %v17692_v8 = vpop.f32.mrb[35].mxu0 }
 0xa04   :  { %20863 = vst [vmem:[#allocation126_spill] sm:$0xff] %v17692_v8 }
 0xa0a   :  { %v17694_v9 = vpop.f32.mrb[36].mxu0 }
 0xa0b   :  { %20864 = vst [vmem:[#allocation197_spill] sm:$0xff] %v17694_v9  ;;  %v17696_v45 = vpop.f32.mrb[37].mxu0 }
 0xa0c   :  { %20865 = vst [vmem:[#allocation169_spill] sm:$0xff] %v17696_v45 }
 0xa12   :  { %v17698_v5 = vpop.f32.mrb[38].mxu0 }
 0xa13   :  { %20866 = vst [vmem:[#allocation132_spill] sm:$0xff] %v17698_v5  ;;  %v17700_v46 = vpop.f32.mrb[39].mxu0 }
 0xa14   :  { %20867 = vst [vmem:[#allocation170_spill] sm:$0xff] %v17700_v46 }
 0xa1a   :  { %v17702_v31 = vpop.f32.mrb[40].mxu0 }
 0xa1b   :  { %20868 = vst [vmem:[#allocation133_spill] sm:$0xff] %v17702_v31  ;;  %v17704_v56 = vpop.f32.mrb[41].mxu0 }
 0xa1c   :  { %20869 = vst [vmem:[#allocation174_spill] sm:$0xff] %v17704_v56 }
 0xa1e   :  { %v7091_v18 = vpop.f32.mrb[42].mxu0 }
 0xa1f   :  { %v7093_v61 = vpop.f32.mrb[43].mxu0  ;;  %11935 = vmatprep.mubr.msk.f32.mxu1 %vm89_vm0, %v7091_v18 }
 0xa22   :  { %v7096_v33 = vpop.f32.mrb[44].mxu0 }
 0xa23   :  { %v7098_v57 = vpop.f32.mrb[45].mxu0  ;;  %11936 = vmatmul.mubr.msk.f32.vlgmr.msra.gmra.mrb[150].mxu1 %vm89_vm0, %v7096_v33 }
 0xa24   :  { %12477 = vmatpush1.bf16.msra.mxu1 %v13646_v59 }
 0xa25   :  { %12478 = vmatprep.subr.bf16.mxu1 %v20210_v37 }
 0xa26   :  { %v7101_v45 = vpop.f32.mrb[46].mxu0 }
 0xa27   :  { %v7103_v5 = vpop.f32.mrb[47].mxu0  ;;  %11938 = vmatprep.mubr.msk.f32.mxu1 %vm89_vm0, %v7101_v45 }
 0xa28   :  { %12480 = vmatpush1.bf16.msra.mxu1 %v13679_v4 }
 0xa29   :  { %12481 = vmatprep.subr.bf16.mxu1 %v20210_v37 }
 0xa2a   :  { %v7106_v56 = vpop.f32.mrb[48].mxu0 }
 0xa2b   :  { %v7108_v61 = vpop.f32.mrb[49].mxu0  ;;  %11939 = vmatmul.mubr.msk.f32.gmra.mrb[152].mxu1 %vm89_vm0, %v7106_v56 }
 0xa2c   :  { %12483 = vmatpush1.bf16.msra.mxu1 %v13706_v13 }
 0xa2d   :  { %12484 = vmatprep.subr.bf16.mxu1 %v20210_v37 }
 0xa2e   :  { %v7111_v57 = vpop.f32.mrb[50].mxu0 }
 0xa2f   :  { %v7113_v59 = vpop.f32.mrb[51].mxu0  ;;  %11941 = vmatprep.mubr.msk.f32.mxu1 %vm89_vm0, %v7111_v57 }
 0xa30   :  { %12486 = vmatpush1.bf16.msra.mxu1 %v13725_v23 }
 0xa31   :  { %12487 = vmatprep.subr.bf16.mxu1 %v20210_v37 }
 0xa32   :  { %v7116_v45 = vpop.f32.mrb[52].mxu0 }
 0xa33   :  { %v7118_v4 = vpop.f32.mrb[53].mxu0  ;;  %11942 = vmatmul.mubr.msk.f32.gmra.mrb[154].mxu1 %vm89_vm0, %v7116_v45 }
 0xa34   :  { %12489 = vmatpush1.bf16.msra.mxu1 %v13745_v38 }
 0xa35   :  { %12490 = vmatprep.subr.bf16.mxu1 %v20210_v37 }
 0xa36   :  { %v7121_v33 = vpop.f32.mrb[54].mxu0 }
 0xa37   :  { %v7123_v13 = vpop.f32.mrb[55].mxu0  ;;  %11944 = vmatprep.mubr.msk.f32.mxu1 %vm89_vm0, %v7121_v33 }
 0xa38   :  { %12492 = vmatpush1.bf16.msra.mxu1 %v20360_v55 }
 0xa39   :  { %12493 = vmatprep.subr.bf16.mxu1 %v20210_v37 }
 0xa3a   :  { %v7126_v56 = vpop.f32.mrb[56].mxu0 }
 0xa3b   :  { %v7128_v23 = vpop.f32.mrb[57].mxu0  ;;  %11945 = vmatmul.mubr.msk.f32.gmra.mrb[156].mxu1 %vm89_vm0, %v7126_v56 }
 0xa3c   :  { %12495 = vmatpush1.bf16.msra.mxu1 %v20363_v29 }
 0xa3d   :  { %12496 = vmatprep.subr.bf16.mxu1 %v20210_v37 }
 0xa3e   :  { %v7131_v18 = vpop.f32.mrb[58].mxu0 }
 0xa3f   :  { %v7133_v38 = vpop.f32.mrb[59].mxu0  ;;  %11947 = vmatprep.mubr.msk.f32.mxu1 %vm89_vm0, %v7131_v18 }
 0xa40   :  { %12498 = vmatpush1.bf16.msra.mxu1 %v20364_v41 }
 0xa41   :  { %12499 = vmatprep.subr.bf16.mxu1 %v20210_v37 }
 0xa42   :  { %v7136_v5 = vpop.f32.mrb[60].mxu0 }
 0xa43   :  { %v7138_v55 = vpop.f32.mrb[61].mxu0  ;;  %11948 = vmatmul.mubr.msk.f32.gmra.mrb[158].mxu1 %vm89_vm0, %v7136_v5 }
 0xa44   :  { %12501 = vmatpush1.bf16.msra.mxu1 %v20367_v21 }
 0xa45   :  { %12502 = vmatprep.subr.bf16.mxu1 %v20210_v37 }
 0xa46   :  { %v7141_v61 = vpop.f32.mrb[62].mxu0 }
 0xa47   :  { %v7143_v29 = vpop.f32.mrb[63].mxu0  ;;  %11950 = vmatprep.mubr.msk.f32.mxu1 %vm89_vm0, %v7141_v61 }
 0xa48   :  { %12504 = vmatpush1.bf16.msra.mxu1 %v20370_v48 }
 0xa49   :  { %12505 = vmatprep.subr.bf16.mxu1 %v20210_v37 }
 0xa4a   :  { %v7146_v57 = vpop.f32.mrb[64].mxu0 }
 0xa4b   :  { %v7148_v41 = vpop.f32.mrb[65].mxu0  ;;  %11951 = vmatmul.mubr.msk.f32.gmra.mrb[160].mxu1 %vm89_vm0, %v7146_v57 }
 0xa4c   :  { %12507 = vmatpush1.bf16.msra.mxu1 %v20371_v20 }
 0xa4d   :  { %12508 = vmatprep.subr.bf16.mxu1 %v20210_v37 }
 0xa4e   :  { %v7151_v59 = vpop.f32.mrb[66].mxu0 }
 0xa4f   :  { %v7153_v21 = vpop.f32.mrb[67].mxu0  ;;  %11953 = vmatprep.mubr.msk.f32.mxu1 %vm89_vm0, %v7151_v59 }
 0xa50   :  { %12510 = vmatpush1.bf16.msra.mxu1 %v20375_v14 }
 0xa51   :  { %12511 = vmatprep.subr.bf16.mxu1 %v20210_v37 }
 0xa52   :  { %v7156_v45 = vpop.f32.mrb[68].mxu0 }
 0xa53   :  { %v7158_v48 = vpop.f32.mrb[69].mxu0  ;;  %11954 = vmatmul.mubr.msk.f32.gmra.mrb[162].mxu1 %vm89_vm0, %v7156_v45 }
 0xa54   :  { %12513 = vmatpush1.bf16.msra.mxu1 %v20379_v7 }
 0xa55   :  { %12514 = vmatprep.subr.bf16.mxu1 %v20210_v37 }
 0xa56   :  { %v7161_v4 = vpop.f32.mrb[70].mxu0 }
 0xa57   :  { %v7163_v20 = vpop.f32.mrb[71].mxu0  ;;  %11956 = vmatprep.mubr.msk.f32.mxu1 %vm89_vm0, %v7161_v4 }
 0xa58   :  { %12516 = vmatpush1.bf16.msra.mxu1 %v20381_v43 }
 0xa59   :  { %12517 = vmatprep.subr.bf16.mxu1 %v20210_v37 }
 0xa5a   :  { %v7166_v33 = vpop.f32.mrb[72].mxu0 }
 0xa5b   :  { %v7168_v14 = vpop.f32.mrb[73].mxu0  ;;  %11957 = vmatmul.mubr.msk.f32.gmra.mrb[164].mxu1 %vm89_vm0, %v7166_v33 }
 0xa5c   :  { %12519 = vmatpush1.bf16.msra.mxu1 %v20385_v52 }
 0xa5d   :  { %12520 = vmatprep.subr.bf16.mxu1 %v20210_v37 }
 0xa5e   :  { %v7171_v13 = vpop.f32.mrb[74].mxu0 }
 0xa5f   :  { %v7173_v7 = vpop.f32.mrb[75].mxu0  ;;  %11959 = vmatprep.mubr.msk.f32.mxu1 %vm89_vm0, %v7171_v13 }
 0xa60   :  { %12522 = vmatpush1.bf16.msra.mxu1 %v20389_v49 }
 0xa62   :  { %v7176_v56 = vpop.f32.mrb[76].mxu0 }
 0xa63   :  { %v7178_v23 = vpop.f32.mrb[77].mxu0  ;;  %11960 = vmatmul.mubr.msk.f32.gmra.mrb[166].mxu1 %vm89_vm0, %v7176_v56 }
 0xa66   :  { %v7181_v43 = vpop.f32.mrb[78].mxu0 }
 0xa67   :  { %v7183_v18 = vpop.f32.mrb[79].mxu0  ;;  %11962 = vmatprep.mubr.msk.f32.mxu1 %vm89_vm0, %v7181_v43 }
 0xa6a   :  { %v7186_v38 = vpop.f32.mrb[80].mxu0 }
 0xa6b   :  { %v7188_v5 = vpop.f32.mrb[81].mxu0  ;;  %11963 = vmatmul.mubr.msk.f32.gmra.mrb[168].mxu1 %vm89_vm0, %v7186_v38 }
 0xa6c   :  { %v20870_v5 = vld [vmem:[#allocation143_spill] sm:$0xff] }
 0xa6d   :  { %vm7700_vm3 = vcmp.eq.s32.totalorder %v13981_v26, %v20870_v5  ;;  %vm7699_vm4 = vcmp.eq.s32.totalorder %v13970_v11, %v20870_v5  ;;  %v20891_v5 = vld [vmem:[#allocation31_spill] sm:$0xff] }
 0xa6e   :  { %v7191_v52 = vpop.f32.mrb[82].mxu0 }
 0xa6f   :  { %v7193_v55 = vpop.f32.mrb[83].mxu0  ;;  %11965 = vmatprep.mubr.msk.f32.mxu1 %vm89_vm0, %v7191_v52 }
 0xa72   :  { %v7196_v61 = vpop.f32.mrb[84].mxu0 }
 0xa73   :  { %v7198_v29 = vpop.f32.mrb[85].mxu0  ;;  %11966 = vmatmul.mubr.msk.f32.gmra.mrb[170].mxu1 %vm89_vm0, %v7196_v61  ;;  %v20871_v61 = vld [vmem:[#allocation38_spill] sm:$0xff] }
 0xa74   :  { %vm7702_vm5 = vcmp.eq.s32.totalorder %v13981_v26, %v20871_v61  ;;  %vm7701_vm6 = vcmp.eq.s32.totalorder %v13970_v11, %v20871_v61  ;;  %v20872_v29 = vld [vmem:[#allocation13_spill] sm:$0xff] }
 0xa75   :  { %vm7704_vm7 = vcmp.eq.s32.totalorder %v13981_v26, %v20872_v29  ;;  %vm7703_vm8 = vcmp.eq.s32.totalorder %v13970_v11, %v20872_v29  ;;  %v20895_v29 = vld [vmem:[#allocation30_spill] sm:$0xff] }
 0xa76   :  { %v7201_v49 = vpop.f32.mrb[86].mxu0 }
 0xa77   :  { %v7203_v57 = vpop.f32.mrb[87].mxu0  ;;  %11968 = vmatprep.mubr.msk.f32.mxu1 %vm89_vm0, %v7201_v49  ;;  %v20873_v49 = vld [vmem:[#allocation14_spill] sm:$0xff] }
 0xa78   :  { %vm7706_vm11 = vcmp.eq.s32.totalorder %v13981_v26, %v20873_v49  ;;  %vm7705_vm12 = vcmp.eq.s32.totalorder %v13970_v11, %v20873_v49  ;;  %v20874_v57 = vld [vmem:[#allocation146_spill] sm:$0xff] }
 0xa79   :  { %vm7708_vm13 = vcmp.eq.s32.totalorder %v13981_v26, %v20874_v57  ;;  %vm7707_vm14 = vcmp.eq.s32.totalorder %v13970_v11, %v20874_v57  ;;  %v20896_v49 = vld [vmem:[#allocation150_spill] sm:$0xff] }
 0xa7a   :  { %v7206_v41 = vpop.f32.mrb[88].mxu0 }
 0xa7b   :  { %v7208_v59 = vpop.f32.mrb[89].mxu0  ;;  %11969 = vmatmul.mubr.msk.f32.gmra.mrb[172].mxu1 %vm89_vm0, %v7206_v41  ;;  %v20875_v41 = vld [vmem:[#allocation145_spill] sm:$0xff] }
 0xa7c   :  { %vm7710_vm15 = vcmp.eq.s32.totalorder %v13981_v26, %v20875_v41  ;;  %vm7709_vm1 = vcmp.eq.s32.totalorder %v13970_v11, %v20875_v41  ;;  %v20876_v59 = vld [vmem:[#allocation17_spill] sm:$0xff] }
 0xa7d   :  { %vm7712_vm2 = vcmp.eq.s32.totalorder %v13981_v26, %v20876_v59 }
 0xa7e   :  { %v7211_v21 = vpop.f32.mrb[90].mxu0 }
 0xa7f   :  { %v7213_v45 = vpop.f32.mrb[91].mxu0  ;;  %11971 = vmatprep.mubr.msk.f32.mxu1 %vm89_vm0, %v7211_v21  ;;  %v20877_v21 = vld [vmem:[#allocation15_spill] sm:$0xff] }
 0xa80   :  { %v20878_v45 = vld [vmem:[#allocation148_spill] sm:$0xff] }
 0xa82   :  { %v7216_v48 = vpop.f32.mrb[92].mxu0 }
 0xa83   :  { %v7218_v4 = vpop.f32.mrb[93].mxu0  ;;  %11972 = vmatmul.mubr.msk.f32.gmra.mrb[174].mxu1 %vm89_vm0, %v7216_v48  ;;  %v20879_v48 = vld [vmem:[#allocation16_spill] sm:$0xff] }
 0xa84   :  { %v20880_v4 = vld [vmem:[#allocation21_spill] sm:$0xff] }
 0xa86   :  { %v7221_v20 = vpop.f32.mrb[94].mxu0 }
 0xa87   :  { %v7223_v33 = vpop.f32.mrb[95].mxu0  ;;  %11974 = vmatprep.mubr.msk.f32.mxu1 %vm89_vm0, %v7221_v20  ;;  %v20881_v20 = vld [vmem:[#allocation147_spill] sm:$0xff] }
 0xa88   :  { %v20882_v33 = vld [vmem:[#allocation20_spill] sm:$0xff] }
 0xa8a   :  { %v7226_v14 = vpop.f32.mrb[96].mxu0 }
 0xa8b   :  { %v7228_v13 = vpop.f32.mrb[97].mxu0  ;;  %11975 = vmatmul.mubr.msk.f32.gmra.mrb[176].mxu1 %vm89_vm0, %v7226_v14  ;;  %v20883_v14 = vld [vmem:[#allocation25_spill] sm:$0xff] }
 0xa8c   :  { %v20884_v13 = vld [vmem:[#allocation22_spill] sm:$0xff] }
 0xa8e   :  { %v7231_v7 = vpop.f32.mrb[98].mxu0 }
 0xa8f   :  { %v7233_v56 = vpop.f32.mrb[99].mxu0  ;;  %11977 = vmatprep.mubr.msk.f32.mxu1 %vm89_vm0, %v7231_v7  ;;  %v20885_v7 = vld [vmem:[#allocation24_spill] sm:$0xff] }
 0xa90   :  { %v20886_v56 = vld [vmem:[#allocation18_spill] sm:$0xff] }
 0xa92   :  { %v7236_v23 = vpop.f32.mrb[100].mxu0 }
 0xa93   :  { %v7238_v43 = vpop.f32.mrb[101].mxu0  ;;  %11978 = vmatmul.mubr.msk.f32.gmra.mrb[178].mxu1 %vm89_vm0, %v7236_v23  ;;  %v20887_v23 = vld [vmem:[#allocation26_spill] sm:$0xff] }
 0xa94   :  { %v20888_v43 = vld [vmem:[#allocation19_spill] sm:$0xff] }
 0xa96   :  { %v7241_v18 = vpop.f32.mrb[102].mxu0 }
 0xa97   :  { %v7243_v38 = vpop.f32.mrb[103].mxu0  ;;  %11980 = vmatprep.mubr.msk.f32.mxu1 %vm89_vm0, %v7241_v18  ;;  %v20889_v18 = vld [vmem:[#allocation29_spill] sm:$0xff] }
 0xa98   :  { %v20890_v38 = vld [vmem:[#allocation149_spill] sm:$0xff] }
 0xa9a   :  { %v7246_v52 = vpop.f32.mrb[104].mxu0 }
 0xa9b   :  { %v7248_v55 = vpop.f32.mrb[105].mxu0  ;;  %11981 = vmatmul.mubr.msk.f32.gmra.mrb[180].mxu1 %vm89_vm0, %v7246_v52  ;;  %v20892_v52 = vld [vmem:[#allocation23_spill] sm:$0xff] }
 0xa9c   :  { %11206 = vmatprep.mubr.msk.f32.mxu1 %vm7700_vm3, %v20206_v1  ;;  %vm7711_vm3 = vcmp.eq.s32.totalorder %v13970_v11, %v20876_v59  ;;  %v20899_v59 = vld [vmem:[#allocation27_spill] sm:$0xff] }
 0xa9f   :  { %11207 = vmatmul.mubr.msk.f32.vlgmr.msra.gmra.mrb[182].mxu1 %vm7699_vm4, %v20206_v1  ;;  %vm7714_vm4 = vcmp.eq.s32.totalorder %v13981_v26, %v20877_v21 }
 0xaa0   :  { %11208 = vmatprep.mubr.msk.f32.mxu1 %vm7702_vm5, %v20206_v1  ;;  %vm7713_vm5 = vcmp.eq.s32.totalorder %v13970_v11, %v20877_v21  ;;  %v20900_v21 = vld [vmem:[#allocation151_spill] sm:$0xff] }
 0xaa3   :  { %11209 = vmatmul.mubr.msk.f32.gmra.mrb[184].mxu1 %vm7701_vm6, %v20206_v1  ;;  %vm7716_vm6 = vcmp.eq.s32.totalorder %v13981_v26, %v20878_v45 }
 0xaa4   :  { %11210 = vmatprep.mubr.msk.f32.mxu1 %vm7704_vm7, %v20206_v1  ;;  %vm7715_vm7 = vcmp.eq.s32.totalorder %v13970_v11, %v20878_v45 }
 0xaa7   :  { %11211 = vmatmul.mubr.msk.f32.gmra.mrb[186].mxu1 %vm7703_vm8, %v20206_v1  ;;  %vm7718_vm8 = vcmp.eq.s32.totalorder %v13981_v26, %v20879_v48 }
 0xaa8   :  { %11212 = vmatprep.mubr.msk.f32.mxu1 %vm7706_vm11, %v20206_v1  ;;  %vm7717_vm11 = vcmp.eq.s32.totalorder %v13970_v11, %v20879_v48 }
 0xaab   :  { %11213 = vmatmul.mubr.msk.f32.gmra.mrb[188].mxu1 %vm7705_vm12, %v20206_v1  ;;  %vm7720_vm12 = vcmp.eq.s32.totalorder %v13981_v26, %v20880_v4 }
 0xaac   :  { %11214 = vmatprep.mubr.msk.f32.mxu1 %vm7708_vm13, %v20206_v1  ;;  %vm7719_vm13 = vcmp.eq.s32.totalorder %v13970_v11, %v20880_v4  ;;  %v20903_v4 = vld [vmem:[#allocation152_spill] sm:$0xff] }
 0xaaf   :  { %11215 = vmatmul.mubr.msk.f32.gmra.mrb[190].mxu1 %vm7707_vm14, %v20206_v1  ;;  %vm7722_vm14 = vcmp.eq.s32.totalorder %v13981_v26, %v20881_v20 }
 0xab0   :  { %11216 = vmatprep.mubr.msk.f32.mxu1 %vm7710_vm15, %v20206_v1  ;;  %vm7721_vm15 = vcmp.eq.s32.totalorder %v13970_v11, %v20881_v20  ;;  %v20904_v20 = vld [vmem:[#allocation211_spill] sm:$0xff] }
 0xab3   :  { %11217 = vmatmul.mubr.msk.f32.gmra.mrb[192].mxu1 %vm7709_vm1, %v20206_v1  ;;  %vm7724_vm1 = vcmp.eq.s32.totalorder %v13981_v26, %v20882_v33 }
 0xab4   :  { %11218 = vmatprep.mubr.msk.f32.mxu1 %vm7712_vm2, %v20206_v1  ;;  %vm7723_vm2 = vcmp.eq.s32.totalorder %v13970_v11, %v20882_v33 }
 0xab7   :  { %11219 = vmatmul.mubr.msk.f32.gmra.mrb[194].mxu1 %vm7711_vm3, %v20206_v1  ;;  %vm7726_vm3 = vcmp.eq.s32.totalorder %v13981_v26, %v20883_v14 }
 0xab8   :  { %11220 = vmatprep.mubr.msk.f32.mxu1 %vm7714_vm4, %v20206_v1  ;;  %vm7725_vm4 = vcmp.eq.s32.totalorder %v13970_v11, %v20883_v14 }
 0xabb   :  { %11221 = vmatmul.mubr.msk.f32.gmra.mrb[196].mxu1 %vm7713_vm5, %v20206_v1  ;;  %vm7728_vm5 = vcmp.eq.s32.totalorder %v13981_v26, %v20884_v13 }
 0xabc   :  { %11222 = vmatprep.mubr.msk.f32.mxu1 %vm7716_vm6, %v20206_v1  ;;  %vm7727_vm6 = vcmp.eq.s32.totalorder %v13970_v11, %v20884_v13  ;;  %v20907_v13 = vld [vmem:[#allocation156_spill] sm:$0xff] }
 0xabf   :  { %11223 = vmatmul.mubr.msk.f32.gmra.mrb[198].mxu1 %vm7715_vm7, %v20206_v1  ;;  %vm7730_vm7 = vcmp.eq.s32.totalorder %v13981_v26, %v20885_v7 }
 0xac0   :  { %11224 = vmatprep.mubr.msk.f32.mxu1 %vm7718_vm8, %v20206_v1  ;;  %vm7729_vm8 = vcmp.eq.s32.totalorder %v13970_v11, %v20885_v7  ;;  %v20908_v7 = vld [vmem:[#allocation32_spill] sm:$0xff] }
 0xac3   :  { %11225 = vmatmul.mubr.msk.f32.gmra.mrb[200].mxu1 %vm7717_vm11, %v20206_v1  ;;  %vm7732_vm11 = vcmp.eq.s32.totalorder %v13981_v26, %v20886_v56 }
 0xac4   :  { %11226 = vmatprep.mubr.msk.f32.mxu1 %vm7720_vm12, %v20206_v1  ;;  %vm7731_vm12 = vcmp.eq.s32.totalorder %v13970_v11, %v20886_v56 }
 0xac7   :  { %11227 = vmatmul.mubr.msk.f32.gmra.mrb[202].mxu1 %vm7719_vm13, %v20206_v1  ;;  %vm7734_vm13 = vcmp.eq.s32.totalorder %v13981_v26, %v20887_v23 }
 0xac8   :  { %11228 = vmatprep.mubr.msk.f32.mxu1 %vm7722_vm14, %v20206_v1  ;;  %vm7733_vm14 = vcmp.eq.s32.totalorder %v13970_v11, %v20887_v23 }
 0xacb   :  { %11229 = vmatmul.mubr.msk.f32.gmra.mrb[204].mxu1 %vm7721_vm15, %v20206_v1  ;;  %vm7736_vm15 = vcmp.eq.s32.totalorder %v13981_v26, %v20888_v43 }
 0xacc   :  { %11230 = vmatprep.mubr.msk.f32.mxu1 %vm7724_vm1, %v20206_v1  ;;  %vm7735_vm1 = vcmp.eq.s32.totalorder %v13970_v11, %v20888_v43  ;;  %v20911_v43 = vld [vmem:[#allocation28_spill] sm:$0xff] }
 0xacf   :  { %11231 = vmatmul.mubr.msk.f32.gmra.mrb[206].mxu1 %vm7723_vm2, %v20206_v1  ;;  %vm7738_vm2 = vcmp.eq.s32.totalorder %v13981_v26, %v20889_v18 }
 0xad0   :  { %11232 = vmatprep.mubr.msk.f32.mxu1 %vm7726_vm3, %v20206_v1  ;;  %vm7737_vm3 = vcmp.eq.s32.totalorder %v13970_v11, %v20889_v18 }
 0xad3   :  { %11233 = vmatmul.mubr.msk.f32.gmra.mrb[208].mxu1 %vm7725_vm4, %v20206_v1  ;;  %vm7740_vm4 = vcmp.eq.s32.totalorder %v13981_v26, %v20890_v38 }
 0xad4   :  { %11234 = vmatprep.mubr.msk.f32.mxu1 %vm7728_vm5, %v20206_v1  ;;  %vm7739_vm5 = vcmp.eq.s32.totalorder %v13970_v11, %v20890_v38 }
 0xad7   :  { %11235 = vmatmul.mubr.msk.f32.gmra.mrb[210].mxu1 %vm7727_vm6, %v20206_v1  ;;  %vm7742_vm6 = vcmp.eq.s32.totalorder %v13981_v26, %v20891_v5 }
 0xad8   :  { %11236 = vmatprep.mubr.msk.f32.mxu1 %vm7730_vm7, %v20206_v1  ;;  %vm7741_vm7 = vcmp.eq.s32.totalorder %v13970_v11, %v20891_v5 }
 0xadb   :  { %11237 = vmatmul.mubr.msk.f32.gmra.mrb[212].mxu1 %vm7729_vm8, %v20206_v1  ;;  %vm7744_vm8 = vcmp.eq.s32.totalorder %v13981_v26, %v20892_v52 }
 0xadc   :  { %11238 = vmatprep.mubr.msk.f32.mxu1 %vm7732_vm11, %v20206_v1  ;;  %vm7743_vm11 = vcmp.eq.s32.totalorder %v13970_v11, %v20892_v52 }
 0xadf   :  { %11239 = vmatmul.mubr.msk.f32.gmra.mrb[214].mxu1 %vm7731_vm12, %v20206_v1  ;;  %vm7746_vm12 = vcmp.eq.s32.totalorder %v13981_v26, %v20895_v29 }
 0xae0   :  { %11240 = vmatprep.mubr.msk.f32.mxu1 %vm7734_vm13, %v20206_v1  ;;  %vm7745_vm13 = vcmp.eq.s32.totalorder %v13970_v11, %v20895_v29 }
 0xae3   :  { %11241 = vmatmul.mubr.msk.f32.gmra.mrb[216].mxu1 %vm7733_vm14, %v20206_v1  ;;  %vm7748_vm14 = vcmp.eq.s32.totalorder %v13981_v26, %v20896_v49 }
 0xae4   :  { %11242 = vmatprep.mubr.msk.f32.mxu1 %vm7736_vm15, %v20206_v1  ;;  %vm7747_vm15 = vcmp.eq.s32.totalorder %v13970_v11, %v20896_v49 }
 0xae7   :  { %11243 = vmatmul.mubr.msk.f32.gmra.mrb[218].mxu1 %vm7735_vm1, %v20206_v1  ;;  %vm7750_vm1 = vcmp.eq.s32.totalorder %v13981_v26, %v20899_v59 }
 0xae8   :  { %11244 = vmatprep.mubr.msk.f32.mxu1 %vm7738_vm2, %v20206_v1  ;;  %vm7749_vm2 = vcmp.eq.s32.totalorder %v13970_v11, %v20899_v59 }
 0xaeb   :  { %11245 = vmatmul.mubr.msk.f32.gmra.mrb[220].mxu1 %vm7737_vm3, %v20206_v1  ;;  %vm7752_vm3 = vcmp.eq.s32.totalorder %v13981_v26, %v20900_v21 }
 0xaec   :  { %11246 = vmatprep.mubr.msk.f32.mxu1 %vm7740_vm4, %v20206_v1  ;;  %vm7751_vm4 = vcmp.eq.s32.totalorder %v13970_v11, %v20900_v21 }
 0xaef   :  { %11247 = vmatmul.mubr.msk.f32.gmra.mrb[222].mxu1 %vm7739_vm5, %v20206_v1  ;;  %vm7754_vm5 = vcmp.eq.s32.totalorder %v13981_v26, %v20903_v4 }
 0xaf0   :  { %11248 = vmatprep.mubr.msk.f32.mxu1 %vm7742_vm6, %v20206_v1  ;;  %vm7753_vm6 = vcmp.eq.s32.totalorder %v13970_v11, %v20903_v4 }
 0xaf3   :  { %11249 = vmatmul.mubr.msk.f32.gmra.mrb[224].mxu1 %vm7741_vm7, %v20206_v1  ;;  %vm7756_vm7 = vcmp.eq.s32.totalorder %v13981_v26, %v20904_v20 }
 0xaf4   :  { %11250 = vmatprep.mubr.msk.f32.mxu1 %vm7744_vm8, %v20206_v1  ;;  %vm7755_vm8 = vcmp.eq.s32.totalorder %v13970_v11, %v20904_v20 }
 0xaf6   :  { %v17906_v55 = vpop.f32.mrb[150].mxu1 }
 0xaf7   :  { %20893 = vst [vmem:[#allocation135_spill] sm:$0xff] %v17906_v55  ;;  %v17908_v61 = vpop.f32.mrb[151].mxu1  ;;  %11251 = vmatmul.mubr.msk.f32.gmra.mrb[226].mxu1 %vm7743_vm11, %v20206_v1  ;;  %vm7758_vm11 = vcmp.eq.s32.totalorder %v13981_v26, %v20907_v13 }
 0xaf8   :  { %20894 = vst [vmem:[#allocation182_spill] sm:$0xff] %v17908_v61  ;;  %11252 = vmatprep.mubr.msk.f32.mxu1 %vm7746_vm12, %v20206_v1  ;;  %vm7757_vm12 = vcmp.eq.s32.totalorder %v13970_v11, %v20907_v13 }
 0xafb   :  { %11253 = vmatmul.mubr.msk.f32.gmra.mrb[228].mxu1 %vm7745_vm13, %v20206_v1  ;;  %vm7760_vm13 = vcmp.eq.s32.totalorder %v13981_v26, %v20908_v7 }
 0xafc   :  { %11254 = vmatprep.mubr.msk.f32.mxu1 %vm7748_vm14, %v20206_v1  ;;  %vm7759_vm14 = vcmp.eq.s32.totalorder %v13970_v11, %v20908_v7 }
 0xafe   :  { %v17922_v57 = vpop.f32.mrb[152].mxu1 }
 0xaff   :  { %20897 = vst [vmem:[#allocation136_spill] sm:$0xff] %v17922_v57  ;;  %v17924_v41 = vpop.f32.mrb[153].mxu1  ;;  %11255 = vmatmul.mubr.msk.f32.gmra.mrb[230].mxu1 %vm7747_vm15, %v20206_v1  ;;  %vm7762_vm15 = vcmp.eq.s32.totalorder %v13981_v26, %v20911_v43  ;;  %v20963_v57 = vld [vmem:[#allocation89_spill] sm:$0xff] }
 0xb00   :  { %20898 = vst [vmem:[#allocation186_spill] sm:$0xff] %v17924_v41  ;;  %11256 = vmatprep.mubr.msk.f32.mxu1 %vm7750_vm1, %v20206_v1  ;;  %vm7761_vm1 = vcmp.eq.s32.totalorder %v13970_v11, %v20911_v43 }
 0xb03   :  { %11257 = vmatmul.mubr.msk.f32.gmra.mrb[232].mxu1 %vm7749_vm2, %v20206_v1 }
 0xb04   :  { %11258 = vmatprep.mubr.msk.f32.mxu1 %vm7752_vm3, %v20206_v1 }
 0xb06   :  { %v17938_v45 = vpop.f32.mrb[154].mxu1 }
 0xb07   :  { %20901 = vst [vmem:[#allocation137_spill] sm:$0xff] %v17938_v45  ;;  %v17940_v48 = vpop.f32.mrb[155].mxu1  ;;  %11259 = vmatmul.mubr.msk.f32.gmra.mrb[234].mxu1 %vm7751_vm4, %v20206_v1 }
 0xb08   :  { %20902 = vst [vmem:[#allocation189_spill] sm:$0xff] %v17940_v48  ;;  %11260 = vmatprep.mubr.msk.f32.mxu1 %vm7754_vm5, %v20206_v1 }
 0xb0b   :  { %11261 = vmatmul.mubr.msk.f32.gmra.mrb[236].mxu1 %vm7753_vm6, %v20206_v1 }
 0xb0c   :  { %11262 = vmatprep.mubr.msk.f32.mxu1 %vm7756_vm7, %v20206_v1 }
 0xb0e   :  { %v17954_v33 = vpop.f32.mrb[156].mxu1 }
 0xb0f   :  { %20905 = vst [vmem:[#allocation138_spill] sm:$0xff] %v17954_v33  ;;  %v17956_v14 = vpop.f32.mrb[157].mxu1  ;;  %11263 = vmatmul.mubr.msk.f32.gmra.mrb[238].mxu1 %vm7755_vm8, %v20206_v1 }
 0xb10   :  { %20906 = vst [vmem:[#allocation195_spill] sm:$0xff] %v17956_v14  ;;  %11264 = vmatprep.mubr.msk.f32.mxu1 %vm7758_vm11, %v20206_v1 }
 0xb13   :  { %11265 = vmatmul.mubr.msk.f32.gmra.mrb[240].mxu1 %vm7757_vm12, %v20206_v1 }
 0xb14   :  { %11266 = vmatprep.mubr.msk.f32.mxu1 %vm7760_vm13, %v20206_v1 }
 0xb16   :  { %v17970_v56 = vpop.f32.mrb[158].mxu1 }
 0xb17   :  { %20909 = vst [vmem:[#allocation141_spill] sm:$0xff] %v17970_v56  ;;  %v17972_v23 = vpop.f32.mrb[159].mxu1  ;;  %11267 = vmatmul.mubr.msk.f32.gmra.mrb[242].mxu1 %vm7759_vm14, %v20206_v1 }
 0xb18   :  { %20910 = vst [vmem:[#allocation198_spill] sm:$0xff] %v17972_v23  ;;  %11268 = vmatprep.mubr.msk.f32.mxu1 %vm7762_vm15, %v20206_v1  ;;  %v20959_v23 = vld [vmem:[#allocation158_spill] sm:$0xff] }
 0xb1b   :  { %11269 = vmatmul.mubr.msk.f32.gmra.mrb[244].mxu1 %vm7761_vm1, %v20206_v1 }
 0xb1e   :  { %v17981_v18 = vpop.f32.mrb[160].mxu1 }
 0xb1f   :  { %20912 = vst [vmem:[#allocation139_spill] sm:$0xff] %v17981_v18  ;;  %v17983_v38 = vpop.f32.mrb[161].mxu1 }
 0xb20   :  { %20913 = vst [vmem:[#allocation201_spill] sm:$0xff] %v17983_v38 }
 0xb26   :  { %v17985_v5 = vpop.f32.mrb[162].mxu1 }
 0xb27   :  { %20914 = vst [vmem:[#allocation144_spill] sm:$0xff] %v17985_v5  ;;  %v17987_v52 = vpop.f32.mrb[163].mxu1 }
 0xb28   :  { %20915 = vst [vmem:[#allocation202_spill] sm:$0xff] %v17987_v52 }
 0xb2e   :  { %v17989_v29 = vpop.f32.mrb[164].mxu1 }
 0xb2f   :  { %20916 = vst [vmem:[#allocation140_spill] sm:$0xff] %v17989_v29  ;;  %v17991_v49 = vpop.f32.mrb[165].mxu1 }
 0xb30   :  { %20917 = vst [vmem:[#allocation207_spill] sm:$0xff] %v17991_v49 }
 0xb36   :  { %v17993_v26 = vpop.f32.mrb[166].mxu1 }
 0xb37   :  { %20918 = vst [vmem:[#allocation142_spill] sm:$0xff] %v17993_v26  ;;  %v17995_v59 = vpop.f32.mrb[167].mxu1 }
 0xb38   :  { %20919 = vst [vmem:[#allocation208_spill] sm:$0xff] %v17995_v59 }
 0xb3e   :  { %v17997_v21 = vpop.f32.mrb[168].mxu1 }
 0xb3f   :  { %20920 = vst [vmem:[#allocation143_spill] sm:$0xff] %v17997_v21  ;;  %v17999_v11 = vpop.f32.mrb[169].mxu1 }
 0xb40   :  { %20921 = vst [vmem:[#allocation38_spill] sm:$0xff] %v17999_v11 }
 0xb46   :  { %v18001_v1 = vpop.f32.mrb[170].mxu1 }
 0xb47   :  { %20922 = vst [vmem:[#allocation13_spill] sm:$0xff] %v18001_v1  ;;  %v18003_v4 = vpop.f32.mrb[171].mxu1 }
 0xb48   :  { %20923 = vst [vmem:[#allocation14_spill] sm:$0xff] %v18003_v4 }
 0xb4e   :  { %v18005_v20 = vpop.f32.mrb[172].mxu1 }
 0xb4f   :  { %20924 = vst [vmem:[#allocation146_spill] sm:$0xff] %v18005_v20  ;;  %v18007_v13 = vpop.f32.mrb[173].mxu1  ;;  %v9109_v20 = vld [vmem:[%s19747_s8] sm:$0xff] }
 0xb50   :  { %20925 = vst [vmem:[#allocation145_spill] sm:$0xff] %v18007_v13 }
 0xb56   :  { %v18009_v7 = vpop.f32.mrb[174].mxu1 }
 0xb57   :  { %20926 = vst [vmem:[#allocation17_spill] sm:$0xff] %v18009_v7  ;;  %v18011_v43 = vpop.f32.mrb[175].mxu1  ;;  %v9110_v7 = vld [vmem:[%s19747_s8 + $0x8] sm:$0xff] }
 0xb58   :  { %20927 = vst [vmem:[#allocation15_spill] sm:$0xff] %v18011_v43 }
 0xb5e   :  { %v18013_v29 = vpop.f32.mrb[176].mxu1 }
 0xb5f   :  { %20928 = vst [vmem:[#allocation148_spill] sm:$0xff] %v18013_v29  ;;  %v18015_v26 = vpop.f32.mrb[177].mxu1 }
 0xb60   :  { %20929 = vst [vmem:[#allocation16_spill] sm:$0xff] %v18015_v26  ;;  %v12532_v26 = vpack.c.bf16 %v9110_v7, %v9109_v20  ;;  %v9114_v20 = vld [vmem:[%s19747_s8 + $0x28] sm:$0xff] }
 0xb66   :  { %v18017_v59 = vpop.f32.mrb[178].mxu1 }
 0xb67   :  { %20930 = vst [vmem:[#allocation21_spill] sm:$0xff] %v18017_v59  ;;  %v18019_v21 = vpop.f32.mrb[179].mxu1  ;;  %v9111_v59 = vld [vmem:[%s19747_s8 + $0x10] sm:$0xff] }
 0xb68   :  { %20931 = vst [vmem:[#allocation147_spill] sm:$0xff] %v18019_v21 }
 0xb6e   :  { %v18021_v11 = vpop.f32.mrb[180].mxu1 }
 0xb6f   :  { %20932 = vst [vmem:[#allocation20_spill] sm:$0xff] %v18021_v11  ;;  %v18023_v1 = vpop.f32.mrb[181].mxu1  ;;  %v9112_v11 = vld [vmem:[%s19747_s8 + $0x18] sm:$0xff] }
 0xb70   :  { %20933 = vst [vmem:[#allocation25_spill] sm:$0xff] %v18023_v1  ;;  %v12535_v13 = vpack.c.bf16 %v9112_v11, %v9111_v59  ;;  %v9116_v59 = vld [vmem:[%s19747_s8 + $0x38] sm:$0xff] }
 0xb72   :  { %v7957_v43 = vpop.f32.mrb[182].mxu1 }
 0xb73   :  { %v7959_v29 = vpop.f32.mrb[183].mxu1  ;;  %11991 = vmatprep.mubr.msk.f32.mxu0 %vm89_vm0, %v7957_v43 }
 0xb74   :  { %v9113_v29 = vld [vmem:[%s19747_s8 + $0x20] sm:$0xff] }
 0xb76   :  { %v7962_v1 = vpop.f32.mrb[184].mxu1 }
 0xb77   :  { %v7964_v21 = vpop.f32.mrb[185].mxu1  ;;  %11992 = vmatmul.mubr.msk.f32.vlgmr.msra.gmra.mrb[106].mxu0 %vm89_vm0, %v7962_v1 }
 0xb78   :  { %12533 = vmatpush1.bf16.msra.mxu0 %v12532_v26  ;;  %v12538_v21 = vpack.c.bf16 %v9114_v20, %v9113_v29  ;;  %v9115_v26 = vld [vmem:[%s19747_s8 + $0x30] sm:$0xff]  ;;  %v9118_v29 = vld [vmem:[%s19747_s8 + $0x48] sm:$0xff] }
 0xb79   :  { %12534 = vmatprep.subr.bf16.mxu0 %v20210_v37 }
 0xb7a   :  { %v7967_v7 = vpop.f32.mrb[186].mxu1 }
 0xb7b   :  { %v7969_v43 = vpop.f32.mrb[187].mxu1  ;;  %11994 = vmatprep.mubr.msk.f32.mxu0 %vm89_vm0, %v7967_v7 }
 0xb7c   :  { %12536 = vmatpush1.bf16.msra.mxu0 %v12535_v13  ;;  %v12541_v43 = vpack.c.bf16 %v9116_v59, %v9115_v26  ;;  %v9117_v13 = vld [vmem:[%s19747_s8 + $0x40] sm:$0xff]  ;;  %v9120_v26 = vld [vmem:[%s19747_s8 + $0x58] sm:$0xff] }
 0xb7d   :  { %12537 = vmatprep.subr.bf16.mxu0 %v20210_v37 }
 0xb7e   :  { %v7972_v11 = vpop.f32.mrb[188].mxu1 }
 0xb7f   :  { %v7974_v1 = vpop.f32.mrb[189].mxu1  ;;  %11995 = vmatmul.mubr.msk.f32.gmra.mrb[108].mxu0 %vm89_vm0, %v7972_v11 }
 0xb80   :  { %12539 = vmatpush1.bf16.msra.mxu0 %v12538_v21  ;;  %v12544_v1 = vpack.c.bf16 %v9118_v29, %v9117_v13  ;;  %v9119_v21 = vld [vmem:[%s19747_s8 + $0x50] sm:$0xff]  ;;  %v9122_v13 = vld [vmem:[%s19747_s8 + $0x68] sm:$0xff] }
 0xb81   :  { %12540 = vmatprep.subr.bf16.mxu0 %v20210_v37 }
 0xb82   :  { %v7977_v20 = vpop.f32.mrb[190].mxu1 }
 0xb83   :  { %v7979_v7 = vpop.f32.mrb[191].mxu1  ;;  %11997 = vmatprep.mubr.msk.f32.mxu0 %vm89_vm0, %v7977_v20 }
 0xb84   :  { %12542 = vmatpush1.bf16.msra.mxu0 %v12541_v43  ;;  %v12547_v7 = vpack.c.bf16 %v9120_v26, %v9119_v21  ;;  %v9121_v43 = vld [vmem:[%s19747_s8 + $0x60] sm:$0xff]  ;;  %v9124_v21 = vld [vmem:[%s19747_s8 + $0x78] sm:$0xff] }
 0xb85   :  { %12543 = vmatprep.subr.bf16.mxu0 %v20210_v37 }
 0xb86   :  { %v7982_v59 = vpop.f32.mrb[192].mxu1 }
 0xb87   :  { %v7984_v11 = vpop.f32.mrb[193].mxu1  ;;  %11998 = vmatmul.mubr.msk.f32.gmra.mrb[110].mxu0 %vm89_vm0, %v7982_v59 }
 0xb88   :  { %12545 = vmatpush1.bf16.msra.mxu0 %v12544_v1  ;;  %v12550_v11 = vpack.c.bf16 %v9122_v13, %v9121_v43  ;;  %v9123_v1 = vld [vmem:[%s19747_s8 + $0x70] sm:$0xff]  ;;  %v9126_v43 = vld [vmem:[%s19747_s8 + $0x88] sm:$0xff] }
 0xb89   :  { %12546 = vmatprep.subr.bf16.mxu0 %v20210_v37 }
 0xb8a   :  { %v7987_v29 = vpop.f32.mrb[194].mxu1 }
 0xb8b   :  { %v7989_v20 = vpop.f32.mrb[195].mxu1  ;;  %12000 = vmatprep.mubr.msk.f32.mxu0 %vm89_vm0, %v7987_v29 }
 0xb8c   :  { %12548 = vmatpush1.bf16.msra.mxu0 %v12547_v7  ;;  %v12553_v20 = vpack.c.bf16 %v9124_v21, %v9123_v1  ;;  %v9125_v7 = vld [vmem:[%s19747_s8 + $0x80] sm:$0xff]  ;;  %v9128_v1 = vld [vmem:[%s19747_s8 + $0x98] sm:$0xff] }
 0xb8d   :  { %12549 = vmatprep.subr.bf16.mxu0 %v20210_v37 }
 0xb8e   :  { %v7992_v26 = vpop.f32.mrb[196].mxu1 }
 0xb8f   :  { %v7994_v59 = vpop.f32.mrb[197].mxu1  ;;  %12001 = vmatmul.mubr.msk.f32.gmra.mrb[112].mxu0 %vm89_vm0, %v7992_v26 }
 0xb90   :  { %12551 = vmatpush1.bf16.msra.mxu0 %v12550_v11  ;;  %v12556_v59 = vpack.c.bf16 %v9126_v43, %v9125_v7  ;;  %v9127_v11 = vld [vmem:[%s19747_s8 + $0x90] sm:$0xff]  ;;  %v9130_v7 = vld [vmem:[%s19747_s8 + $0xa8] sm:$0xff] }
 0xb91   :  { %12552 = vmatprep.subr.bf16.mxu0 %v20210_v37 }
 0xb92   :  { %v7997_v13 = vpop.f32.mrb[198].mxu1 }
 0xb93   :  { %v7999_v29 = vpop.f32.mrb[199].mxu1  ;;  %12003 = vmatprep.mubr.msk.f32.mxu0 %vm89_vm0, %v7997_v13 }
 0xb94   :  { %12554 = vmatpush1.bf16.msra.mxu0 %v12553_v20  ;;  %v12559_v29 = vpack.c.bf16 %v9128_v1, %v9127_v11  ;;  %v9129_v20 = vld [vmem:[%s19747_s8 + $0xa0] sm:$0xff]  ;;  %v9132_v11 = vld [vmem:[%s19747_s8 + $0xb8] sm:$0xff] }
 0xb95   :  { %12555 = vmatprep.subr.bf16.mxu0 %v20210_v37 }
 0xb96   :  { %v8002_v21 = vpop.f32.mrb[200].mxu1 }
 0xb97   :  { %v8004_v26 = vpop.f32.mrb[201].mxu1  ;;  %12004 = vmatmul.mubr.msk.f32.gmra.mrb[114].mxu0 %vm89_vm0, %v8002_v21  ;;  %v18118_v21 = vpop.xlane.xlu0 %865 }
 0xb98   :  { %12557 = vmatpush1.bf16.msra.mxu0 %v12556_v59  ;;  %v12562_v26 = vpack.c.bf16 %v9130_v7, %v9129_v20  ;;  %v9131_v59 = vld [vmem:[%s19747_s8 + $0xb0] sm:$0xff]  ;;  %20934 = vst [vmem:[#allocation22_spill] sm:$0xff] %v18118_v21  ;;  %v9133_v20 = vld [vmem:[%s19747_s8 + $0xc0] sm:$0xff]  ;;  %v9134_v7 = vld [vmem:[%s19747_s8 + $0xc8] sm:$0xff] }
 0xb99   :  { %12558 = vmatprep.subr.bf16.mxu0 %v20210_v37 }
 0xb9a   :  { %v8007_v43 = vpop.f32.mrb[202].mxu1 }
 0xb9b   :  { %v8009_v13 = vpop.f32.mrb[203].mxu1  ;;  %12006 = vmatprep.mubr.msk.f32.mxu0 %vm89_vm0, %v8007_v43 }
 0xb9c   :  { %12560 = vmatpush1.bf16.msra.mxu0 %v12559_v29  ;;  %v18121_v13 = vpop.xlane.xlu1 %868  ;;  %v12565_v29 = vpack.c.bf16 %v9132_v11, %v9131_v59  ;;  %v9136_v59 = vld [vmem:[%s19747_s8 + $0xd8] sm:$0xff] }
 0xb9d   :  { %12561 = vmatprep.subr.bf16.mxu0 %v20210_v37  ;;  %20935 = vst [vmem:[#allocation24_spill] sm:$0xff] %v18121_v13 }
 0xb9e   :  { %v8012_v1 = vpop.f32.mrb[204].mxu1 }
 0xb9f   :  { %v8014_v4 = vpop.f32.mrb[205].mxu1  ;;  %12007 = vmatmul.mubr.msk.f32.gmra.mrb[116].mxu0 %vm89_vm0, %v8012_v1  ;;  %v18131_v1 = vpop.xlane.xlu0 %871 }
 0xba0   :  { %12563 = vmatpush1.bf16.msra.mxu0 %v12562_v26  ;;  %v12568_v4 = vpack.c.bf16 %v9134_v7, %v9133_v20  ;;  %20936 = vst [vmem:[#allocation18_spill] sm:$0xff] %v18131_v1  ;;  %v9135_v26 = vld [vmem:[%s19747_s8 + $0xd0] sm:$0xff]  ;;  %v18140_v11 = vpop.xlane.xlu1 %880  ;;  %v9137_v20 = vld [vmem:[%s19747_s8 + $0xe0] sm:$0xff]  ;;  %v9138_v7 = vld [vmem:[%s19747_s8 + $0xe8] sm:$0xff] }
 0xba1   :  { %12564 = vmatprep.subr.bf16.mxu0 %v20210_v37  ;;  %20937 = vst [vmem:[#allocation26_spill] sm:$0xff] %v18140_v11 }
 0xba2   :  { %v8017_v43 = vpop.f32.mrb[206].mxu1 }
 0xba3   :  { %v8019_v49 = vpop.f32.mrb[207].mxu1  ;;  %12009 = vmatprep.mubr.msk.f32.mxu0 %vm89_vm0, %v8017_v43  ;;  %v18150_v52 = vpop.xlane.xlu0 %874 }
 0xba4   :  { %12566 = vmatpush1.bf16.msra.mxu0 %v12565_v29  ;;  %v12571_v29 = vpack.c.bf16 %v9136_v59, %v9135_v26  ;;  %20938 = vst [vmem:[#allocation19_spill] sm:$0xff] %v18150_v52  ;;  %v9140_v26 = vld [vmem:[%s19747_s8 + $0xf8] sm:$0xff] }
 0xba5   :  { %12567 = vmatprep.subr.bf16.mxu0 %v20210_v37 }
 0xba6   :  { %v8022_v5 = vpop.f32.mrb[208].mxu1 }
 0xba7   :  { %v8024_v49 = vpop.f32.mrb[209].mxu1  ;;  %12010 = vmatmul.mubr.msk.f32.gmra.mrb[118].mxu0 %vm89_vm0, %v8022_v5  ;;  %v12574_v5 = vpack.c.bf16 %v9138_v7, %v9137_v20 }
 0xba8   :  { %12569 = vmatpush1.bf16.msra.mxu0 %v12568_v4  ;;  %v18153_v49 = vpop.xlane.xlu1 %886  ;;  %v9139_v4 = vld [vmem:[%s19747_s8 + $0xf0] sm:$0xff] }
 0xba9   :  { %12570 = vmatprep.subr.bf16.mxu0 %v20210_v37  ;;  %20939 = vst [vmem:[#allocation29_spill] sm:$0xff] %v18153_v49 }
 0xbaa   :  { %v8027_v43 = vpop.f32.mrb[210].mxu1 }
 0xbab   :  { %v8029_v18 = vpop.f32.mrb[211].mxu1  ;;  %12012 = vmatprep.mubr.msk.f32.mxu0 %vm89_vm0, %v8027_v43  ;;  %v18163_v43 = vpop.xlane.xlu0 %877 }
 0xbac   :  { %12572 = vmatpush1.bf16.msra.mxu0 %v12571_v29  ;;  %v12577_v18 = vpack.c.bf16 %v9140_v26, %v9139_v4  ;;  %20940 = vst [vmem:[#allocation149_spill] sm:$0xff] %v18163_v43  ;;  %v18166_v29 = vpop.xlane.xlu1 %892 }
 0xbad   :  { %12573 = vmatprep.subr.bf16.mxu0 %v20210_v37  ;;  %20941 = vst [vmem:[#allocation31_spill] sm:$0xff] %v18166_v29 }
 0xbae   :  { %v8032_v59 = vpop.f32.mrb[212].mxu1 }
 0xbaf   :  { %v8034_v38 = vpop.f32.mrb[213].mxu1  ;;  %12013 = vmatmul.mubr.msk.f32.gmra.mrb[120].mxu0 %vm89_vm0, %v8032_v59  ;;  %v18170_v11 = vpop.xlane.xlu0 %883 }
 0xbb0   :  { %12575 = vmatpush1.bf16.msra.mxu0 %v12574_v5  ;;  %20942 = vst [vmem:[#allocation23_spill] sm:$0xff] %v18170_v11  ;;  %v18173_v5 = vpop.xlane.xlu1 %898 }
 0xbb1   :  { %12576 = vmatprep.subr.bf16.mxu0 %v20210_v37  ;;  %20943 = vst [vmem:[#allocation30_spill] sm:$0xff] %v18173_v5 }
 0xbb2   :  { %v8037_v20 = vpop.f32.mrb[214].mxu1 }
 0xbb3   :  { %v8039_v7 = vpop.f32.mrb[215].mxu1  ;;  %12015 = vmatprep.mubr.msk.f32.mxu0 %vm89_vm0, %v8037_v20  ;;  %v18176_v59 = vpop.xlane.xlu0 %889 }
 0xbb4   :  { %12578 = vmatpush1.bf16.msra.mxu0 %v12577_v18  ;;  %20944 = vst [vmem:[#allocation150_spill] sm:$0xff] %v18176_v59  ;;  %v18178_v7 = vpop.xlane.xlu1 %904 }
 0xbb5   :  { %12579 = vmatprep.subr.bf16.mxu0 %v20210_v37  ;;  %20945 = vst [vmem:[#allocation27_spill] sm:$0xff] %v18178_v7 }
 0xbb6   :  { %v8042_v49 = vpop.f32.mrb[216].mxu1 }
 0xbb7   :  { %v8044_v38 = vpop.f32.mrb[217].mxu1  ;;  %12016 = vmatmul.mubr.msk.f32.gmra.mrb[122].mxu0 %vm89_vm0, %v8042_v49  ;;  %v18181_v43 = vpop.xlane.xlu0 %895 }
 0xbb8   :  { %20946 = vst [vmem:[#allocation151_spill] sm:$0xff] %v18181_v43  ;;  %v18184_v49 = vpop.xlane.xlu1 %910 }
 0xbb9   :  { %20947 = vst [vmem:[#allocation152_spill] sm:$0xff] %v18184_v49 }
 0xbba   :  { %v8047_v4 = vpop.f32.mrb[218].mxu1 }
 0xbbb   :  { %v8049_v26 = vpop.f32.mrb[219].mxu1  ;;  %12018 = vmatprep.mubr.msk.f32.mxu0 %vm89_vm0, %v8047_v4  ;;  %v18187_v4 = vpop.xlane.xlu0 %901 }
 0xbbc   :  { %20948 = vst [vmem:[#allocation211_spill] sm:$0xff] %v18187_v4  ;;  %v18189_v59 = vpop.xlane.xlu1 %916 }
 0xbbd   :  { %20949 = vst [vmem:[#allocation156_spill] sm:$0xff] %v18189_v59 }
 0xbbe   :  { %v8052_v20 = vpop.f32.mrb[220].mxu1 }
 0xbbf   :  { %v8054_v18 = vpop.f32.mrb[221].mxu1  ;;  %12019 = vmatmul.mubr.msk.f32.gmra.mrb[124].mxu0 %vm89_vm0, %v8052_v20  ;;  %v18192_v11 = vpop.xlane.xlu0 %907 }
 0xbc0   :  { %20950 = vst [vmem:[#allocation32_spill] sm:$0xff] %v18192_v11 }
 0xbc2   :  { %v8057_v29 = vpop.f32.mrb[222].mxu1 }
 0xbc3   :  { %v8059_v38 = vpop.f32.mrb[223].mxu1  ;;  %12021 = vmatprep.mubr.msk.f32.mxu0 %vm89_vm0, %v8057_v29  ;;  %v18195_v29 = vpop.xlane.xlu1 %922 }
 0xbc4   :  { %20951 = vst [vmem:[#allocation28_spill] sm:$0xff] %v18195_v29 }
 0xbc6   :  { %v8062_v5 = vpop.f32.mrb[224].mxu1 }
 0xbc7   :  { %v8064_v26 = vpop.f32.mrb[225].mxu1  ;;  %12022 = vmatmul.mubr.msk.f32.gmra.mrb[126].mxu0 %vm89_vm0, %v8062_v5  ;;  %v18198_v5 = vpop.xlane.xlu0 %913 }
 0xbc8   :  { %20952 = vst [vmem:[#allocation218_spill] sm:$0xff] %v18198_v5  ;;  %v18200_v4 = vpop.xlane.xlu1 %928 }
 0xbc9   :  { %20953 = vst [vmem:[#allocation219_spill] sm:$0xff] %v18200_v4 }
 0xbca   :  { %v8067_v7 = vpop.f32.mrb[226].mxu1 }
 0xbcb   :  { %v8069_v18 = vpop.f32.mrb[227].mxu1  ;;  %12024 = vmatprep.mubr.msk.f32.mxu0 %vm89_vm0, %v8067_v7 }
 0xbcc   :  { %v12787_v7 = vpop.permute.xlu1 %12786 }
 0xbcd   :  { %v12788_v13 = vunpack.i.l.bf16 %v12787_v7 }
 0xbce   :  { %v8072_v20 = vpop.f32.mrb[228].mxu1 }
 0xbcf   :  { %v8074_v38 = vpop.f32.mrb[229].mxu1  ;;  %12025 = vmatmul.mubr.msk.f32.gmra.mrb[128].mxu0 %vm89_vm0, %v8072_v20  ;;  %v18204_v20 = vpop.xlane.xlu0 %919 }
 0xbd0   :  { %20954 = vst [vmem:[#allocation220_spill] sm:$0xff] %v18204_v20 }
 0xbd2   :  { %v8077_v49 = vpop.f32.mrb[230].mxu1 }
 0xbd3   :  { %v8079_v26 = vpop.f32.mrb[231].mxu1  ;;  %12027 = vmatprep.mubr.msk.f32.mxu0 %vm89_vm0, %v8077_v49  ;;  %v12792_v49 = vpop.permute.xlu1 %12791 }
 0xbd4   :  { %v18207_v26 = vpop.xlane.xlu0 %925  ;;  %v12794_v33 = vunpack.i.h.bf16 %v12792_v49 }
 0xbd5   :  { %20955 = vst [vmem:[#allocation221_spill] sm:$0xff] %v18207_v26 }
 0xbd6   :  { %v8082_v59 = vpop.f32.mrb[232].mxu1 }
 0xbd7   :  { %v8084_v18 = vpop.f32.mrb[233].mxu1  ;;  %12028 = vmatmul.mubr.msk.f32.gmra.mrb[130].mxu0 %vm89_vm0, %v8082_v59 }
 0xbd8   :  { %v18210_v18 = vpop.permute.xlu1 %12796 }
 0xbda   :  { %v8087_v43 = vpop.f32.mrb[234].mxu1 }
 0xbdb   :  { %v8089_v11 = vpop.f32.mrb[235].mxu1  ;;  %12030 = vmatprep.mubr.msk.f32.mxu0 %vm89_vm0, %v8087_v43  ;;  %v20957_v43 = vld [vmem:[#allocation86_spill] sm:$0xff] }
 0xbdc   :  { %v18213_v11 = vpop.xlane.xlu0 %931 }
 0xbdd   :  { %20956 = vst [vmem:[#allocation222_spill] sm:$0xff] %v18213_v11 }
 0xbde   :  { %v8092_v38 = vpop.f32.mrb[236].mxu1 }
 0xbdf   :  { %v8094_v29 = vpop.f32.mrb[237].mxu1  ;;  %12031 = vmatmul.mubr.msk.f32.gmra.mrb[132].mxu0 %vm89_vm0, %v8092_v38  ;;  %v12793_v38 = vunpack.i.l.bf16 %v12792_v49 }
 0xbe0   :  { %v3949_v29 = vadd.f32 %v20957_v43, %v16711_v58  ;;  %v18220_v52 = vpop.permute.xlu0 %12816 }
 0xbe2   :  { %v8097_v5 = vpop.f32.mrb[238].mxu1 }
 0xbe3   :  { %v8099_v4 = vpop.f32.mrb[239].mxu1  ;;  %12033 = vmatprep.mubr.msk.f32.mxu0 %vm89_vm0, %v8097_v5  ;;  %v12802_v5 = vpop.permute.xlu1 %12801 }
 0xbe4   :  { %v20958_v4 = vld [vmem:[#allocation203_spill] sm:$0xff]  ;;  %v12804_v55 = vunpack.i.h.bf16 %v12802_v5 }
 0xbe5   :  { %v2217_v26 = vadd.f32 %v20958_v4, %v16711_v58  ;;  %v18228_v4 = vpop.xlane.xlu0 %937 }
 0xbe6   :  { %v8102_v59 = vpop.f32.mrb[240].mxu1  ;;  %20962 = vst [vmem:[#allocation86_spill] sm:$0xff] %v18228_v4  ;;  %v20966_v4 = vld [vmem:[#allocation84_spill] sm:$0xff] }
 0xbe7   :  { %v8104_v56 = vpop.f32.mrb[241].mxu1  ;;  %12034 = vmatmul.mubr.msk.f32.gmra.mrb[134].mxu0 %vm89_vm0, %v8102_v59  ;;  %v4107_v59 = vmax.f32 %v3949_v29, 0.0  ;;  %v2375_v45 = vmax.f32 %v2217_v26, 0.0  ;;  %v12789_v29 = vunpack.i.h.bf16 %v12787_v7  ;;  %v12807_v41 = vpop.permute.xlu1 %12806  ;;  %v20965_v26 = vld [vmem:[#allocation154_spill] sm:$0xff] }
 0xbe8   :  { %v20960_v56 = vld [vmem:[#allocation81_spill] sm:$0xff]  ;;  %v12808_v31 = vunpack.i.l.bf16 %v12807_v41  ;;  %v12809_v9 = vunpack.i.h.bf16 %v12807_v41 }
 0xbe9   :  { %v3954_v1 = vadd.f32 %v20960_v56, %v20959_v23  ;;  %v3959_v56 = vadd.f32 %v20963_v57, %v16726_v12  ;;  %v8981_v49 = vsel %vm538_vm9, %v2375_v45, %v12794_v33  ;;  %v18238_v61 = vpop.permute.xlu0 %12826  ;;  %v12798_v45 = vunpack.i.l.bf16 %v18210_v18 }
 0xbea   :  { %v8107_v20 = vpop.f32.mrb[242].mxu1 }
 0xbeb   :  { %v8109_v21 = vpop.f32.mrb[243].mxu1  ;;  %12036 = vmatprep.mubr.msk.f32.mxu0 %vm89_vm0, %v8107_v20  ;;  %v20961_v20 = vld [vmem:[#allocation33_spill] sm:$0xff]  ;;  %v4108_v48 = vmax.f32 %v3954_v1, 0.0  ;;  %v4109_v1 = vmax.f32 %v3959_v56, 0.0 }
 0xbec   :  { %v9013_v21 = vsel %vm538_vm9, %v4107_v59, %v12793_v38  ;;  %v2222_v43 = vadd.f32 %v20961_v20, %v20959_v23  ;;  %v20964_v59 = vld [vmem:[#allocation206_spill] sm:$0xff] }
 0xbed   :  { %v2227_v20 = vadd.f32 %v20964_v59, %v16726_v12 }
 0xbee   :  { %v8112_v11 = vpop.f32.mrb[244].mxu1  ;;  %v2376_v38 = vmax.f32 %v2222_v43, 0.0  ;;  %v12812_v43 = vpop.permute.xlu1 %12811 }
 0xbef   :  { %v8114_v14 = vpop.f32.mrb[245].mxu1  ;;  %12037 = vmatmul.mubr.msk.f32.gmra.mrb[136].mxu0 %vm89_vm0, %v8112_v11  ;;  %v9014_v11 = vsel %vm538_vm9, %v4108_v48, %v12788_v13  ;;  %v20967_v48 = vld [vmem:[#allocation205_spill] sm:$0xff]  ;;  %v2377_v7 = vmax.f32 %v2227_v20, 0.0  ;;  %v20970_v20 = vld [vmem:[#allocation155_spill] sm:$0xff]  ;;  %vm1181_vm0 = vcmask 23552  }
 0xbf0   :  { %9244 = vmatprep.mubr.f32.mxu0 %v9013_v21  ;;  %v12803_v14 = vunpack.i.l.bf16 %v12802_v5  ;;  %v3964_v21 = vadd.f32 %v20966_v4, %v20965_v26  ;;  %v8982_v57 = vsel %vm538_vm9, %v2376_v38, %v12789_v29  ;;  %v2232_v13 = vadd.f32 %v20967_v48, %v20965_v26  ;;  %v20968_v4 = vld [vmem:[#allocation92_spill] sm:$0xff] }
 0xbf1   :  { %v3969_v56 = vadd.f32 %v20968_v4, %v16737_v2  ;;  %v12799_v5 = vunpack.i.h.bf16 %v18210_v18  ;;  %v12813_v29 = vunpack.i.l.bf16 %v12812_v43  ;;  %v12814_v4 = vunpack.i.h.bf16 %v12812_v43 }
 0xbf2   :  { %v9015_v33 = vsel %vm538_vm9, %v4109_v1, %v12803_v14  ;;  %v2378_v59 = vmax.f32 %v2232_v13, 0.0  ;;  %v20969_v14 = vld [vmem:[#allocation40_spill] sm:$0xff] }
 0xbf3   :  { %9245 = vmatmul.mubr.f32.vlgmr.msra.gmra.mrb[138].mxu0 %v8981_v49  ;;  %v4110_v49 = vmax.f32 %v3964_v21, 0.0  ;;  %v2237_v1 = vadd.f32 %v20969_v14, %v16737_v2  ;;  %v20971_v21 = vld [vmem:[#allocation87_spill] sm:$0xff]  ;;  %v4111_v48 = vmax.f32 %v3969_v56, 0.0  ;;  %v20973_v14 = vld [vmem:[#allocation153_spill] sm:$0xff] }
 0xbf4   :  { %9249 = vmatprep.mubr.f32.mxu0 %v9014_v11  ;;  %v8983_v11 = vsel %vm538_vm9, %v2377_v7, %v12804_v55  ;;  %v8984_v18 = vsel %vm538_vm9, %v2378_v59, %v12799_v5  ;;  %v20975_v59 = vld [vmem:[#allocation42_spill] sm:$0xff] }
 0xbf5   :  { %v9016_v38 = vsel %vm538_vm9, %v4110_v49, %v12798_v45  ;;  %v9017_v55 = vsel %vm538_vm9, %v4111_v48, %v12813_v29  ;;  %v20972_v45 = vld [vmem:[#allocation39_spill] sm:$0xff]  ;;  %v2379_v7 = vmax.f32 %v2237_v1, 0.0  ;;  %v12822_v49 = vpop.permute.xlu1 %12821  ;;  %v2247_v48 = vadd.f32 %v20975_v59, %v20973_v14  ;;  %v20976_v1 = vld [vmem:[#allocation157_spill] sm:$0xff]  ;;  %v20980_v59 = vld [vmem:[#allocation98_spill] sm:$0xff] }
 0xbf6   :  { %v2242_v13 = vadd.f32 %v20972_v45, %v20970_v20  ;;  %v12823_v56 = vunpack.i.l.bf16 %v12822_v49  ;;  %v12824_v45 = vunpack.i.h.bf16 %v12822_v49 }
 0xbf7   :  { %9250 = vmatmul.mubr.f32.gmra.mrb[140].mxu0 %v8982_v57  ;;  %v18252_v57 = vpop.permute.xlu0 %12831  ;;  %v8985_v43 = vsel %vm538_vm9, %v2379_v7, %v12814_v4  ;;  %v20978_v7 = vld [vmem:[#allocation41_spill] sm:$0xff] }
 0xbf8   :  { %9254 = vmatprep.mubr.f32.mxu0 %v9015_v33  ;;  %v3974_v33 = vadd.f32 %v20971_v21, %v20970_v20  ;;  %v2380_v29 = vmax.f32 %v2242_v13, 0.0  ;;  %v2381_v13 = vmax.f32 %v2247_v48, 0.0  ;;  %v12833_v49 = vunpack.i.l.bf16 %v18252_v57 }
 0xbfa   :  { %v8986_v41 = vsel %vm538_vm9, %v2380_v29, %v12809_v9  ;;  %v8987_v9 = vsel %vm538_vm9, %v2381_v13, %v12824_v45  ;;  %v12828_v45 = vunpack.i.l.bf16 %v18238_v61  ;;  %v9142_v13 = vld [vmem:[%s19747_s8 + $0x108] sm:$0xff] }
 0xbfb   :  { %9255 = vmatmul.mubr.f32.gmra.mrb[142].mxu0 %v8983_v11  ;;  %v4112_v11 = vmax.f32 %v3974_v33, 0.0  ;;  %v18262_v21 = vpop.permute.xlu0 %12836 }
 0xbfc   :  { %9259 = vmatprep.mubr.f32.mxu0 %v9016_v38  ;;  %v20974_v38 = vld [vmem:[#allocation95_spill] sm:$0xff] }
 0xbfd   :  { %v3979_v46 = vadd.f32 %v20974_v38, %v20973_v14  ;;  %v9018_v5 = vsel %vm538_vm9, %v4112_v11, %v12808_v31  ;;  %v12818_v38 = vunpack.i.l.bf16 %v18220_v52  ;;  %v2252_v31 = vadd.f32 %v20978_v7, %v20976_v1 }
 0xbff   :  { %9260 = vmatmul.mubr.f32.gmra.mrb[144].mxu0 %v8984_v18  ;;  %v20977_v18 = vld [vmem:[#allocation90_spill] sm:$0xff]  ;;  %v18275_v11 = vpop.permute.xlu0 %12841  ;;  %v2382_v29 = vmax.f32 %v2252_v31, 0.0 }
 0xc00   :  { %9264 = vmatprep.mubr.f32.mxu0 %v9017_v55  ;;  %v3984_v33 = vadd.f32 %v20977_v18, %v20976_v1  ;;  %v4113_v55 = vmax.f32 %v3979_v46, 0.0  ;;  %v12819_v46 = vunpack.i.h.bf16 %v18220_v52  ;;  %v9141_v31 = vld [vmem:[%s19747_s8 + $0x100] sm:$0xff] }
 0xc02   :  { %v9019_v4 = vsel %vm538_vm9, %v4113_v55, %v12823_v56  ;;  %v20981_v55 = vld [vmem:[#allocation44_spill] sm:$0xff]  ;;  %v8988_v52 = vsel %vm538_vm9, %v2382_v29, %v12819_v46  ;;  %v20985_v29 = vld [vmem:[#allocation162_spill] sm:$0xff] }
 0xc03   :  { %9265 = vmatmul.mubr.f32.gmra.mrb[146].mxu0 %v8985_v43  ;;  %v4114_v43 = vmax.f32 %v3984_v33, 0.0  ;;  %v18288_v8 = vpop.permute.xlu0 %12846  ;;  %v9143_v46 = vld [vmem:[%s19747_s8 + $0x110] sm:$0xff] }
 0xc04   :  { %9269 = vmatprep.mubr.f32.mxu0 %v9018_v5  ;;  %v20979_v5 = vld [vmem:[#allocation160_spill] sm:$0xff] }
 0xc05   :  { %v3989_v18 = vadd.f32 %v20980_v59, %v20979_v5  ;;  %v9020_v56 = vsel %vm538_vm9, %v4114_v43, %v12818_v38  ;;  %v2257_v48 = vadd.f32 %v20981_v55, %v20979_v5  ;;  %v12834_v59 = vunpack.i.h.bf16 %v18252_v57  ;;  %v20984_v43 = vld [vmem:[#allocation43_spill] sm:$0xff]  ;;  %v20986_v55 = vld [vmem:[#allocation101_spill] sm:$0xff] }
 0xc07   :  { %9270 = vmatmul.mubr.f32.gmra.mrb[148].mxu0 %v8986_v41  ;;  %v20982_v41 = vld [vmem:[#allocation5_spill] sm:$0xff]  ;;  %v4115_v7 = vmax.f32 %v3989_v18, 0.0  ;;  %v2383_v18 = vmax.f32 %v2257_v48, 0.0  ;;  %v12852_v36 = vpop.permute.xlu0 %12851 }
 0xc08   :  { %9274 = vmatprep.mubr.f32.mxu0 %v9019_v4  ;;  %v20983_v4 = vld [vmem:[#allocation93_spill] sm:$0xff]  ;;  %v2262_v57 = vadd.f32 %v20984_v43, %v20982_v41  ;;  %v20987_v43 = vld [vmem:[#allocation46_spill] sm:$0xff]  ;;  %v12854_v24 = vunpack.i.h.bf16 %v12852_v36 }
 0xc09   :  { %v3994_v33 = vadd.f32 %v20983_v4, %v20982_v41  ;;  %v9021_v38 = vsel %vm538_vm9, %v4115_v7, %v12833_v49  ;;  %v9144_v49 = vld [vmem:[%s19747_s8 + $0x118] sm:$0xff]  ;;  %v3999_v4 = vadd.f32 %v20986_v55, %v20985_v29  ;;  %v12829_v7 = vunpack.i.h.bf16 %v18238_v61 }
 0xc0a   :  { %v12583_v48 = vpack.c.bf16 %v9144_v49, %v9143_v46  ;;  %v20988_v55 = vld [vmem:[#allocation213_spill] sm:$0xff] }
 0xc0b   :  { %9275 = vmatmul.mubr.f32.gmra.mrb[150].mxu0 %v8987_v9  ;;  %v12580_v9 = vpack.c.bf16 %v9142_v13, %v9141_v31  ;;  %v2384_v13 = vmax.f32 %v2262_v57, 0.0  ;;  %v4004_v61 = vadd.f32 %v20989_v17, %v20988_v55  ;;  %v4117_v47 = vmax.f32 %v3999_v4, 0.0  ;;  %v9145_v57 = vld [vmem:[%s19747_s8 + $0x120] sm:$0xff]  ;;  %v9146_v17 = vld [vmem:[%s19747_s8 + $0x128] sm:$0xff]  ;;  %v9148_v4 = vld [vmem:[%s19747_s8 + $0x138] sm:$0xff] }
 0xc0c   :  { %9279 = vmatprep.mubr.f32.mxu0 %v9020_v56  ;;  %v4116_v56 = vmax.f32 %v3994_v33, 0.0  ;;  %v2267_v33 = vadd.f32 %v20987_v43, %v20985_v29 }
 0xc0d   :  { %12581 = vmatpush1.bf16.msra.mxu0 %v12580_v9  ;;  %v12838_v9 = vunpack.i.l.bf16 %v18262_v21 }
 0xc0e   :  { %v9022_v31 = vsel %vm538_vm9, %v4116_v56, %v12828_v45  ;;  %12582 = vmatprep.subr.bf16.mxu0 %v20210_v37  ;;  %v2385_v49 = vmax.f32 %v2267_v33, 0.0  ;;  %v12586_v56 = vpack.c.bf16 %v9146_v17, %v9145_v57 }
 0xc0f   :  { %9280 = vmatmul.mubr.f32.gmra.mrb[152].mxu0 %v8988_v52  ;;  %v8989_v52 = vsel %vm538_vm9, %v2383_v18, %v12834_v59  ;;  %v12844_v59 = vunpack.i.h.bf16 %v18275_v11  ;;  %v8990_v18 = vsel %vm538_vm9, %v2384_v13, %v12829_v7  ;;  %v4118_v7 = vmax.f32 %v4004_v61, 0.0  ;;  %v18340_v13 = vpop.permute.xlu0 %12856  ;;  %v20993_v61 = vld [vmem:[#allocation48_spill] sm:$0xff] }
 0xc10   :  { %9284 = vmatprep.mubr.f32.mxu0 %v9021_v38  ;;  %v12843_v38 = vunpack.i.l.bf16 %v18275_v11  ;;  %v20990_v11 = vld [vmem:[#allocation45_spill] sm:$0xff] }
 0xc11   :  { %12584 = vmatpush1.bf16.msra.mxu0 %v12583_v48  ;;  %v2272_v46 = vadd.f32 %v20990_v11, %v20988_v55  ;;  %v20992_v48 = vld [vmem:[#allocation104_spill] sm:$0xff]  ;;  %v8991_v43 = vsel %vm538_vm9, %v2385_v49, %v12844_v59  ;;  %v20994_v11 = vld [vmem:[#allocation215_spill] sm:$0xff]  ;;  %v12848_v49 = vunpack.i.l.bf16 %v18288_v8 }
 0xc12   :  { %v9023_v45 = vsel %vm538_vm9, %v4117_v47, %v12843_v38  ;;  %12585 = vmatprep.subr.bf16.mxu0 %v20210_v37  ;;  %v9147_v47 = vld [vmem:[%s19747_s8 + $0x130] sm:$0xff] }
 0xc13   :  { %9285 = vmatmul.mubr.f32.gmra.mrb[154].mxu0 %v8989_v52  ;;  %v20991_v52 = vld [vmem:[#allocation2_spill] sm:$0xff]  ;;  %v12589_v33 = vpack.c.bf16 %v9148_v4, %v9147_v47  ;;  %v2386_v57 = vmax.f32 %v2272_v46, 0.0 }
 0xc14   :  { %9289 = vmatprep.mubr.f32.mxu0 %v9022_v31  ;;  %v4009_v38 = vadd.f32 %v20992_v48, %v20991_v52  ;;  %v12839_v31 = vunpack.i.h.bf16 %v18262_v21  ;;  %v2277_v17 = vadd.f32 %v20993_v61, %v20991_v52  ;;  %v20995_v48 = vld [vmem:[#allocation99_spill] sm:$0xff]  ;;  %v9149_v46 = vld [vmem:[%s19747_s8 + $0x140] sm:$0xff] }
 0xc15   :  { %12587 = vmatpush1.bf16.msra.mxu0 %v12586_v56  ;;  %v4014_v21 = vadd.f32 %v20995_v48, %v20994_v11  ;;  %v9150_v56 = vld [vmem:[%s19747_s8 + $0x148] sm:$0xff] }
 0xc16   :  { %12588 = vmatprep.subr.bf16.mxu0 %v20210_v37  ;;  %v4119_v63 = vmax.f32 %v4009_v38, 0.0  ;;  %v8992_v59 = vsel %vm538_vm9, %v2386_v57, %v12839_v31  ;;  %v2387_v4 = vmax.f32 %v2277_v17, 0.0  ;;  %v12592_v38 = vpack.c.bf16 %v9150_v56, %v9149_v46  ;;  %v9152_v31 = vld [vmem:[%s19747_s8 + $0x158] sm:$0xff]  ;;  %v20999_v46 = vld [vmem:[#allocation51_spill] sm:$0xff] }
 0xc17   :  { %9290 = vmatmul.mubr.f32.gmra.mrb[156].mxu0 %v8990_v18  ;;  %v12853_v18 = vunpack.i.l.bf16 %v12852_v36  ;;  %v20996_v36 = vld [vmem:[#allocation47_spill] sm:$0xff]  ;;  %v12849_v57 = vunpack.i.h.bf16 %v18288_v8  ;;  %v18377_v8 = vpop.xlane.xlu1 %934 }
 0xc18   :  { %9294 = vmatprep.mubr.f32.mxu0 %v9023_v45  ;;  %v9024_v45 = vsel %vm538_vm9, %v4118_v7, %v12838_v9  ;;  %v2282_v47 = vadd.f32 %v20996_v36, %v20994_v11  ;;  %v12862_v7 = vpop.permute.xlu0 %12861  ;;  %v8993_v61 = vsel %vm538_vm9, %v2387_v4, %v12854_v24  ;;  %v21001_v36 = vld [vmem:[#allocation102_spill] sm:$0xff]  ;;  %21002 = vst [vmem:[#allocation203_spill] sm:$0xff] %v18377_v8 }
 0xc19   :  { %12590 = vmatpush1.bf16.msra.mxu0 %v12589_v33  ;;  %v9025_v9 = vsel %vm538_vm9, %v4119_v63, %v12853_v18  ;;  %v9151_v63 = vld [vmem:[%s19747_s8 + $0x150] sm:$0xff]  ;;  %v20997_v33 = vld [vmem:[#allocation3_spill] sm:$0xff]  ;;  %v12863_v48 = vunpack.i.l.bf16 %v12862_v7  ;;  %v12864_v24 = vunpack.i.h.bf16 %v12862_v7  ;;  %v21003_v7 = vld [vmem:[#allocation50_spill] sm:$0xff] }
 0xc1a   :  { %12591 = vmatprep.subr.bf16.mxu0 %v20210_v37  ;;  %v20998_v18 = vld [vmem:[#allocation107_spill] sm:$0xff]  ;;  %v12595_v17 = vpack.c.bf16 %v9152_v31, %v9151_v63  ;;  %v2287_v56 = vadd.f32 %v20999_v46, %v20997_v33  ;;  %v12859_v46 = vunpack.i.h.bf16 %v18340_v13  ;;  %v21007_v8 = vld [vmem:[#allocation214_spill] sm:$0xff] }
 0xc1b   :  { %9295 = vmatmul.mubr.f32.gmra.mrb[158].mxu0 %v8991_v43  ;;  %v4120_v43 = vmax.f32 %v4014_v21, 0.0  ;;  %v21000_v21 = vld [vmem:[#allocation159_spill] sm:$0xff] }
 0xc1c   :  { %9299 = vmatprep.mubr.f32.mxu0 %v9024_v45  ;;  %v4019_v45 = vadd.f32 %v20998_v18, %v20997_v33  ;;  %v4024_v18 = vadd.f32 %v21001_v36, %v21000_v21  ;;  %v9154_v63 = vld [vmem:[%s19747_s8 + $0x168] sm:$0xff]  ;;  %v2292_v31 = vadd.f32 %v21003_v7, %v21000_v21 }
 0xc1d   :  { %12593 = vmatpush1.bf16.msra.mxu0 %v12592_v38  ;;  %v12858_v38 = vunpack.i.l.bf16 %v18340_v13 }
 0xc1e   :  { %12594 = vmatprep.subr.bf16.mxu0 %v20210_v37  ;;  %v4121_v52 = vmax.f32 %v4019_v45, 0.0  ;;  %v12872_v45 = vpop.permute.xlu0 %12871 }
 0xc1f   :  { %9300 = vmatmul.mubr.f32.gmra.mrb[160].mxu0 %v8992_v59  ;;  %v9026_v59 = vsel %vm538_vm9, %v4120_v43, %v12848_v49  ;;  %v2389_v43 = vmax.f32 %v2287_v56, 0.0  ;;  %v12874_v21 = vunpack.i.h.bf16 %v12872_v45 }
 0xc20   :  { %9304 = vmatprep.mubr.f32.mxu0 %v9025_v9  ;;  %v2388_v9 = vmax.f32 %v2282_v47, 0.0  ;;  %v9027_v49 = vsel %vm538_vm9, %v4121_v52, %v12863_v48  ;;  %v9153_v47 = vld [vmem:[%s19747_s8 + $0x160] sm:$0xff]  ;;  %v9155_v52 = vld [vmem:[%s19747_s8 + $0x170] sm:$0xff]  ;;  %v21004_v48 = vld [vmem:[#allocation161_spill] sm:$0xff] }
 0xc21   :  { %12596 = vmatpush1.bf16.msra.mxu0 %v12595_v17  ;;  %v4122_v17 = vmax.f32 %v4024_v18, 0.0  ;;  %v8995_v36 = vsel %vm538_vm9, %v2389_v43, %v12864_v24  ;;  %v12867_v18 = vpop.permute.xlu1 %12866 }
 0xc22   :  { %v8994_v4 = vsel %vm538_vm9, %v2388_v9, %v12849_v57  ;;  %12597 = vmatprep.subr.bf16.mxu0 %v20210_v37  ;;  %v12598_v57 = vpack.c.bf16 %v9154_v63, %v9153_v47  ;;  %v2390_v47 = vmax.f32 %v2292_v31, 0.0  ;;  %v21006_v63 = vld [vmem:[#allocation54_spill] sm:$0xff]  ;;  %v12868_v43 = vunpack.i.l.bf16 %v12867_v18 }
 0xc23   :  { %9305 = vmatmul.mubr.f32.gmra.mrb[162].mxu0 %v8993_v61  ;;  %v9156_v61 = vld [vmem:[%s19747_s8 + $0x178] sm:$0xff]  ;;  %v2297_v7 = vadd.f32 %v21006_v63, %v21004_v48  ;;  %v9157_v31 = vld [vmem:[%s19747_s8 + $0x180] sm:$0xff] }
 0xc24   :  { %9309 = vmatprep.mubr.f32.mxu0 %v9026_v59  ;;  %v21005_v59 = vld [vmem:[#allocation110_spill] sm:$0xff]  ;;  %v12601_v56 = vpack.c.bf16 %v9156_v61, %v9155_v52  ;;  %v8996_v24 = vsel %vm538_vm9, %v2390_v47, %v12859_v46  ;;  %v21009_v52 = vld [vmem:[#allocation53_spill] sm:$0xff]  ;;  %v9159_v46 = vld [vmem:[%s19747_s8 + $0x190] sm:$0xff]  ;;  %v12869_v47 = vunpack.i.h.bf16 %v12867_v18 }
 0xc25   :  { %v4029_v9 = vadd.f32 %v21005_v59, %v21004_v48  ;;  %12599 = vmatpush1.bf16.msra.mxu0 %v12598_v57  ;;  %v21008_v59 = vld [vmem:[#allocation105_spill] sm:$0xff]  ;;  %v9158_v57 = vld [vmem:[%s19747_s8 + $0x188] sm:$0xff]  ;;  %v2391_v61 = vmax.f32 %v2297_v7, 0.0 }
 0xc26   :  { %12600 = vmatprep.subr.bf16.mxu0 %v20210_v37  ;;  %v4034_v33 = vadd.f32 %v21008_v59, %v21007_v8 }
 0xc27   :  { %9310 = vmatmul.mubr.f32.gmra.mrb[164].mxu0 %v8994_v4  ;;  %v12873_v4 = vunpack.i.l.bf16 %v12872_v45  ;;  %v4123_v13 = vmax.f32 %v4029_v9, 0.0  ;;  %v2302_v45 = vadd.f32 %v21009_v52, %v21007_v8  ;;  %v12604_v9 = vpack.c.bf16 %v9158_v57, %v9157_v31  ;;  %v12877_v57 = vpop.permute.xlu1 %12876  ;;  %v21013_v52 = vld [vmem:[#allocation108_spill] sm:$0xff] }
 0xc28   :  { %9314 = vmatprep.mubr.f32.mxu0 %v9027_v49  ;;  %v9028_v49 = vsel %vm538_vm9, %v4122_v17, %v12858_v38  ;;  %v12882_v17 = vpop.permute.xlu0 %12881  ;;  %v8997_v63 = vsel %vm538_vm9, %v2391_v61, %v12874_v21  ;;  %v12878_v61 = vunpack.i.l.bf16 %v12877_v57 }
 0xc29   :  { %12602 = vmatpush1.bf16.msra.mxu0 %v12601_v56  ;;  %v9029_v38 = vsel %vm538_vm9, %v4123_v13, %v12873_v4  ;;  %v4124_v56 = vmax.f32 %v4034_v33, 0.0  ;;  %v21010_v4 = vld [vmem:[#allocation113_spill] sm:$0xff]  ;;  %v12883_v59 = vunpack.i.l.bf16 %v12882_v17  ;;  %v12884_v48 = vunpack.i.h.bf16 %v12882_v17 }
 0xc2a   :  { %12603 = vmatprep.subr.bf16.mxu0 %v20210_v37  ;;  %v21012_v33 = vld [vmem:[#allocation217_spill] sm:$0xff] }
 0xc2b   :  { %9315 = vmatmul.mubr.f32.gmra.mrb[166].mxu0 %v8995_v36  ;;  %v9160_v36 = vld [vmem:[%s19747_s8 + $0x198] sm:$0xff]  ;;  %v9030_v13 = vsel %vm538_vm9, %v4124_v56, %v12868_v43 }
 0xc2c   :  { %9319 = vmatprep.mubr.f32.mxu0 %v9028_v49  ;;  %v4039_v49 = vadd.f32 %v21010_v4, %v16888_v44  ;;  %v12607_v7 = vpack.c.bf16 %v9160_v36, %v9159_v46  ;;  %v4044_v4 = vadd.f32 %v21013_v52, %v21012_v33  ;;  %v21014_v46 = vld [vmem:[#allocation56_spill] sm:$0xff]  ;;  %v12892_v56 = vpop.permute.xlu0 %12891 }
 0xc2d   :  { %12605 = vmatpush1.bf16.msra.mxu0 %v12604_v9  ;;  %v9162_v9 = vld [vmem:[%s19747_s8 + $0x1a8] sm:$0xff]  ;;  %v2312_v17 = vadd.f32 %v21014_v46, %v21012_v33  ;;  %v12893_v52 = vunpack.i.l.bf16 %v12892_v56 }
 0xc2e   :  { %12606 = vmatprep.subr.bf16.mxu0 %v20210_v37  ;;  %v4125_v18 = vmax.f32 %v4039_v49, 0.0 }
 0xc2f   :  { %9320 = vmatmul.mubr.f32.gmra.mrb[168].mxu0 %v8996_v24  ;;  %v2392_v24 = vmax.f32 %v2302_v45, 0.0  ;;  %v9161_v45 = vld [vmem:[%s19747_s8 + $0x1a0] sm:$0xff] }
 0xc30   :  { %9324 = vmatprep.mubr.f32.mxu0 %v9029_v38  ;;  %v21011_v38 = vld [vmem:[#allocation57_spill] sm:$0xff]  ;;  %v9031_v43 = vsel %vm538_vm9, %v4125_v18, %v12883_v59  ;;  %v12610_v49 = vpack.c.bf16 %v9162_v9, %v9161_v45  ;;  %v21015_v59 = vld [vmem:[#allocation116_spill] sm:$0xff]  ;;  %v12887_v9 = vpop.permute.xlu1 %12886 }
 0xc31   :  { %v2307_v31 = vadd.f32 %v21011_v38, %v16888_v44  ;;  %v8998_v21 = vsel %vm538_vm9, %v2392_v24, %v12869_v47  ;;  %12608 = vmatpush1.bf16.msra.mxu0 %v12607_v7  ;;  %v9163_v47 = vld [vmem:[%s19747_s8 + $0x1b0] sm:$0xff]  ;;  %v4126_v7 = vmax.f32 %v4044_v4, 0.0  ;;  %v12879_v24 = vunpack.i.h.bf16 %v12877_v57  ;;  %v21017_v4 = vld [vmem:[#allocation111_spill] sm:$0xff] }
 0xc32   :  { %12609 = vmatprep.subr.bf16.mxu0 %v20210_v37  ;;  %v4054_v46 = vadd.f32 %v21017_v4, %v16918_v15 }
 0xc33   :  { %9325 = vmatmul.mubr.f32.gmra.mrb[170].mxu0 %v8997_v63  ;;  %v2393_v36 = vmax.f32 %v2307_v31, 0.0  ;;  %v9164_v63 = vld [vmem:[%s19747_s8 + $0x1b8] sm:$0xff]  ;;  %v9032_v18 = vsel %vm538_vm9, %v4126_v7, %v12878_v61  ;;  %v12902_v7 = vpop.permute.xlu0 %12901 }
 0xc34   :  { %9329 = vmatprep.mubr.f32.mxu0 %v9030_v13  ;;  %v4049_v13 = vadd.f32 %v21015_v59, %v16898_v10  ;;  %v12613_v31 = vpack.c.bf16 %v9164_v63, %v9163_v47  ;;  %v12894_v59 = vunpack.i.h.bf16 %v12892_v56  ;;  %v21018_v47 = vld [vmem:[#allocation59_spill] sm:$0xff]  ;;  %v12903_v4 = vunpack.i.l.bf16 %v12902_v7 }
 0xc35   :  { %v8999_v38 = vsel %vm538_vm9, %v2393_v36, %v12884_v48  ;;  %12611 = vmatpush1.bf16.msra.mxu0 %v12610_v49  ;;  %v12888_v36 = vunpack.i.l.bf16 %v12887_v9  ;;  %v9166_v49 = vld [vmem:[%s19747_s8 + $0x1c8] sm:$0xff]  ;;  %v2322_v56 = vadd.f32 %v21018_v47, %v16918_v15 }
 0xc36   :  { %12612 = vmatprep.subr.bf16.mxu0 %v20210_v37  ;;  %v4127_v57 = vmax.f32 %v4049_v13, 0.0 }
 0xc37   :  { %9330 = vmatmul.mubr.f32.gmra.mrb[172].mxu0 %v8998_v21  ;;  %v2394_v21 = vmax.f32 %v2312_v17, 0.0  ;;  %v9165_v17 = vld [vmem:[%s19747_s8 + $0x1c0] sm:$0xff] }
 0xc38   :  { %9334 = vmatprep.mubr.f32.mxu0 %v9031_v43  ;;  %v21016_v43 = vld [vmem:[#allocation60_spill] sm:$0xff]  ;;  %v9033_v61 = vsel %vm538_vm9, %v4127_v57, %v12893_v52  ;;  %v12616_v13 = vpack.c.bf16 %v9166_v49, %v9165_v17  ;;  %v21019_v52 = vld [vmem:[#allocation119_spill] sm:$0xff]  ;;  %v12897_v49 = vpop.permute.xlu1 %12896 }
 0xc39   :  { %v2317_v45 = vadd.f32 %v21016_v43, %v16898_v10  ;;  %v9000_v48 = vsel %vm538_vm9, %v2394_v21, %v12879_v24  ;;  %12614 = vmatpush1.bf16.msra.mxu0 %v12613_v31  ;;  %v9167_v24 = vld [vmem:[%s19747_s8 + $0x1d0] sm:$0xff]  ;;  %v4128_v31 = vmax.f32 %v4054_v46, 0.0  ;;  %v12889_v21 = vunpack.i.h.bf16 %v12887_v9  ;;  %v21021_v46 = vld [vmem:[#allocation114_spill] sm:$0xff] }
 0xc3a   :  { %12615 = vmatprep.subr.bf16.mxu0 %v20210_v37  ;;  %v4064_v47 = vadd.f32 %v21021_v46, %v16945_v50 }
 0xc3b   :  { %9335 = vmatmul.mubr.f32.gmra.mrb[174].mxu0 %v8999_v38  ;;  %v2395_v63 = vmax.f32 %v2317_v45, 0.0  ;;  %v9168_v38 = vld [vmem:[%s19747_s8 + $0x1d8] sm:$0xff]  ;;  %v9034_v57 = vsel %vm538_vm9, %v4128_v31, %v12888_v36  ;;  %v12912_v31 = vpop.permute.xlu0 %12911 }
 0xc3c   :  { %9339 = vmatprep.mubr.f32.mxu0 %v9032_v18  ;;  %v4059_v18 = vadd.f32 %v21019_v52, %v16935_v62  ;;  %v12619_v45 = vpack.c.bf16 %v9168_v38, %v9167_v24  ;;  %v12904_v52 = vunpack.i.h.bf16 %v12902_v7  ;;  %v21022_v24 = vld [vmem:[#allocation62_spill] sm:$0xff] }
 0xc3d   :  { %v9001_v43 = vsel %vm538_vm9, %v2395_v63, %v12894_v59  ;;  %12617 = vmatpush1.bf16.msra.mxu0 %v12616_v13  ;;  %v12898_v63 = vunpack.i.l.bf16 %v12897_v49  ;;  %v9170_v13 = vld [vmem:[%s19747_s8 + $0x1e8] sm:$0xff]  ;;  %v2332_v7 = vadd.f32 %v21022_v24, %v16945_v50 }
 0xc3e   :  { %12618 = vmatprep.subr.bf16.mxu0 %v20210_v37  ;;  %v4129_v9 = vmax.f32 %v4059_v18, 0.0 }
 0xc3f   :  { %9340 = vmatmul.mubr.f32.gmra.mrb[176].mxu0 %v9000_v48  ;;  %v2396_v48 = vmax.f32 %v2322_v56, 0.0  ;;  %v9169_v56 = vld [vmem:[%s19747_s8 + $0x1e0] sm:$0xff]  ;;  %v2398_v24 = vmax.f32 %v2332_v7, 0.0 }
 0xc40   :  { %9344 = vmatprep.mubr.f32.mxu0 %v9033_v61  ;;  %v21020_v61 = vld [vmem:[#allocation63_spill] sm:$0xff]  ;;  %v9035_v36 = vsel %vm538_vm9, %v4129_v9, %v12903_v4  ;;  %v12622_v18 = vpack.c.bf16 %v9170_v13, %v9169_v56  ;;  %v21023_v4 = vld [vmem:[#allocation122_spill] sm:$0xff] }
 0xc41   :  { %v2327_v17 = vadd.f32 %v21020_v61, %v16935_v62  ;;  %v9002_v59 = vsel %vm538_vm9, %v2396_v48, %v12889_v21  ;;  %12620 = vmatpush1.bf16.msra.mxu0 %v12619_v45  ;;  %v9171_v21 = vld [vmem:[%s19747_s8 + $0x1f0] sm:$0xff]  ;;  %v4130_v45 = vmax.f32 %v4064_v47, 0.0  ;;  %v6552_v48 = vadd.f32 %v17587_v19, %v20959_v23  ;;  %v21024_v19 = vld [vmem:[#allocation66_spill] sm:$0xff] }
 0xc42   :  { %12621 = vmatprep.subr.bf16.mxu0 %v20210_v37  ;;  %v12899_v61 = vunpack.i.h.bf16 %v12897_v49  ;;  %v2337_v49 = vadd.f32 %v21024_v19, %v16955_v28 }
 0xc43   :  { %9345 = vmatmul.mubr.f32.gmra.mrb[178].mxu0 %v9001_v43  ;;  %v2397_v38 = vmax.f32 %v2327_v17, 0.0  ;;  %v9172_v43 = vld [vmem:[%s19747_s8 + $0x1f8] sm:$0xff]  ;;  %v6547_v17 = vadd.f32 %v17589_v40, %v16711_v58  ;;  %v9036_v47 = vsel %vm538_vm9, %v4130_v45, %v12898_v63 }
 0xc44   :  { %9349 = vmatprep.mubr.f32.mxu0 %v9034_v57  ;;  %v4069_v57 = vadd.f32 %v21023_v4, %v16955_v28  ;;  %v12907_v4 = vpop.permute.xlu1 %12906  ;;  %v9004_v63 = vsel %vm538_vm9, %v2398_v24, %v12899_v61  ;;  %v2399_v19 = vmax.f32 %v2337_v49, 0.0  ;;  %v6562_v61 = vadd.f32 %v17603_v51, %v20965_v26  ;;  %v21028_v51 = vld [vmem:[#allocation69_spill] sm:$0xff] }
 0xc45   :  { %v9003_v9 = vsel %vm538_vm9, %v2397_v38, %v12904_v52  ;;  %12623 = vmatpush1.bf16.msra.mxu0 %v12622_v18  ;;  %v21025_v52 = vld [vmem:[#allocation117_spill] sm:$0xff] }
 0xc46   :  { %12624 = vmatprep.subr.bf16.mxu0 %v20210_v37  ;;  %v4074_v38 = vadd.f32 %v21025_v52, %v16964_v32  ;;  %v4131_v18 = vmax.f32 %v4069_v57, 0.0  ;;  %v12908_v37 = vunpack.i.l.bf16 %v12907_v4 }
 0xc47   :  { %9350 = vmatmul.mubr.f32.gmra.mrb[180].mxu0 %v9002_v59  ;;  %v12625_v59 = vpack.c.bf16 %v9172_v43, %v9171_v21  ;;  %v6706_v21 = vmax.f32 %v6552_v48, 0.0 }
 0xc48   :  { %9354 = vmatprep.mubr.f32.mxu0 %v9035_v36  ;;  %v12913_v36 = vunpack.i.l.bf16 %v12912_v31  ;;  %v4132_v57 = vmax.f32 %v4074_v38, 0.0 }
 0xc49   :  { %12626 = vmatpush1.bf16.msra.mxu0 %v12625_v59  ;;  %v6557_v59 = vadd.f32 %v17605_v53, %v16726_v12  ;;  %v21029_v53 = vld [vmem:[#allocation121_spill] sm:$0xff] }
 0xc4a   :  { %v11993_v46 = vpop.f32.mrb[106].mxu0  ;;  %v9037_v45 = vsel %vm538_vm9, %v4131_v18, %v12913_v36  ;;  %v2347_v18 = vadd.f32 %v21028_v51, %v16974_v3 }
 0xc4b   :  { %v8284_v56 = vadd.f32 %v11993_v46, %v20959_v23  ;;  %v8278_v13 = vpop.f32.mrb[107].mxu0  ;;  %9355 = vmatmul.mubr.f32.gmra.mrb[182].mxu0 %v9003_v9  ;;  %v12914_v46 = vunpack.i.h.bf16 %v12912_v31  ;;  %v6705_v9 = vmax.f32 %v6547_v17, 0.0  ;;  %v21027_v31 = vld [vmem:[#allocation124_spill] sm:$0xff]  ;;  %v12909_v17 = vunpack.i.h.bf16 %v12907_v4  ;;  %v12917_v4 = vpop.permute.xlu1 %12916 }
 0xc4c   :  { %v8279_v40 = vadd.f32 %v8278_v13, %v16711_v58  ;;  %9359 = vmatprep.mubr.f32.mxu0 %v9036_v47  ;;  %v21026_v13 = vld [vmem:[#allocation65_spill] sm:$0xff]  ;;  %v12922_v58 = vpop.permute.xlu0 %12921  ;;  %v4079_v48 = vadd.f32 %v21027_v31, %v16974_v3 }
 0xc4d   :  { %v8438_v43 = vmax.f32 %v8284_v56, 0.0  ;;  %v2342_v47 = vadd.f32 %v21026_v13, %v16964_v32  ;;  %v9005_v56 = vsel %vm538_vm9, %v2399_v19, %v12914_v46  ;;  %v6708_v46 = vmax.f32 %v6562_v61, 0.0  ;;  %v21031_v61 = vld [vmem:[#allocation125_spill] sm:$0xff] }
 0xc4e   :  { %v8437_v23 = vmax.f32 %v8279_v40, 0.0  ;;  %v9038_v40 = vsel %vm538_vm9, %v4132_v57, %v12908_v37  ;;  %v12918_v37 = vunpack.i.l.bf16 %v12917_v4  ;;  %v21030_v57 = vld [vmem:[#allocation68_spill] sm:$0xff] }
 0xc4f   :  { %v12945_v7 = vpack.i.bf16 %v6706_v21, %v8438_v43  ;;  %9360 = vmatmul.mubr.f32.gmra.mrb[184].mxu0 %v9004_v63  ;;  %v2400_v38 = vmax.f32 %v2342_v47, 0.0  ;;  %v4084_v43 = vadd.f32 %v21029_v53, %v16986_v34  ;;  %v2352_v31 = vadd.f32 %v21030_v57, %v16986_v34 }
 0xc50   :  { %v12950_v52 = vpack.i.bf16 %v6705_v9, %v8437_v23  ;;  %9364 = vmatprep.mubr.f32.mxu0 %v9037_v45  ;;  %v12923_v23 = vunpack.i.l.bf16 %v12922_v58  ;;  %v4133_v9 = vmax.f32 %v4079_v48, 0.0  ;;  %v6707_v45 = vmax.f32 %v6557_v59, 0.0 }
 0xc51   :  { %12946 = vrot.lane.b32.xlu1 %v12945_v7, %s13288_s13  ;;  %v12924_v7 = vunpack.i.h.bf16 %v12922_v58  ;;  %v9006_v19 = vsel %vm538_vm9, %v2400_v38, %v12909_v17  ;;  %v4134_v48 = vmax.f32 %v4084_v43, 0.0  ;;  %v4089_v58 = vadd.f32 %v21031_v61, %v16999_v16  ;;  %v21032_v43 = vld [vmem:[#allocation72_spill] sm:$0xff] }
 0xc52   :  { %v11996_v36 = vpop.f32.mrb[108].mxu0  ;;  %12951 = vrot.lane.b32.xlu0 %v12950_v52, %s13288_s13  ;;  %v9039_v52 = vsel %vm538_vm9, %v4133_v9, %v12923_v23  ;;  %v6572_v59 = vadd.f32 %v17619_v42, %v20970_v20  ;;  %v12919_v17 = vunpack.i.h.bf16 %v12917_v4  ;;  %v6567_v23 = vadd.f32 %v17621_v39, %v16737_v2  ;;  %v21033_v39 = vld [vmem:[#allocation127_spill] sm:$0xff] }
 0xc53   :  { %v8294_v24 = vadd.f32 %v11996_v36, %v20965_v26  ;;  %v8288_v49 = vpop.f32.mrb[109].mxu0  ;;  %9365 = vmatmul.mubr.f32.gmra.mrb[186].mxu0 %v9005_v56  ;;  %v2401_v36 = vmax.f32 %v2347_v18, 0.0  ;;  %v12932_v56 = vpop.permute.xlu0 %12931  ;;  %v9040_v53 = vsel %vm538_vm9, %v4134_v48, %v12918_v37  ;;  %v2402_v42 = vmax.f32 %v2352_v31, 0.0 }
 0xc54   :  { %v8289_v21 = vadd.f32 %v8288_v49, %v16726_v12  ;;  %9369 = vmatprep.mubr.f32.mxu0 %v9038_v40  ;;  %v12933_v51 = vunpack.i.l.bf16 %v12932_v56  ;;  %v2357_v4 = vadd.f32 %v21032_v43, %v16999_v16 }
 0xc55   :  { %v8440_v63 = vmax.f32 %v8294_v24, 0.0  ;;  %v12927_v24 = vpop.permute.xlu1 %12926  ;;  %v9007_v38 = vsel %vm538_vm9, %v2401_v36, %v12924_v7  ;;  %v9008_v37 = vsel %vm538_vm9, %v2402_v42, %v12919_v17  ;;  %v6582_v17 = vadd.f32 %v17635_v30, %v20976_v1 }
 0xc56   :  { %v8439_v13 = vmax.f32 %v8289_v21, 0.0  ;;  %v12928_v57 = vunpack.i.l.bf16 %v12927_v24  ;;  %v2403_v61 = vmax.f32 %v2357_v4, 0.0 }
 0xc57   :  { %v12955_v47 = vpack.i.bf16 %v6708_v46, %v8440_v63  ;;  %9370 = vmatmul.mubr.f32.gmra.mrb[188].mxu0 %v9006_v19  ;;  %v4094_v46 = vadd.f32 %v21033_v39, %v17011_v0  ;;  %v4135_v63 = vmax.f32 %v4089_v58, 0.0  ;;  %v21036_v39 = vld [vmem:[#allocation210_spill] sm:$0xff] }
 0xc58   :  { %v12960_v49 = vpack.i.bf16 %v6707_v45, %v8439_v13  ;;  %9374 = vmatprep.mubr.f32.mxu0 %v9039_v52  ;;  %v6710_v45 = vmax.f32 %v6572_v59, 0.0  ;;  %v12934_v13 = vunpack.i.h.bf16 %v12932_v56  ;;  %v21035_v59 = vld [vmem:[#allocation129_spill] sm:$0xff]  ;;  %v2367_v30 = vadd.f32 %v21036_v39, %v17019_v54 }
 0xc59   :  { %12956 = vrot.lane.b32.xlu1 %v12955_v47, %s13288_s13  ;;  %v18557_v19 = vpop.xlane.xlu1 %940  ;;  %v6709_v47 = vmax.f32 %v6567_v23, 0.0  ;;  %v9041_v36 = vsel %vm538_vm9, %v4135_v63, %v12933_v51  ;;  %v4136_v56 = vmax.f32 %v4094_v46, 0.0  ;;  %v4099_v23 = vadd.f32 %v21035_v59, %v17019_v54 }
 0xc5a   :  { %v11999_v40 = vpop.f32.mrb[110].mxu0  ;;  %12961 = vrot.lane.b32.xlu0 %v12960_v49, %s13288_s13  ;;  %v21034_v49 = vld [vmem:[#allocation71_spill] sm:$0xff]  ;;  %v6577_v51 = vadd.f32 %v17637_v60, %v20973_v14  ;;  %v21037_v60 = vld [vmem:[#allocation130_spill] sm:$0xff] }
 0xc5b   :  { %v8304_v18 = vadd.f32 %v11999_v40, %v20970_v20  ;;  %v8298_v21 = vpop.f32.mrb[111].mxu0  ;;  %9375 = vmatmul.mubr.f32.gmra.mrb[190].mxu0 %v9007_v38  ;;  %v2362_v48 = vadd.f32 %v21034_v49, %v17011_v0  ;;  %v12942_v40 = vpop.permute.xlu0 %12941  ;;  %v12929_v38 = vunpack.i.h.bf16 %v12927_v24  ;;  %v9042_v4 = vsel %vm538_vm9, %v4136_v56, %v12928_v57 }
 0xc5c   :  { %v8299_v9 = vadd.f32 %v8298_v21, %v16737_v2  ;;  %9379 = vmatprep.mubr.f32.mxu0 %v9040_v53  ;;  %v9009_v21 = vsel %vm538_vm9, %v2403_v61, %v12934_v13  ;;  %v12943_v53 = vunpack.i.l.bf16 %v12942_v40  ;;  %v4104_v63 = vadd.f32 %v21037_v60, %v17029_v22 }
 0xc5d   :  { %v8442_v7 = vmax.f32 %v8304_v18, 0.0  ;;  %v12937_v46 = vpop.permute.xlu1 %12936  ;;  %v2405_v56 = vmax.f32 %v2367_v30, 0.0  ;;  %v6602_v60 = vadd.f32 %v17662_v25, %v20988_v55 }
 0xc5e   :  { %v8441_v52 = vmax.f32 %v8299_v9, 0.0  ;;  %v2404_v9 = vmax.f32 %v2362_v48, 0.0  ;;  %v12938_v57 = vunpack.i.l.bf16 %v12937_v46  ;;  %v21038_v48 = vld [vmem:[#allocation209_spill] sm:$0xff] }
 0xc5f   :  { %v12965_v31 = vpack.i.bf16 %v6710_v45, %v8442_v7  ;;  %9380 = vmatmul.mubr.f32.gmra.mrb[192].mxu0 %v9008_v37  ;;  %v4137_v45 = vmax.f32 %v4099_v23, 0.0  ;;  %v6712_v7 = vmax.f32 %v6582_v17, 0.0  ;;  %v2372_v61 = vadd.f32 %v21038_v48, %v17029_v22 }
 0xc60   :  { %v18563_v58 = vpack.i.bf16 %v6709_v47, %v8441_v52  ;;  %9384 = vmatprep.mubr.f32.mxu0 %v9041_v36  ;;  %v12944_v47 = vunpack.i.h.bf16 %v12942_v40  ;;  %v6711_v52 = vmax.f32 %v6577_v51, 0.0  ;;  %v4138_v23 = vmax.f32 %v4104_v63, 0.0 }
 0xc61   :  { %12966 = vrot.lane.b32.xlu1 %v12965_v31, %s13288_s13  ;;  %v9010_v31 = vsel %vm538_vm9, %v2404_v9, %v12929_v38  ;;  %v9043_v49 = vsel %vm538_vm9, %v4137_v45, %v12943_v53  ;;  %v6592_v40 = vadd.f32 %v17651_v35, %v20982_v41  ;;  %v12939_v17 = vunpack.i.h.bf16 %v12937_v46 }
 0xc62   :  { %v12002_v18 = vpop.f32.mrb[112].mxu0  ;;  %v6587_v38 = vadd.f32 %v17653_v27, %v20979_v5  ;;  %v6597_v63 = vadd.f32 %v17664_v6, %v20985_v29 }
 0xc63   :  { %v8314_v42 = vadd.f32 %v12002_v18, %v20976_v1  ;;  %v8308_v43 = vpop.f32.mrb[113].mxu0  ;;  %9385 = vmatmul.mubr.f32.gmra.mrb[194].mxu0 %v9009_v21  ;;  %v9011_v18 = vsel %vm538_vm9, %v2405_v56, %v12944_v47  ;;  %v6714_v35 = vmax.f32 %v6592_v40, 0.0  ;;  %v18607_v47 = vld [vmem:[%s19746_s7] ss:$0 sm:$0xff]  ;;  %v21041_v56 = vld [vmem:[#allocation167_spill] sm:$0xff]  ;;  %s13289_s7 = smov 123  }
 0xc64   :  { %v8309_v24 = vadd.f32 %v8308_v43, %v20973_v14  ;;  %9389 = vmatprep.mubr.f32.mxu0 %v9042_v4  ;;  %v2406_v43 = vmax.f32 %v2372_v61, 0.0  ;;  %v6713_v39 = vmax.f32 %v6587_v38, 0.0  ;;  %v21042_v40 = vld [vmem:[#allocation2_spill] sm:$0xff] }
 0xc65   :  { %v8444_v13 = vmax.f32 %v8314_v42, 0.0  ;;  %v9044_v42 = vsel %vm538_vm9, %v4138_v23, %v12938_v57  ;;  %v6612_v23 = vadd.f32 %v21041_v56, %v20994_v11  ;;  %v21048_v56 = vld [vmem:[#allocation100_spill] sm:$0xff] }
 0xc66   :  { %v8443_v37 = vmax.f32 %v8309_v24, 0.0  ;;  %v9012_v46 = vsel %vm538_vm9, %v2406_v43, %v12939_v17  ;;  %v21043_v17 = vld [vmem:[#allocation176_spill] sm:$0xff] }
 0xc67   :  { %v12975_v36 = vpack.i.bf16 %v6712_v7, %v8444_v13  ;;  %9390 = vmatmul.mubr.f32.gmra.mrb[196].mxu0 %v9010_v31  ;;  %v6716_v31 = vmax.f32 %v6602_v60, 0.0  ;;  %v6607_v38 = vadd.f32 %v21043_v17, %v21042_v40  ;;  %v21046_v60 = vld [vmem:[#allocation3_spill] sm:$0xff]  ;;  %v21049_v17 = vld [vmem:[#allocation161_spill] sm:$0xff] }
 0xc68   :  { %v18584_v59 = vpack.i.bf16 %v6711_v52, %v8443_v37  ;;  %9394 = vmatprep.mubr.f32.mxu0 %v9043_v49  ;;  %v21039_v52 = vld [vmem:[#allocation55_spill] sm:$0xff] }
 0xc69   :  { %12976 = vrot.lane.b32.xlu1 %v12975_v36, %s13288_s13  ;;  %v18611_v37 = vadd.f32 %v18607_v47, %v21039_v52  ;;  %v6715_v36 = vmax.f32 %v6597_v63, 0.0  ;;  %v21047_v63 = vld [vmem:[#allocation178_spill] sm:$0xff] }
 0xc6a   :  { %v12005_v51 = vpop.f32.mrb[114].mxu0 }
 0xc6b   :  { %v8324_v21 = vadd.f32 %v12005_v51, %v20982_v41  ;;  %v8318_v53 = vpop.f32.mrb[115].mxu0  ;;  %9395 = vmatmul.mubr.f32.gmra.mrb[198].mxu0 %v9011_v18  ;;  %21040 = vst [vmem:[#allocation81_spill] sm:$0xff] %v18611_v37  ;;  %v942_v61 = vsel %vm860_vm10, %v18611_v37, -inf }
 0xc6c   :  { %v8319_v4 = vadd.f32 %v8318_v53, %v20979_v5  ;;  %9399 = vmatprep.mubr.f32.mxu0 %v9044_v42  ;;  %v6718_v42 = vmax.f32 %v6612_v23, 0.0  ;;  %v6632_v23 = vadd.f32 %v21048_v56, %v21007_v8 }
 0xc6d   :  { %v8446_v9 = vmax.f32 %v8324_v21, 0.0 }
 0xc6e   :  { %v8445_v30 = vmax.f32 %v8319_v4, 0.0  ;;  %v6717_v4 = vmax.f32 %v6607_v38, 0.0  ;;  %v21050_v38 = vld [vmem:[#allocation181_spill] sm:$0xff] }
 0xc6f   :  { %v12985_v27 = vpack.i.bf16 %v6714_v35, %v8446_v9  ;;  %9400 = vmatmul.mubr.f32.gmra.mrb[200].mxu0 %v9012_v46  ;;  %v21045_v46 = vld [vmem:[#allocation97_spill] sm:$0xff] }
 0xc70   :  { %v18596_v24 = vpack.i.bf16 %v6713_v39, %v8445_v30  ;;  %v21044_v30 = vld [vmem:[#allocation159_spill] sm:$0xff] }
 0xc71   :  { %12986 = vrot.lane.b32.xlu1 %v12985_v27, %s13288_s13  ;;  %v6622_v27 = vadd.f32 %v21045_v46, %v21044_v30 }
 0xc72   :  { %v12008_v45 = vpop.f32.mrb[116].mxu0 }
 0xc73   :  { %v8334_v7 = vadd.f32 %v12008_v45, %v20988_v55  ;;  %v8328_v13 = vpop.f32.mrb[117].mxu0  ;;  %v6617_v45 = vadd.f32 %v21047_v63, %v21046_v60  ;;  %v21051_v63 = vld [vmem:[#allocation103_spill] sm:$0xff] }
 0xc74   :  { %v8329_v25 = vadd.f32 %v8328_v13, %v20985_v29 }
 0xc75   :  { %v8448_v57 = vmax.f32 %v8334_v7, 0.0 }
 0xc76   :  { %v8447_v49 = vmax.f32 %v8329_v25, 0.0 }
 0xc77   :  { %v12995_v6 = vpack.i.bf16 %v6716_v31, %v8448_v57  ;;  %v6720_v31 = vmax.f32 %v6622_v27, 0.0 }
 0xc78   :  { %v18614_v48 = vpack.i.bf16 %v6715_v36, %v8447_v49  ;;  %v6719_v36 = vmax.f32 %v6617_v45, 0.0  ;;  %v6642_v45 = vadd.f32 %v21051_v63, %v21012_v33 }
 0xc79   :  { %943 = vmax.xlane.f32.xlu0 %v942_v61  ;;  %12996 = vrot.lane.b32.xlu1 %v12995_v6, %s13288_s13 }
 0xc7a   :  { %v12011_v51 = vpop.f32.mrb[118].mxu0 }
 0xc7b   :  { %v8344_v18 = vadd.f32 %v12011_v51, %v20994_v11  ;;  %v8338_v21 = vpop.f32.mrb[119].mxu0  ;;  %v6627_v51 = vadd.f32 %v21050_v38, %v21049_v17  ;;  %v21053_v38 = vld [vmem:[#allocation112_spill] sm:$0xff] }
 0xc7c   :  { %v8339_v53 = vadd.f32 %v8338_v21, %v21042_v40 }
 0xc7d   :  { %v8450_v43 = vmax.f32 %v8344_v18, 0.0 }
 0xc7e   :  { %v8449_v35 = vmax.f32 %v8339_v53, 0.0 }
 0xc7f   :  { %v13005_v9 = vpack.i.bf16 %v6718_v42, %v8450_v43  ;;  %v6722_v43 = vmax.f32 %v6632_v23, 0.0 }
 0xc80   :  { %v13010_v39 = vpack.i.bf16 %v6717_v4, %v8449_v35  ;;  %v6721_v35 = vmax.f32 %v6627_v51, 0.0  ;;  %v6652_v51 = vadd.f32 %v21053_v38, %v16918_v15  ;;  %v21057_v38 = vld [vmem:[#allocation193_spill] sm:$0xff] }
 0xc81   :  { %13006 = vrot.lane.b32.xlu1 %v13005_v9, %s13288_s13 }
 0xc82   :  { %v12014_v7 = vpop.f32.mrb[120].mxu0 }
 0xc83   :  { %v8354_v13 = vadd.f32 %v12014_v7, %v21044_v30  ;;  %v8348_v52 = vpop.f32.mrb[121].mxu0  ;;  %v21052_v7 = vld [vmem:[#allocation184_spill] sm:$0xff] }
 0xc84   :  { %v8349_v25 = vadd.f32 %v8348_v52, %v21046_v60 }
 0xc85   :  { %v8452_v57 = vmax.f32 %v8354_v13, 0.0  ;;  %v6637_v13 = vadd.f32 %v21052_v7, %v16888_v44 }
 0xc86   :  { %v8451_v49 = vmax.f32 %v8349_v25, 0.0 }
 0xc87   :  { %v13015_v6 = vpack.i.bf16 %v6720_v31, %v8452_v57 }
 0xc88   :  { %v13020_v61 = vpack.i.bf16 %v6719_v36, %v8451_v49  ;;  %v6724_v36 = vmax.f32 %v6642_v45, 0.0  ;;  %v6723_v49 = vmax.f32 %v6637_v13, 0.0  ;;  %v21055_v45 = vld [vmem:[#allocation188_spill] sm:$0xff] }
 0xc89   :  { %13016 = vrot.lane.b32.xlu1 %v13015_v6, %s13288_s13  ;;  %v6662_v7 = vadd.f32 %v21055_v45, %v16945_v50  ;;  %v21056_v13 = vld [vmem:[#allocation120_spill] sm:$0xff] }
 0xc8a   :  { %v12017_v18 = vpop.f32.mrb[122].mxu0 }
 0xc8b   :  { %v8364_v21 = vadd.f32 %v12017_v18, %v21007_v8  ;;  %v8358_v53 = vpop.f32.mrb[123].mxu0  ;;  %v21054_v18 = vld [vmem:[#allocation115_spill] sm:$0xff] }
 0xc8c   :  { %v8359_v42 = vadd.f32 %v8358_v53, %v21049_v17 }
 0xc8d   :  { %v8454_v4 = vmax.f32 %v8364_v21, 0.0  ;;  %v6647_v21 = vadd.f32 %v21054_v18, %v16898_v10  ;;  %v21058_v18 = vld [vmem:[#allocation126_spill] sm:$0xff] }
 0xc8e   :  { %v8453_v9 = vmax.f32 %v8359_v42, 0.0 }
 0xc8f   :  { %v13025_v46 = vpack.i.bf16 %v6722_v43, %v8454_v4  ;;  %12971 = vrot.lane.b32.xlu0 %v18563_v58, %s13288_s13  ;;  %v6726_v4 = vmax.f32 %v6652_v51, 0.0  ;;  %v6672_v51 = vadd.f32 %v21057_v38, %v16964_v32  ;;  %v21062_v38 = vld [vmem:[#allocation170_spill] sm:$0xff] }
 0xc90   :  { %v13030_v27 = vpack.i.bf16 %v6721_v35, %v8453_v9  ;;  %v6725_v35 = vmax.f32 %v6647_v21, 0.0  ;;  %v6667_v21 = vadd.f32 %v21058_v18, %v16955_v28 }
 0xc91   :  { %13026 = vrot.lane.b32.xlu1 %v13025_v46, %s13288_s13 }
 0xc92   :  { %v12020_v52 = vpop.f32.mrb[124].mxu0 }
 0xc93   :  { %v8374_v25 = vadd.f32 %v12020_v52, %v21012_v33  ;;  %v8368_v31 = vpop.f32.mrb[125].mxu0  ;;  %12981 = vrot.lane.b32.xlu0 %v18584_v59, %s13288_s13  ;;  %v6657_v52 = vadd.f32 %v21056_v13, %v16935_v62 }
 0xc94   :  { %v8369_v57 = vadd.f32 %v8368_v31, %v16888_v44 }
 0xc95   :  { %v8456_v58 = vmax.f32 %v8374_v25, 0.0 }
 0xc96   :  { %v8455_v6 = vmax.f32 %v8369_v57, 0.0 }
 0xc97   :  { %v13035_v56 = vpack.i.bf16 %v6724_v36, %v8456_v58  ;;  %12991 = vrot.lane.b32.xlu0 %v18596_v24, %s13288_s13  ;;  %v6728_v36 = vmax.f32 %v6662_v7, 0.0  ;;  %v21060_v7 = vld [vmem:[#allocation169_spill] sm:$0xff] }
 0xc98   :  { %v13040_v23 = vpack.i.bf16 %v6723_v49, %v8455_v6  ;;  %v6677_v13 = vadd.f32 %v21060_v7, %v16974_v3  ;;  %v21066_v7 = vld [vmem:[#allocation182_spill] sm:$0xff] }
 0xc99   :  { %13036 = vrot.lane.b32.xlu1 %v13035_v56, %s13288_s13 }
 0xc9a   :  { %v12023_v59 = vpop.f32.mrb[126].mxu0 }
 0xc9b   :  { %v8384_v53 = vadd.f32 %v12023_v59, %v16918_v15  ;;  %v8378_v42 = vpop.f32.mrb[127].mxu0  ;;  %13001 = vrot.lane.b32.xlu0 %v18614_v48, %s13288_s13 }
 0xc9c   :  { %v8379_v43 = vadd.f32 %v8378_v42, %v16898_v10 }
 0xc9d   :  { %v8458_v24 = vmax.f32 %v8384_v53, 0.0 }
 0xc9e   :  { %v8457_v9 = vmax.f32 %v8379_v43, 0.0  ;;  %v6730_v43 = vmax.f32 %v6672_v51, 0.0  ;;  %v6687_v51 = vadd.f32 %v21062_v38, %v16999_v16 }
 0xc9f   :  { %v13045_v46 = vpack.i.bf16 %v6726_v4, %v8458_v24  ;;  %13011 = vrot.lane.b32.xlu0 %v13010_v39, %s13288_s13  ;;  %v6727_v39 = vmax.f32 %v6657_v52, 0.0 }
 0xca0   :  { %v13050_v63 = vpack.i.bf16 %v6725_v35, %v8457_v9 }
 0xca1   :  { %13046 = vrot.lane.b32.xlu1 %v13045_v46, %s13288_s13  ;;  %v21059_v46 = vld [vmem:[#allocation197_spill] sm:$0xff] }
 0xca2   :  { %v12026_v25 = vpop.f32.mrb[128].mxu0  ;;  %v6682_v45 = vadd.f32 %v21059_v46, %v16986_v34  ;;  %v21065_v46 = vld [vmem:[#allocation133_spill] sm:$0xff] }
 0xca3   :  { %v8394_v48 = vadd.f32 %v12026_v25, %v16945_v50  ;;  %v8388_v31 = vpop.f32.mrb[129].mxu0  ;;  %13021 = vrot.lane.b32.xlu0 %v13020_v61, %s13288_s13 }
 0xca4   :  { %v8389_v57 = vadd.f32 %v8388_v31, %v16935_v62  ;;  %v6732_v31 = vmax.f32 %v6682_v45, 0.0  ;;  %v6702_v45 = vadd.f32 %v21065_v46, %v17029_v22 }
 0xca5   :  { %v8460_v58 = vmax.f32 %v8394_v48, 0.0 }
 0xca6   :  { %v8459_v49 = vmax.f32 %v8389_v57, 0.0  ;;  %v6736_v38 = vmax.f32 %v6702_v45, 0.0  ;;  %v21071_v45 = vld [vmem:[#allocation67_spill] sm:$0xff] }
 0xca7   :  { %v13055_v6 = vpack.i.bf16 %v6728_v36, %v8460_v58  ;;  %13031 = vrot.lane.b32.xlu0 %v13030_v27, %s13288_s13  ;;  %v6729_v27 = vmax.f32 %v6667_v21, 0.0  ;;  %v6731_v36 = vmax.f32 %v6677_v13, 0.0 }
 0xca8   :  { %v13060_v56 = vpack.i.bf16 %v6727_v39, %v8459_v49  ;;  %v21061_v49 = vld [vmem:[#allocation132_spill] sm:$0xff] }
 0xca9   :  { %13056 = vrot.lane.b32.xlu1 %v13055_v6, %s13288_s13  ;;  %v6692_v6 = vadd.f32 %v21061_v49, %v17011_v0 }
 0xcaa   :  { %v12029_v59 = vpop.f32.mrb[130].mxu0 }
 0xcab   :  { %v8404_v61 = vadd.f32 %v12029_v59, %v16964_v32  ;;  %v8398_v53 = vpop.f32.mrb[131].mxu0  ;;  %13041 = vrot.lane.b32.xlu0 %v13040_v23, %s13288_s13 }
 0xcac   :  { %v8399_v42 = vadd.f32 %v8398_v53, %v16955_v28 }
 0xcad   :  { %v8462_v4 = vmax.f32 %v8404_v61, 0.0  ;;  %v6734_v61 = vmax.f32 %v6692_v6, 0.0 }
 0xcae   :  { %v8461_v24 = vmax.f32 %v8399_v42, 0.0  ;;  %v6733_v42 = vmax.f32 %v6687_v51, 0.0 }
 0xcaf   :  { %v18679_v35 = vpack.i.bf16 %v6730_v43, %v8462_v4  ;;  %13051 = vrot.lane.b32.xlu0 %v13050_v63, %s13288_s13 }
 0xcb0   :  { %v13070_v9 = vpack.i.bf16 %v6729_v27, %v8461_v24  ;;  %v21063_v27 = vld [vmem:[#allocation212_spill] sm:$0xff]  ;;  %v21064_v24 = vld [vmem:[#allocation77_spill] sm:$0xff] }
 0xcb1   :  { %v7413_v13 = vadd.f32 %v21066_v7, %v21063_v27 }
 0xcb2   :  { %v12032_v52 = vpop.f32.mrb[132].mxu0 }
 0xcb3   :  { %v8414_v23 = vadd.f32 %v12032_v52, %v16986_v34  ;;  %v8408_v25 = vpop.f32.mrb[133].mxu0  ;;  %13061 = vrot.lane.b32.xlu0 %v13060_v56, %s13288_s13  ;;  %v7571_v51 = vmax.f32 %v7413_v13, 0.0  ;;  %v18720_v13 = vadd.f32 %v18607_v47, %v21071_v45 }
 0xcb4   :  { %v8409_v48 = vadd.f32 %v8408_v25, %v16974_v3 }
 0xcb5   :  { %v8464_v57 = vmax.f32 %v8414_v23, 0.0  ;;  %v21067_v23 = vld [vmem:[#allocation174_spill] sm:$0xff]  ;;  %21072 = vst [vmem:[#allocation33_spill] sm:$0xff] %v18720_v13 }
 0xcb6   :  { %v8463_v58 = vmax.f32 %v8409_v48, 0.0  ;;  %v6697_v25 = vadd.f32 %v21067_v23, %v17019_v54  ;;  %v21073_v23 = vld [vmem:[#allocation78_spill] sm:$0xff] }
 0xcb7   :  { %v18689_v63 = vpack.i.bf16 %v6732_v31, %v8464_v57  ;;  %13071 = vrot.lane.b32.xlu0 %v13070_v9, %s13288_s13  ;;  %v5681_v9 = vadd.f32 %v21064_v24, %v21063_v27  ;;  %v21068_v31 = vld [vmem:[#allocation158_spill] sm:$0xff]  ;;  %v21069_v57 = vld [vmem:[#allocation135_spill] sm:$0xff] }
 0xcb8   :  { %v13080_v39 = vpack.i.bf16 %v6731_v36, %v8463_v58  ;;  %v7418_v36 = vadd.f32 %v21069_v57, %v21068_v31  ;;  %v6735_v27 = vmax.f32 %v6697_v25, 0.0 }
 0xcb9   :  { %v5839_v6 = vmax.f32 %v5681_v9, 0.0 }
 0xcba   :  { %v12035_v18 = vpop.f32.mrb[134].mxu0  ;;  %v7572_v46 = vmax.f32 %v7418_v36, 0.0 }
 0xcbb   :  { %v8424_v56 = vadd.f32 %v12035_v18, %v17011_v0  ;;  %v8418_v21 = vpop.f32.mrb[135].mxu0  ;;  %13081 = vrot.lane.b32.xlu0 %v13080_v39, %s13288_s13 }
 0xcbc   :  { %v8419_v59 = vadd.f32 %v8418_v21, %v16999_v16 }
 0xcbd   :  { %v8466_v53 = vmax.f32 %v8424_v56, 0.0 }
 0xcbe   :  { %v8465_v43 = vmax.f32 %v8419_v59, 0.0 }
 0xcbf   :  { %v18699_v4 = vpack.i.bf16 %v6734_v61, %v8466_v53 }
 0xcc0   :  { %v13090_v52 = vpack.i.bf16 %v6733_v42, %v8465_v43  ;;  %v21070_v42 = vld [vmem:[#allocation75_spill] sm:$0xff] }
 0xcc1   :  { %v5686_v43 = vadd.f32 %v21070_v42, %v21068_v31  ;;  %v21074_v31 = vld [vmem:[#allocation186_spill] sm:$0xff] }
 0xcc2   :  { %v12038_v48 = vpop.f32.mrb[136].mxu0  ;;  %13091 = vrot.lane.b32.xlu0 %v13090_v52, %s13288_s13  ;;  %v7423_v25 = vadd.f32 %v21074_v31, %v16726_v12  ;;  %v21079_v31 = vld [vmem:[#allocation49_spill] sm:$0xff] }
 0xcc3   :  { %v8434_v58 = vadd.f32 %v12038_v48, %v17029_v22  ;;  %v8428_v39 = vpop.f32.mrb[137].mxu0  ;;  %v12947_v49 = vpop.permute.xlu1 %12946  ;;  %v5691_v48 = vadd.f32 %v21073_v23, %v16726_v12 }
 0xcc4   :  { %v8429_v18 = vadd.f32 %v8428_v39, %v17019_v54  ;;  %v12952_v56 = vpop.permute.xlu0 %12951  ;;  %v12948_v59 = vunpack.i.l.bf16 %v12947_v49  ;;  %v5840_v39 = vmax.f32 %v5686_v43, 0.0 }
 0xcc5   :  { %v8468_v21 = vmax.f32 %v8434_v58, 0.0  ;;  %v12954_v61 = vunpack.i.h.bf16 %v12952_v56  ;;  %v12953_v53 = vunpack.i.l.bf16 %v12952_v56  ;;  %v12949_v58 = vunpack.i.h.bf16 %v12947_v49 }
 0xcc6   :  { %v8467_v24 = vmax.f32 %v8429_v18, 0.0  ;;  %v9078_v36 = vsel %vm538_vm9, %v7572_v46, %v12948_v59  ;;  %v5841_v18 = vmax.f32 %v5691_v48, 0.0  ;;  %v21076_v59 = vld [vmem:[#allocation80_spill] sm:$0xff]  ;;  %v21077_v48 = vld [vmem:[#allocation73_spill] sm:$0xff] }
 0xcc7   :  { %v13095_v7 = vpack.i.bf16 %v6736_v38, %v8468_v21  ;;  %v9045_v52 = vsel %vm538_vm9, %v5839_v6, %v12954_v61  ;;  %v9077_v9 = vsel %vm538_vm9, %v7571_v51, %v12953_v53  ;;  %v21075_v6 = vld [vmem:[#allocation136_spill] sm:$0xff]  ;;  %v945_v21 = vsel %vm860_vm10, %v18720_v13, -inf }
 0xcc8   :  { %v13100_v57 = vpack.i.bf16 %v6735_v27, %v8467_v24  ;;  %9469 = vmatprep.mubr.f32.mxu0 %v9077_v9  ;;  %v7428_v38 = vadd.f32 %v21075_v6, %v20965_v26  ;;  %v9046_v49 = vsel %vm538_vm9, %v5840_v39, %v12949_v58  ;;  %v7573_v61 = vmax.f32 %v7423_v25, 0.0  ;;  %v21081_v6 = vld [vmem:[#allocation91_spill] sm:$0xff] }
 0xcc9   :  { %9470 = vmatmul.mubr.f32.vlgmr.msra.gmra.mrb[138].mxu0 %v9045_v52  ;;  %v5696_v43 = vadd.f32 %v21076_v59, %v20965_v26  ;;  %v18740_v58 = vadd.f32 %v18607_v47, %v21077_v48  ;;  %v5701_v25 = vadd.f32 %v21079_v31, %v16737_v2  ;;  %v21089_v31 = vld [vmem:[#allocation190_spill] sm:$0xff] }
 0xcca   :  { %9474 = vmatprep.mubr.f32.mxu0 %v9078_v36  ;;  %v7574_v27 = vmax.f32 %v7428_v38, 0.0  ;;  %v18760_v38 = vadd.f32 %v18607_v47, %v21081_v6 }
 0xccb   :  { %v12957_v51 = vpop.permute.xlu1 %12956  ;;  %v5842_v45 = vmax.f32 %v5696_v43, 0.0  ;;  %21078 = vst [vmem:[#allocation89_spill] sm:$0xff] %v18740_v58  ;;  %v948_v26 = vsel %vm860_vm10, %v18740_v58, -inf }
 0xccc   :  { %v12962_v56 = vpop.permute.xlu0 %12961  ;;  %v12958_v53 = vunpack.i.l.bf16 %v12957_v51  ;;  %v12959_v52 = vunpack.i.h.bf16 %v12957_v51  ;;  %21082 = vst [vmem:[#allocation206_spill] sm:$0xff] %v18760_v38  ;;  %v21083_v51 = vld [vmem:[#allocation137_spill] sm:$0xff]  ;;  %v951_v59 = vsel %vm860_vm10, %v18760_v38, -inf }
 0xccd   :  { %v12964_v42 = vunpack.i.h.bf16 %v12962_v56  ;;  %v12963_v12 = vunpack.i.l.bf16 %v12962_v56  ;;  %946 = vmax.xlane.f32.xlu1 %v945_v21  ;;  %9475 = vmatmul.mubr.f32.gmra.mrb[140].mxu0 %v9046_v49 }
 0xcce   :  { %v9080_v9 = vsel %vm538_vm9, %v7574_v27, %v12958_v53  ;;  %v9048_v23 = vsel %vm538_vm9, %v5842_v45, %v12959_v52  ;;  %v21087_v27 = vld [vmem:[#allocation195_spill] sm:$0xff] }
 0xccf   :  { %v9079_v24 = vsel %vm538_vm9, %v7573_v61, %v12963_v12  ;;  %v9047_v46 = vsel %vm538_vm9, %v5841_v18, %v12964_v42  ;;  %v21084_v18 = vld [vmem:[#allocation216_spill] sm:$0xff]  ;;  %v21086_v12 = vld [vmem:[#allocation83_spill] sm:$0xff] }
 0xcd0   :  { %9479 = vmatprep.mubr.f32.mxu0 %v9079_v24  ;;  %v7443_v24 = vadd.f32 %v21087_v27, %v20973_v14 }
 0xcd1   :  { %9480 = vmatmul.mubr.f32.gmra.mrb[142].mxu0 %v9047_v46 }
 0xcd2   :  { %9484 = vmatprep.mubr.f32.mxu0 %v9080_v9 }
 0xcd5   :  { %9485 = vmatmul.mubr.f32.gmra.mrb[144].mxu0 %v9048_v23 }
 0xcde   :  { %13066 = vrot.lane.b32.xlu1 %v18679_v35, %s13288_s13  ;;  %v21080_v35 = vld [vmem:[#allocation189_spill] sm:$0xff] }
 0xcdf   :  { %v7433_v39 = vadd.f32 %v21080_v35, %v16737_v2  ;;  %v5706_v2 = vadd.f32 %v21086_v12, %v20970_v20 }
 0xce1   :  { %949 = vmax.xlane.f32.xlu0 %v948_v26  ;;  %v7575_v49 = vmax.f32 %v7433_v39, 0.0  ;;  %v21088_v26 = vld [vmem:[#allocation24_spill] sm:$0xff]  ;;  %v5844_v35 = vmax.f32 %v5706_v2, 0.0  ;;  %v21090_v39 = vld [vmem:[#allocation163_spill] sm:$0xff] }
 0xce2   :  { %13076 = vrot.lane.b32.xlu1 %v18689_v63, %s13288_s13  ;;  %v12967_v63 = vpop.permute.xlu1 %12966  ;;  %v5711_v6 = vadd.f32 %v21090_v39, %v20973_v14  ;;  %v21095_v14 = vld [vmem:[#allocation131_spill] sm:$0xff] }
 0xce3   :  { %v12968_v61 = vunpack.i.l.bf16 %v12967_v63  ;;  %v12969_v9 = vunpack.i.h.bf16 %v12967_v63 }
 0xce6   :  { %13086 = vrot.lane.b32.xlu1 %v18699_v4, %s13288_s13  ;;  %v7438_v4 = vadd.f32 %v21083_v51, %v20970_v20  ;;  %v12977_v51 = vpop.permute.xlu1 %12976 }
 0xce8   :  { %v7576_v43 = vmax.f32 %v7438_v4, 0.0  ;;  %v21091_v4 = vld [vmem:[#allocation94_spill] sm:$0xff] }
 0xce9   :  { %v18781_v63 = vadd.f32 %v18607_v47, %v21091_v4 }
 0xcea   :  { %13096 = vrot.lane.b32.xlu1 %v13095_v7, %s13288_s13  ;;  %v21085_v7 = vld [vmem:[#allocation85_spill] sm:$0xff]  ;;  %v9082_v20 = vsel %vm538_vm9, %v7576_v43, %v12968_v61  ;;  %v12978_v61 = vunpack.i.l.bf16 %v12977_v51  ;;  %v5845_v43 = vmax.f32 %v5711_v6, 0.0  ;;  %v21100_v6 = vld [vmem:[#allocation52_spill] sm:$0xff] }
 0xceb   :  { %v957_v56 = vsub.f32 %v21085_v7, %v21084_v18  ;;  %21092 = vst [vmem:[#allocation154_spill] sm:$0xff] %v18781_v63  ;;  %v21093_v18 = vld [vmem:[#allocation138_spill] sm:$0xff]  ;;  %v5721_v4 = vadd.f32 %v21100_v6, %v20979_v5 }
 0xced   :  { %v989_v23 = vmul.f32 1.442695, %v957_v56  ;;  %v7448_v56 = vadd.f32 %v21093_v18, %v20976_v1  ;;  %v12987_v18 = vpop.permute.xlu1 %12986 }
 0xcef   :  { %13105 = vpow2.f32 %v989_v23 }
 0xcf7   :  { %13101 = vrot.lane.b32.xlu0 %v13100_v57, %s13288_s13  ;;  %v5843_v57 = vmax.f32 %v5701_v25, 0.0  ;;  %v959_v25 = vsub.f32 %v21089_v31, %v21088_v26 }
 0xcf9   :  { %v993_v2 = vmul.f32 1.442695, %v959_v25 }
 0xcfb   :  { %13107 = vpow2.f32 %v993_v2 }
 0xd06   :  { %v18754_v36 = vpop.xlane.xlu0 %943 }
 0xd0a   :  { %v12972_v21 = vpop.permute.xlu0 %12971 }
 0xd0b   :  { %v12974_v53 = vunpack.i.h.bf16 %v12972_v21  ;;  %v12973_v42 = vunpack.i.l.bf16 %v12972_v21 }
 0xd0d   :  { %v9081_v46 = vsel %vm538_vm9, %v7575_v49, %v12973_v42  ;;  %v9049_v52 = vsel %vm538_vm9, %v5843_v57, %v12974_v53  ;;  %v7577_v57 = vmax.f32 %v7443_v24, 0.0  ;;  %v9050_v49 = vsel %vm538_vm9, %v5844_v35, %v12969_v9  ;;  %v21094_v42 = vld [vmem:[#allocation18_spill] sm:$0xff] }
 0xd0e   :  { %952 = vmax.xlane.f32.xlu1 %v951_v59  ;;  %v12982_v45 = vpop.permute.xlu0 %12981  ;;  %9489 = vmatprep.mubr.f32.mxu0 %v9081_v46  ;;  %v960_v12 = vsub.f32 %v21095_v14, %v21094_v42  ;;  %v21096_v59 = vld [vmem:[#allocation6_spill] sm:$0xff]  ;;  %v7578_v46 = vmax.f32 %v7448_v56, 0.0  ;;  %v954_v9 = vsel %vm860_vm10, %v18781_v63, -inf }
 0xd0f   :  { %v12983_v48 = vunpack.i.l.bf16 %v12982_v45  ;;  %9490 = vmatmul.mubr.f32.gmra.mrb[146].mxu0 %v9049_v52  ;;  %v12984_v21 = vunpack.i.h.bf16 %v12982_v45  ;;  %v5716_v47 = vadd.f32 %v21096_v59, %v20976_v1  ;;  %v21097_v24 = vld [vmem:[#allocation198_spill] sm:$0xff]  ;;  %v12979_v45 = vunpack.i.h.bf16 %v12977_v51  ;;  %v21102_v51 = vld [vmem:[#allocation168_spill] sm:$0xff] }
 0xd10   :  { %9494 = vmatprep.mubr.f32.mxu0 %v9082_v20  ;;  %v7453_v52 = vadd.f32 %v21097_v24, %v20979_v5  ;;  %v21099_v20 = vld [vmem:[#allocation171_spill] sm:$0xff]  ;;  %v9084_v1 = vsel %vm538_vm9, %v7578_v46, %v12978_v61  ;;  %v995_v35 = vmul.f32 1.442695, %v960_v12  ;;  %v21101_v56 = vld [vmem:[#allocation22_spill] sm:$0xff]  ;;  %v21104_v61 = vld [vmem:[#allocation149_spill] sm:$0xff] }
 0xd11   :  { %v9083_v53 = vsel %vm538_vm9, %v7577_v57, %v12983_v48  ;;  %v9051_v23 = vsel %vm538_vm9, %v5845_v43, %v12984_v21  ;;  %v21098_v48 = vld [vmem:[#allocation19_spill] sm:$0xff]  ;;  %v5846_v39 = vmax.f32 %v5716_v47, 0.0  ;;  %v958_v57 = vsub.f32 %v21102_v51, %v21101_v56  ;;  %v21103_v21 = vld [vmem:[#allocation141_spill] sm:$0xff]  ;;  %v21106_v46 = vld [vmem:[#allocation26_spill] sm:$0xff] }
 0xd12   :  { %v12992_v27 = vpop.permute.xlu0 %12991  ;;  %v961_v26 = vsub.f32 %v21099_v20, %v21098_v48  ;;  %v21105_v12 = vld [vmem:[#allocation173_spill] sm:$0xff]  ;;  %v12988_v47 = vunpack.i.l.bf16 %v12987_v18  ;;  %13109 = vpow2.f32 %v995_v35  ;;  %v21107_v24 = vld [vmem:[#allocation192_spill] sm:$0xff]  ;;  %v12989_v56 = vunpack.i.h.bf16 %v12987_v18 }
 0xd13   :  { %9495 = vmatmul.mubr.f32.gmra.mrb[148].mxu0 %v9050_v49  ;;  %v12993_v25 = vunpack.i.l.bf16 %v12992_v27  ;;  %v7458_v49 = vadd.f32 %v21103_v21, %v20982_v41  ;;  %v12994_v42 = vunpack.i.h.bf16 %v12992_v27  ;;  %v9052_v59 = vsel %vm538_vm9, %v5846_v39, %v12979_v45  ;;  %v18813_v27 = vpop.eup %13105  ;;  %v21109_v39 = vld [vmem:[#allocation201_spill] sm:$0xff] }
 0xd14   :  { %9499 = vmatprep.mubr.f32.mxu0 %v9083_v53  ;;  %v7579_v53 = vmax.f32 %v7453_v52, 0.0  ;;  %v997_v43 = vmul.f32 1.442695, %v961_v26  ;;  %v962_v2 = vsub.f32 %v21105_v12, %v21104_v61  ;;  %v991_v45 = vmul.f32 1.442695, %v958_v57  ;;  %v21111_v57 = vld [vmem:[#allocation196_spill] sm:$0xff] }
 0xd15   :  { %v7580_v26 = vmax.f32 %v7458_v49, 0.0  ;;  %v7463_v6 = vadd.f32 %v21109_v39, %v20985_v29  ;;  %v21112_v61 = vld [vmem:[#allocation58_spill] sm:$0xff]  ;;  %v18829_v39 = vpop.eup %13107 }
 0xd16   :  { %955 = vmax.xlane.f32.xlu0 %v954_v9  ;;  %v9085_v5 = vsel %vm538_vm9, %v7579_v53, %v12993_v25  ;;  %v963_v9 = vsub.f32 %v21107_v24, %v21106_v46  ;;  %v13002_v52 = vpop.permute.xlu0 %13001  ;;  %13111 = vpow2.f32 %v997_v43  ;;  %v999_v35 = vmul.f32 1.442695, %v962_v2  ;;  %v21110_v53 = vld [vmem:[#allocation29_spill] sm:$0xff]  ;;  %v21114_v43 = vld [vmem:[#allocation175_spill] sm:$0xff] }
 0xd17   :  { %9500 = vmatmul.mubr.f32.gmra.mrb[150].mxu0 %v9051_v23  ;;  %v21108_v23 = vld [vmem:[#allocation164_spill] sm:$0xff]  ;;  %v13003_v21 = vunpack.i.l.bf16 %v13002_v52  ;;  %v965_v49 = vsub.f32 %v21111_v57, %v21110_v53  ;;  %v5731_v18 = vadd.f32 %v21112_v61, %v20985_v29  ;;  %13113 = vpow2.f32 %v991_v45  ;;  %v21115_v46 = vld [vmem:[#allocation139_spill] sm:$0xff] }
 0xd18   :  { %9504 = vmatprep.mubr.f32.mxu0 %v9084_v1  ;;  %v5726_v48 = vadd.f32 %v21108_v23, %v20982_v41  ;;  %v5847_v1 = vmax.f32 %v5721_v4, 0.0  ;;  %v9086_v41 = vsel %vm538_vm9, %v7580_v26, %v12988_v47  ;;  %v1001_v4 = vmul.f32 1.442695, %v963_v9  ;;  %v21117_v26 = vld [vmem:[#allocation199_spill] sm:$0xff] }
 0xd19   :  { %v7468_v23 = vadd.f32 %v21115_v46, %v20988_v55  ;;  %v13004_v47 = vunpack.i.h.bf16 %v13002_v52  ;;  %13115 = vpow2.f32 %v999_v35  ;;  %v5849_v61 = vmax.f32 %v5731_v18, 0.0  ;;  %v21119_v35 = vld [vmem:[#allocation150_spill] sm:$0xff] }
 0xd1a   :  { %v9053_v25 = vsel %vm538_vm9, %v5847_v1, %v12994_v42  ;;  %v21113_v42 = vld [vmem:[#allocation23_spill] sm:$0xff]  ;;  %v7581_v1 = vmax.f32 %v7463_v6, 0.0  ;;  %13117 = vpow2.f32 %v1001_v4  ;;  %v21118_v6 = vld [vmem:[#allocation4_spill] sm:$0xff]  ;;  %v13012_v52 = vpop.permute.xlu0 %13011 }
 0xd1b   :  { %9505 = vmatmul.mubr.f32.gmra.mrb[152].mxu0 %v9052_v59  ;;  %v5848_v59 = vmax.f32 %v5726_v48, 0.0  ;;  %v964_v2 = vsub.f32 %v21114_v43, %v21113_v42  ;;  %v21116_v48 = vld [vmem:[#allocation31_spill] sm:$0xff]  ;;  %v5736_v53 = vadd.f32 %v21118_v6, %v20988_v55  ;;  %v7582_v46 = vmax.f32 %v7468_v23, 0.0  ;;  %v21124_v23 = vld [vmem:[#allocation30_spill] sm:$0xff] }
 0xd1c   :  { %9509 = vmatprep.mubr.f32.mxu0 %v9085_v5  ;;  %v12997_v5 = vpop.permute.xlu1 %12996  ;;  %v9087_v45 = vsel %vm538_vm9, %v7581_v1, %v13003_v21  ;;  %v18843_v57 = vpop.eup %13109  ;;  %v9055_v21 = vsel %vm538_vm9, %v5849_v61, %v13004_v47  ;;  %v21122_v4 = vld [vmem:[#allocation151_spill] sm:$0xff]  ;;  %v13013_v18 = vunpack.i.l.bf16 %v13012_v52 }
 0xd1d   :  { %v9054_v9 = vsel %vm538_vm9, %v5848_v59, %v12989_v56  ;;  %v12998_v29 = vunpack.i.l.bf16 %v12997_v5  ;;  %v1003_v56 = vmul.f32 1.442695, %v964_v2  ;;  %v21120_v59 = vld [vmem:[#allocation177_spill] sm:$0xff] }
 0xd1e   :  { %v966_v42 = vsub.f32 %v21120_v59, %v21119_v35  ;;  %v5850_v35 = vmax.f32 %v5736_v53, 0.0  ;;  %v13014_v59 = vunpack.i.h.bf16 %v13012_v52 }
 0xd1f   :  { %1085 = vrot.lane.b32.xlu1 %v18813_v27, %s13289_s7  ;;  %9510 = vmatmul.mubr.f32.gmra.mrb[154].mxu0 %v9053_v25  ;;  %v967_v25 = vsub.f32 %v21117_v26, %v21116_v48  ;;  %v21121_v48 = vld [vmem:[#allocation202_spill] sm:$0xff]  ;;  %v9088_v2 = vsel %vm538_vm9, %v7582_v46, %v12998_v29 }
 0xd20   :  { %9514 = vmatprep.mubr.f32.mxu0 %v9086_v41  ;;  %v1005_v41 = vmul.f32 1.442695, %v965_v49  ;;  %v7473_v26 = vadd.f32 %v21121_v48, %v21042_v40  ;;  %v21123_v49 = vld [vmem:[#allocation179_spill] sm:$0xff]  ;;  %v13007_v47 = vpop.permute.xlu1 %13006  ;;  %v18855_v61 = vpop.eup %13111 }
 0xd21   :  { %v968_v1 = vsub.f32 %v21123_v49, %v21122_v4  ;;  %v1009_v55 = vmul.f32 1.442695, %v967_v25  ;;  %v1007_v25 = vmul.f32 1.442695, %v966_v42  ;;  %v21127_v4 = vld [vmem:[#allocation144_spill] sm:$0xff]  ;;  %v13008_v53 = vunpack.i.l.bf16 %v13007_v47  ;;  %v21128_v42 = vld [vmem:[#allocation27_spill] sm:$0xff] }
 0xd22   :  { %13119 = vpow2.f32 %v1005_v41  ;;  %v7478_v49 = vadd.f32 %v21127_v4, %v20994_v11  ;;  %v18860_v41 = vpop.eup %13113 }
 0xd23   :  { %1089 = vrot.lane.b32.xlu1 %v18829_v39, %s13289_s7  ;;  %9515 = vmatmul.mubr.f32.gmra.mrb[156].mxu0 %v9054_v9  ;;  %v12999_v9 = vunpack.i.h.bf16 %v12997_v5  ;;  %v21126_v5 = vld [vmem:[#allocation64_spill] sm:$0xff]  ;;  %13121 = vpow2.f32 %v1003_v56  ;;  %v1011_v46 = vmul.f32 1.442695, %v968_v1  ;;  %v18871_v1 = vpop.eup %13115 }
 0xd24   :  { %9519 = vmatprep.mubr.f32.mxu0 %v9087_v45  ;;  %v21125_v45 = vld [vmem:[#allocation200_spill] sm:$0xff]  ;;  %v5741_v48 = vadd.f32 %v21126_v5, %v21042_v40  ;;  %13123 = vpow2.f32 %v1009_v55  ;;  %v21131_v55 = vld [vmem:[#allocation211_spill] sm:$0xff] }
 0xd25   :  { %v969_v6 = vsub.f32 %v21125_v45, %v21124_v23  ;;  %v9056_v29 = vsel %vm538_vm9, %v5850_v35, %v12999_v9  ;;  %v13022_v9 = vpop.permute.xlu0 %13021  ;;  %13125 = vpow2.f32 %v1007_v25  ;;  %v21132_v35 = vld [vmem:[#allocation180_spill] sm:$0xff] }
 0xd26   :  { %v5851_v5 = vmax.f32 %v5741_v48, 0.0  ;;  %v970_v4 = vsub.f32 %v21132_v35, %v21131_v55  ;;  %13127 = vpow2.f32 %v1011_v46  ;;  %v21134_v48 = vld [vmem:[#allocation152_spill] sm:$0xff] }
 0xd27   :  { %1091 = vrot.lane.b32.xlu1 %v18843_v57, %s13289_s7  ;;  %9520 = vmatmul.mubr.f32.gmra.mrb[158].mxu0 %v9055_v21  ;;  %v7583_v21 = vmax.f32 %v7473_v26, 0.0  ;;  %v1013_v56 = vmul.f32 1.442695, %v969_v6  ;;  %v21130_v26 = vld [vmem:[#allocation165_spill] sm:$0xff]  ;;  %v21133_v6 = vld [vmem:[#allocation207_spill] sm:$0xff]  ;;  %v21137_v46 = vld [vmem:[#allocation32_spill] sm:$0xff] }
 0xd28   :  { %9524 = vmatprep.mubr.f32.mxu0 %v9088_v2  ;;  %v21129_v2 = vld [vmem:[#allocation34_spill] sm:$0xff]  ;;  %v5746_v52 = vadd.f32 %v21130_v26, %v20994_v11  ;;  %v9057_v11 = vsel %vm538_vm9, %v5851_v5, %v13014_v59  ;;  %v21135_v26 = vld [vmem:[#allocation204_spill] sm:$0xff]  ;;  %v1015_v59 = vmul.f32 1.442695, %v970_v4  ;;  %v21138_v5 = vld [vmem:[#allocation183_spill] sm:$0xff] }
 0xd29   :  { %v9089_v40 = vsel %vm538_vm9, %v7583_v21, %v13013_v18  ;;  %v971_v23 = vsub.f32 %v21129_v2, %v21128_v42  ;;  %v7584_v18 = vmax.f32 %v7478_v49, 0.0  ;;  %v7483_v21 = vadd.f32 %v21133_v6, %v21046_v60  ;;  %v21136_v6 = vld [vmem:[#allocation70_spill] sm:$0xff] }
 0xd2a   :  { %v13009_v42 = vunpack.i.h.bf16 %v13007_v47  ;;  %v973_v2 = vsub.f32 %v21135_v26, %v21134_v48  ;;  %13129 = vpow2.f32 %v1013_v56  ;;  %v5852_v55 = vmax.f32 %v5746_v52, 0.0  ;;  %v13017_v47 = vpop.permute.xlu1 %13016  ;;  %v21139_v26 = vld [vmem:[#allocation140_spill] sm:$0xff] }
 0xd2b   :  { %1093 = vrot.lane.b32.xlu1 %v18855_v61, %s13289_s7  ;;  %9525 = vmatmul.mubr.f32.gmra.mrb[160].mxu0 %v9056_v29  ;;  %v18877_v29 = vpop.eup %13117  ;;  %v9090_v25 = vsel %vm538_vm9, %v7584_v18, %v13008_v53  ;;  %v1017_v49 = vmul.f32 1.442695, %v971_v23  ;;  %v5751_v45 = vadd.f32 %v21136_v6, %v21046_v60  ;;  %v972_v48 = vsub.f32 %v21138_v5, %v21137_v46  ;;  %v21140_v60 = vld [vmem:[#allocation218_spill] sm:$0xff]  ;;  %v21141_v18 = vld [vmem:[#allocation185_spill] sm:$0xff]  ;;  %v13032_v5 = vpop.permute.xlu0 %13031 }
 0xd2c   :  { %1087 = vrot.lane.b32.xlu0 %v18860_v41, %s13289_s7  ;;  %9529 = vmatprep.mubr.f32.mxu0 %v9089_v40  ;;  %v13023_v40 = vunpack.i.l.bf16 %v13022_v9  ;;  %v7585_v35 = vmax.f32 %v7483_v21, 0.0  ;;  %v18893_v53 = vpop.eup %13119  ;;  %v13024_v56 = vunpack.i.h.bf16 %v13022_v9  ;;  %v9058_v23 = vsel %vm538_vm9, %v5852_v55, %v13009_v42  ;;  %v21142_v21 = vld [vmem:[#allocation156_spill] sm:$0xff]  ;;  %v21144_v9 = vld [vmem:[#allocation7_spill] sm:$0xff] }
 0xd2d   :  { %v18896_v52 = vpop.eup %13121  ;;  %v974_v6 = vsub.f32 %v21141_v18, %v21140_v60  ;;  %v1021_v24 = vmul.f32 1.442695, %v973_v2  ;;  %13131 = vpow2.f32 %v1017_v49  ;;  %v5756_v42 = vadd.f32 %v21144_v9, %v21044_v30 }
 0xd2e   :  { %v9091_v4 = vsel %vm538_vm9, %v7585_v35, %v13023_v40  ;;  %v5853_v55 = vmax.f32 %v5751_v45, 0.0  ;;  %v18909_v2 = vpop.eup %13123  ;;  %13133 = vpow2.f32 %v1015_v59  ;;  %v1019_v60 = vmul.f32 1.442695, %v972_v48  ;;  %v21146_v35 = vld [vmem:[#allocation208_spill] sm:$0xff] }
 0xd2f   :  { %1097 = vrot.lane.b32.xlu1 %v18877_v29, %s13289_s7  ;;  %9530 = vmatmul.mubr.f32.gmra.mrb[162].mxu0 %v9057_v11  ;;  %v7488_v11 = vadd.f32 %v21139_v26, %v21044_v30  ;;  %v21143_v26 = vld [vmem:[#allocation35_spill] sm:$0xff]  ;;  %21145 = vst [vmem:[#allocation84_spill] sm:$0xff] %v18909_v2  ;;  %v7493_v40 = vadd.f32 %v21146_v35, %v21049_v17  ;;  %v13019_v49 = vunpack.i.h.bf16 %v13017_v47  ;;  %v1023_v30 = vmul.f32 1.442695, %v974_v6  ;;  %v21147_v48 = vld [vmem:[#allocation28_spill] sm:$0xff] }
 0xd30   :  { %1095 = vrot.lane.b32.xlu0 %v18871_v1, %s13289_s7  ;;  %9534 = vmatprep.mubr.f32.mxu0 %v9090_v25  ;;  %v13018_v25 = vunpack.i.l.bf16 %v13017_v47  ;;  %v975_v46 = vsub.f32 %v21143_v26, %v21142_v21  ;;  %v9059_v21 = vsel %vm538_vm9, %v5853_v55, %v13024_v56  ;;  %v18914_v26 = vpop.eup %13125  ;;  %13135 = vpow2.f32 %v1021_v24  ;;  %v21149_v47 = vld [vmem:[#allocation166_spill] sm:$0xff]  ;;  %v13027_v56 = vpop.permute.xlu1 %13026  ;;  %v21151_v6 = vld [vmem:[#allocation220_spill] sm:$0xff]  ;;  %v21152_v55 = vld [vmem:[#allocation187_spill] sm:$0xff] }
 0xd31   :  { %v13033_v45 = vunpack.i.l.bf16 %v13032_v5  ;;  %v5854_v18 = vmax.f32 %v5756_v42, 0.0  ;;  %v5761_v35 = vadd.f32 %v21149_v47, %v21049_v17  ;;  %v18925_v24 = vpop.eup %13127  ;;  %13137 = vpow2.f32 %v1019_v60  ;;  %v21155_v47 = vld [vmem:[#allocation219_spill] sm:$0xff] }
 0xd32   :  { %v1025_v59 = vmul.f32 1.442695, %v975_v46  ;;  %21150 = vst [vmem:[#allocation205_spill] sm:$0xff] %v18925_v24  ;;  %v13034_v42 = vunpack.i.h.bf16 %v13032_v5  ;;  %13139 = vpow2.f32 %v1023_v30  ;;  %v13042_v5 = vpop.permute.xlu0 %13041  ;;  %v21159_v30 = vld [vmem:[#allocation191_spill] sm:$0xff] }
 0xd33   :  { %1101 = vrot.lane.b32.xlu1 %v18893_v53, %s13289_s7  ;;  %9535 = vmatmul.mubr.f32.gmra.mrb[164].mxu0 %v9058_v23  ;;  %v7586_v23 = vmax.f32 %v7488_v11, 0.0  ;;  %v21148_v11 = vld [vmem:[#allocation36_spill] sm:$0xff]  ;;  %v9060_v17 = vsel %vm538_vm9, %v5854_v18, %v13019_v49  ;;  %v21158_v49 = vld [vmem:[#allocation221_spill] sm:$0xff] }
 0xd34   :  { %1099 = vrot.lane.b32.xlu0 %v18896_v52, %s13289_s7  ;;  %9539 = vmatprep.mubr.f32.mxu0 %v9091_v4  ;;  %v977_v9 = vsub.f32 %v21148_v11, %v21147_v48  ;;  %v18931_v48 = vpop.eup %13129  ;;  %v21156_v11 = vld [vmem:[#allocation37_spill] sm:$0xff]  ;;  %13141 = vpow2.f32 %v1025_v59  ;;  %v13029_v59 = vunpack.i.h.bf16 %v13027_v56 }
 0xd35   :  { %v9092_v4 = vsel %vm538_vm9, %v7586_v23, %v13018_v25  ;;  %v21153_v25 = vld [vmem:[#allocation142_spill] sm:$0xff]  ;;  %v7587_v23 = vmax.f32 %v7493_v40, 0.0  ;;  %21154 = vst [vmem:[#allocation92_spill] sm:$0xff] %v18931_v48  ;;  %v21157_v40 = vld [vmem:[#allocation8_spill] sm:$0xff] }
 0xd36   :  { %v7498_v46 = vadd.f32 %v21153_v25, %v21007_v8  ;;  %v5766_v25 = vadd.f32 %v21157_v40, %v21007_v8 }
 0xd37   :  { %1105 = vrot.lane.b32.xlu1 %v18909_v2, %s13289_s7  ;;  %9540 = vmatmul.mubr.f32.gmra.mrb[166].mxu0 %v9059_v21  ;;  %v976_v21 = vsub.f32 %v21152_v55, %v21151_v6  ;;  %v979_v2 = vsub.f32 %v21156_v11, %v21155_v47  ;;  %v9093_v60 = vsel %vm538_vm9, %v7587_v23, %v13033_v45  ;;  %v1029_v6 = vmul.f32 1.442695, %v977_v9  ;;  %v18947_v45 = vpop.eup %13131  ;;  %v21162_v23 = vld [vmem:[#allocation194_spill] sm:$0xff] }
 0xd38   :  { %1103 = vrot.lane.b32.xlu0 %v18914_v26, %s13289_s7  ;;  %9544 = vmatprep.mubr.f32.mxu0 %v9092_v4  ;;  %v13028_v4 = vunpack.i.l.bf16 %v13027_v56  ;;  %v5855_v55 = vmax.f32 %v5761_v35, 0.0  ;;  %v978_v47 = vsub.f32 %v21159_v30, %v21158_v49  ;;  %v7588_v11 = vmax.f32 %v7498_v46, 0.0  ;;  %v18950_v8 = vpop.eup %13133  ;;  %v21161_v35 = vld [vmem:[#allocation222_spill] sm:$0xff]  ;;  %v21163_v46 = vld [vmem:[#allocation203_spill] sm:$0xff]  ;;  %v21164_v49 = vld [vmem:[#allocation76_spill] sm:$0xff]  ;;  %v13037_v30 = vpop.permute.xlu1 %13036 }
 0xd39   :  { %v1027_v18 = vmul.f32 1.442695, %v976_v21  ;;  %v980_v40 = vsub.f32 %v21162_v23, %v21161_v35  ;;  %13143 = vpow2.f32 %v1029_v6  ;;  %v5856_v56 = vmax.f32 %v5766_v25, 0.0 }
 0xd3a   :  { %v9061_v9 = vsel %vm538_vm9, %v5855_v55, %v13034_v42  ;;  %v9094_v21 = vsel %vm538_vm9, %v7588_v11, %v13028_v4  ;;  %v21165_v55 = vld [vmem:[#allocation109_spill] sm:$0xff]  ;;  %v1031_v35 = vmul.f32 1.442695, %v978_v47  ;;  %v13044_v6 = vunpack.i.h.bf16 %v13042_v5  ;;  %v21167_v47 = vld [vmem:[#allocation74_spill] sm:$0xff] }
 0xd3b   :  { %1109 = vrot.lane.b32.xlu1 %v18931_v48, %s13289_s7  ;;  %9545 = vmatmul.mubr.f32.gmra.mrb[168].mxu0 %v9060_v17  ;;  %v21160_v17 = vld [vmem:[#allocation38_spill] sm:$0xff]  ;;  %v5771_v42 = vadd.f32 %v21165_v55, %v16888_v44  ;;  %13145 = vpow2.f32 %v1027_v18  ;;  %v983_v55 = vsub.f32 %v21167_v47, %v18557_v19  ;;  %v13039_v47 = vunpack.i.h.bf16 %v13037_v30 }
 0xd3c   :  { %1107 = vrot.lane.b32.xlu0 %v18925_v24, %s13289_s7  ;;  %9549 = vmatprep.mubr.f32.mxu0 %v9093_v60  ;;  %v7503_v48 = vadd.f32 %v21160_v17, %v16888_v44  ;;  %v1033_v24 = vmul.f32 1.442695, %v979_v2  ;;  %v13043_v60 = vunpack.i.l.bf16 %v13042_v5  ;;  %v981_v17 = vsub.f32 %v21164_v49, %v21163_v46  ;;  %v18963_v2 = vpop.eup %13135 }
 0xd3d   :  { %v9062_v46 = vsel %vm538_vm9, %v5856_v56, %v13029_v59  ;;  %v18968_v25 = vpop.eup %13137  ;;  %v1035_v49 = vmul.f32 1.442695, %v980_v40  ;;  %v13038_v44 = vunpack.i.l.bf16 %v13037_v30  ;;  %v13052_v59 = vpop.permute.xlu0 %13051  ;;  %v21169_v40 = vld [vmem:[#allocation86_spill] sm:$0xff] }
 0xd3e   :  { %v7589_v4 = vmax.f32 %v7503_v48, 0.0  ;;  %13147 = vpow2.f32 %v1033_v24  ;;  %v1037_v18 = vmul.f32 1.442695, %v981_v17  ;;  %v21168_v48 = vld [vmem:[#allocation9_spill] sm:$0xff]  ;;  %v18979_v24 = vpop.eup %13139  ;;  %v21170_v56 = vld [vmem:[#allocation82_spill] sm:$0xff] }
 0xd3f   :  { %1113 = vrot.lane.b32.xlu1 %v18947_v45, %s13289_s7  ;;  %9550 = vmatmul.mubr.f32.gmra.mrb[170].mxu0 %v9061_v9  ;;  %v21166_v9 = vld [vmem:[#allocation143_spill] sm:$0xff]  ;;  %v5776_v5 = vadd.f32 %v21168_v48, %v21012_v33  ;;  %13149 = vpow2.f32 %v1031_v35  ;;  %v21171_v17 = vld [vmem:[#allocation14_spill] sm:$0xff]  ;;  %v18985_v19 = vpop.eup %13141 }
 0xd40   :  { %1111 = vrot.lane.b32.xlu0 %v18950_v8, %s13289_s7  ;;  %9554 = vmatprep.mubr.f32.mxu0 %v9094_v21  ;;  %v7508_v11 = vadd.f32 %v21166_v9, %v21012_v33  ;;  %v9095_v21 = vsel %vm538_vm9, %v7589_v4, %v13043_v60  ;;  %v5857_v9 = vmax.f32 %v5771_v42, 0.0  ;;  %v7513_v4 = vadd.f32 %v21171_v17, %v16898_v10  ;;  %v13047_v17 = vpop.permute.xlu1 %13046 }
 0xd41   :  { %13151 = vpow2.f32 %v1035_v49  ;;  %v13053_v42 = vunpack.i.l.bf16 %v13052_v59  ;;  %v5858_v48 = vmax.f32 %v5776_v5, 0.0  ;;  %v21173_v49 = vld [vmem:[#allocation13_spill] sm:$0xff] }
 0xd42   :  { %v7590_v60 = vmax.f32 %v7508_v11, 0.0  ;;  %v9063_v33 = vsel %vm538_vm9, %v5857_v9, %v13044_v6  ;;  %13153 = vpow2.f32 %v1037_v18  ;;  %v21172_v11 = vld [vmem:[#allocation106_spill] sm:$0xff]  ;;  %v7518_v6 = vadd.f32 %v21173_v49, %v16918_v15 }
 0xd43   :  { %1117 = vrot.lane.b32.xlu1 %v18963_v2, %s13289_s7  ;;  %9555 = vmatmul.mubr.f32.gmra.mrb[172].mxu0 %v9062_v46  ;;  %v982_v46 = vsub.f32 %v21170_v56, %v21169_v40  ;;  %v5781_v40 = vadd.f32 %v21172_v11, %v16898_v10  ;;  %v7591_v9 = vmax.f32 %v7513_v4, 0.0  ;;  %v13054_v18 = vunpack.i.h.bf16 %v13052_v59 }
 0xd44   :  { %1115 = vrot.lane.b32.xlu0 %v18968_v25, %s13289_s7  ;;  %9559 = vmatprep.mubr.f32.mxu0 %v9095_v21  ;;  %v9096_v35 = vsel %vm538_vm9, %v7590_v60, %v13038_v44  ;;  %v1041_v21 = vmul.f32 1.442695, %v983_v55  ;;  %v18999_v44 = vpop.eup %13143  ;;  %v9064_v55 = vsel %vm538_vm9, %v5858_v48, %v13039_v47  ;;  %v13048_v10 = vunpack.i.l.bf16 %v13047_v17  ;;  %v21174_v60 = vld [vmem:[#allocation10_spill] sm:$0xff]  ;;  %v21175_v48 = vld [vmem:[#allocation145_spill] sm:$0xff] }
 0xd45   :  { %v1039_v30 = vmul.f32 1.442695, %v982_v46  ;;  %v19002_v5 = vpop.eup %13145  ;;  %v9097_v46 = vsel %vm538_vm9, %v7591_v9, %v13053_v42  ;;  %v5786_v4 = vadd.f32 %v21174_v60, %v16918_v15  ;;  %v7592_v59 = vmax.f32 %v7518_v6, 0.0 }
 0xd46   :  { %13155 = vpow2.f32 %v1041_v21  ;;  %v7523_v11 = vadd.f32 %v21175_v48, %v16935_v62 }
 0xd47   :  { %1121 = vrot.lane.b32.xlu1 %v18985_v19, %s13289_s7  ;;  %9560 = vmatmul.mubr.f32.gmra.mrb[174].mxu0 %v9063_v33  ;;  %v984_v33 = vsub.f32 %v18611_v37, %v18754_v36  ;;  %v13062_v36 = vpop.permute.xlu0 %13061  ;;  %13157 = vpow2.f32 %v1039_v30  ;;  %v5860_v9 = vmax.f32 %v5786_v4, 0.0  ;;  %v21176_v30 = vld [vmem:[#allocation118_spill] sm:$0xff] }
 0xd48   :  { %1119 = vrot.lane.b32.xlu0 %v18979_v24, %s13289_s7  ;;  %9564 = vmatprep.mubr.f32.mxu0 %v9096_v35  ;;  %v5859_v35 = vmax.f32 %v5781_v40, 0.0  ;;  %v19011_v47 = vpop.eup %13147  ;;  %v13063_v15 = vunpack.i.l.bf16 %v13062_v36  ;;  %v9098_v40 = vsel %vm538_vm9, %v7592_v59, %v13048_v10  ;;  %v5791_v6 = vadd.f32 %v21176_v30, %v16935_v62  ;;  %v21179_v59 = vld [vmem:[#allocation11_spill] sm:$0xff] }
 0xd49   :  { %v1043_v49 = vmul.f32 1.442695, %v984_v33  ;;  %v19016_v21 = vpop.eup %13149  ;;  %v21177_v33 = vld [vmem:[#allocation146_spill] sm:$0xff]  ;;  %v7593_v60 = vmax.f32 %v7523_v11, 0.0  ;;  %v13064_v48 = vunpack.i.h.bf16 %v13062_v36  ;;  %v21180_v36 = vld [vmem:[#allocation15_spill] sm:$0xff] }
 0xd4a   :  { %v9065_v42 = vsel %vm538_vm9, %v5859_v35, %v13054_v18  ;;  %v7528_v18 = vadd.f32 %v21177_v33, %v16945_v50 }
 0xd4b   :  { %1125 = vrot.lane.b32.xlu1 %v18999_v44, %s13289_s7  ;;  %9565 = vmatmul.mubr.f32.gmra.mrb[176].mxu0 %v9064_v55  ;;  %v13049_v55 = vunpack.i.h.bf16 %v13047_v17  ;;  %v19025_v17 = vpop.eup %13151  ;;  %13159 = vpow2.f32 %v1043_v49  ;;  %v9099_v62 = vsel %vm538_vm9, %v7593_v60, %v13063_v15  ;;  %v13072_v30 = vpop.permute.xlu0 %13071  ;;  %v7533_v49 = vadd.f32 %v21180_v36, %v16955_v28 }
 0xd4c   :  { %1123 = vrot.lane.b32.xlu0 %v19002_v5, %s13289_s7  ;;  %9569 = vmatprep.mubr.f32.mxu0 %v9097_v46  ;;  %v13057_v46 = vpop.permute.xlu1 %13056  ;;  %v19029_v35 = vpop.eup %13153  ;;  %v7594_v11 = vmax.f32 %v7528_v18, 0.0  ;;  %v13073_v15 = vunpack.i.l.bf16 %v13072_v30  ;;  %v21182_v18 = vld [vmem:[#allocation123_spill] sm:$0xff]  ;;  %v13074_v36 = vunpack.i.h.bf16 %v13072_v30 }
 0xd4d   :  { %21178 = vst [vmem:[#allocation40_spill] sm:$0xff] %v19029_v35  ;;  %v9066_v10 = vsel %vm538_vm9, %v5860_v9, %v13049_v55  ;;  %v13058_v4 = vunpack.i.l.bf16 %v13057_v46  ;;  %v13059_v9 = vunpack.i.h.bf16 %v13057_v46  ;;  %v5801_v60 = vadd.f32 %v21182_v18, %v16955_v28 }
 0xd4e   :  { %v7595_v46 = vmax.f32 %v7533_v49, 0.0  ;;  %v21186_v49 = vld [vmem:[#allocation16_spill] sm:$0xff] }
 0xd4f   :  { %1129 = vrot.lane.b32.xlu1 %v19011_v47, %s13289_s7  ;;  %9570 = vmatmul.mubr.f32.gmra.mrb[178].mxu0 %v9065_v42  ;;  %v5796_v42 = vadd.f32 %v21179_v59, %v16945_v50  ;;  %v9100_v50 = vsel %vm538_vm9, %v7594_v11, %v13058_v4  ;;  %v21184_v59 = vld [vmem:[#allocation17_spill] sm:$0xff]  ;;  %v5863_v11 = vmax.f32 %v5801_v60, 0.0 }
 0xd50   :  { %1127 = vrot.lane.b32.xlu0 %v19016_v21, %s13289_s7  ;;  %9574 = vmatprep.mubr.f32.mxu0 %v9098_v40  ;;  %v5861_v40 = vmax.f32 %v5791_v6, 0.0  ;;  %v19041_v55 = vpop.eup %13155  ;;  %v9101_v28 = vsel %vm538_vm9, %v7595_v46, %v13073_v15  ;;  %v21187_v15 = vld [vmem:[#allocation128_spill] sm:$0xff] }
 0xd51   :  { %21181 = vst [vmem:[#allocation155_spill] sm:$0xff] %v19041_v55  ;;  %v5862_v6 = vmax.f32 %v5796_v42, 0.0  ;;  %v5811_v60 = vadd.f32 %v21187_v15, %v16974_v3  ;;  %v21188_v46 = vld [vmem:[#allocation148_spill] sm:$0xff] }
 0xd52   :  { %v9067_v33 = vsel %vm538_vm9, %v5861_v40, %v13064_v48  ;;  %v21183_v48 = vld [vmem:[#allocation12_spill] sm:$0xff]  ;;  %v7538_v40 = vadd.f32 %v21184_v59, %v16964_v32 }
 0xd53   :  { %1133 = vrot.lane.b32.xlu1 %v19029_v35, %s13289_s7  ;;  %9575 = vmatmul.mubr.f32.gmra.mrb[180].mxu0 %v9066_v10  ;;  %v19044_v10 = vpop.eup %13157 }
 0xd54   :  { %1131 = vrot.lane.b32.xlu0 %v19025_v17, %s13289_s7  ;;  %9579 = vmatprep.mubr.f32.mxu0 %v9099_v62  ;;  %v5806_v62 = vadd.f32 %v21183_v48, %v16964_v32  ;;  %v7543_v32 = vadd.f32 %v21186_v49, %v16974_v3  ;;  %v7596_v48 = vmax.f32 %v7538_v40, 0.0 }
 0xd55   :  { %v19058_v4 = vpop.eup %13159 }
 0xd56   :  { %21185 = vst [vmem:[#allocation87_spill] sm:$0xff] %v19058_v4  ;;  %v5864_v18 = vmax.f32 %v5806_v62, 0.0 }
 0xd57   :  { %1137 = vrot.lane.b32.xlu1 %v19041_v55, %s13289_s7  ;;  %9580 = vmatmul.mubr.f32.gmra.mrb[182].mxu0 %v9067_v33  ;;  %v9068_v33 = vsel %vm538_vm9, %v5862_v6, %v13059_v9  ;;  %v9069_v6 = vsel %vm538_vm9, %v5863_v11, %v13074_v36 }
 0xd58   :  { %1135 = vrot.lane.b32.xlu0 %v19044_v10, %s13289_s7  ;;  %9584 = vmatprep.mubr.f32.mxu0 %v9100_v50  ;;  %v13082_v50 = vpop.permute.xlu0 %13081 }
 0xd59   :  { %v13083_v59 = vunpack.i.l.bf16 %v13082_v50  ;;  %v13084_v40 = vunpack.i.h.bf16 %v13082_v50 }
 0xd5a   :  { %v947_v37 = vpop.xlane.xlu1 %946 }
 0xd5b   :  { %v985_v42 = vsub.f32 %v18720_v13, %v947_v37  ;;  %9585 = vmatmul.mubr.f32.gmra.mrb[184].mxu0 %v9068_v33  ;;  %v7597_v13 = vmax.f32 %v7543_v32, 0.0  ;;  %v21190_v32 = vld [vmem:[#allocation147_spill] sm:$0xff] }
 0xd5c   :  { %1139 = vrot.lane.b32.xlu0 %v19058_v4, %s13289_s7  ;;  %9589 = vmatprep.mubr.f32.mxu0 %v9101_v28  ;;  %v7548_v28 = vadd.f32 %v21188_v46, %v16986_v34  ;;  %v13092_v3 = vpop.permute.xlu0 %13091  ;;  %v7553_v46 = vadd.f32 %v21190_v32, %v16999_v16 }
 0xd5d   :  { %v1045_v30 = vmul.f32 1.442695, %v985_v42  ;;  %v9103_v11 = vsel %vm538_vm9, %v7597_v13, %v13083_v59  ;;  %v13093_v50 = vunpack.i.l.bf16 %v13092_v3  ;;  %v21191_v13 = vld [vmem:[#allocation134_spill] sm:$0xff] }
 0xd5e   :  { %v13067_v9 = vpop.permute.xlu1 %13066  ;;  %v7598_v15 = vmax.f32 %v7548_v28, 0.0  ;;  %v5821_v59 = vadd.f32 %v21191_v13, %v16999_v16  ;;  %v21194_v16 = vld [vmem:[#allocation61_spill] sm:$0xff] }
 0xd5f   :  { %13161 = vpow2.f32 %v1045_v30  ;;  %v13069_v37 = vunpack.i.h.bf16 %v13067_v9  ;;  %v13068_v33 = vunpack.i.l.bf16 %v13067_v9  ;;  %9590 = vmatmul.mubr.f32.gmra.mrb[186].mxu0 %v9069_v6  ;;  %v21189_v30 = vld [vmem:[#allocation88_spill] sm:$0xff]  ;;  %v5865_v6 = vmax.f32 %v5811_v60, 0.0  ;;  %v21193_v60 = vld [vmem:[#allocation21_spill] sm:$0xff] }
 0xd60   :  { %v5816_v9 = vadd.f32 %v21189_v30, %v16986_v34  ;;  %v7558_v28 = vadd.f32 %v21193_v60, %v17011_v0  ;;  %v5826_v30 = vadd.f32 %v21194_v16, %v17011_v0 }
 0xd61   :  { %v9102_v49 = vsel %vm538_vm9, %v7596_v48, %v13068_v33  ;;  %v9070_v62 = vsel %vm538_vm9, %v5864_v18, %v13069_v37  ;;  %v9071_v18 = vsel %vm538_vm9, %v5865_v6, %v13084_v40 }
 0xd62   :  { %v13077_v42 = vpop.permute.xlu1 %13076  ;;  %9594 = vmatprep.mubr.f32.mxu0 %v9102_v49  ;;  %v5866_v33 = vmax.f32 %v5816_v9, 0.0  ;;  %v5867_v9 = vmax.f32 %v5821_v59, 0.0  ;;  %v7600_v6 = vmax.f32 %v7558_v28, 0.0  ;;  %v5868_v13 = vmax.f32 %v5826_v30, 0.0  ;;  %v21197_v59 = vld [vmem:[#allocation20_spill] sm:$0xff] }
 0xd63   :  { %v13078_v36 = vunpack.i.l.bf16 %v13077_v42  ;;  %9595 = vmatmul.mubr.f32.gmra.mrb[188].mxu0 %v9070_v62  ;;  %v13079_v48 = vunpack.i.h.bf16 %v13077_v42  ;;  %v7599_v62 = vmax.f32 %v7553_v46, 0.0  ;;  %v7568_v60 = vadd.f32 %v21197_v59, %v17029_v22 }
 0xd64   :  { %9599 = vmatprep.mubr.f32.mxu0 %v9103_v11  ;;  %v13094_v11 = vunpack.i.h.bf16 %v13092_v3  ;;  %v21196_v3 = vld [vmem:[#allocation25_spill] sm:$0xff] }
 0xd65   :  { %v9104_v37 = vsel %vm538_vm9, %v7598_v15, %v13078_v36  ;;  %v9072_v40 = vsel %vm538_vm9, %v5866_v33, %v13079_v48  ;;  %v9105_v36 = vsel %vm538_vm9, %v7599_v62, %v13093_v50  ;;  %v21195_v15 = vld [vmem:[#allocation172_spill] sm:$0xff]  ;;  %v7563_v46 = vadd.f32 %v21196_v3, %v17019_v54 }
 0xd66   :  { %v13087_v49 = vpop.permute.xlu1 %13086  ;;  %v5831_v32 = vadd.f32 %v21195_v15, %v17019_v54  ;;  %v9073_v48 = vsel %vm538_vm9, %v5867_v9, %v13094_v11  ;;  %v21198_v9 = vld [vmem:[#allocation79_spill] sm:$0xff]  ;;  %v7602_v30 = vmax.f32 %v7568_v60, 0.0 }
 0xd67   :  { %9600 = vmatmul.mubr.f32.gmra.mrb[190].mxu0 %v9071_v18  ;;  %v13088_v42 = vunpack.i.l.bf16 %v13087_v49  ;;  %v13089_v18 = vunpack.i.h.bf16 %v13087_v49 }
 0xd68   :  { %9604 = vmatprep.mubr.f32.mxu0 %v9104_v37  ;;  %v5869_v62 = vmax.f32 %v5831_v32, 0.0 }
 0xd69   :  { %v19082_v34 = vpop.eup %13161  ;;  %v9106_v50 = vsel %vm538_vm9, %v7600_v6, %v13088_v42  ;;  %v9074_v54 = vsel %vm538_vm9, %v5868_v13, %v13089_v18  ;;  %v5836_v42 = vadd.f32 %v21198_v9, %v17029_v22 }
 0xd6a   :  { %21192 = vst [vmem:[#allocation39_spill] sm:$0xff] %v19082_v34  ;;  %1141 = vrot.lane.b32.xlu1 %v19082_v34, %s13289_s7  ;;  %v13097_v0 = vpop.permute.xlu1 %13096 }
 0xd6b   :  { %9605 = vmatmul.mubr.f32.gmra.mrb[192].mxu0 %v9072_v40  ;;  %v7601_v40 = vmax.f32 %v7563_v46, 0.0  ;;  %v13098_v49 = vunpack.i.l.bf16 %v13097_v0  ;;  %v13099_v3 = vunpack.i.h.bf16 %v13097_v0  ;;  %v5870_v46 = vmax.f32 %v5836_v42, 0.0 }
 0xd6c   :  { %9609 = vmatprep.mubr.f32.mxu0 %v9105_v36 }
 0xd6d   :  { %v9108_v32 = vsel %vm538_vm9, %v7602_v30, %v13098_v49  ;;  %v9076_v18 = vsel %vm538_vm9, %v5870_v46, %v13099_v3 }
 0xd6e   :  { %v950_v37 = vpop.xlane.xlu0 %949 }
 0xd6f   :  { %v986_v33 = vsub.f32 %v18740_v58, %v950_v37  ;;  %9610 = vmatmul.mubr.f32.gmra.mrb[194].mxu0 %v9073_v48 }
 0xd70   :  { %9614 = vmatprep.mubr.f32.mxu0 %v9106_v50 }
 0xd71   :  { %v1047_v28 = vmul.f32 1.442695, %v986_v33 }
 0xd72   :  { %v13102_v36 = vpop.permute.xlu0 %13101 }
 0xd73   :  { %13163 = vpow2.f32 %v1047_v28  ;;  %v13104_v11 = vunpack.i.h.bf16 %v13102_v36  ;;  %v13103_v16 = vunpack.i.l.bf16 %v13102_v36  ;;  %9615 = vmatmul.mubr.f32.gmra.mrb[196].mxu0 %v9074_v54 }
 0xd75   :  { %v9107_v6 = vsel %vm538_vm9, %v7601_v40, %v13103_v16  ;;  %v9075_v15 = vsel %vm538_vm9, %v5869_v62, %v13104_v11 }
 0xd76   :  { %9619 = vmatprep.mubr.f32.mxu0 %v9107_v6 }
 0xd77   :  { %9620 = vmatmul.mubr.f32.gmra.mrb[198].mxu0 %v9075_v15 }
 0xd78   :  { %9624 = vmatprep.mubr.f32.mxu0 %v9108_v32 }
 0xd7b   :  { %9625 = vmatmul.mubr.f32.gmra.mrb[200].mxu0 %v9076_v18 }
 0xd7d   :  { %v19108_v37 = vpop.eup %13163 }
 0xd7e   :  { %21199 = vst [vmem:[#allocation153_spill] sm:$0xff] %v19108_v37  ;;  %1143 = vrot.lane.b32.xlu0 %v19108_v37, %s13289_s7 }
 0xd9b   :  { %v953_v22 = vpop.xlane.xlu1 %952 }
 0xd9c   :  { %v987_v48 = vsub.f32 %v18760_v38, %v953_v22  ;;  %v19113_v33 = vpop.f32.mrb[138].mxu0 }
 0xd9d   :  { %v9473_v50 = vpop.f32.mrb[139].mxu0 }
 0xd9e   :  { %v1049_v13 = vmul.f32 1.442695, %v987_v48 }
 0xd9f   :  { %v1086_v40 = vpop.permute.xlu1 %1085 }
 0xda0   :  { %13165 = vpow2.f32 %v1049_v13  ;;  %v19115_v0 = vpop.f32.mrb[140].mxu0  ;;  %v1182_v48 = vsel %vm1181_vm0, %v1086_v40, 0.0 }
 0xda1   :  { %v9478_v59 = vpop.f32.mrb[141].mxu0 }
 0xda3   :  { %v956_v60 = vpop.xlane.xlu0 %955  ;;  %v1090_v9 = vpop.permute.xlu1 %1089 }
 0xda4   :  { %v988_v28 = vsub.f32 %v18781_v63, %v956_v60  ;;  %v19118_v62 = vpop.f32.mrb[142].mxu0 }
 0xda5   :  { %v9483_v36 = vpop.f32.mrb[143].mxu0 }
 0xda6   :  { %v1051_v54 = vmul.f32 1.442695, %v988_v28  ;;  %v1188_v28 = vsel %vm1181_vm0, %v1090_v9, 0.0 }
 0xda7   :  { %v1092_v42 = vpop.permute.xlu1 %1091  ;;  %v1088_v3 = vpop.permute.xlu0 %1087 }
 0xda8   :  { %13167 = vpow2.f32 %v1051_v54  ;;  %v19120_v49 = vpop.f32.mrb[144].mxu0  ;;  %v1185_v59 = vsel %vm1181_vm0, %v1088_v3, 0.0  ;;  %v1191_v38 = vsel %vm1181_vm0, %v1092_v42, 0.0 }
 0xda9   :  { %v9488_v11 = vpop.f32.mrb[145].mxu0 }
 0xdaa   :  { %v19122_v16 = vpop.eup %13165 }
 0xdab   :  { %21200 = vst [vmem:[#allocation95_spill] sm:$0xff] %v19122_v16  ;;  %1145 = vrot.lane.b32.xlu1 %v19122_v16, %s13289_s7  ;;  %v1094_v6 = vpop.permute.xlu1 %1093  ;;  %v1096_v46 = vpop.permute.xlu0 %1095 }
 0xdac   :  { %v1194_v60 = vsel %vm1181_vm0, %v1094_v6, 0.0  ;;  %v1197_v6 = vsel %vm1181_vm0, %v1096_v46, 0.0 }
 0xdaf   :  { %v1098_v15 = vpop.permute.xlu1 %1097  ;;  %v1100_v22 = vpop.permute.xlu0 %1099 }
 0xdb0   :  { %v1200_v54 = vsel %vm1181_vm0, %v1098_v15, 0.0  ;;  %v1203_v9 = vsel %vm1181_vm0, %v1100_v22, 0.0 }
 0xdb2   :  { %v19126_v30 = vpop.eup %13167 }
 0xdb3   :  { %21201 = vst [vmem:[#allocation42_spill] sm:$0xff] %v19126_v30  ;;  %1147 = vrot.lane.b32.xlu0 %v19126_v30, %s13289_s7  ;;  %v1102_v32 = vpop.permute.xlu1 %1101  ;;  %v1104_v13 = vpop.permute.xlu0 %1103 }
 0xdb4   :  { %v1206_v40 = vsel %vm1181_vm0, %v1102_v32, 0.0  ;;  %v1209_v32 = vsel %vm1181_vm0, %v1104_v13, 0.0 }
 0xdb7   :  { %v1106_v18 = vpop.permute.xlu1 %1105  ;;  %v1108_v11 = vpop.permute.xlu0 %1107 }
 0xdbb   :  { %v1110_v50 = vpop.permute.xlu1 %1109  ;;  %v1112_v3 = vpop.permute.xlu0 %1111 }
 0xdbc   :  { %v1221_v13 = vsel %vm1181_vm0, %v1112_v3, 0.0 }
 0xdbf   :  { %v1114_v36 = vpop.permute.xlu1 %1113 }
 0xdcf   :  { %1183 = vadd.xlane.f32.xlu1 %v1182_v48  ;;  %v1118_v48 = vpop.permute.xlu1 %1117 }
 0xdd2   :  { %1186 = vadd.xlane.f32.xlu0 %v1185_v59  ;;  %v1212_v59 = vsel %vm1181_vm0, %v1106_v18, 0.0 }
 0xdd3   :  { %1195 = vadd.xlane.f32.xlu1 %v1194_v60  ;;  %v1122_v15 = vpop.permute.xlu1 %1121  ;;  %v1218_v60 = vsel %vm1181_vm0, %v1110_v50, 0.0  ;;  %v1230_v50 = vsel %vm1181_vm0, %v1118_v48, 0.0 }
 0xdd6   :  { %1189 = vadd.xlane.f32.xlu0 %v1188_v28  ;;  %v1116_v28 = vpop.permute.xlu0 %1115 }
 0xdd7   :  { %1201 = vadd.xlane.f32.xlu1 %v1200_v54  ;;  %v1224_v54 = vsel %vm1181_vm0, %v1114_v36, 0.0  ;;  %v1126_v18 = vpop.permute.xlu1 %1125  ;;  %v1236_v36 = vsel %vm1181_vm0, %v1122_v15, 0.0 }
 0xdd8   :  { %v1242_v48 = vsel %vm1181_vm0, %v1126_v18, 0.0 }
 0xdda   :  { %1192 = vadd.xlane.f32.xlu0 %v1191_v38  ;;  %v1120_v22 = vpop.permute.xlu0 %1119 }
 0xddb   :  { %1207 = vadd.xlane.f32.xlu1 %v1206_v40 }
 0xdde   :  { %1198 = vadd.xlane.f32.xlu0 %v1197_v6  ;;  %v1215_v6 = vsel %vm1181_vm0, %v1108_v11, 0.0  ;;  %v1227_v11 = vsel %vm1181_vm0, %v1116_v28, 0.0 }
 0xddf   :  { %1213 = vadd.xlane.f32.xlu1 %v1212_v59 }
 0xde2   :  { %1204 = vadd.xlane.f32.xlu0 %v1203_v9  ;;  %v19141_v42 = vpop.f32.mrb[146].mxu0 }
 0xde3   :  { %1219 = vadd.xlane.f32.xlu1 %v1218_v60  ;;  %v9493_v38 = vpop.f32.mrb[147].mxu0  ;;  %v1130_v60 = vpop.permute.xlu1 %1129 }
 0xde4   :  { %v1124_v38 = vpop.permute.xlu0 %1123  ;;  %v1248_v15 = vsel %vm1181_vm0, %v1130_v60, 0.0 }
 0xde5   :  { %v1239_v28 = vsel %vm1181_vm0, %v1124_v38, 0.0 }
 0xde6   :  { %1210 = vadd.xlane.f32.xlu0 %v1209_v32  ;;  %v19145_v46 = vpop.f32.mrb[148].mxu0 }
 0xde7   :  { %1225 = vadd.xlane.f32.xlu1 %v1224_v54  ;;  %v9498_v40 = vpop.f32.mrb[149].mxu0 }
 0xde8   :  { %v1128_v3 = vpop.permute.xlu0 %1127 }
 0xdea   :  { %1216 = vadd.xlane.f32.xlu0 %v1215_v6  ;;  %v19149_v59 = vpop.f32.mrb[150].mxu0  ;;  %v1134_v6 = vpop.permute.xlu1 %1133 }
 0xdeb   :  { %1231 = vadd.xlane.f32.xlu1 %v1230_v50  ;;  %v9503_v9 = vpop.f32.mrb[151].mxu0 }
 0xdec   :  { %v1233_v9 = vsel %vm1181_vm0, %v1120_v22, 0.0  ;;  %v1132_v18 = vpop.permute.xlu0 %1131  ;;  %v1245_v22 = vsel %vm1181_vm0, %v1128_v3, 0.0 }
 0xdee   :  { %1222 = vadd.xlane.f32.xlu0 %v1221_v13  ;;  %v19153_v32 = vpop.f32.mrb[152].mxu0 }
 0xdef   :  { %1237 = vadd.xlane.f32.xlu1 %v1236_v36  ;;  %v9508_v54 = vpop.f32.mrb[153].mxu0 }
 0xdf0   :  { %v1138_v54 = vpop.permute.xlu1 %1137  ;;  %v1136_v38 = vpop.permute.xlu0 %1135 }
 0xdf1   :  { %v1260_v60 = vsel %vm1181_vm0, %v1138_v54, 0.0  ;;  %v1257_v3 = vsel %vm1181_vm0, %v1136_v38, 0.0 }
 0xdf2   :  { %1228 = vadd.xlane.f32.xlu0 %v1227_v11  ;;  %v19157_v40 = vpop.f32.mrb[154].mxu0  ;;  %v1254_v11 = vsel %vm1181_vm0, %v1134_v6, 0.0 }
 0xdf3   :  { %1243 = vadd.xlane.f32.xlu1 %v1242_v48  ;;  %v9513_v50 = vpop.f32.mrb[155].mxu0 }
 0xdf6   :  { %1234 = vadd.xlane.f32.xlu0 %v1233_v9  ;;  %v19161_v13 = vpop.f32.mrb[156].mxu0  ;;  %v1142_v9 = vpop.permute.xlu1 %1141 }
 0xdf7   :  { %1249 = vadd.xlane.f32.xlu1 %v1248_v15  ;;  %v9518_v36 = vpop.f32.mrb[157].mxu0  ;;  %v1266_v6 = vsel %vm1181_vm0, %v1142_v9, 0.0 }
 0xdf8   :  { %v1251_v36 = vsel %vm1181_vm0, %v1132_v18, 0.0 }
 0xdfa   :  { %1240 = vadd.xlane.f32.xlu0 %v1239_v28  ;;  %v19165_v63 = vpop.f32.mrb[158].mxu0 }
 0xdfb   :  { %1255 = vadd.xlane.f32.xlu1 %v1254_v11  ;;  %v9523_v48 = vpop.f32.mrb[159].mxu0 }
 0xdfc   :  { %v1140_v48 = vpop.permute.xlu0 %1139 }
 0xdfe   :  { %1246 = vadd.xlane.f32.xlu0 %v1245_v22  ;;  %v19169_v50 = vpop.f32.mrb[160].mxu0 }
 0xdff   :  { %1261 = vadd.xlane.f32.xlu1 %v1260_v60  ;;  %v9528_v15 = vpop.f32.mrb[161].mxu0  ;;  %v1263_v60 = vsel %vm1181_vm0, %v1140_v48, 0.0 }
 0xe00   :  { %v1144_v15 = vpop.permute.xlu0 %1143 }
 0xe01   :  { %v1269_v9 = vsel %vm1181_vm0, %v1144_v15, 0.0 }
 0xe02   :  { %1252 = vadd.xlane.f32.xlu0 %v1251_v36  ;;  %v19173_v28 = vpop.f32.mrb[162].mxu0 }
 0xe03   :  { %1267 = vadd.xlane.f32.xlu1 %v1266_v6  ;;  %v9533_v11 = vpop.f32.mrb[163].mxu0 }
 0xe06   :  { %1258 = vadd.xlane.f32.xlu0 %v1257_v3  ;;  %v19176_v54 = vpop.f32.mrb[164].mxu0 }
 0xe07   :  { %v9538_v22 = vpop.f32.mrb[165].mxu0 }
 0xe0a   :  { %1264 = vadd.xlane.f32.xlu0 %v1263_v60  ;;  %v19179_v16 = vpop.f32.mrb[166].mxu0 }
 0xe0b   :  { %v9543_v18 = vpop.f32.mrb[167].mxu0 }
 0xe0e   :  { %1270 = vadd.xlane.f32.xlu0 %v1269_v9  ;;  %v19182_v36 = vpop.f32.mrb[168].mxu0 }
 0xe0f   :  { %v9548_v6 = vpop.f32.mrb[169].mxu0 }
 0xe12   :  { %v19184_v11 = vpop.f32.mrb[170].mxu0 }
 0xe13   :  { %v9553_v38 = vpop.f32.mrb[171].mxu0 }
 0xe16   :  { %v19186_v3 = vpop.f32.mrb[172].mxu0 }
 0xe17   :  { %v9558_v30 = vpop.f32.mrb[173].mxu0 }
 0xe1a   :  { %v19188_v22 = vpop.f32.mrb[174].mxu0 }
 0xe1b   :  { %v9563_v48 = vpop.f32.mrb[175].mxu0 }
 0xe1c   :  { %v19201_v48 = vld [vmem:[%s19748_s9] ss:$0 sm:$0xff]  ;;  %s13290_s9 = smov 8  }
 0xe1d   :  { %v1146_v58 = vpop.permute.xlu1 %1145  ;;  %v12661_v55 = vadd.f32 %v19201_v48, %v19118_v62  ;;  %v12662_v56 = vadd.f32 %v19201_v48, %v19120_v49  ;;  %v9631_v62 = vld [vmem:[%s19749_s2 + $0x8] sm:$0xff]  ;;  %v9636_v49 = vld [vmem:[%s19749_s2 + $0x30] sm:$0xff] }
 0xe1e   :  { %v1272_v60 = vsel %vm1181_vm0, %v1146_v58, 0.0  ;;  %v19191_v34 = vpop.f32.mrb[176].mxu0  ;;  %v9630_v58 = vld [vmem:[%s19749_s2] sm:$0xff]  ;;  %vm9663_vm4 = vcmp.gt.f32.partialorder %v9631_v62, 0.5  ;;  %vm9668_vm5 = vcmp.gt.f32.partialorder %v9636_v49, 0.5 }
 0xe1f   :  { %1273 = vadd.xlane.f32.xlu1 %v1272_v60  ;;  %v9568_v15 = vpop.f32.mrb[177].mxu0  ;;  %vm9662_vm9 = vcmp.gt.f32.partialorder %v9630_v58, 0.5  ;;  %v9638_v62 = vld [vmem:[%s19749_s2 + $0x40] sm:$0xff] }
 0xe20   :  { %v12659_v15 = vadd.f32 %v19201_v48, %v19113_v33  ;;  %v9633_v33 = vld [vmem:[%s19749_s2 + $0x18] sm:$0xff]  ;;  %vm9670_vm7 = vcmp.gt.f32.partialorder %v9638_v62, 0.5  ;;  %v12668_v62 = vadd.f32 %v19201_v48, %v19161_v13  ;;  %v12671_v13 = vadd.f32 %v19201_v48, %v19173_v28 }
 0xe21   :  { %vm9665_vm2 = vcmp.gt.f32.partialorder %v9633_v33, 0.5  ;;  %v9635_v33 = vld [vmem:[%s19749_s2 + $0x28] sm:$0xff] }
 0xe22   :  { %v19193_v18 = vpop.f32.mrb[178].mxu0  ;;  %vm9667_vm6 = vcmp.gt.f32.partialorder %v9635_v33, 0.5  ;;  %v12666_v33 = vadd.f32 %v19201_v48, %v19153_v32  ;;  %v12669_v32 = vadd.f32 %v19201_v48, %v19165_v63 }
 0xe23   :  { %v9573_v9 = vpop.f32.mrb[179].mxu0 }
 0xe25   :  { %v1148_v6 = vpop.permute.xlu0 %1147 }
 0xe26   :  { %v1275_v37 = vsel %vm1181_vm0, %v1148_v6, 0.0  ;;  %v19196_v38 = vpop.f32.mrb[180].mxu0 }
 0xe27   :  { %1276 = vadd.xlane.f32.xlu0 %v1275_v37  ;;  %v9578_v30 = vpop.f32.mrb[181].mxu0  ;;  %v9632_v37 = vld [vmem:[%s19749_s2 + $0x10] sm:$0xff] }
 0xe28   :  { %v9694_v30 = vsel %vm9662_vm9, %v12659_v15, -1e+10  ;;  %vm9664_vm10 = vcmp.gt.f32.partialorder %v9632_v37, 0.5  ;;  %v9697_v37 = vsel %vm9665_vm2, %v12662_v56, -1e+10 }
 0xe2a   :  { %v19206_v60 = vpop.f32.mrb[182].mxu0 }
 0xe2b   :  { %v9583_v9 = vpop.f32.mrb[183].mxu0 }
 0xe2c   :  { %v9696_v9 = vsel %vm9664_vm10, %v12661_v55, -1e+10  ;;  %v12663_v55 = vadd.f32 %v19201_v48, %v19141_v42  ;;  %v12665_v42 = vadd.f32 %v19201_v48, %v19149_v59 }
 0xe2e   :  { %v19213_v6 = vpop.f32.mrb[184].mxu0 }
 0xe2f   :  { %v9588_v4 = vpop.f32.mrb[185].mxu0 }
 0xe30   :  { %9758 = vrot.lane.b32.xlu1 %v9694_v30, %s13290_s9  ;;  %v9634_v4 = vld [vmem:[%s19749_s2 + $0x20] sm:$0xff] }
 0xe31   :  { %vm9666_vm3 = vcmp.gt.f32.partialorder %v9634_v4, 0.5  ;;  %v12664_v4 = vadd.f32 %v19201_v48, %v19145_v46  ;;  %v12667_v46 = vadd.f32 %v19201_v48, %v19157_v40 }
 0xe32   :  { %v19221_v58 = vpop.f32.mrb[186].mxu0 }
 0xe33   :  { %v9593_v35 = vpop.f32.mrb[187].mxu0  ;;  %v9699_v49 = vsel %vm9667_vm6, %v12664_v4, -1e+10 }
 0xe34   :  { %9762 = vrot.lane.b32.xlu1 %v9696_v9, %s13290_s9  ;;  %v12660_v35 = vadd.f32 %v19201_v48, %v19115_v0  ;;  %v9698_v9 = vsel %vm9666_vm3, %v12663_v55, -1e+10  ;;  %v9700_v55 = vsel %vm9668_vm5, %v12665_v42, -1e+10  ;;  %v9639_v42 = vld [vmem:[%s19749_s2 + $0x48] sm:$0xff] }
 0xe35   :  { %vm9671_vm12 = vcmp.gt.f32.partialorder %v9639_v42, 0.5  ;;  %v9643_v42 = vld [vmem:[%s19749_s2 + $0x68] sm:$0xff] }
 0xe36   :  { %v19232_v15 = vpop.f32.mrb[188].mxu0  ;;  %v9695_v0 = vsel %vm9663_vm4, %v12660_v35, -1e+10  ;;  %vm9675_vm1 = vcmp.gt.f32.partialorder %v9643_v42, 0.5 }
 0xe37   :  { %v9598_v30 = vpop.f32.mrb[189].mxu0 }
 0xe38   :  { %9764 = vrot.lane.b32.xlu1 %v9697_v37, %s13290_s9  ;;  %v9637_v37 = vld [vmem:[%s19749_s2 + $0x38] sm:$0xff] }
 0xe39   :  { %vm9669_vm8 = vcmp.gt.f32.partialorder %v9637_v37, 0.5  ;;  %v9642_v37 = vld [vmem:[%s19749_s2 + $0x60] sm:$0xff] }
 0xe3a   :  { %v19245_v56 = vpop.f32.mrb[190].mxu0  ;;  %v9701_v4 = vsel %vm9669_vm8, %v12666_v33, -1e+10  ;;  %v12670_v33 = vadd.f32 %v19201_v48, %v19169_v50  ;;  %vm9674_vm13 = vcmp.gt.f32.partialorder %v9642_v37, 0.5  ;;  %v12673_v50 = vadd.f32 %v19201_v48, %v19179_v16  ;;  %v9645_v37 = vld [vmem:[%s19749_s2 + $0x78] sm:$0xff] }
 0xe3b   :  { %v9603_v30 = vpop.f32.mrb[191].mxu0  ;;  %vm9677_vm9 = vcmp.gt.f32.partialorder %v9645_v37, 0.5 }
 0xe3c   :  { %9766 = vrot.lane.b32.xlu1 %v9698_v9, %s13290_s9  ;;  %v9640_v9 = vld [vmem:[%s19749_s2 + $0x50] sm:$0xff]  ;;  %v9702_v30 = vsel %vm9670_vm7, %v12667_v46, -1e+10 }
 0xe3d   :  { %9760 = vrot.lane.b32.xlu0 %v9695_v0, %s13290_s9  ;;  %vm9672_vm11 = vcmp.gt.f32.partialorder %v9640_v9, 0.5  ;;  %v9644_v9 = vld [vmem:[%s19749_s2 + $0x70] sm:$0xff] }
 0xe3e   :  { %v19259_v59 = vpop.f32.mrb[192].mxu0  ;;  %v9704_v46 = vsel %vm9672_vm11, %v12669_v32, -1e+10  ;;  %vm9676_vm15 = vcmp.gt.f32.partialorder %v9644_v9, 0.5  ;;  %v12677_v9 = vadd.f32 %v19201_v48, %v19188_v22  ;;  %v12679_v22 = vadd.f32 %v19201_v48, %v19193_v18 }
 0xe3f   :  { %v9608_v35 = vpop.f32.mrb[193].mxu0  ;;  %v12681_v18 = vadd.f32 %v19201_v48, %v19206_v60  ;;  %v9653_v60 = vld [vmem:[%s19749_s2 + $0xb8] sm:$0xff] }
 0xe40   :  { %9770 = vrot.lane.b32.xlu1 %v9700_v55, %s13290_s9  ;;  %v9641_v55 = vld [vmem:[%s19749_s2 + $0x58] sm:$0xff]  ;;  %vm9685_vm8 = vcmp.gt.f32.partialorder %v9653_v60, 0.5 }
 0xe41   :  { %9768 = vrot.lane.b32.xlu0 %v9699_v49, %s13290_s9  ;;  %v9703_v49 = vsel %vm9671_vm12, %v12668_v62, -1e+10  ;;  %vm9673_vm14 = vcmp.gt.f32.partialorder %v9641_v55, 0.5  ;;  %v9646_v62 = vld [vmem:[%s19749_s2 + $0x80] sm:$0xff]  ;;  %v9708_v55 = vsel %vm9676_vm15, %v12673_v50, -1e+10 }
 0xe42   :  { %v19273_v40 = vpop.f32.mrb[194].mxu0  ;;  %vm9678_vm0 = vcmp.gt.f32.partialorder %v9646_v62, 0.5  ;;  %v9649_v50 = vld [vmem:[%s19749_s2 + $0x98] sm:$0xff]  ;;  %v9651_v62 = vld [vmem:[%s19749_s2 + $0xa8] sm:$0xff] }
 0xe43   :  { %v9613_v0 = vpop.f32.mrb[195].mxu0  ;;  %vm9681_vm4 = vcmp.gt.f32.partialorder %v9649_v50, 0.5  ;;  %vm9683_vm6 = vcmp.gt.f32.partialorder %v9651_v62, 0.5  ;;  %v12684_v50 = vadd.f32 %v19201_v48, %v19232_v15  ;;  %v12686_v62 = vadd.f32 %v19201_v48, %v19259_v59 }
 0xe44   :  { %9774 = vrot.lane.b32.xlu1 %v9702_v30, %s13290_s9  ;;  %v9706_v30 = vsel %vm9674_vm13, %v12671_v13, -1e+10  ;;  %v9705_v0 = vsel %vm9673_vm14, %v12670_v33, -1e+10  ;;  %v9647_v33 = vld [vmem:[%s19749_s2 + $0x88] sm:$0xff] }
 0xe45   :  { %9772 = vrot.lane.b32.xlu0 %v9701_v4, %s13290_s9  ;;  %v12672_v4 = vadd.f32 %v19201_v48, %v19176_v54  ;;  %v12675_v54 = vadd.f32 %v19201_v48, %v19184_v11  ;;  %vm9679_vm2 = vcmp.gt.f32.partialorder %v9647_v33, 0.5  ;;  %v12682_v33 = vadd.f32 %v19201_v48, %v19213_v6 }
 0xe46   :  { %v19287_v63 = vpop.f32.mrb[196].mxu0  ;;  %v12685_v6 = vadd.f32 %v19201_v48, %v19245_v56 }
 0xe47   :  { %v9618_v35 = vpop.f32.mrb[197].mxu0  ;;  %v9707_v13 = vsel %vm9675_vm1, %v12672_v4, -1e+10  ;;  %v9710_v11 = vsel %vm9678_vm0, %v12675_v54, -1e+10  ;;  %v9652_v4 = vld [vmem:[%s19749_s2 + $0xb0] sm:$0xff] }
 0xe48   :  { %9778 = vrot.lane.b32.xlu1 %v9704_v46, %s13290_s9  ;;  %v12674_v35 = vadd.f32 %v19201_v48, %v19182_v36  ;;  %v12676_v36 = vadd.f32 %v19201_v48, %v19186_v3  ;;  %v12678_v3 = vadd.f32 %v19201_v48, %v19191_v34  ;;  %v12680_v34 = vadd.f32 %v19201_v48, %v19196_v38 }
 0xe49   :  { %9776 = vrot.lane.b32.xlu0 %v9703_v49, %s13290_s9  ;;  %v9648_v49 = vld [vmem:[%s19749_s2 + $0x90] sm:$0xff]  ;;  %vm9684_vm5 = vcmp.gt.f32.partialorder %v9652_v4, 0.5  ;;  %v12683_v38 = vadd.f32 %v19201_v48, %v19221_v58  ;;  %v9655_v58 = vld [vmem:[%s19749_s2 + $0xc8] sm:$0xff] }
 0xe4a   :  { %v19301_v28 = vpop.f32.mrb[198].mxu0  ;;  %v9709_v42 = vsel %vm9677_vm9, %v12674_v35, -1e+10  ;;  %vm9680_vm10 = vcmp.gt.f32.partialorder %v9648_v49, 0.5  ;;  %v9715_v49 = vsel %vm9683_vm6, %v12680_v34, -1e+10 }
 0xe4b   :  { %v9623_v32 = vpop.f32.mrb[199].mxu0  ;;  %vm9687_vm12 = vcmp.gt.f32.partialorder %v9655_v58, 0.5  ;;  %vm9854_vm9 = vcmask 39936  }
 0xe4c   :  { %9782 = vrot.lane.b32.xlu1 %v9706_v30, %s13290_s9  ;;  %v9650_v30 = vld [vmem:[%s19749_s2 + $0xa0] sm:$0xff]  ;;  %v9712_v32 = vsel %vm9680_vm10, %v12677_v9, -1e+10  ;;  %v9656_v9 = vld [vmem:[%s19749_s2 + $0xd0] sm:$0xff]  ;;  %v9719_v4 = vsel %vm9687_vm12, %v12684_v50, -1e+10 }
 0xe4d   :  { %9780 = vrot.lane.b32.xlu0 %v9705_v0, %s13290_s9  ;;  %v9711_v0 = vsel %vm9679_vm2, %v12676_v36, -1e+10  ;;  %vm9682_vm3 = vcmp.gt.f32.partialorder %v9650_v30, 0.5  ;;  %v9717_v30 = vsel %vm9685_vm8, %v12682_v33, -1e+10  ;;  %vm9688_vm11 = vcmp.gt.f32.partialorder %v9656_v9, 0.5 }
 0xe4e   :  { %v19315_v16 = vpop.f32.mrb[200].mxu0  ;;  %v9714_v37 = vsel %vm9682_vm3, %v12679_v22, -1e+10  ;;  %v9657_v22 = vld [vmem:[%s19749_s2 + $0xd8] sm:$0xff]  ;;  %vm9887_vm10 = vcmask 64512   ;;  %vm9920_vm2 = vcmask 130048  }
 0xe4f   :  { %v9628_v46 = vpop.f32.mrb[201].mxu0  ;;  %vm9689_vm14 = vcmp.gt.f32.partialorder %v9657_v22, 0.5 }
 0xe50   :  { %9786 = vrot.lane.b32.xlu1 %v9708_v55, %s13290_s9  ;;  %v9713_v55 = vsel %vm9681_vm4, %v12678_v3, -1e+10  ;;  %v9654_v46 = vld [vmem:[%s19749_s2 + $0xc0] sm:$0xff]  ;;  %v12687_v3 = vadd.f32 %v19201_v48, %v19273_v40  ;;  %v9721_v59 = vsel %vm9689_vm14, %v12686_v62, -1e+10 }
 0xe51   :  { %9784 = vrot.lane.b32.xlu0 %v9707_v13, %s13290_s9  ;;  %v9716_v13 = vsel %vm9684_vm5, %v12681_v18, -1e+10  ;;  %vm9686_vm7 = vcmp.gt.f32.partialorder %v9654_v46, 0.5  ;;  %v9659_v18 = vld [vmem:[%s19749_s2 + $0xe8] sm:$0xff]  ;;  %v12688_v46 = vadd.f32 %v19201_v48, %v19287_v63 }
 0xe52   :  { %vm9691_vm1 = vcmp.gt.f32.partialorder %v9659_v18, 0.5 }
 0xe53   :  { %v9723_v33 = vsel %vm9691_vm1, %v12688_v46, -1e+10 }
 0xe54   :  { %9790 = vrot.lane.b32.xlu1 %v9710_v11, %s13290_s9 }
 0xe55   :  { %9788 = vrot.lane.b32.xlu0 %v9709_v42, %s13290_s9  ;;  %v9718_v42 = vsel %vm9686_vm7, %v12683_v38, -1e+10 }
 0xe58   :  { %9794 = vrot.lane.b32.xlu1 %v9712_v32, %s13290_s9  ;;  %v9658_v32 = vld [vmem:[%s19749_s2 + $0xe0] sm:$0xff] }
 0xe59   :  { %9792 = vrot.lane.b32.xlu0 %v9711_v0, %s13290_s9  ;;  %v9720_v0 = vsel %vm9688_vm11, %v12685_v6, -1e+10  ;;  %vm9690_vm13 = vcmp.gt.f32.partialorder %v9658_v32, 0.5 }
 0xe5a   :  { %v9722_v40 = vsel %vm9690_vm13, %v12687_v3, -1e+10 }
 0xe5c   :  { %v19357_v54 = vpop.xlane.xlu1 %1183  ;;  %9798 = vrot.lane.b32.xlu1 %v9714_v37, %s13290_s9  ;;  %v9660_v37 = vld [vmem:[%s19749_s2 + $0xf0] sm:$0xff] }
 0xe5d   :  { %9796 = vrot.lane.b32.xlu0 %v9713_v55, %s13290_s9  ;;  %v12689_v55 = vadd.f32 %v19201_v48, %v19301_v28  ;;  %vm9692_vm15 = vcmp.gt.f32.partialorder %v9660_v37, 0.5  ;;  %v12690_v28 = vadd.f32 %v19201_v48, %v19315_v16  ;;  %13169 = vrcp.f32 %v19357_v54 }
 0xe5f   :  { %v19369_v35 = vpop.xlane.xlu0 %1186  ;;  %v9724_v38 = vsel %vm9692_vm15, %v12689_v55, -1e+10 }
 0xe60   :  { %v19373_v11 = vpop.xlane.xlu1 %1195  ;;  %9802 = vrot.lane.b32.xlu1 %v9716_v13, %s13290_s9  ;;  %v9661_v13 = vld [vmem:[%s19749_s2 + $0xf8] sm:$0xff] }
 0xe61   :  { %9800 = vrot.lane.b32.xlu0 %v9715_v49, %s13290_s9  ;;  %vm9693_vm0 = vcmp.gt.f32.partialorder %v9661_v13, 0.5 }
 0xe62   :  { %v9725_v9 = vsel %vm9693_vm0, %v12690_v28, -1e+10 }
 0xe63   :  { %v1190_v36 = vpop.xlane.xlu0 %1189 }
 0xe64   :  { %9806 = vrot.lane.b32.xlu1 %v9718_v42, %s13290_s9  ;;  %v1202_v56 = vpop.xlane.xlu1 %1201  ;;  %13171 = vrcp.f32 %v1190_v36 }
 0xe65   :  { %9804 = vrot.lane.b32.xlu0 %v9717_v30, %s13290_s9  ;;  %13173 = vrcp.f32 %v19369_v35 }
 0xe67   :  { %v1193_v15 = vpop.xlane.xlu0 %1192  ;;  %v13170_v46 = vpop.eup %13169 }
 0xe68   :  { %9810 = vrot.lane.b32.xlu1 %v9720_v0, %s13290_s9  ;;  %v1208_v60 = vpop.xlane.xlu1 %1207  ;;  %13175 = vrcp.f32 %v1193_v15  ;;  %v1279_v54 = vmul.f32 %v13170_v46, %v18813_v27 }
 0xe69   :  { %9808 = vrot.lane.b32.xlu0 %v9719_v4, %s13290_s9  ;;  %13177 = vrcp.f32 %v19373_v11 }
 0xe6a   :  { %v9855_v15 = vsel %vm9854_vm9, %v21085_v7, %v1279_v54 }
 0xe6b   :  { %v1199_v34 = vpop.xlane.xlu0 %1198 }
 0xe6c   :  { %9814 = vrot.lane.b32.xlu1 %v9722_v40, %s13290_s9  ;;  %v1214_v63 = vpop.xlane.xlu1 %1213  ;;  %13179 = vrcp.f32 %v1199_v34 }
 0xe6d   :  { %9812 = vrot.lane.b32.xlu0 %v9721_v59, %s13290_s9  ;;  %13181 = vrcp.f32 %v1202_v56 }
 0xe6f   :  { %v1205_v49 = vpop.xlane.xlu0 %1204 }
 0xe70   :  { %9818 = vrot.lane.b32.xlu1 %v9724_v38, %s13290_s9  ;;  %v19421_v42 = vpop.xlane.xlu1 %1219  ;;  %13183 = vrcp.f32 %v1205_v49 }
 0xe71   :  { %9816 = vrot.lane.b32.xlu0 %v9723_v33, %s13290_s9  ;;  %v13172_v33 = vpop.eup %13171  ;;  %13185 = vrcp.f32 %v1208_v60 }
 0xe72   :  { %v13174_v35 = vpop.eup %13173  ;;  %v1283_v28 = vmul.f32 %v13172_v33, %v18829_v39 }
 0xe73   :  { %v1211_v58 = vpop.xlane.xlu0 %1210  ;;  %v13176_v34 = vpop.eup %13175  ;;  %v1281_v46 = vmul.f32 %v13174_v35, %v18860_v41 }
 0xe74   :  { %v19423_v30 = vpop.xlane.xlu1 %1225  ;;  %13187 = vrcp.f32 %v1211_v58  ;;  %v13178_v27 = vpop.eup %13177  ;;  %v9857_v49 = vsel %vm9854_vm9, %v21089_v31, %v1283_v28  ;;  %v1285_v39 = vmul.f32 %v13176_v34, %v18843_v57 }
 0xe75   :  { %9820 = vrot.lane.b32.xlu0 %v9725_v9, %s13290_s9  ;;  %13189 = vrcp.f32 %v1214_v63  ;;  %v9856_v33 = vsel %vm9854_vm9, %v21102_v51, %v1281_v46 }
 0xe76   :  { %v13180_v54 = vpop.eup %13179  ;;  %v9858_v41 = vsel %vm9854_vm9, %v21095_v14, %v1285_v39 }
 0xe77   :  { %v1217_v6 = vpop.xlane.xlu0 %1216  ;;  %v13182_v58 = vpop.eup %13181  ;;  %v1289_v57 = vmul.f32 %v13180_v54, %v18871_v1 }
 0xe78   :  { %v19427_v32 = vpop.xlane.xlu1 %1231  ;;  %13191 = vrcp.f32 %v1217_v6  ;;  %v1291_v34 = vmul.f32 %v13182_v58, %v18877_v29  ;;  %v21204_v58 = vld [vmem:[#allocation196_spill] sm:$0xff] }
 0xe79   :  { %13193 = vrcp.f32 %v19421_v42  ;;  %v9860_v51 = vsel %vm9854_vm9, %v21105_v12, %v1289_v57 }
 0xe7a   :  { %v13184_v63 = vpop.eup %13183 }
 0xe7b   :  { %v19425_v50 = vpop.xlane.xlu0 %1222  ;;  %v13186_v14 = vpop.eup %13185  ;;  %v1293_v6 = vmul.f32 %v13184_v63, %v18896_v52  ;;  %v21202_v52 = vld [vmem:[#allocation192_spill] sm:$0xff] }
 0xe7c   :  { %v19431_v16 = vpop.xlane.xlu1 %1237  ;;  %13195 = vrcp.f32 %v19425_v50  ;;  %v1295_v46 = vmul.f32 %v13186_v14, %v18893_v53  ;;  %v21203_v53 = vld [vmem:[#allocation177_spill] sm:$0xff] }
 0xe7d   :  { %13197 = vrcp.f32 %v19423_v30  ;;  %v9862_v12 = vsel %vm9854_vm9, %v21114_v43, %v1293_v6  ;;  %v9861_v30 = vsel %vm9854_vm9, %v21202_v52, %v1291_v34  ;;  %v21209_v6 = vld [vmem:[#allocation92_spill] sm:$0xff] }
 0xe7f   :  { %v19429_v48 = vpop.xlane.xlu0 %1228 }
 0xe80   :  { %v19435_v0 = vpop.xlane.xlu1 %1243  ;;  %13199 = vrcp.f32 %v19429_v48 }
 0xe81   :  { %13201 = vrcp.f32 %v19427_v32  ;;  %v9863_v32 = vsel %vm9854_vm9, %v21204_v58, %v1295_v46 }
 0xe83   :  { %v19433_v22 = vpop.xlane.xlu0 %1234 }
 0xe84   :  { %v19439_v4 = vpop.xlane.xlu1 %1249  ;;  %13203 = vrcp.f32 %v19433_v22 }
 0xe85   :  { %13205 = vrcp.f32 %v19431_v16 }
 0xe87   :  { %v19437_v3 = vpop.xlane.xlu0 %1240 }
 0xe88   :  { %v19443_v37 = vpop.xlane.xlu1 %1255  ;;  %13207 = vrcp.f32 %v19437_v3  ;;  %v21210_v3 = vld [vmem:[#allocation180_spill] sm:$0xff] }
 0xe89   :  { %13209 = vrcp.f32 %v19435_v0 }
 0xe8b   :  { %v19441_v62 = vpop.xlane.xlu0 %1246 }
 0xe8c   :  { %v19448_v40 = vpop.xlane.xlu1 %1261  ;;  %13211 = vrcp.f32 %v19441_v62 }
 0xe8d   :  { %13213 = vrcp.f32 %v19439_v4 }
 0xe8f   :  { %v19445_v18 = vpop.xlane.xlu0 %1252 }
 0xe90   :  { %v19453_v59 = vpop.xlane.xlu1 %1267  ;;  %13215 = vrcp.f32 %v19445_v18 }
 0xe91   :  { %13217 = vrcp.f32 %v19443_v37 }
 0xe93   :  { %v19450_v55 = vpop.xlane.xlu0 %1258 }
 0xe97   :  { %v19456_v13 = vpop.xlane.xlu0 %1264 }
 0xe9b   :  { %v19461_v36 = vpop.xlane.xlu0 %1270 }
 0xeac   :  { %v19458_v38 = vpop.xlane.xlu1 %1273 }
 0xeb0   :  { %v9759_v11 = vpop.permute.xlu1 %9758 }
 0xeb1   :  { %v9888_v9 = vsel %vm9887_vm10, %v9855_v15, %v9759_v11  ;;  %v1287_v15 = vmul.f32 %v13178_v27, %v18855_v61 }
 0xeb2   :  { %9921 = vst.msk [vmem:[%s19750_s10] sm:$0xff] %vm9920_vm2, %v9888_v9  ;;  %v13188_v9 = vpop.eup %13187  ;;  %13219 = vrcp.f32 %v19450_v55 }
 0xeb3   :  { %v9859_v1 = vsel %vm9854_vm9, %v21099_v20, %v1287_v15  ;;  %v13190_v20 = vpop.eup %13189  ;;  %13221 = vrcp.f32 %v19448_v40 }
 0xeb4   :  { %v19471_v56 = vpop.xlane.xlu0 %1276  ;;  %v9763_v7 = vpop.permute.xlu1 %9762 }
 0xeb5   :  { %v9890_v60 = vsel %vm9887_vm10, %v9857_v49, %v9763_v7  ;;  %v1297_v7 = vmul.f32 %v13188_v9, %v18914_v26  ;;  %v13192_v39 = vpop.eup %13191  ;;  %13223 = vrcp.f32 %v19456_v13 }
 0xeb6   :  { %9923 = vst.msk [vmem:[%s19750_s10 + $0x10] sm:$0xff] %vm9920_vm2, %v9890_v60  ;;  %v13194_v43 = vpop.eup %13193  ;;  %13225 = vrcp.f32 %v19453_v59 }
 0xeb7   :  { %v9864_v26 = vsel %vm9854_vm9, %v21203_v53, %v1297_v7  ;;  %v13196_v15 = vpop.eup %13195  ;;  %v1303_v34 = vmul.f32 %v13194_v43, %v21209_v6  ;;  %13227 = vrcp.f32 %v19461_v36 }
 0xeb8   :  { %v9761_v31 = vpop.permute.xlu0 %9760  ;;  %v9765_v35 = vpop.permute.xlu1 %9764 }
 0xeb9   :  { %v9889_v11 = vsel %vm9887_vm10, %v9856_v33, %v9761_v31  ;;  %v9891_v28 = vsel %vm9887_vm10, %v9858_v41, %v9765_v35  ;;  %v21205_v31 = vld [vmem:[#allocation205_spill] sm:$0xff]  ;;  %v21206_v35 = vld [vmem:[#allocation84_spill] sm:$0xff]  ;;  %v13198_v22 = vpop.eup %13197  ;;  %13229 = vrcp.f32 %v19458_v38 }
 0xeba   :  { %9922 = vst.msk [vmem:[%s19750_s10 + $0x8] sm:$0xff] %vm9920_vm2, %v9889_v11  ;;  %9924 = vst.msk [vmem:[%s19750_s10 + $0x18] sm:$0xff] %vm9920_vm2, %v9891_v28  ;;  %v1301_v41 = vmul.f32 %v13192_v39, %v21205_v31  ;;  %v1299_v57 = vmul.f32 %v13190_v20, %v21206_v35  ;;  %v21207_v28 = vld [vmem:[#allocation179_spill] sm:$0xff]  ;;  %v13200_v9 = vpop.eup %13199  ;;  %v21215_v31 = vld [vmem:[#allocation204_spill] sm:$0xff]  ;;  %13231 = vrcp.f32 %v19471_v56 }
 0xebb   :  { %v21222_v56 = vld [vmem:[#allocation82_spill] sm:$0xff] }
 0xebc   :  { %v9769_v61 = vpop.permute.xlu0 %9768  ;;  %v9767_v42 = vpop.permute.xlu1 %9766  ;;  %v9866_v14 = vsel %vm9854_vm9, %v21207_v28, %v1301_v41  ;;  %v21217_v28 = vld [vmem:[#allocation35_spill] sm:$0xff] }
 0xebd   :  { %v9893_v27 = vsel %vm9887_vm10, %v9860_v51, %v9769_v61  ;;  %v9892_v49 = vsel %vm9887_vm10, %v9859_v1, %v9767_v42  ;;  %v21208_v61 = vld [vmem:[#allocation199_spill] sm:$0xff]  ;;  %v1305_v42 = vmul.f32 %v13196_v15, %v18950_v8  ;;  %v13202_v8 = vpop.eup %13201 }
 0xebe   :  { %9926 = vst.msk [vmem:[%s19750_s10 + $0x28] sm:$0xff] %vm9920_vm2, %v9893_v27  ;;  %9925 = vst.msk [vmem:[%s19750_s10 + $0x20] sm:$0xff] %vm9920_vm2, %v9892_v49  ;;  %v9865_v16 = vsel %vm9854_vm9, %v21208_v61, %v1299_v57  ;;  %v13204_v7 = vpop.eup %13203 }
 0xebf   :  { %v9868_v20 = vsel %vm9854_vm9, %v21210_v3, %v1305_v42  ;;  %v1313_v53 = vmul.f32 %v13204_v7, %v18979_v24  ;;  %v21214_v24 = vld [vmem:[#allocation185_spill] sm:$0xff] }
 0xec0   :  { %v9773_v29 = vpop.permute.xlu0 %9772  ;;  %v9771_v50 = vpop.permute.xlu1 %9770 }
 0xec1   :  { %v9895_v54 = vsel %vm9887_vm10, %v9862_v12, %v9773_v29  ;;  %v9894_v60 = vsel %vm9887_vm10, %v9861_v30, %v9771_v50  ;;  %v21211_v29 = vld [vmem:[#allocation200_spill] sm:$0xff]  ;;  %v1309_v30 = vmul.f32 %v13200_v9, %v18968_v25  ;;  %v1307_v50 = vmul.f32 %v13198_v22, %v18947_v45  ;;  %v13206_v45 = vpop.eup %13205  ;;  %v21212_v25 = vld [vmem:[#allocation183_spill] sm:$0xff] }
 0xec2   :  { %9928 = vst.msk [vmem:[%s19750_s10 + $0x38] sm:$0xff] %vm9920_vm2, %v9895_v54  ;;  %9927 = vst.msk [vmem:[%s19750_s10 + $0x30] sm:$0xff] %vm9920_vm2, %v9894_v60  ;;  %v9867_v0 = vsel %vm9854_vm9, %v21211_v29, %v1303_v34  ;;  %v21213_v60 = vld [vmem:[#allocation34_spill] sm:$0xff]  ;;  %v9872_v18 = vsel %vm9854_vm9, %v21214_v24, %v1313_v53  ;;  %v1315_v57 = vmul.f32 %v13206_v45, %v18985_v19  ;;  %v21219_v34 = vld [vmem:[#allocation36_spill] sm:$0xff] }
 0xec3   :  { %v9870_v62 = vsel %vm9854_vm9, %v21212_v25, %v1309_v30  ;;  %v9869_v4 = vsel %vm9854_vm9, %v21213_v60, %v1307_v50  ;;  %v21223_v45 = vld [vmem:[#allocation76_spill] sm:$0xff] }
 0xec4   :  { %v9777_v48 = vpop.permute.xlu0 %9776  ;;  %v9775_v33 = vpop.permute.xlu1 %9774  ;;  %v9873_v40 = vsel %vm9854_vm9, %v21217_v28, %v1315_v57 }
 0xec5   :  { %v9897_v63 = vsel %vm9887_vm10, %v9864_v26, %v9777_v48  ;;  %v9896_v11 = vsel %vm9887_vm10, %v9863_v32, %v9775_v33  ;;  %v1311_v26 = vmul.f32 %v13202_v8, %v18963_v2  ;;  %v13208_v48 = vpop.eup %13207 }
 0xec6   :  { %9930 = vst.msk [vmem:[%s19750_s10 + $0x48] sm:$0xff] %vm9920_vm2, %v9897_v63  ;;  %9929 = vst.msk [vmem:[%s19750_s10 + $0x40] sm:$0xff] %vm9920_vm2, %v9896_v11  ;;  %v13210_v2 = vpop.eup %13209  ;;  %v1317_v35 = vmul.f32 %v13208_v48, %v19002_v5  ;;  %v21216_v5 = vld [vmem:[#allocation187_spill] sm:$0xff] }
 0xec7   :  { %v9871_v37 = vsel %vm9854_vm9, %v21215_v31, %v1311_v26  ;;  %v13212_v15 = vpop.eup %13211  ;;  %v1319_v61 = vmul.f32 %v13210_v2, %v18999_v44 }
 0xec8   :  { %v9781_v51 = vpop.permute.xlu0 %9780  ;;  %v9779_v1 = vpop.permute.xlu1 %9778  ;;  %v9874_v55 = vsel %vm9854_vm9, %v21216_v5, %v1317_v35  ;;  %v21229_v35 = vld [vmem:[#allocation39_spill] sm:$0xff] }
 0xec9   :  { %v9899_v27 = vsel %vm9887_vm10, %v9866_v14, %v9781_v51  ;;  %v9898_v49 = vsel %vm9887_vm10, %v9865_v16, %v9779_v1  ;;  %v13214_v19 = vpop.eup %13213  ;;  %v1321_v51 = vmul.f32 %v13212_v15, %v19016_v21  ;;  %v21218_v21 = vld [vmem:[#allocation191_spill] sm:$0xff]  ;;  %v9875_v59 = vsel %vm9854_vm9, %v21219_v34, %v1319_v61 }
 0xeca   :  { %9932 = vst.msk [vmem:[%s19750_s10 + $0x58] sm:$0xff] %vm9920_vm2, %v9899_v27  ;;  %9931 = vst.msk [vmem:[%s19750_s10 + $0x50] sm:$0xff] %vm9920_vm2, %v9898_v49  ;;  %v13216_v16 = vpop.eup %13215  ;;  %v1323_v49 = vmul.f32 %v13214_v19, %v19011_v47  ;;  %v21230_v19 = vld [vmem:[#allocation89_spill] sm:$0xff]  ;;  %v21233_v61 = vld [vmem:[#allocation95_spill] sm:$0xff] }
 0xecb   :  { %v13218_v44 = vpop.eup %13217  ;;  %v9876_v13 = vsel %vm9854_vm9, %v21218_v21, %v1321_v51  ;;  %v1325_v27 = vmul.f32 %v13216_v16, %v19025_v17 }
 0xecc   :  { %v9785_v12 = vpop.permute.xlu0 %9784  ;;  %v9783_v52 = vpop.permute.xlu1 %9782 }
 0xecd   :  { %v9901_v46 = vsel %vm9887_vm10, %v9868_v20, %v9785_v12  ;;  %v9900_v39 = vsel %vm9887_vm10, %v9867_v0, %v9783_v52  ;;  %v13220_v8 = vpop.eup %13219  ;;  %v9878_v17 = vsel %vm9854_vm9, %v21162_v23, %v1325_v27  ;;  %v21220_v12 = vld [vmem:[#allocation37_spill] sm:$0xff]  ;;  %v21221_v52 = vld [vmem:[#allocation40_spill] sm:$0xff] }
 0xece   :  { %9934 = vst.msk [vmem:[%s19750_s10 + $0x68] sm:$0xff] %vm9920_vm2, %v9901_v46  ;;  %9933 = vst.msk [vmem:[%s19750_s10 + $0x60] sm:$0xff] %vm9920_vm2, %v9900_v39  ;;  %v13222_v47 = vpop.eup %13221  ;;  %v9877_v38 = vsel %vm9854_vm9, %v21220_v12, %v1323_v49  ;;  %v1329_v0 = vmul.f32 %v13220_v8, %v19044_v10  ;;  %v1327_v30 = vmul.f32 %v13218_v44, %v21221_v52  ;;  %v21234_v44 = vld [vmem:[#allocation154_spill] sm:$0xff] }
 0xecf   :  { %v13224_v50 = vpop.eup %13223 }
 0xed0   :  { %v9789_v54 = vpop.permute.xlu0 %9788  ;;  %v9787_v43 = vpop.permute.xlu1 %9786  ;;  %v9880_v10 = vsel %vm9854_vm9, %v21222_v56, %v1329_v0  ;;  %v9879_v25 = vsel %vm9854_vm9, %v21223_v45, %v1327_v30 }
 0xed1   :  { %v9903_v58 = vsel %vm9887_vm10, %v9870_v62, %v9789_v54  ;;  %v9902_v32 = vsel %vm9887_vm10, %v9869_v4, %v9787_v43  ;;  %v13226_v23 = vpop.eup %13225  ;;  %v21224_v54 = vld [vmem:[#allocation87_spill] sm:$0xff] }
 0xed2   :  { %9936 = vst.msk [vmem:[%s19750_s10 + $0x78] sm:$0xff] %vm9920_vm2, %v9903_v58  ;;  %9935 = vst.msk [vmem:[%s19750_s10 + $0x70] sm:$0xff] %vm9920_vm2, %v9902_v32  ;;  %v1333_v60 = vmul.f32 %v13224_v50, %v21224_v54  ;;  %v21225_v4 = vld [vmem:[#allocation155_spill] sm:$0xff]  ;;  %v13228_v53 = vpop.eup %13227  ;;  %v21226_v32 = vld [vmem:[#allocation81_spill] sm:$0xff]  ;;  %v1335_v57 = vmul.f32 %v13226_v23, %v21229_v35 }
 0xed3   :  { %v1331_v43 = vmul.f32 %v13222_v47, %v21225_v4  ;;  %v13230_v58 = vpop.eup %13229 }
 0xed4   :  { %v9793_v33 = vpop.permute.xlu0 %9792  ;;  %v9791_v41 = vpop.permute.xlu1 %9790  ;;  %v9882_v2 = vsel %vm9854_vm9, %v21226_v32, %v1333_v60  ;;  %v1339_v16 = vmul.f32 %v13230_v58, %v21233_v61 }
 0xed5   :  { %v9905_v63 = vsel %vm9887_vm10, %v9872_v18, %v9793_v33  ;;  %v9904_v11 = vsel %vm9887_vm10, %v9871_v37, %v9791_v41  ;;  %v21227_v18 = vld [vmem:[#allocation74_spill] sm:$0xff]  ;;  %v21228_v37 = vld [vmem:[#allocation153_spill] sm:$0xff]  ;;  %v13232_v15 = vpop.eup %13231 }
 0xed6   :  { %9938 = vst.msk [vmem:[%s19750_s10 + $0x88] sm:$0xff] %vm9920_vm2, %v9905_v63  ;;  %9937 = vst.msk [vmem:[%s19750_s10 + $0x80] sm:$0xff] %vm9920_vm2, %v9904_v11  ;;  %v9881_v33 = vsel %vm9854_vm9, %v21227_v18, %v1331_v43  ;;  %v1337_v41 = vmul.f32 %v13228_v53, %v21228_v37 }
 0xed8   :  { %v9797_v22 = vpop.permute.xlu0 %9796  ;;  %v9795_v14 = vpop.permute.xlu1 %9794  ;;  %v9884_v5 = vsel %vm9854_vm9, %v21230_v19, %v1337_v41 }
 0xed9   :  { %v9907_v1 = vsel %vm9887_vm10, %v9874_v55, %v9797_v22  ;;  %v9906_v42 = vsel %vm9887_vm10, %v9873_v40, %v9795_v14  ;;  %v21231_v22 = vld [vmem:[#allocation33_spill] sm:$0xff]  ;;  %v21232_v14 = vld [vmem:[#allocation42_spill] sm:$0xff] }
 0xeda   :  { %9940 = vst.msk [vmem:[%s19750_s10 + $0x98] sm:$0xff] %vm9920_vm2, %v9907_v1  ;;  %9939 = vst.msk [vmem:[%s19750_s10 + $0x90] sm:$0xff] %vm9920_vm2, %v9906_v42  ;;  %v9883_v28 = vsel %vm9854_vm9, %v21231_v22, %v1335_v57  ;;  %v1341_v51 = vmul.f32 %v13232_v15, %v21232_v14 }
 0xedc   :  { %v9801_v6 = vpop.permute.xlu0 %9800  ;;  %v9799_v9 = vpop.permute.xlu1 %9798  ;;  %v9886_v21 = vsel %vm9854_vm9, %v21234_v44, %v1341_v51 }
 0xedd   :  { %v9909_v3 = vsel %vm9887_vm10, %v9876_v13, %v9801_v6  ;;  %v9908_v20 = vsel %vm9887_vm10, %v9875_v59, %v9799_v9  ;;  %v21235_v6 = vld [vmem:[#allocation206_spill] sm:$0xff] }
 0xede   :  { %9942 = vst.msk [vmem:[%s19750_s10 + $0xa8] sm:$0xff] %vm9920_vm2, %v9909_v3  ;;  %9941 = vst.msk [vmem:[%s19750_s10 + $0xa0] sm:$0xff] %vm9920_vm2, %v9908_v20  ;;  %v9885_v34 = vsel %vm9854_vm9, %v21235_v6, %v1339_v16 }
 0xee0   :  { %v9805_v36 = vpop.permute.xlu0 %9804  ;;  %v9803_v29 = vpop.permute.xlu1 %9802 }
 0xee1   :  { %v9911_v7 = vsel %vm9887_vm10, %v9878_v17, %v9805_v36  ;;  %v9910_v46 = vsel %vm9887_vm10, %v9877_v38, %v9803_v29 }
 0xee2   :  { %9944 = vst.msk [vmem:[%s19750_s10 + $0xb8] sm:$0xff] %vm9920_vm2, %v9911_v7  ;;  %9943 = vst.msk [vmem:[%s19750_s10 + $0xb0] sm:$0xff] %vm9920_vm2, %v9910_v46 }
 0xee4   :  { %v9809_v39 = vpop.permute.xlu0 %9808  ;;  %v9807_v62 = vpop.permute.xlu1 %9806 }
 0xee5   :  { %v9913_v26 = vsel %vm9887_vm10, %v9880_v10, %v9809_v39  ;;  %v9912_v48 = vsel %vm9887_vm10, %v9879_v25, %v9807_v62 }
 0xee6   :  { %9946 = vst.msk [vmem:[%s19750_s10 + $0xc8] sm:$0xff] %vm9920_vm2, %v9913_v26  ;;  %9945 = vst.msk [vmem:[%s19750_s10 + $0xc0] sm:$0xff] %vm9920_vm2, %v9912_v48 }
 0xee8   :  { %v9813_v24 = vpop.permute.xlu0 %9812  ;;  %v9811_v31 = vpop.permute.xlu1 %9810 }
 0xee9   :  { %v9915_v63 = vsel %vm9887_vm10, %v9882_v2, %v9813_v24  ;;  %v9914_v11 = vsel %vm9887_vm10, %v9881_v33, %v9811_v31 }
 0xeea   :  { %9948 = vst.msk [vmem:[%s19750_s10 + $0xd8] sm:$0xff] %vm9920_vm2, %v9915_v63  ;;  %9947 = vst.msk [vmem:[%s19750_s10 + $0xd0] sm:$0xff] %vm9920_vm2, %v9914_v11 }
 0xeec   :  { %v9817_v55 = vpop.permute.xlu0 %9816  ;;  %v9815_v40 = vpop.permute.xlu1 %9814 }
 0xeed   :  { %v9917_v1 = vsel %vm9887_vm10, %v9884_v5, %v9817_v55  ;;  %v9916_v42 = vsel %vm9887_vm10, %v9883_v28, %v9815_v40 }
 0xeee   :  { %9950 = vst.msk [vmem:[%s19750_s10 + $0xe8] sm:$0xff] %vm9920_vm2, %v9917_v1  ;;  %9949 = vst.msk [vmem:[%s19750_s10 + $0xe0] sm:$0xff] %vm9920_vm2, %v9916_v42 }
 0xef0   :  { %v9821_v13 = vpop.permute.xlu0 %9820  ;;  %v9819_v59 = vpop.permute.xlu1 %9818 }
 0xef1   :  { %v9919_v9 = vsel %vm9887_vm10, %v9886_v21, %v9821_v13  ;;  %v9918_v27 = vsel %vm9887_vm10, %v9885_v34, %v9819_v59 }
 0xef2   :  { %9952 = vst.msk [vmem:[%s19750_s10 + $0xf8] sm:$0xff] %vm9920_vm2, %v9919_v9  ;;  %9951 = vst.msk [vmem:[%s19750_s10 + $0xf0] sm:$0xff] %vm9920_vm2, %v9918_v27 }

</bundles_post_ra>
